<compile_context>
chip_gen: v5e
topology: v5e:2x2
jax: 0.10.0
libtpu: 0.0.40
codegen_flags: <defaults>
</compile_context>

<pallas_src>
import math
import functools

import jax
import jax.numpy as jnp
from jax.experimental import pallas as pl
from jax.experimental.pallas import tpu as pltpu

BN_EPS = 1e-5
ACT_DTYPE = jnp.bfloat16       # activation / weight storage dtype (f32 accumulate)
TILE_M = 512                   # max grouped rows per grid step
VMEM_LIMIT = 32 * 1024 * 1024  # tiles are ~0.3-1.2 MiB; safe on v5e/v6e/v7x
CONV1_CIN = 8                  # conv1 input channels zero-padded 3 -> 8 (K 8-aligned)
LANE = 128                     # lane width target for folded outputs
FC_PAD = 128                   # FC output lanes padded 10 -> 128
HEAD_ROWS = 8                  # pooled-matmul rows padded to a full sublane group


def _round_up(x, m):
    return (x + m - 1) // m * m


def _ceil_div(a, b):
    return -(-a // b)


# ----------------------------- Pallas kernels ------------------------------

def _mm_kernel(*refs, has_res, has_mask):
    """relu?((A @ W_blockdiag) + bias [+ residual]) on one (tm, 128) tile."""
    it = iter(refs)
    a_ref = next(it)
    w_ref = next(it)
    b_ref = next(it)
    r_ref = next(it) if has_res else None
    m_ref = next(it) if has_mask else None
    o_ref = next(it)

    y = jnp.dot(a_ref[...], w_ref[...], preferred_element_type=jnp.float32)
    y = y + b_ref[...]
    if has_res:
        y = y + r_ref[...].astype(jnp.float32)
    if has_mask:
        # mask = 0.0 on ReLU columns, 1.0 on identity columns:
        #   max(y, y*0) = relu(y),  max(y, y*1) = y      (2 VPU ops, no iota)
        y = jnp.maximum(y, y * m_ref[...])
    else:
        y = jnp.maximum(y, 0.0)
    o_ref[...] = y.astype(o_ref.dtype)


def _head_kernel(x_ref, w_ref, b_ref, o_ref):
    # AvgPool2d(8) over the full 8x8 map; the 1/(H*W) factor is folded into w,
    # so a plain spatial sum feeds the FC matmul (rows padded to 8 outside).
    pooled = jnp.sum(x_ref[...].astype(jnp.float32), axis=1)              # (Bp, C)
    o_ref[...] = (jnp.dot(pooled, w_ref[...], preferred_element_type=jnp.float32)
                  + b_ref[...])


# --------------------------- Pallas call wrappers ---------------------------

def fused_matmul_bias(a, w_bd, bias2, mask=None, *, q, n, residual=None):
    """Lane-folded conv matmul.

    a:        (M, K) im2col patches (bf16)
    w_bd:     (q*K, q*N) block-diagonal folded-BN weight (bf16), q*N >= 128
    bias2:    (1, q*N) f32 (bias tiled q times)
    mask:     optional (1, q*N) f32 ReLU column mask (0 = relu, 1 = identity)
    residual: optional (M, N) bf16 added before the ReLU
    returns:  (M, N) bf16
    """
    M, K = a.shape
    qK, qN = w_bd.shape

    # --- group q consecutive rows -> one kernel row (lane-dense fold) --------
    Mq = _round_up(M, q)
    if Mq != M:
        a = jnp.pad(a, ((0, Mq - M), (0, 0)))
        if residual is not None:
            residual = jnp.pad(residual, ((0, Mq - M), (0, 0)))
    Mg = Mq // q
    ag = a.reshape(Mg, qK)
    rg = residual.reshape(Mg, qN) if residual is not None else None

    # --- tile policy: >= 2 grid steps (v7x megacore + pipelining), tm % 16 ---
    tm = min(TILE_M, _round_up(_ceil_div(Mg, 2), 16))
    Mp = _round_up(Mg, tm)
    if Mp != Mg:
        ag = jnp.pad(ag, ((0, Mp - Mg), (0, 0)))
        if rg is not None:
            rg = jnp.pad(rg, ((0, Mp - Mg), (0, 0)))

    in_specs = [
        pl.BlockSpec((tm, qK), lambda i: (i, 0)),   # A: streamed / double-buffered
        pl.BlockSpec((qK, qN), lambda i: (0, 0)),   # W: VMEM-resident (BN folded)
        pl.BlockSpec((1, qN), lambda i: (0, 0)),    # bias: VMEM-resident
    ]
    inputs = [ag, w_bd, bias2]
    has_res = rg is not None
    has_mask = mask is not None
    if has_res:
        in_specs.append(pl.BlockSpec((tm, qN), lambda i: (i, 0)))
        inputs.append(rg)
    if has_mask:
        in_specs.append(pl.BlockSpec((1, qN), lambda i: (0, 0)))
        inputs.append(mask)

    kernel = functools.partial(_mm_kernel, has_res=has_res, has_mask=has_mask)
    bytes_accessed = sum(int(v.size) * v.dtype.itemsize for v in inputs) + Mp * qN * 2

    out = pl.pallas_call(
        kernel,
        out_shape=jax.ShapeDtypeStruct((Mp, qN), ACT_DTYPE),
        grid=(Mp // tm,),
        in_specs=in_specs,
        out_specs=pl.BlockSpec((tm, qN), lambda i: (i, 0)),
        compiler_params=pltpu.CompilerParams(
            dimension_semantics=("parallel",),
            vmem_limit_bytes=VMEM_LIMIT,
        ),
        cost_estimate=pl.CostEstimate(flops=2 * Mp * qK * qN, transcendentals=0,
                                      bytes_accessed=int(bytes_accessed)),
    )(*inputs)

    # un-fold back to (M, N): pure row-major reshape, absorbed by XLA glue
    out = out[:Mg].reshape(Mq, n)
    if Mq != M:
        out = out[:M]
    return out


def head_avgpool_fc(x_bhwc, w, b):
    """AvgPool2d(8) + Linear head; 1/(H*W) folded into w; w padded to 128 lanes."""
    B, H, W, C = x_bhwc.shape
    Bp = _round_up(max(B, HEAD_ROWS), 8)
    if Bp != B:
        x_bhwc = jnp.pad(x_bhwc, ((0, Bp - B), (0, 0), (0, 0), (0, 0)))
    x = x_bhwc.reshape(Bp, H * W, C)
    vmem = pl.BlockSpec(memory_space=pltpu.MemorySpace.VMEM)
    # TODO(synk): block over B if batch ever grows large (unblocked VMEM load here).
    return pl.pallas_call(
        _head_kernel,
        out_shape=jax.ShapeDtypeStruct((Bp, w.shape[1]), jnp.float32),
        in_specs=[vmem, vmem, vmem],
        out_specs=vmem,
        compiler_params=pltpu.CompilerParams(vmem_limit_bytes=VMEM_LIMIT),
    )(x, w, b.reshape(1, -1))


# ------------------------------ JAX glue ------------------------------------

def im2col(x, kh, kw, stride, pad):
    """x: (B,H,W,C) NHWC -> (B*Ho*Wo, kh*kw*C) patches (tap-major, channel-minor)."""
    B, H, W, C = x.shape
    xp = jnp.pad(x, ((0, 0), (pad, pad), (pad, pad), (0, 0)))
    Ho = (H + 2 * pad - kh) // stride + 1
    Wo = (W + 2 * pad - kw) // stride + 1
    cols = []
    for i in range(kh):
        for j in range(kw):
            cols.append(xp[:, i:i + stride * Ho:stride, j:j + stride * Wo:stride, :])
    patches = jnp.concatenate(cols, axis=-1)
    return patches.reshape(B * Ho * Wo, kh * kw * C), Ho, Wo


def conv_bn(x, cp, *, ksize, stride, pad, residual=None):
    """Conv (im2col + lane-folded Pallas matmul) fused with bias/residual/ReLU."""
    B = x.shape[0]
    patches, Ho, Wo = im2col(x, ksize, ksize, stride, pad)
    M, K = patches.shape
    q = cp['w'].shape[0] // K
    n = cp['w'].shape[1] // q
    res_flat = None
    if residual is not None:
        res_flat = residual.reshape(M, residual.shape[-1])
    out = fused_matmul_bias(patches, cp['w'], cp['b'], cp.get('m'),
                            residual=res_flat, q=q, n=n)
    return out.reshape(B, Ho, Wo, n)


def basic_block_forward(x, bp):
    if 'c1d' in bp:
        # conv1(3x3,s2)+bn1+relu and downsample 1x1(s2)+bn fused into one matmul
        # over shared im2col patches; ReLU masked to the conv1 half of the columns.
        both = conv_bn(x, bp['c1d'], ksize=3, stride=2, pad=1)
        planes = both.shape[-1] // 2
        out = both[..., :planes]
        identity = both[..., planes:]
    else:
        out = conv_bn(x, bp['c1'], ksize=3, stride=1, pad=1)
        identity = x
    # conv2 + bn2 + residual add + relu, fused in one Pallas call
    out = conv_bn(out, bp['c2'], ksize=3, stride=1, pad=1, residual=identity)
    return out


def resnet_cifar_forward(params, x_nchw, *, num_classes):
    B = x_nchw.shape[0]
    x = jnp.transpose(x_nchw, (0, 2, 3, 1)).astype(ACT_DTYPE)      # NCHW -> NHWC bf16
    x = jnp.pad(x, ((0, 0), (0, 0), (0, 0), (0, CONV1_CIN - x.shape[-1])))
    x = conv_bn(x, params['conv1'], ksize=3, stride=1, pad=1)
    for li in (1, 2, 3):
        for bp in params[f'layer{li}']:
            x = basic_block_forward(x, bp)
    logits = head_avgpool_fc(x, params['fc_w'], params['fc_b'])     # (Bp, 128)
    return logits[:B, :num_classes]


# ---------------------------- parameter init --------------------------------

def _conv_weight(key, kh, kw, cin, cout, cin_pad=None):
    # PyTorch init: normal(0, sqrt(2 / (kh*kw*cout)))
    std = math.sqrt(2.0 / (kh * kw * cout))
    w = std * jax.random.normal(key, (kh, kw, cin, cout), jnp.float32)
    if cin_pad is not None and cin_pad > cin:
        w = jnp.pad(w, ((0, 0), (0, 0), (0, cin_pad - cin), (0, 0)))
    return w


def _bn_scale_bias(c):
    # eval-mode BN with PyTorch init state: gamma=1, beta=0, mean=0, var=1
    gamma = jnp.ones((c,), jnp.float32)
    beta = jnp.zeros((c,), jnp.float32)
    mean = jnp.zeros((c,), jnp.float32)
    var = jnp.ones((c,), jnp.float32)
    scale = gamma / jnp.sqrt(var + BN_EPS)
    bias = beta - mean * scale
    return scale, bias


def _fold(w_khwcio, scale):
    """Fold BN scale into output channels, flatten to im2col layout (f32 (K,N))."""
    w = w_khwcio * scale[None, None, None, :]
    kh, kw, cin, cout = w.shape
    return w.reshape(kh * kw * cin, cout)


def _embed_1x1_center(w_1x1, cin, cout):
    """Place a (1,1,cin,cout) kernel at the center tap of a 3x3 im2col weight."""
    w = jnp.zeros((3, 3, cin, cout), jnp.float32)
    return w.at[1, 1].set(w_1x1[0, 0])


def _lane_fold_factor(n):
    return max(1, LANE // n) if LANE % n == 0 else 1


def _block_diag(w_kn, q):
    """(K,N) -> block-diagonal (q*K, q*N); group r multiplies patch row r of a group."""
    K, N = w_kn.shape
    if q == 1:
        return w_kn
    out = jnp.zeros((q * K, q * N), w_kn.dtype)
    for r in range(q):
        out = out.at[r * K:(r + 1) * K, r * N:(r + 1) * N].set(w_kn)
    return out


def _pack_conv(w_kn, bias_n, relu_cols=None):
    """Lane-dense packing: block-diag weight (bf16), tiled bias / ReLU mask (f32)."""
    K, N = w_kn.shape
    q = _lane_fold_factor(N)
    packed = {
        'w': _block_diag(w_kn, q).astype(ACT_DTYPE),
        'b': jnp.tile(bias_n, q).reshape(1, q * N).astype(jnp.float32),
    }
    if relu_cols is not None and relu_cols < N:
        m = jnp.concatenate([jnp.zeros((relu_cols,), jnp.float32),
                             jnp.ones((N - relu_cols,), jnp.float32)])
        packed['m'] = jnp.tile(m, q).reshape(1, q * N)
    return packed


def init_params(key, layers=(1, 1, 1), num_classes=10):
    keys = iter(jax.random.split(key, 128))
    p = {}
    # stem conv1 (3x3, 3->16), input channels zero-padded to CONV1_CIN
    w = _conv_weight(next(keys), 3, 3, 3, 16, cin_pad=CONV1_CIN)
    s, b = _bn_scale_bias(16)
    p['conv1'] = _pack_conv(_fold(w, s), b)

    inplanes = 16
    for li, (planes, stride, nblocks) in enumerate(
            zip((16, 32, 64), (1, 2, 2), layers), start=1):
        blocks = []
        for bi in range(nblocks):
            s_ = stride if bi == 0 else 1
            bp = {}
            w1 = _conv_weight(next(keys), 3, 3, inplanes, planes)
            s1, b1 = _bn_scale_bias(planes)
            w2 = _conv_weight(next(keys), 3, 3, planes, planes)
            s2, b2 = _bn_scale_bias(planes)
            bp['c2'] = _pack_conv(_fold(w2, s2), b2)
            if s_ != 1 or inplanes != planes:
                # fuse conv1+bn1 (ReLU'd half) with 1x1 downsample+bn (identity half)
                wd = _conv_weight(next(keys), 1, 1, inplanes, planes)
                sd, bd = _bn_scale_bias(planes)
                wd3 = _embed_1x1_center(wd, inplanes, planes)
                w1d = jnp.concatenate([_fold(w1, s1), _fold(wd3, sd)], axis=1)
                b1d = jnp.concatenate([b1, bd], axis=0)
                bp['c1d'] = _pack_conv(w1d, b1d, relu_cols=planes)
            else:
                bp['c1'] = _pack_conv(_fold(w1, s1), b1)
            inplanes = planes
            blocks.append(bp)
        p[f'layer{li}'] = blocks

    # FC head (64 -> num_classes), PyTorch Linear default uniform init.
    # AvgPool2d(8) mean over the 8x8 map folded in as 1/64; output padded to 128.
    bound = 1.0 / math.sqrt(64)
    fc_w = jax.random.uniform(next(keys), (64, num_classes), jnp.float32, -bound, bound)
    fc_b = jax.random.uniform(next(keys), (num_classes,), jnp.float32, -bound, bound)
    fc_w = fc_w / 64.0
    p['fc_w'] = jnp.pad(fc_w, ((0, 0), (0, FC_PAD - num_classes)))
    p['fc_b'] = jnp.pad(fc_b, ((0, FC_PAD - num_classes),))
    return p


# --------------------------------- main --------------------------------------

if __name__ == "__main__":
    key = jax.random.PRNGKey(0)
    pkey, xkey = jax.random.split(key)
    params = init_params(pkey, layers=(1, 1, 1), num_classes=10)
    # PyTorch-style NCHW CIFAR input (32x32 so AvgPool2d(8) sees an 8x8 map)
    x = jax.random.normal(xkey, (2, 3, 32, 32), jnp.float32)

    forward = jax.jit(functools.partial(resnet_cifar_forward, num_classes=10))
    out = forward(params, x)
    out = jax.block_until_ready(out)
    assert out.shape == (2, 10) and out.dtype == jnp.float32
    print("KERNEL_OK")
</pallas_src>

<mosaic_0001>
module attributes {stable_mosaic.version = 11 : i64} {
  func.func @_mm_kernel(%arg0: i32, %arg1: memref<128x576xbf16, #tpu.memory_space<vmem>>, %arg2: memref<576x128xbf16, #tpu.memory_space<vmem>>, %arg3: memref<1x128xf32, #tpu.memory_space<vmem>>, %arg4: memref<128x128xbf16, #tpu.memory_space<vmem>>) attributes {dimension_semantics = [#tpu.dimension_semantics<parallel>], iteration_bounds = array<i64: 2>, scalar_prefetch = 0 : i64, scratch_operands = 0 : i64, tpu.core_type = #tpu.core_type<tc>, window_params = [{transform_indices = @transform_0, window_bounds = array<i64: 128, 576>}, {pipeline_mode = #tpu.pipeline_mode<synchronous>, transform_indices = @transform_1, window_bounds = array<i64: 576, 128>}, {pipeline_mode = #tpu.pipeline_mode<synchronous>, transform_indices = @transform_2, window_bounds = array<i64: 1, 128>}, {transform_indices = @transform_3, window_bounds = array<i64: 128, 128>}]} {
    %c0 = arith.constant 0 : index
    %c0_0 = arith.constant 0 : index
    %0 = vector.load %arg1[%c0, %c0_0] : memref<128x576xbf16, #tpu.memory_space<vmem>>, vector<128x576xbf16>
    %c0_1 = arith.constant 0 : index
    %c0_2 = arith.constant 0 : index
    %1 = vector.load %arg2[%c0_1, %c0_2] : memref<576x128xbf16, #tpu.memory_space<vmem>>, vector<576x128xbf16>
    %cst = arith.constant dense<0.000000e+00> : vector<128x128xf32>
    %2 = tpu.matmul %0, %1, %cst {dimension_numbers = #tpu.dot_dimension_numbers<[1], [0], [0], [1], [0, 0, 1, 1], [], []>} : vector<128x576xbf16>, vector<576x128xbf16>, vector<128x128xf32> -> vector<128x128xf32>
    %c0_3 = arith.constant 0 : index
    %c0_4 = arith.constant 0 : index
    %3 = vector.load %arg3[%c0_3, %c0_4] : memref<1x128xf32, #tpu.memory_space<vmem>>, vector<1x128xf32>
    %4 = vector.broadcast %3 : vector<1x128xf32> to vector<128x128xf32>
    %5 = arith.addf %2, %4 : vector<128x128xf32>
    %cst_5 = arith.constant 0.000000e+00 : f32
    %6 = vector.broadcast %cst_5 : f32 to vector<128x128xf32>
    %7 = arith.maximumf %5, %6 : vector<128x128xf32>
    %8 = arith.truncf %7 : vector<128x128xf32> to vector<128x128xbf16>
    %c0_6 = arith.constant 0 : index
    %c0_7 = arith.constant 0 : index
    %9 = vector.load %arg4[%c0_6, %c0_7] : memref<128x128xbf16, #tpu.memory_space<vmem>>, vector<128x128xbf16>
    tpu.vector_store %arg4[%c0_6, %c0_7], %8 {strides = array<i32>} : memref<128x128xbf16, #tpu.memory_space<vmem>>, vector<128x128xbf16>,
    return
  }
  func.func @transform_0(%arg0: i32) -> (i32, i32) {
    %c0_i32 = arith.constant 0 : i32
    %c0_i32_0 = arith.constant 0 : i32
    return %arg0, %c0_i32 : i32, i32
  }
  func.func @transform_1(%arg0: i32) -> (i32, i32) {
    %c0_i32 = arith.constant 0 : i32
    %c0_i32_0 = arith.constant 0 : i32
    %c0_i32_1 = arith.constant 0 : i32
    return %c0_i32, %c0_i32_0 : i32, i32
  }
  func.func @transform_2(%arg0: i32) -> (i32, i32) {
    %c0_i32 = arith.constant 0 : i32
    %c0_i32_0 = arith.constant 0 : i32
    %c0_i32_1 = arith.constant 0 : i32
    return %c0_i32, %c0_i32_0 : i32, i32
  }
  func.func @transform_3(%arg0: i32) -> (i32, i32) {
    %c0_i32 = arith.constant 0 : i32
    %c0_i32_0 = arith.constant 0 : i32
    return %arg0, %c0_i32 : i32, i32
  }
}

module attributes {stable_mosaic.version = 11 : i64} {
  func.func @_mm_kernel(%arg0: i32, %arg1: memref<128x1152xbf16, #tpu.memory_space<vmem>>, %arg2: memref<1152x128xbf16, #tpu.memory_space<vmem>>, %arg3: memref<1x128xf32, #tpu.memory_space<vmem>>, %arg4: memref<128x128xbf16, #tpu.memory_space<vmem>>) attributes {dimension_semantics = [#tpu.dimension_semantics<parallel>], iteration_bounds = array<i64: 2>, scalar_prefetch = 0 : i64, scratch_operands = 0 : i64, tpu.core_type = #tpu.core_type<tc>, window_params = [{transform_indices = @transform_0, window_bounds = array<i64: 128, 1152>}, {pipeline_mode = #tpu.pipeline_mode<synchronous>, transform_indices = @transform_1, window_bounds = array<i64: 1152, 128>}, {pipeline_mode = #tpu.pipeline_mode<synchronous>, transform_indices = @transform_2, window_bounds = array<i64: 1, 128>}, {transform_indices = @transform_3, window_bounds = array<i64: 128, 128>}]} {
    %c0 = arith.constant 0 : index
    %c0_0 = arith.constant 0 : index
    %0 = vector.load %arg1[%c0, %c0_0] : memref<128x1152xbf16, #tpu.memory_space<vmem>>, vector<128x1152xbf16>
    %c0_1 = arith.constant 0 : index
    %c0_2 = arith.constant 0 : index
    %1 = vector.load %arg2[%c0_1, %c0_2] : memref<1152x128xbf16, #tpu.memory_space<vmem>>, vector<1152x128xbf16>
    %cst = arith.constant dense<0.000000e+00> : vector<128x128xf32>
    %2 = tpu.matmul %0, %1, %cst {dimension_numbers = #tpu.dot_dimension_numbers<[1], [0], [0], [1], [0, 0, 1, 1], [], []>} : vector<128x1152xbf16>, vector<1152x128xbf16>, vector<128x128xf32> -> vector<128x128xf32>
    %c0_3 = arith.constant 0 : index
    %c0_4 = arith.constant 0 : index
    %3 = vector.load %arg3[%c0_3, %c0_4] : memref<1x128xf32, #tpu.memory_space<vmem>>, vector<1x128xf32>
    %4 = vector.broadcast %3 : vector<1x128xf32> to vector<128x128xf32>
    %5 = arith.addf %2, %4 : vector<128x128xf32>
    %cst_5 = arith.constant 0.000000e+00 : f32
    %6 = vector.broadcast %cst_5 : f32 to vector<128x128xf32>
    %7 = arith.maximumf %5, %6 : vector<128x128xf32>
    %8 = arith.truncf %7 : vector<128x128xf32> to vector<128x128xbf16>
    %c0_6 = arith.constant 0 : index
    %c0_7 = arith.constant 0 : index
    %9 = vector.load %arg4[%c0_6, %c0_7] : memref<128x128xbf16, #tpu.memory_space<vmem>>, vector<128x128xbf16>
    tpu.vector_store %arg4[%c0_6, %c0_7], %8 {strides = array<i32>} : memref<128x128xbf16, #tpu.memory_space<vmem>>, vector<128x128xbf16>,
    return
  }
  func.func @transform_0(%arg0: i32) -> (i32, i32) {
    %c0_i32 = arith.constant 0 : i32
    %c0_i32_0 = arith.constant 0 : i32
    return %arg0, %c0_i32 : i32, i32
  }
  func.func @transform_1(%arg0: i32) -> (i32, i32) {
    %c0_i32 = arith.constant 0 : i32
    %c0_i32_0 = arith.constant 0 : i32
    %c0_i32_1 = arith.constant 0 : i32
    return %c0_i32, %c0_i32_0 : i32, i32
  }
  func.func @transform_2(%arg0: i32) -> (i32, i32) {
    %c0_i32 = arith.constant 0 : i32
    %c0_i32_0 = arith.constant 0 : i32
    %c0_i32_1 = arith.constant 0 : i32
    return %c0_i32, %c0_i32_0 : i32, i32
  }
  func.func @transform_3(%arg0: i32) -> (i32, i32) {
    %c0_i32 = arith.constant 0 : i32
    %c0_i32_0 = arith.constant 0 : i32
    return %arg0, %c0_i32 : i32, i32
  }
}

module attributes {stable_mosaic.version = 11 : i64} {
  func.func @_mm_kernel(%arg0: i32, %arg1: memref<128x1152xbf16, #tpu.memory_space<vmem>>, %arg2: memref<1152x128xbf16, #tpu.memory_space<vmem>>, %arg3: memref<1x128xf32, #tpu.memory_space<vmem>>, %arg4: memref<128x128xbf16, #tpu.memory_space<vmem>>, %arg5: memref<128x128xbf16, #tpu.memory_space<vmem>>) attributes {dimension_semantics = [#tpu.dimension_semantics<parallel>], iteration_bounds = array<i64: 2>, scalar_prefetch = 0 : i64, scratch_operands = 0 : i64, tpu.core_type = #tpu.core_type<tc>, window_params = [{transform_indices = @transform_0, window_bounds = array<i64: 128, 1152>}, {pipeline_mode = #tpu.pipeline_mode<synchronous>, transform_indices = @transform_1, window_bounds = array<i64: 1152, 128>}, {pipeline_mode = #tpu.pipeline_mode<synchronous>, transform_indices = @transform_2, window_bounds = array<i64: 1, 128>}, {transform_indices = @transform_3, window_bounds = array<i64: 128, 128>}, {transform_indices = @transform_4, window_bounds = array<i64: 128, 128>}]} {
    %c0 = arith.constant 0 : index
    %c0_0 = arith.constant 0 : index
    %0 = vector.load %arg1[%c0, %c0_0] : memref<128x1152xbf16, #tpu.memory_space<vmem>>, vector<128x1152xbf16>
    %c0_1 = arith.constant 0 : index
    %c0_2 = arith.constant 0 : index
    %1 = vector.load %arg2[%c0_1, %c0_2] : memref<1152x128xbf16, #tpu.memory_space<vmem>>, vector<1152x128xbf16>
    %cst = arith.constant dense<0.000000e+00> : vector<128x128xf32>
    %2 = tpu.matmul %0, %1, %cst {dimension_numbers = #tpu.dot_dimension_numbers<[1], [0], [0], [1], [0, 0, 1, 1], [], []>} : vector<128x1152xbf16>, vector<1152x128xbf16>, vector<128x128xf32> -> vector<128x128xf32>
    %c0_3 = arith.constant 0 : index
    %c0_4 = arith.constant 0 : index
    %3 = vector.load %arg3[%c0_3, %c0_4] : memref<1x128xf32, #tpu.memory_space<vmem>>, vector<1x128xf32>
    %4 = vector.broadcast %3 : vector<1x128xf32> to vector<128x128xf32>
    %5 = arith.addf %2, %4 : vector<128x128xf32>
    %c0_5 = arith.constant 0 : index
    %c0_6 = arith.constant 0 : index
    %6 = vector.load %arg4[%c0_5, %c0_6] : memref<128x128xbf16, #tpu.memory_space<vmem>>, vector<128x128xbf16>
    %7 = arith.extf %6 : vector<128x128xbf16> to vector<128x128xf32>
    %8 = arith.addf %5, %7 : vector<128x128xf32>
    %cst_7 = arith.constant 0.000000e+00 : f32
    %9 = vector.broadcast %cst_7 : f32 to vector<128x128xf32>
    %10 = arith.maximumf %8, %9 : vector<128x128xf32>
    %11 = arith.truncf %10 : vector<128x128xf32> to vector<128x128xbf16>
    %c0_8 = arith.constant 0 : index
    %c0_9 = arith.constant 0 : index
    %12 = vector.load %arg5[%c0_8, %c0_9] : memref<128x128xbf16, #tpu.memory_space<vmem>>, vector<128x128xbf16>
    tpu.vector_store %arg5[%c0_8, %c0_9], %11 {strides = array<i32>} : memref<128x128xbf16, #tpu.memory_space<vmem>>, vector<128x128xbf16>,
    return
  }
  func.func @transform_0(%arg0: i32) -> (i32, i32) {
    %c0_i32 = arith.constant 0 : i32
    %c0_i32_0 = arith.constant 0 : i32
    return %arg0, %c0_i32 : i32, i32
  }
  func.func @transform_1(%arg0: i32) -> (i32, i32) {
    %c0_i32 = arith.constant 0 : i32
    %c0_i32_0 = arith.constant 0 : i32
    %c0_i32_1 = arith.constant 0 : i32
    return %c0_i32, %c0_i32_0 : i32, i32
  }
  func.func @transform_2(%arg0: i32) -> (i32, i32) {
    %c0_i32 = arith.constant 0 : i32
    %c0_i32_0 = arith.constant 0 : i32
    %c0_i32_1 = arith.constant 0 : i32
    return %c0_i32, %c0_i32_0 : i32, i32
  }
  func.func @transform_3(%arg0: i32) -> (i32, i32) {
    %c0_i32 = arith.constant 0 : i32
    %c0_i32_0 = arith.constant 0 : i32
    return %arg0, %c0_i32 : i32, i32
  }
  func.func @transform_4(%arg0: i32) -> (i32, i32) {
    %c0_i32 = arith.constant 0 : i32
    %c0_i32_0 = arith.constant 0 : i32
    return %arg0, %c0_i32 : i32, i32
  }
}

module attributes {stable_mosaic.version = 11 : i64} {
  func.func @_mm_kernel(%arg0: i32, %arg1: memref<128x288xbf16, #tpu.memory_space<vmem>>, %arg2: memref<288x128xbf16, #tpu.memory_space<vmem>>, %arg3: memref<1x128xf32, #tpu.memory_space<vmem>>, %arg4: memref<1x128xf32, #tpu.memory_space<vmem>>, %arg5: memref<128x128xbf16, #tpu.memory_space<vmem>>) attributes {dimension_semantics = [#tpu.dimension_semantics<parallel>], iteration_bounds = array<i64: 2>, scalar_prefetch = 0 : i64, scratch_operands = 0 : i64, tpu.core_type = #tpu.core_type<tc>, window_params = [{transform_indices = @transform_0, window_bounds = array<i64: 128, 288>}, {pipeline_mode = #tpu.pipeline_mode<synchronous>, transform_indices = @transform_1, window_bounds = array<i64: 288, 128>}, {pipeline_mode = #tpu.pipeline_mode<synchronous>, transform_indices = @transform_2, window_bounds = array<i64: 1, 128>}, {pipeline_mode = #tpu.pipeline_mode<synchronous>, transform_indices = @transform_3, window_bounds = array<i64: 1, 128>}, {transform_indices = @transform_4, window_bounds = array<i64: 128, 128>}]} {
    %c0 = arith.constant 0 : index
    %c0_0 = arith.constant 0 : index
    %0 = vector.load %arg1[%c0, %c0_0] : memref<128x288xbf16, #tpu.memory_space<vmem>>, vector<128x288xbf16>
    %c0_1 = arith.constant 0 : index
    %c0_2 = arith.constant 0 : index
    %1 = vector.load %arg2[%c0_1, %c0_2] : memref<288x128xbf16, #tpu.memory_space<vmem>>, vector<288x128xbf16>
    %cst = arith.constant dense<0.000000e+00> : vector<128x128xf32>
    %2 = tpu.matmul %0, %1, %cst {dimension_numbers = #tpu.dot_dimension_numbers<[1], [0], [0], [1], [0, 0, 1, 1], [], []>} : vector<128x288xbf16>, vector<288x128xbf16>, vector<128x128xf32> -> vector<128x128xf32>
    %c0_3 = arith.constant 0 : index
    %c0_4 = arith.constant 0 : index
    %3 = vector.load %arg3[%c0_3, %c0_4] : memref<1x128xf32, #tpu.memory_space<vmem>>, vector<1x128xf32>
    %4 = vector.broadcast %3 : vector<1x128xf32> to vector<128x128xf32>
    %5 = arith.addf %2, %4 : vector<128x128xf32>
    %c0_5 = arith.constant 0 : index
    %c0_6 = arith.constant 0 : index
    %6 = vector.load %arg4[%c0_5, %c0_6] : memref<1x128xf32, #tpu.memory_space<vmem>>, vector<1x128xf32>
    %7 = vector.broadcast %6 : vector<1x128xf32> to vector<128x128xf32>
    %8 = arith.mulf %5, %7 : vector<128x128xf32>
    %9 = arith.maximumf %5, %8 : vector<128x128xf32>
    %10 = arith.truncf %9 : vector<128x128xf32> to vector<128x128xbf16>
    %c0_7 = arith.constant 0 : index
    %c0_8 = arith.constant 0 : index
    %11 = vector.load %arg5[%c0_7, %c0_8] : memref<128x128xbf16, #tpu.memory_space<vmem>>, vector<128x128xbf16>
    tpu.vector_store %arg5[%c0_7, %c0_8], %10 {strides = array<i32>} : memref<128x128xbf16, #tpu.memory_space<vmem>>, vector<128x128xbf16>,
    return
  }
  func.func @transform_0(%arg0: i32) -> (i32, i32) {
    %c0_i32 = arith.constant 0 : i32
    %c0_i32_0 = arith.constant 0 : i32
    return %arg0, %c0_i32 : i32, i32
  }
  func.func @transform_1(%arg0: i32) -> (i32, i32) {
    %c0_i32 = arith.constant 0 : i32
    %c0_i32_0 = arith.constant 0 : i32
    %c0_i32_1 = arith.constant 0 : i32
    return %c0_i32, %c0_i32_0 : i32, i32
  }
  func.func @transform_2(%arg0: i32) -> (i32, i32) {
    %c0_i32 = arith.constant 0 : i32
    %c0_i32_0 = arith.constant 0 : i32
    %c0_i32_1 = arith.constant 0 : i32
    return %c0_i32, %c0_i32_0 : i32, i32
  }
  func.func @transform_3(%arg0: i32) -> (i32, i32) {
    %c0_i32 = arith.constant 0 : i32
    %c0_i32_0 = arith.constant 0 : i32
    %c0_i32_1 = arith.constant 0 : i32
    return %c0_i32, %c0_i32_0 : i32, i32
  }
  func.func @transform_4(%arg0: i32) -> (i32, i32) {
    %c0_i32 = arith.constant 0 : i32
    %c0_i32_0 = arith.constant 0 : i32
    return %arg0, %c0_i32 : i32, i32
  }
}

module attributes {stable_mosaic.version = 11 : i64} {
  func.func @_mm_kernel(%arg0: i32, %arg1: memref<64x1152xbf16, #tpu.memory_space<vmem>>, %arg2: memref<1152x128xbf16, #tpu.memory_space<vmem>>, %arg3: memref<1x128xf32, #tpu.memory_space<vmem>>, %arg4: memref<64x128xbf16, #tpu.memory_space<vmem>>, %arg5: memref<64x128xbf16, #tpu.memory_space<vmem>>) attributes {dimension_semantics = [#tpu.dimension_semantics<parallel>], iteration_bounds = array<i64: 2>, scalar_prefetch = 0 : i64, scratch_operands = 0 : i64, tpu.core_type = #tpu.core_type<tc>, window_params = [{transform_indices = @transform_0, window_bounds = array<i64: 64, 1152>}, {pipeline_mode = #tpu.pipeline_mode<synchronous>, transform_indices = @transform_1, window_bounds = array<i64: 1152, 128>}, {pipeline_mode = #tpu.pipeline_mode<synchronous>, transform_indices = @transform_2, window_bounds = array<i64: 1, 128>}, {transform_indices = @transform_3, window_bounds = array<i64: 64, 128>}, {transform_indices = @transform_4, window_bounds = array<i64: 64, 128>}]} {
    %c0 = arith.constant 0 : index
    %c0_0 = arith.constant 0 : index
    %0 = vector.load %arg1[%c0, %c0_0] : memref<64x1152xbf16, #tpu.memory_space<vmem>>, vector<64x1152xbf16>
    %c0_1 = arith.constant 0 : index
    %c0_2 = arith.constant 0 : index
    %1 = vector.load %arg2[%c0_1, %c0_2] : memref<1152x128xbf16, #tpu.memory_space<vmem>>, vector<1152x128xbf16>
    %cst = arith.constant dense<0.000000e+00> : vector<64x128xf32>
    %2 = tpu.matmul %0, %1, %cst {dimension_numbers = #tpu.dot_dimension_numbers<[1], [0], [0], [1], [0, 0, 1, 1], [], []>} : vector<64x1152xbf16>, vector<1152x128xbf16>, vector<64x128xf32> -> vector<64x128xf32>
    %c0_3 = arith.constant 0 : index
    %c0_4 = arith.constant 0 : index
    %3 = vector.load %arg3[%c0_3, %c0_4] : memref<1x128xf32, #tpu.memory_space<vmem>>, vector<1x128xf32>
    %4 = vector.broadcast %3 : vector<1x128xf32> to vector<64x128xf32>
    %5 = arith.addf %2, %4 : vector<64x128xf32>
    %c0_5 = arith.constant 0 : index
    %c0_6 = arith.constant 0 : index
    %6 = vector.load %arg4[%c0_5, %c0_6] : memref<64x128xbf16, #tpu.memory_space<vmem>>, vector<64x128xbf16>
    %7 = arith.extf %6 : vector<64x128xbf16> to vector<64x128xf32>
    %8 = arith.addf %5, %7 : vector<64x128xf32>
    %cst_7 = arith.constant 0.000000e+00 : f32
    %9 = vector.broadcast %cst_7 : f32 to vector<64x128xf32>
    %10 = arith.maximumf %8, %9 : vector<64x128xf32>
    %11 = arith.truncf %10 : vector<64x128xf32> to vector<64x128xbf16>
    %c0_8 = arith.constant 0 : index
    %c0_9 = arith.constant 0 : index
    %12 = vector.load %arg5[%c0_8, %c0_9] : memref<64x128xbf16, #tpu.memory_space<vmem>>, vector<64x128xbf16>
    tpu.vector_store %arg5[%c0_8, %c0_9], %11 {strides = array<i32>} : memref<64x128xbf16, #tpu.memory_space<vmem>>, vector<64x128xbf16>,
    return
  }
  func.func @transform_0(%arg0: i32) -> (i32, i32) {
    %c0_i32 = arith.constant 0 : i32
    %c0_i32_0 = arith.constant 0 : i32
    return %arg0, %c0_i32 : i32, i32
  }
  func.func @transform_1(%arg0: i32) -> (i32, i32) {
    %c0_i32 = arith.constant 0 : i32
    %c0_i32_0 = arith.constant 0 : i32
    %c0_i32_1 = arith.constant 0 : i32
    return %c0_i32, %c0_i32_0 : i32, i32
  }
  func.func @transform_2(%arg0: i32) -> (i32, i32) {
    %c0_i32 = arith.constant 0 : i32
    %c0_i32_0 = arith.constant 0 : i32
    %c0_i32_1 = arith.constant 0 : i32
    return %c0_i32, %c0_i32_0 : i32, i32
  }
  func.func @transform_3(%arg0: i32) -> (i32, i32) {
    %c0_i32 = arith.constant 0 : i32
    %c0_i32_0 = arith.constant 0 : i32
    return %arg0, %c0_i32 : i32, i32
  }
  func.func @transform_4(%arg0: i32) -> (i32, i32) {
    %c0_i32 = arith.constant 0 : i32
    %c0_i32_0 = arith.constant 0 : i32
    return %arg0, %c0_i32 : i32, i32
  }
}

module attributes {stable_mosaic.version = 11 : i64} {
  func.func @_mm_kernel(%arg0: i32, %arg1: memref<64x288xbf16, #tpu.memory_space<vmem>>, %arg2: memref<288x128xbf16, #tpu.memory_space<vmem>>, %arg3: memref<1x128xf32, #tpu.memory_space<vmem>>, %arg4: memref<1x128xf32, #tpu.memory_space<vmem>>, %arg5: memref<64x128xbf16, #tpu.memory_space<vmem>>) attributes {dimension_semantics = [#tpu.dimension_semantics<parallel>], iteration_bounds = array<i64: 2>, scalar_prefetch = 0 : i64, scratch_operands = 0 : i64, tpu.core_type = #tpu.core_type<tc>, window_params = [{transform_indices = @transform_0, window_bounds = array<i64: 64, 288>}, {pipeline_mode = #tpu.pipeline_mode<synchronous>, transform_indices = @transform_1, window_bounds = array<i64: 288, 128>}, {pipeline_mode = #tpu.pipeline_mode<synchronous>, transform_indices = @transform_2, window_bounds = array<i64: 1, 128>}, {pipeline_mode = #tpu.pipeline_mode<synchronous>, transform_indices = @transform_3, window_bounds = array<i64: 1, 128>}, {transform_indices = @transform_4, window_bounds = array<i64: 64, 128>}]} {
    %c0 = arith.constant 0 : index
    %c0_0 = arith.constant 0 : index
    %0 = vector.load %arg1[%c0, %c0_0] : memref<64x288xbf16, #tpu.memory_space<vmem>>, vector<64x288xbf16>
    %c0_1 = arith.constant 0 : index
    %c0_2 = arith.constant 0 : index
    %1 = vector.load %arg2[%c0_1, %c0_2] : memref<288x128xbf16, #tpu.memory_space<vmem>>, vector<288x128xbf16>
    %cst = arith.constant dense<0.000000e+00> : vector<64x128xf32>
    %2 = tpu.matmul %0, %1, %cst {dimension_numbers = #tpu.dot_dimension_numbers<[1], [0], [0], [1], [0, 0, 1, 1], [], []>} : vector<64x288xbf16>, vector<288x128xbf16>, vector<64x128xf32> -> vector<64x128xf32>
    %c0_3 = arith.constant 0 : index
    %c0_4 = arith.constant 0 : index
    %3 = vector.load %arg3[%c0_3, %c0_4] : memref<1x128xf32, #tpu.memory_space<vmem>>, vector<1x128xf32>
    %4 = vector.broadcast %3 : vector<1x128xf32> to vector<64x128xf32>
    %5 = arith.addf %2, %4 : vector<64x128xf32>
    %c0_5 = arith.constant 0 : index
    %c0_6 = arith.constant 0 : index
    %6 = vector.load %arg4[%c0_5, %c0_6] : memref<1x128xf32, #tpu.memory_space<vmem>>, vector<1x128xf32>
    %7 = vector.broadcast %6 : vector<1x128xf32> to vector<64x128xf32>
    %8 = arith.mulf %5, %7 : vector<64x128xf32>
    %9 = arith.maximumf %5, %8 : vector<64x128xf32>
    %10 = arith.truncf %9 : vector<64x128xf32> to vector<64x128xbf16>
    %c0_7 = arith.constant 0 : index
    %c0_8 = arith.constant 0 : index
    %11 = vector.load %arg5[%c0_7, %c0_8] : memref<64x128xbf16, #tpu.memory_space<vmem>>, vector<64x128xbf16>
    tpu.vector_store %arg5[%c0_7, %c0_8], %10 {strides = array<i32>} : memref<64x128xbf16, #tpu.memory_space<vmem>>, vector<64x128xbf16>,
    return
  }
  func.func @transform_0(%arg0: i32) -> (i32, i32) {
    %c0_i32 = arith.constant 0 : i32
    %c0_i32_0 = arith.constant 0 : i32
    return %arg0, %c0_i32 : i32, i32
  }
  func.func @transform_1(%arg0: i32) -> (i32, i32) {
    %c0_i32 = arith.constant 0 : i32
    %c0_i32_0 = arith.constant 0 : i32
    %c0_i32_1 = arith.constant 0 : i32
    return %c0_i32, %c0_i32_0 : i32, i32
  }
  func.func @transform_2(%arg0: i32) -> (i32, i32) {
    %c0_i32 = arith.constant 0 : i32
    %c0_i32_0 = arith.constant 0 : i32
    %c0_i32_1 = arith.constant 0 : i32
    return %c0_i32, %c0_i32_0 : i32, i32
  }
  func.func @transform_3(%arg0: i32) -> (i32, i32) {
    %c0_i32 = arith.constant 0 : i32
    %c0_i32_0 = arith.constant 0 : i32
    %c0_i32_1 = arith.constant 0 : i32
    return %c0_i32, %c0_i32_0 : i32, i32
  }
  func.func @transform_4(%arg0: i32) -> (i32, i32) {
    %c0_i32 = arith.constant 0 : i32
    %c0_i32_0 = arith.constant 0 : i32
    return %arg0, %c0_i32 : i32, i32
  }
}

module attributes {stable_mosaic.version = 11 : i64} {
  func.func @_head_kernel(%arg0: memref<8x64x64xbf16, #tpu.memory_space<vmem>>, %arg1: memref<64x128xf32, #tpu.memory_space<vmem>>, %arg2: memref<1x128xf32, #tpu.memory_space<vmem>>, %arg3: memref<8x128xf32, #tpu.memory_space<vmem>>) attributes {dimension_semantics = [], scalar_prefetch = 0 : i64, scratch_operands = 0 : i64, tpu.core_type = #tpu.core_type<tc>} {
    %c0 = arith.constant 0 : index
    %c0_0 = arith.constant 0 : index
    %c0_1 = arith.constant 0 : index
    %0 = vector.load %arg0[%c0, %c0_0, %c0_1] : memref<8x64x64xbf16, #tpu.memory_space<vmem>>, vector<8x64x64xbf16>
    %1 = arith.extf %0 : vector<8x64x64xbf16> to vector<8x64x64xf32>
    %cst = arith.constant dense<0.000000e+00> : vector<8x64xf32>
    %2 = vector.multi_reduction <add>, %1, %cst [1] : vector<8x64x64xf32> to vector<8x64xf32>
    %c0_2 = arith.constant 0 : index
    %c0_3 = arith.constant 0 : index
    %3 = vector.load %arg1[%c0_2, %c0_3] : memref<64x128xf32, #tpu.memory_space<vmem>>, vector<64x128xf32>
    %cst_4 = arith.constant dense<0.000000e+00> : vector<8x128xf32>
    %4 = tpu.matmul %2, %3, %cst_4 {dimension_numbers = #tpu.dot_dimension_numbers<[1], [0], [0], [1], [0, 0, 1, 1], [], []>} : vector<8x64xf32>, vector<64x128xf32>, vector<8x128xf32> -> vector<8x128xf32>
    %c0_5 = arith.constant 0 : index
    %c0_6 = arith.constant 0 : index
    %5 = vector.load %arg2[%c0_5, %c0_6] : memref<1x128xf32, #tpu.memory_space<vmem>>, vector<1x128xf32>
    %6 = vector.broadcast %5 : vector<1x128xf32> to vector<8x128xf32>
    %7 = arith.addf %4, %6 : vector<8x128xf32>
    %c0_7 = arith.constant 0 : index
    %c0_8 = arith.constant 0 : index
    %8 = vector.load %arg3[%c0_7, %c0_8] : memref<8x128xf32, #tpu.memory_space<vmem>>, vector<8x128xf32>
    tpu.vector_store %arg3[%c0_7, %c0_8], %7 {strides = array<i32>} : memref<8x128xf32, #tpu.memory_space<vmem>>, vector<8x128xf32>,
    return
  }
}

module attributes {stable_mosaic.version = 11 : i64} {
  func.func @_mm_kernel(%arg0: i32, %arg1: memref<32x1152xbf16, #tpu.memory_space<vmem>>, %arg2: memref<1152x128xbf16, #tpu.memory_space<vmem>>, %arg3: memref<1x128xf32, #tpu.memory_space<vmem>>, %arg4: memref<32x128xbf16, #tpu.memory_space<vmem>>, %arg5: memref<32x128xbf16, #tpu.memory_space<vmem>>) attributes {dimension_semantics = [#tpu.dimension_semantics<parallel>], iteration_bounds = array<i64: 2>, scalar_prefetch = 0 : i64, scratch_operands = 0 : i64, tpu.core_type = #tpu.core_type<tc>, window_params = [{transform_indices = @transform_0, window_bounds = array<i64: 32, 1152>}, {pipeline_mode = #tpu.pipeline_mode<synchronous>, transform_indices = @transform_1, window_bounds = array<i64: 1152, 128>}, {pipeline_mode = #tpu.pipeline_mode<synchronous>, transform_indices = @transform_2, window_bounds = array<i64: 1, 128>}, {transform_indices = @transform_3, window_bounds = array<i64: 32, 128>}, {transform_indices = @transform_4, window_bounds = array<i64: 32, 128>}]} {
    %c0 = arith.constant 0 : index
    %c0_0 = arith.constant 0 : index
    %0 = vector.load %arg1[%c0, %c0_0] : memref<32x1152xbf16, #tpu.memory_space<vmem>>, vector<32x1152xbf16>
    %c0_1 = arith.constant 0 : index
    %c0_2 = arith.constant 0 : index
    %1 = vector.load %arg2[%c0_1, %c0_2] : memref<1152x128xbf16, #tpu.memory_space<vmem>>, vector<1152x128xbf16>
    %cst = arith.constant dense<0.000000e+00> : vector<32x128xf32>
    %2 = tpu.matmul %0, %1, %cst {dimension_numbers = #tpu.dot_dimension_numbers<[1], [0], [0], [1], [0, 0, 1, 1], [], []>} : vector<32x1152xbf16>, vector<1152x128xbf16>, vector<32x128xf32> -> vector<32x128xf32>
    %c0_3 = arith.constant 0 : index
    %c0_4 = arith.constant 0 : index
    %3 = vector.load %arg3[%c0_3, %c0_4] : memref<1x128xf32, #tpu.memory_space<vmem>>, vector<1x128xf32>
    %4 = vector.broadcast %3 : vector<1x128xf32> to vector<32x128xf32>
    %5 = arith.addf %2, %4 : vector<32x128xf32>
    %c0_5 = arith.constant 0 : index
    %c0_6 = arith.constant 0 : index
    %6 = vector.load %arg4[%c0_5, %c0_6] : memref<32x128xbf16, #tpu.memory_space<vmem>>, vector<32x128xbf16>
    %7 = arith.extf %6 : vector<32x128xbf16> to vector<32x128xf32>
    %8 = arith.addf %5, %7 : vector<32x128xf32>
    %cst_7 = arith.constant 0.000000e+00 : f32
    %9 = vector.broadcast %cst_7 : f32 to vector<32x128xf32>
    %10 = arith.maximumf %8, %9 : vector<32x128xf32>
    %11 = arith.truncf %10 : vector<32x128xf32> to vector<32x128xbf16>
    %c0_8 = arith.constant 0 : index
    %c0_9 = arith.constant 0 : index
    %12 = vector.load %arg5[%c0_8, %c0_9] : memref<32x128xbf16, #tpu.memory_space<vmem>>, vector<32x128xbf16>
    tpu.vector_store %arg5[%c0_8, %c0_9], %11 {strides = array<i32>} : memref<32x128xbf16, #tpu.memory_space<vmem>>, vector<32x128xbf16>,
    return
  }
  func.func @transform_0(%arg0: i32) -> (i32, i32) {
    %c0_i32 = arith.constant 0 : i32
    %c0_i32_0 = arith.constant 0 : i32
    return %arg0, %c0_i32 : i32, i32
  }
  func.func @transform_1(%arg0: i32) -> (i32, i32) {
    %c0_i32 = arith.constant 0 : i32
    %c0_i32_0 = arith.constant 0 : i32
    %c0_i32_1 = arith.constant 0 : i32
    return %c0_i32, %c0_i32_0 : i32, i32
  }
  func.func @transform_2(%arg0: i32) -> (i32, i32) {
    %c0_i32 = arith.constant 0 : i32
    %c0_i32_0 = arith.constant 0 : i32
    %c0_i32_1 = arith.constant 0 : i32
    return %c0_i32, %c0_i32_0 : i32, i32
  }
  func.func @transform_3(%arg0: i32) -> (i32, i32) {
    %c0_i32 = arith.constant 0 : i32
    %c0_i32_0 = arith.constant 0 : i32
    return %arg0, %c0_i32 : i32, i32
  }
  func.func @transform_4(%arg0: i32) -> (i32, i32) {
    %c0_i32 = arith.constant 0 : i32
    %c0_i32_0 = arith.constant 0 : i32
    return %arg0, %c0_i32 : i32, i32
  }
}

</mosaic_0001>

<bundles_post_ra>
// kernel: resnet_cifar_forward.8
= control target key start
LH: loop header
LB: loop body
LE: loop exit
PB: predicated region body
PF: predicated region fallthrough
CT: control target
= control target key end

     0   :  { %s1600_s12 = smov 0   ;;  %s1886_s0 = inlined_call_operand.vmem [shape: bf16[256,576], index: 0, kind: input, shape index: {}]   ;;  %s1887_s1 = inlined_call_operand.vmem [shape: bf16[576,128], index: 1, kind: input, shape index: {}]   ;;  %s1888_s2 = inlined_call_operand.vmem [shape: f32[1,128], index: 2, kind: input, shape index: {}]   ;;  %s1889_s3 = inlined_call_operand.vmem [shape: bf16[256,128], index: 3, kind: output, shape index: {}]  }
   0x1 LB: > { %s1092_s13 = sadd.s32 4294967295, %s1578_s12   ;;  %p1096_p0 = scmp.ge.s32.totalorder %s1578_s12, 1  ;;  %s1578_s12 = sphi %s1600_s12, %s13_s12  }
   0x2   : > { %p139_p1 = scmp.lt.s32.totalorder %s1578_s12, 3 }
   0x4   : > { %p140_p2 = pnand %p1096_p0, %p139_p1 }
   0x5   : > { %s1097_s20 = sshll.u32 (!%p140_p2), %s1092_s13, 4 }
   0x6   : > { %143 = sbr.rel (%p140_p2) target bundleno = 338 (0x152), region = 32  ;;  %p165_p3 = scmp.lt.s32.totalorder (!%p140_p2), %s1097_s20, 31 }
   0xb   : > { %v1462_v0 = vld [vmem:[%s1887_s1 + $0x38] sm:$0xff]  ;;  %v1461_v1 = vld [vmem:[%s1887_s1 + $0x30] sm:$0xff]  ;;  %v1460_v2 = vld [vmem:[%s1887_s1 + $0x28] sm:$0xff]  ;;  %s1891_s20 = smov (!%p165_p3, %s1097_s20), 31  ;;  %vm718_vm0 = vcmask 523264  }
   0xc   : > { %1538 = vmatpush.bf16.msra.mxu1 %v1462_v0  ;;  %1539 = vmatpush.bf16.msra.mxu2 %v1462_v0  ;;  %v1459_v3 = vld [vmem:[%s1887_s1 + $0x20] sm:$0xff]  ;;  %v1458_v4 = vld [vmem:[%s1887_s1 + $0x18] sm:$0xff]  ;;  %v1457_v5 = vld [vmem:[%s1887_s1 + $0x10] sm:$0xff]  ;;  %s1562_s27 = smul.u32 20, %s1891_s20 }
   0xd   : > { %1540 = vmatpush.bf16.msra.mxu3 %v1462_v0  ;;  %743 = vmatpush.bf16.msra.mxu0 %v1462_v0  ;;  %v1456_v6 = vld [vmem:[%s1887_s1 + $0x8] sm:$0xff]  ;;  %v1455_v7 = vld [vmem:[%s1887_s1] sm:$0xff]  ;;  %v1478_v16 = vld [vmem:[%s1887_s1 + $0xb8] sm:$0xff] }
   0xe   : > { %s1635_s5 = scalar_lea.vmem %s1886_s0, %s1562_s27  ;;  %v1470_v17 = vld [vmem:[%s1887_s1 + $0x78] sm:$0xff]  ;;  %v1477_v24 = vld [vmem:[%s1887_s1 + $0xb0] sm:$0xff]  ;;  %v1476_v28 = vld [vmem:[%s1887_s1 + $0xa8] sm:$0xff] }
   0xf   : > { %v1143_v8 = vld [vmem:[%s1635_s5 + $0x50] sm:$0xf]  ;;  %v1427_v9 = vld [vmem:[%s1635_s5 + $0x60] sm:$0xf0]  ;;  %v1183_v10 = vld [vmem:[%s1635_s5 + $0xa0] sm:$0xf] }
  0x10   : > { %1541 = vmatpush.bf16.msra.mxu1 %v1461_v1  ;;  %1542 = vmatpush.bf16.msra.mxu2 %v1461_v1  ;;  %v1437_v11 = vld [vmem:[%s1635_s5 + $0xb0] sm:$0xf0]  ;;  %v1223_v12 = vld [vmem:[%s1635_s5 + $0xf0] sm:$0xf]  ;;  %v1447_v13 = vld [vmem:[%s1635_s5 + $0x100] sm:$0xf0]  ;;  %v1144_v18 = vor.u32 %v1427_v9, %v1143_v8 }
  0x11   : > { %1543 = vmatpush.bf16.msra.mxu3 %v1461_v1  ;;  %744 = vmatpush.bf16.msra.mxu0 %v1461_v1  ;;  %v1103_v14 = vld [vmem:[%s1635_s5] sm:$0xf]  ;;  %v1417_v15 = vld [vmem:[%s1635_s5 + $0x10] sm:$0xf0]  ;;  %v1184_v19 = vor.u32 %v1437_v11, %v1183_v10  ;;  %v1224_v20 = vor.u32 %v1447_v13, %v1223_v12  ;;  %v1486_v22 = vld [vmem:[%s1887_s1 + $0xf8] sm:$0xff] }
  0x12   : > { %v1104_v21 = vor.u32 %v1417_v15, %v1103_v14  ;;  %v1490_v23 = vld [vmem:[%s1887_s1 + $0x118] sm:$0xff]  ;;  %v1469_v25 = vld [vmem:[%s1887_s1 + $0x70] sm:$0xff]  ;;  %v1468_v29 = vld [vmem:[%s1887_s1 + $0x68] sm:$0xff] }
  0x13   : > { %v1485_v26 = vld [vmem:[%s1887_s1 + $0xf0] sm:$0xff]  ;;  %v1484_v30 = vld [vmem:[%s1887_s1 + $0xe8] sm:$0xff]  ;;  %v1475_v32 = vld [vmem:[%s1887_s1 + $0xa0] sm:$0xff] }
  0x14   : > { %1544 = vmatpush.bf16.msra.mxu1 %v1460_v2  ;;  %1545 = vmatpush.bf16.msra.mxu2 %v1460_v2  ;;  %v1489_v27 = vld [vmem:[%s1887_s1 + $0x110] sm:$0xff]  ;;  %v1488_v31 = vld [vmem:[%s1887_s1 + $0x108] sm:$0xff]  ;;  %v1467_v33 = vld [vmem:[%s1887_s1 + $0x60] sm:$0xff] }
  0x15   : > { %1546 = vmatpush.bf16.msra.mxu3 %v1460_v2  ;;  %745 = vmatpush.bf16.msra.mxu0 %v1460_v2  ;;  %v1483_v34 = vld [vmem:[%s1887_s1 + $0xe0] sm:$0xff]  ;;  %v1163_v35 = vld [vmem:[%s1635_s5 + $0x78] sm:$0xf]  ;;  %v1432_v36 = vld [vmem:[%s1635_s5 + $0x88] sm:$0xf0] }
  0x16   : > { %v1203_v37 = vld [vmem:[%s1635_s5 + $0xc8] sm:$0xf]  ;;  %v1442_v38 = vld [vmem:[%s1635_s5 + $0xd8] sm:$0xf0]  ;;  %v1243_v39 = vld [vmem:[%s1635_s5 + $0x118] sm:$0xf]  ;;  %v1164_v46 = vor.u32 %v1432_v36, %v1163_v35 }
  0x17   : > { %v1452_v40 = vld [vmem:[%s1635_s5 + $0x128] sm:$0xf0]  ;;  %v1123_v41 = vld [vmem:[%s1635_s5 + $0x28] sm:$0xf]  ;;  %v1422_v42 = vld [vmem:[%s1635_s5 + $0x38] sm:$0xf0]  ;;  %v1204_v47 = vor.u32 %v1442_v38, %v1203_v37 }
  0x18   : > { %1547 = vmatpush.bf16.msra.mxu1 %v1459_v3  ;;  %1548 = vmatpush.bf16.msra.mxu2 %v1459_v3  ;;  %v1487_v43 = vld [vmem:[%s1887_s1 + $0x100] sm:$0xff]  ;;  %v1474_v44 = vld [vmem:[%s1887_s1 + $0x98] sm:$0xff]  ;;  %v1244_v48 = vor.u32 %v1452_v40, %v1243_v39  ;;  %v1124_v49 = vor.u32 %v1422_v42, %v1123_v41  ;;  %v1473_v51 = vld [vmem:[%s1887_s1 + $0x90] sm:$0xff] }
  0x19   : > { %1549 = vmatpush.bf16.msra.mxu3 %v1459_v3  ;;  %746 = vmatpush.bf16.msra.mxu0 %v1459_v3  ;;  %v1466_v45 = vld [vmem:[%s1887_s1 + $0x58] sm:$0xff]  ;;  %v1465_v52 = vld [vmem:[%s1887_s1 + $0x50] sm:$0xff]  ;;  %v1472_v54 = vld [vmem:[%s1887_s1 + $0x88] sm:$0xff] }
  0x1a   : > { %v1482_v50 = vld [vmem:[%s1887_s1 + $0xd8] sm:$0xff]  ;;  %v1481_v53 = vld [vmem:[%s1887_s1 + $0xd0] sm:$0xff]  ;;  %v1464_v55 = vld [vmem:[%s1887_s1 + $0x48] sm:$0xff] }
  0x1b   : > { %v1480_v56 = vld [vmem:[%s1887_s1 + $0xc8] sm:$0xff]  ;;  %v1471_v57 = vld [vmem:[%s1887_s1 + $0x80] sm:$0xff]  ;;  %v1105_v61 = vld [vmem:[%s1635_s5 + $0x14] sm:$0xf0] }
  0x1c   : > { %1550 = vmatpush.bf16.msra.mxu1 %v1458_v4  ;;  %1551 = vmatpush.bf16.msra.mxu2 %v1458_v4  ;;  %v1463_v58 = vld [vmem:[%s1887_s1 + $0x40] sm:$0xff]  ;;  %v1111_v62 = vld [vmem:[%s1635_s5 + $0x8] sm:$0xf]  ;;  %v1418_v63 = vld [vmem:[%s1635_s5 + $0x18] sm:$0xf0] }
  0x1d   : > { %1552 = vmatpush.bf16.msra.mxu3 %v1458_v4  ;;  %747 = vmatpush.bf16.msra.mxu0 %v1458_v4  ;;  %v1479_v59 = vld [vmem:[%s1887_s1 + $0xc0] sm:$0xff]  ;;  %v1416_v0 = vld [vmem:[%s1635_s5 + $0xc] sm:$0xf]  ;;  %v1119_v2 = vld [vmem:[%s1635_s5 + $0x10] sm:$0xf] }
  0x1e   : > { %v1415_v60 = vld [vmem:[%s1635_s5 + $0x4] sm:$0xf]  ;;  %v1113_v1 = vld [vmem:[%s1635_s5 + $0x1c] sm:$0xf0]  ;;  %v1420_v8 = vld [vmem:[%s1635_s5 + $0x2c] sm:$0xf] }
  0x1f   : > { %v1419_v3 = vld [vmem:[%s1635_s5 + $0x20] sm:$0xf0]  ;;  %v1108_v4 = vor.u32 %v1415_v60, %v1105_v61  ;;  %v1125_v9 = vld [vmem:[%s1635_s5 + $0x3c] sm:$0xf0]  ;;  %v1131_v10 = vld [vmem:[%s1635_s5 + $0x30] sm:$0xf] }
  0x20   : > { %1553 = vmatpush.bf16.msra.mxu1 %v1457_v5  ;;  %1554 = vmatpush.bf16.msra.mxu2 %v1457_v5  ;;  %v1423_v11 = vld [vmem:[%s1635_s5 + $0x40] sm:$0xf0]  ;;  %v1421_v12 = vld [vmem:[%s1635_s5 + $0x34] sm:$0xf]  ;;  %v1133_v13 = vld [vmem:[%s1635_s5 + $0x44] sm:$0xf0] }
  0x21   : > { %1555 = vmatpush.bf16.msra.mxu3 %v1457_v5  ;;  %748 = vmatpush.bf16.msra.mxu0 %v1457_v5  ;;  %v1112_v5 = vor.u32 %v1418_v63, %v1111_v62  ;;  %v1139_v14 = vld [vmem:[%s1635_s5 + $0x38] sm:$0xf]  ;;  %v1424_v15 = vld [vmem:[%s1635_s5 + $0x48] sm:$0xf0]  ;;  %v1433_v35 = vld [vmem:[%s1635_s5 + $0x90] sm:$0xf0] }
  0x22   : > { %v1431_v36 = vld [vmem:[%s1635_s5 + $0x84] sm:$0xf]  ;;  %v1173_v37 = vld [vmem:[%s1635_s5 + $0x94] sm:$0xf0]  ;;  %v1179_v38 = vld [vmem:[%s1635_s5 + $0x88] sm:$0xf] }
  0x23   : > { %v1434_v39 = vld [vmem:[%s1635_s5 + $0x98] sm:$0xf0]  ;;  %v1176_v42 = vor.u32 %v1431_v36, %v1173_v37  ;;  %v1441_v60 = vld [vmem:[%s1635_s5 + $0xd4] sm:$0xf]  ;;  %v1213_v61 = vld [vmem:[%s1635_s5 + $0xe4] sm:$0xf0] }
  0x24   : > { %1556 = vmatpush.bf16.msra.mxu1 %v1456_v6  ;;  %1557 = vmatpush.bf16.msra.mxu2 %v1456_v6  ;;  %v1219_v62 = vld [vmem:[%s1635_s5 + $0xd8] sm:$0xf]  ;;  %v1444_v63 = vld [vmem:[%s1635_s5 + $0xe8] sm:$0xf0] }
  0x25   : > { %1558 = vmatpush.bf16.msra.mxu3 %v1456_v6  ;;  %749 = vmatpush.bf16.msra.mxu0 %v1456_v6  ;;  %v1116_v6 = vor.u32 %v1416_v0, %v1113_v1 }
  0x28   : > { %1559 = vmatpush.bf16.msra.mxu1 %v1455_v7  ;;  %1560 = vmatpush.bf16.msra.mxu2 %v1455_v7 }
  0x29   : > { %1561 = vmatpush.bf16.msra.mxu3 %v1455_v7  ;;  %750 = vmatpush.bf16.msra.mxu0 %v1455_v7  ;;  %v1120_v7 = vor.u32 %v1419_v3, %v1119_v2  ;;  %v1216_v2 = vor.u32 %v1441_v60, %v1213_v61  ;;  %v1220_v3 = vor.u32 %v1444_v63, %v1219_v62 }
  0x2b   : > { %761 = vmatmul.bf16.vlgmr.msra.gmra.mxu1 %v1144_v18  ;;  %771 = vmatmul.bf16.vlgmr.msra.gmra.mxu2 %v1184_v19  ;;  %v1136_v18 = vor.u32 %v1421_v12, %v1133_v13  ;;  %v1140_v19 = vor.u32 %v1424_v15, %v1139_v14 }
  0x2c   : > { %841 = vmatpush.bf16.msrb.mxu2 %v1478_v16  ;;  %792 = vmatpush.bf16.msrb.mxu1 %v1470_v17  ;;  %v1128_v16 = vor.u32 %v1420_v8, %v1125_v9  ;;  %v1132_v17 = vor.u32 %v1423_v11, %v1131_v10  ;;  %v1446_v8 = vld [vmem:[%s1635_s5 + $0xfc] sm:$0xf]  ;;  %v1233_v9 = vld [vmem:[%s1635_s5 + $0x10c] sm:$0xf0]  ;;  %v1239_v10 = vld [vmem:[%s1635_s5 + $0x100] sm:$0xf] }
  0x2d   : > { %781 = vmatmul.bf16.vlgmr.msra.gmra.mxu3 %v1224_v20  ;;  %751 = vmatmul.bf16.vlgmr.msra.gmra.mxu0 %v1104_v21  ;;  %v1425_v20 = vld [vmem:[%s1635_s5 + $0x54] sm:$0xf]  ;;  %v1145_v21 = vld [vmem:[%s1635_s5 + $0x64] sm:$0xf0]  ;;  %v1236_v15 = vor.u32 %v1446_v8, %v1233_v9 }
  0x2e   : > { %890 = vmatpush.bf16.msrb.mxu3 %v1486_v22  ;;  %943 = vmatpush.bf16.msrb.mxu0 %v1490_v23  ;;  %v1151_v22 = vld [vmem:[%s1635_s5 + $0x58] sm:$0xf]  ;;  %v1428_v23 = vld [vmem:[%s1635_s5 + $0x68] sm:$0xf0]  ;;  %v1449_v11 = vld [vmem:[%s1635_s5 + $0x110] sm:$0xf0] }
  0x30   : > { %842 = vmatpush.bf16.msrb.mxu2 %v1477_v24  ;;  %793 = vmatpush.bf16.msrb.mxu1 %v1469_v25  ;;  %v1426_v24 = vld [vmem:[%s1635_s5 + $0x5c] sm:$0xf]  ;;  %v1153_v25 = vld [vmem:[%s1635_s5 + $0x6c] sm:$0xf0] }
  0x32   : > { %891 = vmatpush.bf16.msrb.mxu3 %v1485_v26  ;;  %944 = vmatpush.bf16.msrb.mxu0 %v1489_v27  ;;  %v1159_v26 = vld [vmem:[%s1635_s5 + $0x60] sm:$0xf]  ;;  %v1429_v27 = vld [vmem:[%s1635_s5 + $0x70] sm:$0xf0] }
  0x34   : > { %843 = vmatpush.bf16.msrb.mxu2 %v1476_v28  ;;  %794 = vmatpush.bf16.msrb.mxu1 %v1468_v29  ;;  %v1148_v28 = vor.u32 %v1425_v20, %v1145_v21  ;;  %v1152_v29 = vor.u32 %v1428_v23, %v1151_v22 }
  0x36   : > { %892 = vmatpush.bf16.msrb.mxu3 %v1484_v30  ;;  %945 = vmatpush.bf16.msrb.mxu0 %v1488_v31  ;;  %v1156_v30 = vor.u32 %v1426_v24, %v1153_v25  ;;  %v1160_v31 = vor.u32 %v1429_v27, %v1159_v26  ;;  %v1450_v25 = vld [vmem:[%s1635_s5 + $0x11c] sm:$0xf]  ;;  %v1245_v26 = vld [vmem:[%s1635_s5 + $0x12c] sm:$0xf0]  ;;  %v1251_v27 = vld [vmem:[%s1635_s5 + $0x120] sm:$0xf] }
  0x37   : > { %v1248_v36 = vor.u32 %v1450_v25, %v1245_v26 }
  0x38   : > { %844 = vmatpush.bf16.msrb.mxu2 %v1475_v32  ;;  %795 = vmatpush.bf16.msrb.mxu1 %v1467_v33  ;;  %v1430_v32 = vld [vmem:[%s1635_s5 + $0x7c] sm:$0xf]  ;;  %v1165_v33 = vld [vmem:[%s1635_s5 + $0x8c] sm:$0xf0] }
  0x39   : > { %v1168_v40 = vor.u32 %v1430_v32, %v1165_v33  ;;  %v1454_v32 = vld [vmem:[%s1635_s5 + $0x138] sm:$0xf0] }
  0x3a   : > { %893 = vmatpush.bf16.msrb.mxu3 %v1483_v34  ;;  %946 = vmatpush.bf16.msrb.mxu0 %v1487_v43  ;;  %v1171_v34 = vld [vmem:[%s1635_s5 + $0x80] sm:$0xf]  ;;  %v1180_v43 = vor.u32 %v1434_v39, %v1179_v38 }
  0x3b   : > { %766 = vmatmul.bf16.gmra.mxu1 %v1164_v46  ;;  %776 = vmatmul.bf16.gmra.mxu2 %v1204_v47  ;;  %v1172_v41 = vor.u32 %v1433_v35, %v1171_v34  ;;  %v1191_v46 = vld [vmem:[%s1635_s5 + $0xa8] sm:$0xf]  ;;  %v1438_v47 = vld [vmem:[%s1635_s5 + $0xb8] sm:$0xf0] }
  0x3c   : > { %845 = vmatpush.bf16.msrb.mxu2 %v1474_v44  ;;  %796 = vmatpush.bf16.msrb.mxu1 %v1466_v45  ;;  %v1435_v44 = vld [vmem:[%s1635_s5 + $0xa4] sm:$0xf]  ;;  %v1185_v45 = vld [vmem:[%s1635_s5 + $0xb4] sm:$0xf0] }
  0x3d   : > { %786 = vmatmul.bf16.gmra.mxu3 %v1244_v48  ;;  %756 = vmatmul.bf16.gmra.mxu0 %v1124_v49  ;;  %v1436_v48 = vld [vmem:[%s1635_s5 + $0xac] sm:$0xf]  ;;  %v1193_v49 = vld [vmem:[%s1635_s5 + $0xbc] sm:$0xf0] }
  0x3e   : > { %894 = vmatpush.bf16.msrb.mxu3 %v1482_v50  ;;  %v1199_v50 = vld [vmem:[%s1635_s5 + $0xb0] sm:$0xf] }
  0x40   : > { %846 = vmatpush.bf16.msrb.mxu2 %v1473_v51  ;;  %797 = vmatpush.bf16.msrb.mxu1 %v1465_v52  ;;  %v1439_v51 = vld [vmem:[%s1635_s5 + $0xc0] sm:$0xf0]  ;;  %v1188_v52 = vor.u32 %v1435_v44, %v1185_v45 }
  0x42   : > { %895 = vmatpush.bf16.msrb.mxu3 %v1481_v53  ;;  %v1192_v53 = vor.u32 %v1438_v47, %v1191_v46 }
  0x44   : > { %847 = vmatpush.bf16.msrb.mxu2 %v1472_v54  ;;  %798 = vmatpush.bf16.msrb.mxu1 %v1464_v55  ;;  %v1196_v54 = vor.u32 %v1436_v48, %v1193_v49  ;;  %v1200_v55 = vor.u32 %v1439_v51, %v1199_v50 }
  0x46   : > { %896 = vmatpush.bf16.msrb.mxu3 %v1480_v56  ;;  %v1440_v56 = vld [vmem:[%s1635_s5 + $0xcc] sm:$0xf] }
  0x48   : > { %848 = vmatpush.bf16.msrb.mxu2 %v1471_v57  ;;  %799 = vmatpush.bf16.msrb.mxu1 %v1463_v58  ;;  %v1205_v57 = vld [vmem:[%s1635_s5 + $0xdc] sm:$0xf0]  ;;  %v1211_v58 = vld [vmem:[%s1635_s5 + $0xd0] sm:$0xf] }
  0x49   : > { %v1208_v0 = vor.u32 %v1440_v56, %v1205_v57 }
  0x4a   : > { %897 = vmatpush.bf16.msrb.mxu3 %v1479_v59  ;;  %v1443_v59 = vld [vmem:[%s1635_s5 + $0xe0] sm:$0xf0] }
  0x4b   : > { %800 = vmatmul.bf16.vlgmr.msrb.gmra.mxu1 %v1108_v4  ;;  %849 = vmatmul.bf16.vlgmr.msrb.gmra.mxu2 %v1112_v5  ;;  %v1212_v1 = vor.u32 %v1443_v59, %v1211_v58  ;;  %v1445_v4 = vld [vmem:[%s1635_s5 + $0xf4] sm:$0xf]  ;;  %v1225_v5 = vld [vmem:[%s1635_s5 + $0x104] sm:$0xf0] }
  0x4c   : > { %v1228_v12 = vor.u32 %v1445_v4, %v1225_v5 }
  0x4d   : > { %898 = vmatmul.bf16.vlgmr.msrb.gmra.mxu3 %v1116_v6  ;;  %1405 = vmatmul.msk.bf16.vlgmr.msrb.gmra.mxu0 %vm718_vm0, %v1120_v7  ;;  %v1231_v6 = vld [vmem:[%s1635_s5 + $0xf8] sm:$0xf]  ;;  %v1448_v7 = vld [vmem:[%s1635_s5 + $0x108] sm:$0xf0] }
  0x4e   : > { %v1232_v13 = vor.u32 %v1448_v7, %v1231_v6 }
  0x5b   : > { %805 = vmatmul.bf16.gmra.mxu1 %v1128_v16  ;;  %854 = vmatmul.bf16.gmra.mxu2 %v1132_v17  ;;  %v1240_v16 = vor.u32 %v1449_v11, %v1239_v10 }
  0x5d   : > { %903 = vmatmul.bf16.gmra.mxu3 %v1136_v18  ;;  %1406 = vmatmul.msk.bf16.gmra.mxu0 %vm718_vm0, %v1140_v19  ;;  %v1808_v18 = vld [vmem:[%s1888_s2] ss:$0 sm:$0xff] }
  0x6b   : > { %810 = vmatmul.bf16.gmra.mxu1 %v1148_v28  ;;  %859 = vmatmul.bf16.gmra.mxu2 %v1152_v29  ;;  %v1453_v28 = vld [vmem:[%s1635_s5 + $0x130] sm:$0xf0]  ;;  %v1451_v29 = vld [vmem:[%s1635_s5 + $0x124] sm:$0xf] }
  0x6c   : > { %v1252_v37 = vor.u32 %v1453_v28, %v1251_v27 }
  0x6d   : > { %908 = vmatmul.bf16.gmra.mxu3 %v1156_v30  ;;  %1407 = vmatmul.msk.bf16.gmra.mxu0 %vm718_vm0, %v1160_v31  ;;  %v1253_v30 = vld [vmem:[%s1635_s5 + $0x134] sm:$0xf0]  ;;  %v1259_v31 = vld [vmem:[%s1635_s5 + $0x128] sm:$0xf]  ;;  %s1100_s5 = sshll.u32 %s1891_s20, 2 }
  0x6e   : > { %s1856_s22 = scalar_lea.vmem %s1889_s3, %s1100_s5 }
  0x7b   : > { %815 = vmatmul.bf16.gmra.mxu1 %v1168_v40  ;;  %864 = vmatmul.bf16.gmra.mxu2 %v1172_v41  ;;  %v1256_v40 = vor.u32 %v1451_v29, %v1253_v30  ;;  %v1260_v41 = vor.u32 %v1454_v32, %v1259_v31 }
  0x7d   : > { %913 = vmatmul.bf16.gmra.mxu3 %v1176_v42  ;;  %1408 = vmatmul.msk.bf16.gmra.mxu0 %vm718_vm0, %v1180_v43 }
  0x8b   : > { %820 = vmatmul.bf16.gmra.mxu1 %v1188_v52  ;;  %869 = vmatmul.bf16.gmra.mxu2 %v1192_v53 }
  0x8d   : > { %918 = vmatmul.bf16.gmra.mxu3 %v1196_v54  ;;  %1409 = vmatmul.msk.bf16.gmra.mxu0 %vm718_vm0, %v1200_v55 }
  0x9b   : > { %825 = vmatmul.bf16.gmra.mxu1 %v1208_v0  ;;  %874 = vmatmul.bf16.gmra.mxu2 %v1212_v1 }
  0x9d   : > { %923 = vmatmul.bf16.gmra.mxu3 %v1216_v2  ;;  %1410 = vmatmul.msk.bf16.gmra.mxu0 %vm718_vm0, %v1220_v3 }
  0xa8   : > { %v1802_v14 = vpop.f32.mrf.mxu1 }
  0xaa   : > { %v752_v17 = vpop.f32.mrf.mxu0 }
  0xab   : > { %830 = vmatmul.bf16.gmra.mxu1 %v1228_v12  ;;  %879 = vmatmul.bf16.gmra.mxu2 %v1232_v13  ;;  %v753_v55 = vadd.f32 %v1808_v18, %v752_v17 }
  0xad   : > { %928 = vmatmul.bf16.gmra.mxu3 %v1236_v15  ;;  %1411 = vmatmul.msk.bf16.gmra.mxu0 %vm718_vm0, %v1240_v16 }
  0xae   : > { %v772_v19 = vpop.f32.mrf.mxu2 }
  0xaf   : > { %v1811_v20 = vadd.f32 %v1808_v18, %v772_v19 }
  0xb0   : > { %v782_v21 = vpop.f32.mrf.mxu3  ;;  %v1816_v23 = vpop.f32.mrf.mxu1 }
  0xb1   : > { %v1814_v22 = vadd.f32 %v1808_v18, %v782_v21 }
  0xb2   : > { %v754_v24 = vpop.f32.mrf.mxu0 }
  0xb3   : > { %v755_v62 = vadd.f32 %v1808_v18, %v754_v24 }
  0xb6   : > { %v774_v33 = vpop.f32.mrf.mxu2 }
  0xb7   : > { %v1827_v34 = vadd.f32 %v1808_v18, %v774_v33 }
  0xb8   : > { %v784_v35 = vpop.f32.mrf.mxu3  ;;  %v1832_v39 = vpop.f32.mrf.mxu1 }
  0xb9   : > { %v1830_v38 = vadd.f32 %v1808_v18, %v784_v35 }
  0xba   : > { %v757_v42 = vpop.f32.mrf.mxu0 }
  0xbb   : > { %835 = vmatmul.bf16.gmra.mxu1 %v1248_v36  ;;  %884 = vmatmul.bf16.gmra.mxu2 %v1252_v37  ;;  %v758_v9 = vadd.f32 %v1808_v18, %v757_v42  ;;  %v763_v36 = vadd.f32 %v1808_v18, %v1802_v14 }
  0xbd   : > { %933 = vmatmul.bf16.gmra.mxu3 %v1256_v40  ;;  %1412 = vmatmul.msk.bf16.gmra.mxu0 %vm718_vm0, %v1260_v41 }
  0xbe   : > { %v777_v43 = vpop.f32.mrf.mxu2 }
  0xbf   : > { %v1836_v44 = vadd.f32 %v1808_v18, %v777_v43 }
  0xc0   : > { %v787_v45 = vpop.f32.mrf.mxu3  ;;  %v1841_v47 = vpop.f32.mrf.mxu1 }
  0xc1   : > { %v1839_v46 = vadd.f32 %v1808_v18, %v787_v45 }
  0xc2   : > { %v759_v48 = vpop.f32.mrf.mxu0 }
  0xc3   : > { %v760_v24 = vadd.f32 %v1808_v18, %v759_v48 }
  0xc6   : > { %v779_v49 = vpop.f32.mrf.mxu2 }
  0xc7   : > { %v1844_v50 = vadd.f32 %v1808_v18, %v779_v49 }
  0xc8   : > { %v789_v51 = vpop.f32.mrf.mxu3  ;;  %v801_v53 = vpop.f32.mrf.mxu1 }
  0xc9   : > { %v1847_v52 = vadd.f32 %v1808_v18, %v789_v51  ;;  %v802_v57 = vadd.f32 %v801_v53, %v753_v55  ;;  %v765_v53 = vadd.f32 %v1808_v18, %v1816_v23 }
  0xca   : > { %v948_v54 = vpop.f32.mrf.mxu0 }
  0xce   : > { %v850_v56 = vpop.f32.mrf.mxu2 }
  0xcf   : > { %v851_v60 = vadd.f32 %v850_v56, %v802_v57 }
  0xd0   : > { %v899_v58 = vpop.f32.mrf.mxu3  ;;  %v803_v59 = vpop.f32.mrf.mxu1 }
  0xd1   : > { %v900_v63 = vadd.f32 %v899_v58, %v851_v60  ;;  %v804_v0 = vadd.f32 %v803_v59, %v755_v62 }
  0xd2   : > { %v950_v61 = vpop.f32.mrf.mxu0 }
  0xd3   : > { %v949_v5 = vadd.f32 %v948_v54, %v900_v63  ;;  %v768_v63 = vadd.f32 %v1808_v18, %v1832_v39 }
  0xd5   : > { %v988_v10 = vmax.f32 %v949_v5, 0.0 }
  0xd6   : > { %v852_v1 = vpop.f32.mrf.mxu2 }
  0xd7   : > { %v853_v2 = vadd.f32 %v852_v1, %v804_v0 }
  0xd8   : > { %v901_v3 = vpop.f32.mrf.mxu3  ;;  %v806_v4 = vpop.f32.mrf.mxu1 }
  0xd9   : > { %v902_v6 = vadd.f32 %v901_v3, %v853_v2  ;;  %v807_v15 = vadd.f32 %v806_v4, %v758_v9 }
  0xda   : > { %v953_v7 = vpop.f32.mrf.mxu0 }
  0xdb   : > { %v951_v8 = vadd.f32 %v950_v61, %v902_v6 }
  0xdd   : > { %v989_v11 = vmax.f32 %v951_v8, 0.0  ;;  %v770_v8 = vadd.f32 %v1808_v18, %v1841_v47 }
  0xde   : > { %v855_v12 = vpop.f32.mrf.mxu2 }
  0xdf   : > { %v1494_v13 = vpack.c.bf16 %v989_v11, %v988_v10  ;;  %v856_v19 = vadd.f32 %v855_v12, %v807_v15 }
  0xe0   : > { %v904_v16 = vpop.f32.mrf.mxu3  ;;  %v808_v17 = vpop.f32.mrf.mxu1 }
  0xe1   : > { %1495 = vst [vmem:[%s1856_s22] sm:$0xff] %v1494_v13   ;;  %v905_v25 = vadd.f32 %v904_v16, %v856_v19  ;;  %v809_v26 = vadd.f32 %v808_v17, %v760_v24 }
  0xe2   : > { %v955_v21 = vpop.f32.mrf.mxu0 }
  0xe3   : > { %v954_v31 = vadd.f32 %v953_v7, %v905_v25 }
  0xe5   : > { %v990_v37 = vmax.f32 %v954_v31, 0.0 }
  0xe6   : > { %v857_v27 = vpop.f32.mrf.mxu2 }
  0xe7   : > { %v858_v28 = vadd.f32 %v857_v27, %v809_v26 }
  0xe8   : > { %v906_v29 = vpop.f32.mrf.mxu3  ;;  %v811_v30 = vpop.f32.mrf.mxu1 }
  0xe9   : > { %v907_v32 = vadd.f32 %v906_v29, %v858_v28  ;;  %v812_v43 = vadd.f32 %v811_v30, %v763_v36 }
  0xea   : > { %v958_v33 = vpop.f32.mrf.mxu0 }
  0xeb   : > { %v956_v35 = vadd.f32 %v955_v21, %v907_v32 }
  0xed   : > { %v991_v40 = vmax.f32 %v956_v35, 0.0 }
  0xee   : > { %v860_v41 = vpop.f32.mrf.mxu2 }
  0xef   : > { %v1499_v42 = vpack.c.bf16 %v991_v40, %v990_v37  ;;  %v861_v49 = vadd.f32 %v860_v41, %v812_v43 }
  0xf0   : > { %v909_v45 = vpop.f32.mrf.mxu3  ;;  %v813_v48 = vpop.f32.mrf.mxu1 }
  0xf1   : > { %1531 = vst [vmem:[%s1856_s22 + $0x8] sm:$0xff] %v1499_v42   ;;  %v910_v54 = vadd.f32 %v909_v45, %v861_v49  ;;  %v814_v55 = vadd.f32 %v813_v48, %v765_v53 }
  0xf2   : > { %v960_v51 = vpop.f32.mrf.mxu0 }
  0xf3   : > { %v959_v59 = vadd.f32 %v958_v33, %v910_v54 }
  0xf5   : > { %v992_v0 = vmax.f32 %v959_v59, 0.0 }
  0xf6   : > { %v862_v56 = vpop.f32.mrf.mxu2 }
  0xf7   : > { %v863_v57 = vadd.f32 %v862_v56, %v814_v55 }
  0xf8   : > { %v911_v58 = vpop.f32.mrf.mxu3  ;;  %v816_v14 = vpop.f32.mrf.mxu1 }
  0xf9   : > { %v912_v60 = vadd.f32 %v911_v58, %v863_v57  ;;  %v817_v4 = vadd.f32 %v816_v14, %v768_v63 }
  0xfa   : > { %v963_v61 = vpop.f32.mrf.mxu0 }
  0xfb   : > { %v961_v62 = vadd.f32 %v960_v51, %v912_v60 }
  0xfd   : > { %v993_v1 = vmax.f32 %v961_v62, 0.0 }
  0xfe   : > { %v865_v2 = vpop.f32.mrf.mxu2 }
  0xff   : > { %v1504_v3 = vpack.c.bf16 %v993_v1, %v992_v0  ;;  %v866_v6 = vadd.f32 %v865_v2, %v817_v4 }
 0x100   : > { %v914_v23 = vpop.f32.mrf.mxu3  ;;  %v818_v5 = vpop.f32.mrf.mxu1 }
 0x101   : > { %1532 = vst [vmem:[%s1856_s22 + $0x10] sm:$0xff] %v1504_v3   ;;  %v915_v9 = vadd.f32 %v914_v23, %v866_v6  ;;  %v819_v10 = vadd.f32 %v818_v5, %v770_v8 }
 0x102   : > { %v965_v7 = vpop.f32.mrf.mxu0 }
 0x103   : > { %v964_v15 = vadd.f32 %v963_v61, %v915_v9 }
 0x105   : > { %v994_v21 = vmax.f32 %v964_v15, 0.0 }
 0x106   : > { %v867_v11 = vpop.f32.mrf.mxu2 }
 0x107   : > { %v868_v12 = vadd.f32 %v867_v11, %v819_v10 }
 0x108   : > { %v916_v13 = vpop.f32.mrf.mxu3  ;;  %v821_v39 = vpop.f32.mrf.mxu1 }
 0x109   : > { %v917_v16 = vadd.f32 %v916_v13, %v868_v12  ;;  %v822_v27 = vadd.f32 %v821_v39, %v1811_v20 }
 0x10a   : > { %v968_v17 = vpop.f32.mrf.mxu0 }
 0x10b   : > { %v966_v19 = vadd.f32 %v965_v7, %v917_v16 }
 0x10d   : > { %v995_v24 = vmax.f32 %v966_v19, 0.0 }
 0x10e   : > { %v870_v25 = vpop.f32.mrf.mxu2 }
 0x10f   : > { %v1509_v26 = vpack.c.bf16 %v995_v24, %v994_v21  ;;  %v871_v18 = vadd.f32 %v870_v25, %v822_v27 }
 0x110   : > { %v919_v28 = vpop.f32.mrf.mxu3  ;;  %v823_v29 = vpop.f32.mrf.mxu1 }
 0x111   : > { %1533 = vst [vmem:[%s1856_s22 + $0x18] sm:$0xff] %v1509_v26   ;;  %v920_v30 = vadd.f32 %v919_v28, %v871_v18  ;;  %v824_v31 = vadd.f32 %v823_v29, %v1827_v34 }
 0x112   : > { %v970_v47 = vpop.f32.mrf.mxu0 }
 0x113   : > { %v969_v37 = vadd.f32 %v968_v17, %v920_v30 }
 0x115   : > { %v996_v43 = vmax.f32 %v969_v37, 0.0 }
 0x116   : > { %v872_v32 = vpop.f32.mrf.mxu2 }
 0x117   : > { %v873_v33 = vadd.f32 %v872_v32, %v824_v31 }
 0x118   : > { %v921_v35 = vpop.f32.mrf.mxu3  ;;  %v826_v36 = vpop.f32.mrf.mxu1 }
 0x119   : > { %v922_v40 = vadd.f32 %v921_v35, %v873_v33  ;;  %v827_v49 = vadd.f32 %v826_v36, %v1836_v44 }
 0x11a   : > { %v973_v41 = vpop.f32.mrf.mxu0 }
 0x11b   : > { %v971_v42 = vadd.f32 %v970_v47, %v922_v40 }
 0x11d   : > { %v997_v45 = vmax.f32 %v971_v42, 0.0 }
 0x11e   : > { %v875_v20 = vpop.f32.mrf.mxu2 }
 0x11f   : > { %v1514_v48 = vpack.c.bf16 %v997_v45, %v996_v43  ;;  %v876_v54 = vadd.f32 %v875_v20, %v827_v49 }
 0x120   : > { %v924_v51 = vpop.f32.mrf.mxu3  ;;  %v828_v53 = vpop.f32.mrf.mxu1 }
 0x121   : > { %1534 = vst [vmem:[%s1856_s22 + $0x20] sm:$0xff] %v1514_v48   ;;  %v925_v55 = vadd.f32 %v924_v51, %v876_v54  ;;  %v829_v56 = vadd.f32 %v828_v53, %v1844_v50 }
 0x122   : > { %v975_v34 = vpop.f32.mrf.mxu0 }
 0x123   : > { %v974_v60 = vadd.f32 %v973_v41, %v925_v55 }
 0x125   : > { %v998_v0 = vmax.f32 %v974_v60, 0.0 }
 0x126   : > { %v877_v57 = vpop.f32.mrf.mxu2 }
 0x127   : > { %v878_v58 = vadd.f32 %v877_v57, %v829_v56 }
 0x128   : > { %v926_v14 = vpop.f32.mrf.mxu3  ;;  %v831_v59 = vpop.f32.mrf.mxu1 }
 0x129   : > { %v927_v61 = vadd.f32 %v926_v14, %v878_v58  ;;  %v832_v3 = vadd.f32 %v831_v59, %v1814_v22 }
 0x12a   : > { %v978_v63 = vpop.f32.mrf.mxu0 }
 0x12b   : > { %v976_v62 = vadd.f32 %v975_v34, %v927_v61 }
 0x12d   : > { %v999_v1 = vmax.f32 %v976_v62, 0.0 }
 0x12e   : > { %v880_v44 = vpop.f32.mrf.mxu2 }
 0x12f   : > { %v1519_v2 = vpack.c.bf16 %v999_v1, %v998_v0  ;;  %v881_v5 = vadd.f32 %v880_v44, %v832_v3 }
 0x130   : > { %v929_v4 = vpop.f32.mrf.mxu3  ;;  %v833_v23 = vpop.f32.mrf.mxu1 }
 0x131   : > { %1535 = vst [vmem:[%s1856_s22 + $0x28] sm:$0xff] %v1519_v2   ;;  %v930_v50 = vadd.f32 %v929_v4, %v881_v5  ;;  %v834_v6 = vadd.f32 %v833_v23, %v1830_v38 }
 0x132   : > { %v980_v7 = vpop.f32.mrf.mxu0 }
 0x133   : > { %v979_v12 = vadd.f32 %v978_v63, %v930_v50 }
 0x135   : > { %v1000_v15 = vmax.f32 %v979_v12, 0.0 }
 0x136   : > { %v882_v8 = vpop.f32.mrf.mxu2 }
 0x137   : > { %v883_v9 = vadd.f32 %v882_v8, %v834_v6 }
 0x138   : > { %v931_v10 = vpop.f32.mrf.mxu3  ;;  %v836_v11 = vpop.f32.mrf.mxu1 }
 0x139   : > { %v932_v13 = vadd.f32 %v931_v10, %v883_v9  ;;  %v837_v19 = vadd.f32 %v836_v11, %v1839_v46 }
 0x13a   : > { %v983_v24 = vpop.f32.mrf.mxu0 }
 0x13b   : > { %v981_v39 = vadd.f32 %v980_v7, %v932_v13 }
 0x13d   : > { %v1001_v16 = vmax.f32 %v981_v39, 0.0 }
 0x13e   : > { %v885_v17 = vpop.f32.mrf.mxu2 }
 0x13f   : > { %v1524_v22 = vpack.c.bf16 %v1001_v16, %v1000_v15  ;;  %v886_v38 = vadd.f32 %v885_v17, %v837_v19 }
 0x140   : > { %v934_v21 = vpop.f32.mrf.mxu3  ;;  %v838_v25 = vpop.f32.mrf.mxu1 }
 0x141   : > { %1536 = vst [vmem:[%s1856_s22 + $0x30] sm:$0xff] %v1524_v22   ;;  %v935_v26 = vadd.f32 %v934_v21, %v886_v38  ;;  %v839_v27 = vadd.f32 %v838_v25, %v1847_v52 }
 0x142   : > { %v985_v31 = vpop.f32.mrf.mxu0 }
 0x143   : > { %v984_v47 = vadd.f32 %v983_v24, %v935_v26 }
 0x145   : > { %v1002_v33 = vmax.f32 %v984_v47, 0.0 }
 0x146   : > { %v887_v28 = vpop.f32.mrf.mxu2 }
 0x147   : > { %v888_v29 = vadd.f32 %v887_v28, %v839_v27 }
 0x148   : > { %v936_v18 = vpop.f32.mrf.mxu3 }
 0x149   : > { %v937_v30 = vadd.f32 %v936_v18, %v888_v29 }
 0x14b   : > { %v986_v32 = vadd.f32 %v985_v31, %v937_v30 }
 0x14d   : > { %v1003_v35 = vmax.f32 %v986_v32, 0.0 }
 0x14f   : > { %v1529_v36 = vpack.c.bf16 %v1003_v35, %v1002_v33 }
 0x151   : > { %1537 = vst [vmem:[%s1856_s22 + $0x38] sm:$0xff] %v1529_v36  }
 0x152 PF: > { %s13_s12 = sadd.s32 1, %s1578_s12  }
 0x153   : > { %p10_p4 = scmp.ge.s32.totalorder %s13_s12, 4  }
 0x155   :  { %12 = sbr.rel (!%p10_p4) target bundleno = 1 (0x1), region = 62 }

// kernel: resnet_cifar_forward.9
= control target key start
LH: loop header
LB: loop body
LE: loop exit
PB: predicated region body
PF: predicated region fallthrough
CT: control target
= control target key end

     0   :  { %s2590_s12 = smov 0   ;;  %s3088_s0 = inlined_call_operand.vmem [shape: bf16[256,1152], index: 0, kind: input, shape index: {}]   ;;  %s3089_s1 = inlined_call_operand.vmem [shape: bf16[1152,128], index: 1, kind: input, shape index: {}]   ;;  %s3090_s2 = inlined_call_operand.vmem [shape: f32[1,128], index: 2, kind: input, shape index: {}]   ;;  %s3091_s3 = inlined_call_operand.vmem [shape: bf16[256,128], index: 3, kind: output, shape index: {}]  }
   0x1 LB: > { %s1750_s13 = sadd.s32 4294967295, %s2568_s12   ;;  %p1754_p0 = scmp.ge.s32.totalorder %s2568_s12, 1  ;;  %s2568_s12 = sphi %s2590_s12, %s13_s12  }
   0x2   : > { %p139_p1 = scmp.lt.s32.totalorder %s2568_s12, 3 }
   0x4   : > { %p140_p2 = pnand %p1754_p0, %p139_p1 }
   0x5   : > { %s1755_s20 = sshll.u32 (!%p140_p2), %s1750_s13, 4 }
   0x6   : > { %143 = sbr.rel (%p140_p2) target bundleno = 466 (0x1d2), region = 32  ;;  %p165_p3 = scmp.lt.s32.totalorder (!%p140_p2), %s1755_s20, 31 }
   0xb   : > { %v2416_v0 = vld [vmem:[%s3089_s1 + $0x38] sm:$0xff]  ;;  %v2415_v1 = vld [vmem:[%s3089_s1 + $0x30] sm:$0xff]  ;;  %v2414_v2 = vld [vmem:[%s3089_s1 + $0x28] sm:$0xff]  ;;  %s3093_s20 = smov (!%p165_p3, %s1755_s20), 31 }
   0xc   : > { %2528 = vmatpush.bf16.msra.mxu1 %v2416_v0  ;;  %2529 = vmatpush.bf16.msra.mxu2 %v2416_v0  ;;  %v2413_v3 = vld [vmem:[%s3089_s1 + $0x20] sm:$0xff]  ;;  %v2412_v4 = vld [vmem:[%s3089_s1 + $0x18] sm:$0xff]  ;;  %v2411_v5 = vld [vmem:[%s3089_s1 + $0x10] sm:$0xff]  ;;  %s2552_s27 = smul.u32 36, %s3093_s20 }
   0xd   : > { %2530 = vmatpush.bf16.msra.mxu3 %v2416_v0  ;;  %1205 = vmatpush.bf16.msra.mxu0 %v2416_v0  ;;  %v2410_v6 = vld [vmem:[%s3089_s1 + $0x8] sm:$0xff]  ;;  %v2409_v7 = vld [vmem:[%s3089_s1] sm:$0xff]  ;;  %v2432_v16 = vld [vmem:[%s3089_s1 + $0xb8] sm:$0xff] }
   0xe   : > { %s2625_s5 = scalar_lea.vmem %s3088_s0, %s2552_s27  ;;  %v2424_v17 = vld [vmem:[%s3089_s1 + $0x78] sm:$0xff]  ;;  %v2431_v24 = vld [vmem:[%s3089_s1 + $0xb0] sm:$0xff]  ;;  %v2430_v28 = vld [vmem:[%s3089_s1 + $0xa8] sm:$0xff] }
   0xf   : > { %v1833_v8 = vld [vmem:[%s2625_s5 + $0x90] sm:$0xf]  ;;  %v2359_v9 = vld [vmem:[%s2625_s5 + $0xb0] sm:$0xf0]  ;;  %v1905_v10 = vld [vmem:[%s2625_s5 + $0x120] sm:$0xf] }
  0x10   : > { %2531 = vmatpush.bf16.msra.mxu1 %v2415_v1  ;;  %2532 = vmatpush.bf16.msra.mxu2 %v2415_v1  ;;  %v2377_v11 = vld [vmem:[%s2625_s5 + $0x140] sm:$0xf0]  ;;  %v1977_v12 = vld [vmem:[%s2625_s5 + $0x1b0] sm:$0xf]  ;;  %v2395_v13 = vld [vmem:[%s2625_s5 + $0x1d0] sm:$0xf0]  ;;  %v1834_v18 = vor.u32 %v2359_v9, %v1833_v8 }
  0x11   : > { %2533 = vmatpush.bf16.msra.mxu3 %v2415_v1  ;;  %1206 = vmatpush.bf16.msra.mxu0 %v2415_v1  ;;  %v1761_v14 = vld [vmem:[%s2625_s5] sm:$0xf]  ;;  %v2341_v15 = vld [vmem:[%s2625_s5 + $0x20] sm:$0xf0]  ;;  %v1906_v19 = vor.u32 %v2377_v11, %v1905_v10  ;;  %v1978_v20 = vor.u32 %v2395_v13, %v1977_v12  ;;  %v2440_v22 = vld [vmem:[%s3089_s1 + $0xf8] sm:$0xff] }
  0x12   : > { %v1762_v21 = vor.u32 %v2341_v15, %v1761_v14  ;;  %v2448_v23 = vld [vmem:[%s3089_s1 + $0x138] sm:$0xff]  ;;  %v2423_v25 = vld [vmem:[%s3089_s1 + $0x70] sm:$0xff]  ;;  %v2422_v29 = vld [vmem:[%s3089_s1 + $0x68] sm:$0xff] }
  0x13   : > { %v2439_v26 = vld [vmem:[%s3089_s1 + $0xf0] sm:$0xff]  ;;  %v2438_v30 = vld [vmem:[%s3089_s1 + $0xe8] sm:$0xff]  ;;  %v2429_v32 = vld [vmem:[%s3089_s1 + $0xa0] sm:$0xff] }
  0x14   : > { %2534 = vmatpush.bf16.msra.mxu1 %v2414_v2  ;;  %2535 = vmatpush.bf16.msra.mxu2 %v2414_v2  ;;  %v2447_v27 = vld [vmem:[%s3089_s1 + $0x130] sm:$0xff]  ;;  %v2446_v31 = vld [vmem:[%s3089_s1 + $0x128] sm:$0xff]  ;;  %v2421_v33 = vld [vmem:[%s3089_s1 + $0x60] sm:$0xff] }
  0x15   : > { %2536 = vmatpush.bf16.msra.mxu3 %v2414_v2  ;;  %1207 = vmatpush.bf16.msra.mxu0 %v2414_v2  ;;  %v2437_v34 = vld [vmem:[%s3089_s1 + $0xe0] sm:$0xff]  ;;  %v1869_v36 = vld [vmem:[%s2625_s5 + $0xd8] sm:$0xf]  ;;  %v2368_v37 = vld [vmem:[%s2625_s5 + $0xf8] sm:$0xf0] }
  0x16   : > { %v2445_v35 = vld [vmem:[%s3089_s1 + $0x120] sm:$0xff]  ;;  %v1941_v38 = vld [vmem:[%s2625_s5 + $0x168] sm:$0xf]  ;;  %v2386_v39 = vld [vmem:[%s2625_s5 + $0x188] sm:$0xf0]  ;;  %v1870_v46 = vor.u32 %v2368_v37, %v1869_v36 }
  0x17   : > { %v2013_v40 = vld [vmem:[%s2625_s5 + $0x1f8] sm:$0xf]  ;;  %v2404_v41 = vld [vmem:[%s2625_s5 + $0x218] sm:$0xf0]  ;;  %v1797_v42 = vld [vmem:[%s2625_s5 + $0x48] sm:$0xf]  ;;  %v1942_v47 = vor.u32 %v2386_v39, %v1941_v38 }
  0x18   : > { %2537 = vmatpush.bf16.msra.mxu1 %v2413_v3  ;;  %2538 = vmatpush.bf16.msra.mxu2 %v2413_v3  ;;  %v2350_v43 = vld [vmem:[%s2625_s5 + $0x68] sm:$0xf0]  ;;  %v2428_v44 = vld [vmem:[%s3089_s1 + $0x98] sm:$0xff]  ;;  %v2014_v48 = vor.u32 %v2404_v41, %v2013_v40  ;;  %v2427_v52 = vld [vmem:[%s3089_s1 + $0x90] sm:$0xff] }
  0x19   : > { %2539 = vmatpush.bf16.msra.mxu3 %v2413_v3  ;;  %1208 = vmatpush.bf16.msra.mxu0 %v2413_v3  ;;  %v2420_v45 = vld [vmem:[%s3089_s1 + $0x58] sm:$0xff]  ;;  %v1798_v49 = vor.u32 %v2350_v43, %v1797_v42  ;;  %v2419_v53 = vld [vmem:[%s3089_s1 + $0x50] sm:$0xff]  ;;  %v2426_v56 = vld [vmem:[%s3089_s1 + $0x88] sm:$0xff] }
  0x1a   : > { %v2436_v50 = vld [vmem:[%s3089_s1 + $0xd8] sm:$0xff]  ;;  %v2435_v54 = vld [vmem:[%s3089_s1 + $0xd0] sm:$0xff]  ;;  %v2418_v57 = vld [vmem:[%s3089_s1 + $0x48] sm:$0xff] }
  0x1b   : > { %v2444_v51 = vld [vmem:[%s3089_s1 + $0x118] sm:$0xff]  ;;  %v2443_v55 = vld [vmem:[%s3089_s1 + $0x110] sm:$0xff]  ;;  %v2434_v58 = vld [vmem:[%s3089_s1 + $0xc8] sm:$0xff] }
  0x1c   : > { %2540 = vmatpush.bf16.msra.mxu1 %v2412_v4  ;;  %2541 = vmatpush.bf16.msra.mxu2 %v2412_v4  ;;  %v2442_v59 = vld [vmem:[%s3089_s1 + $0x108] sm:$0xff]  ;;  %v2425_v60 = vld [vmem:[%s3089_s1 + $0x80] sm:$0xff]  ;;  %v2464_v2 = vld [vmem:[%s3089_s1 + $0x1b8] sm:$0xff] }
  0x1d   : > { %2542 = vmatpush.bf16.msra.mxu3 %v2412_v4  ;;  %1209 = vmatpush.bf16.msra.mxu0 %v2412_v4  ;;  %v2417_v61 = vld [vmem:[%s3089_s1 + $0x40] sm:$0xff]  ;;  %v1763_v1 = vld [vmem:[%s2625_s5 + $0x24] sm:$0xf0]  ;;  %v2456_v3 = vld [vmem:[%s3089_s1 + $0x178] sm:$0xff] }
  0x1e   : > { %v2337_v62 = vld [vmem:[%s2625_s5 + $0x4] sm:$0xf]  ;;  %v1769_v4 = vld [vmem:[%s2625_s5 + $0x8] sm:$0xf]  ;;  %v1777_v8 = vld [vmem:[%s2625_s5 + $0x10] sm:$0xf] }
  0x1f   : > { %v2433_v63 = vld [vmem:[%s3089_s1 + $0xc0] sm:$0xff]  ;;  %v2343_v9 = vld [vmem:[%s2625_s5 + $0x30] sm:$0xf0]  ;;  %v2472_v10 = vld [vmem:[%s3089_s1 + $0x1f8] sm:$0xff]  ;;  %v1766_v12 = vor.u32 %v2337_v62, %v1763_v1 }
  0x20   : > { %2543 = vmatpush.bf16.msra.mxu1 %v2411_v5  ;;  %2544 = vmatpush.bf16.msra.mxu2 %v2411_v5  ;;  %v2441_v0 = vld [vmem:[%s3089_s1 + $0x100] sm:$0xff]  ;;  %v2480_v11 = vld [vmem:[%s3089_s1 + $0x238] sm:$0xff]  ;;  %v1778_v15 = vor.u32 %v2343_v9, %v1777_v8  ;;  %v2355_v40 = vld [vmem:[%s2625_s5 + $0x94] sm:$0xf] }
  0x21   : > { %2545 = vmatpush.bf16.msra.mxu3 %v2411_v5  ;;  %1210 = vmatpush.bf16.msra.mxu0 %v2411_v5  ;;  %v2342_v5 = vld [vmem:[%s2625_s5 + $0x28] sm:$0xf0]  ;;  %v2461_v36 = vld [vmem:[%s3089_s1 + $0x1a0] sm:$0xff]  ;;  %v1835_v41 = vld [vmem:[%s2625_s5 + $0xb4] sm:$0xf0] }
  0x22   : > { %v1770_v13 = vor.u32 %v2342_v5, %v1769_v4  ;;  %v2469_v37 = vld [vmem:[%s3089_s1 + $0x1e0] sm:$0xff]  ;;  %v1841_v42 = vld [vmem:[%s2625_s5 + $0x98] sm:$0xf]  ;;  %v2360_v43 = vld [vmem:[%s2625_s5 + $0xb8] sm:$0xf0] }
  0x23   : > { %v2453_v38 = vld [vmem:[%s3089_s1 + $0x160] sm:$0xff]  ;;  %v1885_v62 = vld [vmem:[%s2625_s5 + $0xe8] sm:$0xf]  ;;  %v2459_v4 = vld [vmem:[%s3089_s1 + $0x190] sm:$0xff] }
  0x24   : > { %2546 = vmatpush.bf16.msra.mxu1 %v2410_v6  ;;  %2547 = vmatpush.bf16.msra.mxu2 %v2410_v6  ;;  %v2477_v39 = vld [vmem:[%s3089_s1 + $0x220] sm:$0xff]  ;;  %v2467_v5 = vld [vmem:[%s3089_s1 + $0x1d0] sm:$0xff]  ;;  %v1907_v9 = vld [vmem:[%s2625_s5 + $0x144] sm:$0xf0] }
  0x25   : > { %2548 = vmatpush.bf16.msra.mxu3 %v2410_v6  ;;  %1211 = vmatpush.bf16.msra.mxu0 %v2410_v6  ;;  %v2338_v6 = vld [vmem:[%s2625_s5 + $0xc] sm:$0xf]  ;;  %v2373_v8 = vld [vmem:[%s2625_s5 + $0x124] sm:$0xf] }
  0x28   : > { %2549 = vmatpush.bf16.msra.mxu1 %v2409_v7  ;;  %2550 = vmatpush.bf16.msra.mxu2 %v2409_v7 }
  0x29   : > { %2551 = vmatpush.bf16.msra.mxu3 %v2409_v7  ;;  %1212 = vmatpush.bf16.msra.mxu0 %v2409_v7  ;;  %v1771_v7 = vld [vmem:[%s2625_s5 + $0x2c] sm:$0xf0] }
  0x2a   : > { %v1774_v14 = vor.u32 %v2338_v6, %v1771_v7  ;;  %v2451_v6 = vld [vmem:[%s3089_s1 + $0x150] sm:$0xff] }
  0x2b   : > { %1223 = vmatmul.bf16.vlgmr.msra.gmra.mxu1 %v1834_v18  ;;  %1233 = vmatmul.bf16.vlgmr.msra.gmra.mxu2 %v1906_v19  ;;  %v2471_v18 = vld [vmem:[%s3089_s1 + $0x1f0] sm:$0xff] }
  0x2c   : > { %1303 = vmatpush.bf16.msrb.mxu2 %v2432_v16  ;;  %1254 = vmatpush.bf16.msrb.mxu1 %v2424_v17  ;;  %v2463_v16 = vld [vmem:[%s3089_s1 + $0x1b0] sm:$0xff] }
  0x2d   : > { %1243 = vmatmul.bf16.vlgmr.msra.gmra.mxu3 %v1978_v20  ;;  %1213 = vmatmul.bf16.vlgmr.msra.gmra.mxu0 %v1762_v21  ;;  %v2455_v17 = vld [vmem:[%s3089_s1 + $0x170] sm:$0xff]  ;;  %v2462_v20 = vld [vmem:[%s3089_s1 + $0x1a8] sm:$0xff] }
  0x2e   : > { %1352 = vmatpush.bf16.msrb.mxu3 %v2440_v22  ;;  %1401 = vmatpush.bf16.msrb.mxu0 %v2448_v23  ;;  %v2479_v19 = vld [vmem:[%s3089_s1 + $0x230] sm:$0xff]  ;;  %v2454_v21 = vld [vmem:[%s3089_s1 + $0x168] sm:$0xff] }
  0x2f   : > { %v2470_v22 = vld [vmem:[%s3089_s1 + $0x1e8] sm:$0xff]  ;;  %v2475_v7 = vld [vmem:[%s3089_s1 + $0x210] sm:$0xff] }
  0x30   : > { %1304 = vmatpush.bf16.msrb.mxu2 %v2431_v24  ;;  %1255 = vmatpush.bf16.msrb.mxu1 %v2423_v25  ;;  %v2478_v23 = vld [vmem:[%s3089_s1 + $0x228] sm:$0xff]  ;;  %v1799_v25 = vld [vmem:[%s2625_s5 + $0x6c] sm:$0xf0] }
  0x31   : > { %v2346_v24 = vld [vmem:[%s2625_s5 + $0x4c] sm:$0xf] }
  0x32   : > { %1353 = vmatpush.bf16.msrb.mxu3 %v2439_v26  ;;  %1402 = vmatpush.bf16.msrb.mxu0 %v2447_v27  ;;  %v1805_v26 = vld [vmem:[%s2625_s5 + $0x50] sm:$0xf]  ;;  %v2351_v27 = vld [vmem:[%s2625_s5 + $0x70] sm:$0xf0] }
  0x34   : > { %1305 = vmatpush.bf16.msrb.mxu2 %v2430_v28  ;;  %1256 = vmatpush.bf16.msrb.mxu1 %v2422_v29  ;;  %v2347_v28 = vld [vmem:[%s2625_s5 + $0x54] sm:$0xf]  ;;  %v1807_v29 = vld [vmem:[%s2625_s5 + $0x74] sm:$0xf0] }
  0x36   : > { %1354 = vmatpush.bf16.msrb.mxu3 %v2438_v30  ;;  %1403 = vmatpush.bf16.msrb.mxu0 %v2446_v31  ;;  %v1813_v30 = vld [vmem:[%s2625_s5 + $0x58] sm:$0xf]  ;;  %v2352_v31 = vld [vmem:[%s2625_s5 + $0x78] sm:$0xf0] }
  0x38   : > { %1306 = vmatpush.bf16.msrb.mxu2 %v2429_v32  ;;  %1257 = vmatpush.bf16.msrb.mxu1 %v2421_v33  ;;  %v1802_v32 = vor.u32 %v2346_v24, %v1799_v25  ;;  %v1806_v33 = vor.u32 %v2351_v27, %v1805_v26  ;;  %v2382_v24 = vld [vmem:[%s2625_s5 + $0x16c] sm:$0xf]  ;;  %v1943_v25 = vld [vmem:[%s2625_s5 + $0x18c] sm:$0xf0]  ;;  %v2387_v27 = vld [vmem:[%s2625_s5 + $0x190] sm:$0xf0] }
  0x39   : > { %v1949_v26 = vld [vmem:[%s2625_s5 + $0x170] sm:$0xf] }
  0x3a   : > { %1355 = vmatpush.bf16.msrb.mxu3 %v2437_v34  ;;  %1404 = vmatpush.bf16.msrb.mxu0 %v2445_v35  ;;  %v1810_v34 = vor.u32 %v2347_v28, %v1807_v29  ;;  %v1814_v35 = vor.u32 %v2352_v31, %v1813_v30  ;;  %v2383_v28 = vld [vmem:[%s2625_s5 + $0x174] sm:$0xf]  ;;  %v1951_v29 = vld [vmem:[%s2625_s5 + $0x194] sm:$0xf0]  ;;  %v2388_v31 = vld [vmem:[%s2625_s5 + $0x198] sm:$0xf0] }
  0x3b   : > { %1228 = vmatmul.bf16.gmra.mxu1 %v1870_v46  ;;  %1238 = vmatmul.bf16.gmra.mxu2 %v1942_v47  ;;  %v1849_v46 = vld [vmem:[%s2625_s5 + $0xa0] sm:$0xf]  ;;  %v2361_v47 = vld [vmem:[%s2625_s5 + $0xc0] sm:$0xf0]  ;;  %v1957_v30 = vld [vmem:[%s2625_s5 + $0x178] sm:$0xf] }
  0x3c   : > { %1307 = vmatpush.bf16.msrb.mxu2 %v2428_v44  ;;  %1258 = vmatpush.bf16.msrb.mxu1 %v2420_v45  ;;  %v2356_v44 = vld [vmem:[%s2625_s5 + $0x9c] sm:$0xf]  ;;  %v1843_v45 = vld [vmem:[%s2625_s5 + $0xbc] sm:$0xf0] }
  0x3d   : > { %1248 = vmatmul.bf16.gmra.mxu3 %v2014_v48  ;;  %1218 = vmatmul.bf16.gmra.mxu0 %v1798_v49  ;;  %v1838_v48 = vor.u32 %v2355_v40, %v1835_v41  ;;  %v1842_v49 = vor.u32 %v2360_v43, %v1841_v42  ;;  %v2391_v40 = vld [vmem:[%s2625_s5 + $0x1b4] sm:$0xf]  ;;  %v1979_v41 = vld [vmem:[%s2625_s5 + $0x1d4] sm:$0xf0]  ;;  %v2396_v43 = vld [vmem:[%s2625_s5 + $0x1d8] sm:$0xf0] }
  0x3e   : > { %1356 = vmatpush.bf16.msrb.mxu3 %v2436_v50  ;;  %1405 = vmatpush.bf16.msrb.mxu0 %v2444_v51  ;;  %v1846_v50 = vor.u32 %v2356_v44, %v1843_v45  ;;  %v1850_v51 = vor.u32 %v2361_v47, %v1849_v46  ;;  %v1985_v42 = vld [vmem:[%s2625_s5 + $0x1b8] sm:$0xf]  ;;  %v2392_v44 = vld [vmem:[%s2625_s5 + $0x1bc] sm:$0xf]  ;;  %v1987_v45 = vld [vmem:[%s2625_s5 + $0x1dc] sm:$0xf0] }
  0x3f   : > { %v1993_v46 = vld [vmem:[%s2625_s5 + $0x1c0] sm:$0xf]  ;;  %v2397_v47 = vld [vmem:[%s2625_s5 + $0x1e0] sm:$0xf0] }
  0x40   : > { %1308 = vmatpush.bf16.msrb.mxu2 %v2427_v52  ;;  %1259 = vmatpush.bf16.msrb.mxu1 %v2419_v53  ;;  %v2460_v52 = vld [vmem:[%s3089_s1 + $0x198] sm:$0xff] }
  0x41   : > { %v2468_v53 = vld [vmem:[%s3089_s1 + $0x1d8] sm:$0xff] }
  0x42   : > { %1357 = vmatpush.bf16.msrb.mxu3 %v2435_v54  ;;  %1406 = vmatpush.bf16.msrb.mxu0 %v2443_v55  ;;  %v2452_v54 = vld [vmem:[%s3089_s1 + $0x158] sm:$0xff] }
  0x43   : > { %v2476_v55 = vld [vmem:[%s3089_s1 + $0x218] sm:$0xff] }
  0x44   : > { %1309 = vmatpush.bf16.msrb.mxu2 %v2426_v56  ;;  %1260 = vmatpush.bf16.msrb.mxu1 %v2418_v57  ;;  %v2364_v56 = vld [vmem:[%s2625_s5 + $0xdc] sm:$0xf]  ;;  %v1871_v57 = vld [vmem:[%s2625_s5 + $0xfc] sm:$0xf0] }
  0x46   : > { %1358 = vmatpush.bf16.msrb.mxu3 %v2434_v58  ;;  %1407 = vmatpush.bf16.msrb.mxu0 %v2442_v59  ;;  %v1877_v58 = vld [vmem:[%s2625_s5 + $0xe0] sm:$0xf]  ;;  %v2369_v59 = vld [vmem:[%s2625_s5 + $0x100] sm:$0xf0] }
  0x47   : > { %v1878_v1 = vor.u32 %v2369_v59, %v1877_v58 }
  0x48   : > { %1310 = vmatpush.bf16.msrb.mxu2 %v2425_v60  ;;  %1261 = vmatpush.bf16.msrb.mxu1 %v2417_v61  ;;  %v2365_v60 = vld [vmem:[%s2625_s5 + $0xe4] sm:$0xf]  ;;  %v1879_v61 = vld [vmem:[%s2625_s5 + $0x104] sm:$0xf0] }
  0x4a   : > { %1359 = vmatpush.bf16.msrb.mxu3 %v2433_v63  ;;  %1408 = vmatpush.bf16.msrb.mxu0 %v2441_v0  ;;  %v2370_v63 = vld [vmem:[%s2625_s5 + $0x108] sm:$0xf0]  ;;  %v1874_v0 = vor.u32 %v2364_v56, %v1871_v57 }
  0x4b   : > { %1262 = vmatmul.bf16.vlgmr.msrb.gmra.mxu1 %v1766_v12  ;;  %1311 = vmatmul.bf16.vlgmr.msrb.gmra.mxu2 %v1770_v13  ;;  %v2374_v12 = vld [vmem:[%s2625_s5 + $0x12c] sm:$0xf]  ;;  %v1915_v13 = vld [vmem:[%s2625_s5 + $0x14c] sm:$0xf0] }
  0x4c   : > { %1499 = vmatpush.bf16.msra.mxu2 %v2464_v2  ;;  %1450 = vmatpush.bf16.msra.mxu1 %v2456_v3  ;;  %v1882_v2 = vor.u32 %v2365_v60, %v1879_v61  ;;  %v1886_v3 = vor.u32 %v2370_v63, %v1885_v62  ;;  %v2400_v61 = vld [vmem:[%s2625_s5 + $0x1fc] sm:$0xf]  ;;  %v2015_v62 = vld [vmem:[%s2625_s5 + $0x21c] sm:$0xf0] }
  0x4d   : > { %1360 = vmatmul.bf16.vlgmr.msrb.gmra.mxu3 %v1774_v14  ;;  %1409 = vmatmul.bf16.vlgmr.msrb.gmra.mxu0 %v1778_v15  ;;  %v1921_v14 = vld [vmem:[%s2625_s5 + $0x130] sm:$0xf]  ;;  %v2379_v15 = vld [vmem:[%s2625_s5 + $0x150] sm:$0xf0]  ;;  %v2021_v63 = vld [vmem:[%s2625_s5 + $0x200] sm:$0xf] }
  0x4e   : > { %1548 = vmatpush.bf16.msra.mxu3 %v2472_v10  ;;  %1597 = vmatpush.bf16.msra.mxu0 %v2480_v11  ;;  %v1913_v10 = vld [vmem:[%s2625_s5 + $0x128] sm:$0xf]  ;;  %v2378_v11 = vld [vmem:[%s2625_s5 + $0x148] sm:$0xf0] }
  0x50   : > { %1500 = vmatpush.bf16.msra.mxu2 %v2463_v16  ;;  %1451 = vmatpush.bf16.msra.mxu1 %v2455_v17  ;;  %v1910_v16 = vor.u32 %v2373_v8, %v1907_v9  ;;  %v1914_v17 = vor.u32 %v2378_v11, %v1913_v10  ;;  %v2018_v8 = vor.u32 %v2400_v61, %v2015_v62  ;;  %v1823_v61 = vld [vmem:[%s2625_s5 + $0x84] sm:$0xf0] }
  0x51   : > { %v1829_v62 = vld [vmem:[%s2625_s5 + $0x68] sm:$0xf] }
  0x52   : > { %1549 = vmatpush.bf16.msra.mxu3 %v2471_v18  ;;  %1598 = vmatpush.bf16.msra.mxu0 %v2479_v19  ;;  %v1918_v18 = vor.u32 %v2374_v12, %v1915_v13  ;;  %v1922_v19 = vor.u32 %v2379_v15, %v1921_v14 }
  0x54   : > { %1501 = vmatpush.bf16.msra.mxu2 %v2462_v20  ;;  %1452 = vmatpush.bf16.msra.mxu1 %v2454_v21  ;;  %v2458_v20 = vld [vmem:[%s3089_s1 + $0x188] sm:$0xff] }
  0x55   : > { %v2466_v21 = vld [vmem:[%s3089_s1 + $0x1c8] sm:$0xff] }
  0x56   : > { %1550 = vmatpush.bf16.msra.mxu3 %v2470_v22  ;;  %1599 = vmatpush.bf16.msra.mxu0 %v2478_v23  ;;  %v2450_v22 = vld [vmem:[%s3089_s1 + $0x148] sm:$0xff] }
  0x57   : > { %v2474_v23 = vld [vmem:[%s3089_s1 + $0x208] sm:$0xff] }
  0x58   : > { %1502 = vmatpush.bf16.msra.mxu2 %v2461_v36  ;;  %1453 = vmatpush.bf16.msra.mxu1 %v2453_v38  ;;  %v2457_v36 = vld [vmem:[%s3089_s1 + $0x180] sm:$0xff] }
  0x59   : > { %v2449_v38 = vld [vmem:[%s3089_s1 + $0x140] sm:$0xff] }
  0x5a   : > { %1551 = vmatpush.bf16.msra.mxu3 %v2469_v37  ;;  %1600 = vmatpush.bf16.msra.mxu0 %v2477_v39  ;;  %v2465_v37 = vld [vmem:[%s3089_s1 + $0x1c0] sm:$0xff] }
  0x5b   : > { %1267 = vmatmul.bf16.gmra.mxu1 %v1802_v32  ;;  %1316 = vmatmul.bf16.gmra.mxu2 %v1806_v33  ;;  %v1946_v32 = vor.u32 %v2382_v24, %v1943_v25  ;;  %v1950_v33 = vor.u32 %v2387_v27, %v1949_v26  ;;  %v2473_v39 = vld [vmem:[%s3089_s1 + $0x200] sm:$0xff]  ;;  %v2344_v24 = vld [vmem:[%s2625_s5 + $0x38] sm:$0xf0] }
  0x5c   : > { %1503 = vmatpush.bf16.msra.mxu2 %v2460_v52  ;;  %1454 = vmatpush.bf16.msra.mxu1 %v2452_v54  ;;  %v1994_v52 = vor.u32 %v2397_v47, %v1993_v46  ;;  %v2899_v54 = vld [vmem:[%s3090_s2] ss:$0 sm:$0xff]  ;;  %v2340_v25 = vld [vmem:[%s2625_s5 + $0x1c] sm:$0xf] }
  0x5d   : > { %1365 = vmatmul.bf16.gmra.mxu3 %v1810_v34  ;;  %1414 = vmatmul.bf16.gmra.mxu0 %v1814_v35  ;;  %v1954_v34 = vor.u32 %v2383_v28, %v1951_v29  ;;  %v1958_v35 = vor.u32 %v2388_v31, %v1957_v30  ;;  %v1787_v26 = vld [vmem:[%s2625_s5 + $0x3c] sm:$0xf0]  ;;  %v2345_v28 = vld [vmem:[%s2625_s5 + $0x40] sm:$0xf0] }
  0x5e   : > { %1552 = vmatpush.bf16.msra.mxu3 %v2468_v53  ;;  %1601 = vmatpush.bf16.msra.mxu0 %v2476_v55  ;;  %v1793_v27 = vld [vmem:[%s2625_s5 + $0x20] sm:$0xf] }
  0x60   : > { %1504 = vmatpush.bf16.msra.mxu2 %v2459_v4  ;;  %1455 = vmatpush.bf16.msra.mxu1 %v2451_v6  ;;  %v2406_v4 = vld [vmem:[%s2625_s5 + $0x228] sm:$0xf0] }
  0x62   : > { %1553 = vmatpush.bf16.msra.mxu3 %v2467_v5  ;;  %1602 = vmatpush.bf16.msra.mxu0 %v2475_v7 }
  0x64   : > { %1505 = vmatpush.bf16.msra.mxu2 %v2458_v20  ;;  %1456 = vmatpush.bf16.msra.mxu1 %v2450_v22  ;;  %v1779_v22 = vld [vmem:[%s2625_s5 + $0x34] sm:$0xf0] }
  0x66   : > { %1554 = vmatpush.bf16.msra.mxu3 %v2466_v21  ;;  %1603 = vmatpush.bf16.msra.mxu0 %v2474_v23  ;;  %v2339_v21 = vld [vmem:[%s2625_s5 + $0x14] sm:$0xf]  ;;  %v1785_v23 = vld [vmem:[%s2625_s5 + $0x18] sm:$0xf] }
  0x68   : > { %1506 = vmatpush.bf16.msra.mxu2 %v2457_v36  ;;  %1457 = vmatpush.bf16.msra.mxu1 %v2449_v38  ;;  %v1794_v38 = vor.u32 %v2345_v28, %v1793_v27  ;;  %v2357_v27 = vld [vmem:[%s2625_s5 + $0xa4] sm:$0xf]  ;;  %v1851_v28 = vld [vmem:[%s2625_s5 + $0xc4] sm:$0xf0] }
  0x6a   : > { %1555 = vmatpush.bf16.msra.mxu3 %v2465_v37  ;;  %1604 = vmatpush.bf16.msra.mxu0 %v2473_v39  ;;  %v1790_v37 = vor.u32 %v2340_v25, %v1787_v26 }
  0x6b   : > { %1272 = vmatmul.bf16.gmra.mxu1 %v1838_v48  ;;  %1321 = vmatmul.bf16.gmra.mxu2 %v1842_v49  ;;  %v1982_v48 = vor.u32 %v2391_v40, %v1979_v41  ;;  %v1986_v49 = vor.u32 %v2396_v43, %v1985_v42 }
  0x6d   : > { %1370 = vmatmul.bf16.gmra.mxu3 %v1846_v50  ;;  %1419 = vmatmul.bf16.gmra.mxu0 %v1850_v51  ;;  %v1990_v51 = vor.u32 %v2392_v44, %v1987_v45 }
  0x7b   : > { %1277 = vmatmul.bf16.gmra.mxu1 %v1874_v0  ;;  %1326 = vmatmul.bf16.gmra.mxu2 %v1878_v1  ;;  %v2405_v0 = vld [vmem:[%s2625_s5 + $0x220] sm:$0xf0] }
  0x7c   : > { %v2401_v1 = vld [vmem:[%s2625_s5 + $0x204] sm:$0xf]  ;;  %v2022_v9 = vor.u32 %v2405_v0, %v2021_v63  ;;  %v2354_v63 = vld [vmem:[%s2625_s5 + $0x88] sm:$0xf0] }
  0x7d   : > { %1375 = vmatmul.bf16.gmra.mxu3 %v1882_v2  ;;  %1424 = vmatmul.bf16.gmra.mxu0 %v1886_v3  ;;  %v2023_v2 = vld [vmem:[%s2625_s5 + $0x224] sm:$0xf0] }
  0x7e   : > { %v2029_v3 = vld [vmem:[%s2625_s5 + $0x208] sm:$0xf]  ;;  %v2026_v12 = vor.u32 %v2401_v1, %v2023_v2 }
  0x7f   : > { %v2030_v13 = vor.u32 %v2406_v4, %v2029_v3 }
  0x8b   : > { %1282 = vmatmul.bf16.gmra.mxu1 %v1910_v16  ;;  %1331 = vmatmul.bf16.gmra.mxu2 %v1914_v17 }
  0x8d   : > { %1380 = vmatmul.bf16.gmra.mxu3 %v1918_v18  ;;  %1429 = vmatmul.bf16.gmra.mxu0 %v1922_v19 }
  0x9b   : > { %1287 = vmatmul.bf16.gmra.mxu1 %v1946_v32  ;;  %1336 = vmatmul.bf16.gmra.mxu2 %v1950_v33  ;;  %v1782_v33 = vor.u32 %v2339_v21, %v1779_v22 }
  0x9d   : > { %1385 = vmatmul.bf16.gmra.mxu3 %v1954_v34  ;;  %1434 = vmatmul.bf16.gmra.mxu0 %v1958_v35  ;;  %v1786_v34 = vor.u32 %v2344_v24, %v1785_v23 }
  0xa8   : > { %v2894_v50 = vpop.f32.mrf.mxu1 }
  0xaa   : > { %v1214_v53 = vpop.f32.mrf.mxu0 }
  0xab   : > { %1292 = vmatmul.bf16.gmra.mxu1 %v1982_v48  ;;  %1341 = vmatmul.bf16.gmra.mxu2 %v1986_v49  ;;  %v1215_v30 = vadd.f32 %v2899_v54, %v1214_v53  ;;  %v2348_v49 = vld [vmem:[%s2625_s5 + $0x5c] sm:$0xf]  ;;  %v1821_v53 = vld [vmem:[%s2625_s5 + $0x60] sm:$0xf] }
  0xad   : > { %1390 = vmatmul.bf16.gmra.mxu3 %v1990_v51  ;;  %1439 = vmatmul.bf16.gmra.mxu0 %v1994_v52  ;;  %v1815_v51 = vld [vmem:[%s2625_s5 + $0x7c] sm:$0xf0] }
  0xae   : > { %v1234_v55 = vpop.f32.mrf.mxu2  ;;  %v1818_v3 = vor.u32 %v2348_v49, %v1815_v51 }
  0xaf   : > { %v2902_v56 = vadd.f32 %v2899_v54, %v1234_v55  ;;  %v2353_v55 = vld [vmem:[%s2625_s5 + $0x80] sm:$0xf0] }
  0xb0   : > { %v1244_v57 = vpop.f32.mrf.mxu3  ;;  %v2907_v59 = vpop.f32.mrf.mxu1  ;;  %v1822_v4 = vor.u32 %v2353_v55, %v1821_v53 }
  0xb1   : > { %v2905_v58 = vadd.f32 %v2899_v54, %v1244_v57  ;;  %v2349_v57 = vld [vmem:[%s2625_s5 + $0x64] sm:$0xf]  ;;  %v1227_v51 = vadd.f32 %v2899_v54, %v2907_v59 }
  0xb2   : > { %v1216_v60 = vpop.f32.mrf.mxu0 }
  0xb3   : > { %v1217_v42 = vadd.f32 %v2899_v54, %v1216_v60 }
  0xb6   : > { %v1236_v5 = vpop.f32.mrf.mxu2 }
  0xb7   : > { %v2918_v6 = vadd.f32 %v2899_v54, %v1236_v5 }
  0xb8   : > { %v1246_v7 = vpop.f32.mrf.mxu3  ;;  %v2923_v11 = vpop.f32.mrf.mxu1 }
  0xb9   : > { %v2921_v10 = vadd.f32 %v2899_v54, %v1246_v7  ;;  %v1826_v7 = vor.u32 %v2349_v57, %v1823_v61  ;;  %v1230_v59 = vadd.f32 %v2899_v54, %v2923_v11 }
  0xba   : > { %v1219_v14 = vpop.f32.mrf.mxu0 }
  0xbb   : > { %1297 = vmatmul.bf16.gmra.mxu1 %v2018_v8  ;;  %1346 = vmatmul.bf16.gmra.mxu2 %v2022_v9  ;;  %v1220_v1 = vadd.f32 %v2899_v54, %v1219_v14  ;;  %v1830_v8 = vor.u32 %v2354_v63, %v1829_v62 }
  0xbd   : > { %1395 = vmatmul.bf16.gmra.mxu3 %v2026_v12  ;;  %1444 = vmatmul.bf16.gmra.mxu0 %v2030_v13 }
  0xbe   : > { %v1239_v15 = vpop.f32.mrf.mxu2 }
  0xbf   : > { %v2926_v16 = vadd.f32 %v2899_v54, %v1239_v15 }
  0xc0   : > { %v1249_v17 = vpop.f32.mrf.mxu3  ;;  %v2931_v19 = vpop.f32.mrf.mxu1 }
  0xc1   : > { %v2929_v18 = vadd.f32 %v2899_v54, %v1249_v17 }
  0xc2   : > { %v1221_v20 = vpop.f32.mrf.mxu0 }
  0xc3   : > { %v1222_v17 = vadd.f32 %v2899_v54, %v1221_v20  ;;  %v1225_v20 = vadd.f32 %v2899_v54, %v2894_v50 }
  0xc6   : > { %v1241_v29 = vpop.f32.mrf.mxu2 }
  0xc7   : > { %v2943_v31 = vadd.f32 %v2899_v54, %v1241_v29 }
  0xc8   : > { %v1251_v32 = vpop.f32.mrf.mxu3  ;;  %v1263_v36 = vpop.f32.mrf.mxu1 }
  0xc9   : > { %v2946_v35 = vadd.f32 %v2899_v54, %v1251_v32  ;;  %v1264_v39 = vadd.f32 %v1263_v36, %v1215_v30  ;;  %v1857_v30 = vld [vmem:[%s2625_s5 + $0xa8] sm:$0xf]  ;;  %v2362_v32 = vld [vmem:[%s2625_s5 + $0xc8] sm:$0xf0]  ;;  %v1865_v36 = vld [vmem:[%s2625_s5 + $0xb0] sm:$0xf] }
  0xca   : > { %v1410_v40 = vpop.f32.mrf.mxu0 }
  0xcb   : > { %1458 = vmatmul.bf16.vlgmr.msra.gmra.mxu1 %v1782_v33  ;;  %1507 = vmatmul.bf16.vlgmr.msra.gmra.mxu2 %v1786_v34  ;;  %v2358_v33 = vld [vmem:[%s2625_s5 + $0xac] sm:$0xf]  ;;  %v1859_v34 = vld [vmem:[%s2625_s5 + $0xcc] sm:$0xf0] }
  0xcd   : > { %1556 = vmatmul.bf16.vlgmr.msra.gmra.mxu3 %v1790_v37  ;;  %1605 = vmatmul.bf16.vlgmr.msra.gmra.mxu0 %v1794_v38  ;;  %v2363_v37 = vld [vmem:[%s2625_s5 + $0xd0] sm:$0xf0] }
  0xce   : > { %v1312_v41 = vpop.f32.mrf.mxu2 }
  0xcf   : > { %v1313_v43 = vadd.f32 %v1312_v41, %v1264_v39  ;;  %v1854_v41 = vor.u32 %v2357_v27, %v1851_v28  ;;  %v1232_v28 = vadd.f32 %v2899_v54, %v2931_v19 }
  0xd0   : > { %v1361_v44 = vpop.f32.mrf.mxu3  ;;  %v1265_v45 = vpop.f32.mrf.mxu1 }
  0xd1   : > { %v1362_v46 = vadd.f32 %v1361_v44, %v1313_v43  ;;  %v1266_v47 = vadd.f32 %v1265_v45, %v1217_v42  ;;  %v1858_v42 = vor.u32 %v2362_v32, %v1857_v30  ;;  %v1862_v44 = vor.u32 %v2358_v33, %v1859_v34 }
  0xd2   : > { %v1412_v48 = vpop.f32.mrf.mxu0  ;;  %v1866_v45 = vor.u32 %v2363_v37, %v1865_v36 }
  0xd3   : > { %v2951_v52 = vadd.f32 %v1410_v40, %v1362_v46 }
  0xd6   : > { %v1314_v0 = vpop.f32.mrf.mxu2 }
  0xd7   : > { %v1315_v60 = vadd.f32 %v1314_v0, %v1266_v47  ;;  %v2366_v0 = vld [vmem:[%s2625_s5 + $0xec] sm:$0xf] }
  0xd8   : > { %v1363_v2 = vpop.f32.mrf.mxu3  ;;  %v1268_v5 = vpop.f32.mrf.mxu1 }
  0xd9   : > { %v1364_v9 = vadd.f32 %v1363_v2, %v1315_v60  ;;  %v1269_v12 = vadd.f32 %v1268_v5, %v1220_v1  ;;  %v1887_v1 = vld [vmem:[%s2625_s5 + $0x10c] sm:$0xf0]  ;;  %v1895_v5 = vld [vmem:[%s2625_s5 + $0x114] sm:$0xf0] }
  0xda   : > { %v1415_v13 = vpop.f32.mrf.mxu0  ;;  %v1893_v2 = vld [vmem:[%s2625_s5 + $0xf0] sm:$0xf] }
  0xdb   : > { %1463 = vmatmul.bf16.gmra.mxu1 %v1818_v3  ;;  %1512 = vmatmul.bf16.gmra.mxu2 %v1822_v4  ;;  %v2960_v15 = vadd.f32 %v1412_v48, %v1364_v9  ;;  %v2371_v3 = vld [vmem:[%s2625_s5 + $0x110] sm:$0xf0] }
  0xdc   : > { %v2367_v4 = vld [vmem:[%s2625_s5 + $0xf4] sm:$0xf] }
  0xdd   : > { %1561 = vmatmul.bf16.gmra.mxu3 %v1826_v7  ;;  %1610 = vmatmul.bf16.gmra.mxu0 %v1830_v8  ;;  %v1901_v7 = vld [vmem:[%s2625_s5 + $0xf8] sm:$0xf]  ;;  %v2372_v8 = vld [vmem:[%s2625_s5 + $0x118] sm:$0xf0] }
  0xde   : > { %v1317_v14 = vpop.f32.mrf.mxu2 }
  0xdf   : > { %v1318_v21 = vadd.f32 %v1317_v14, %v1269_v12  ;;  %v1890_v14 = vor.u32 %v2366_v0, %v1887_v1 }
  0xe0   : > { %v1366_v22 = vpop.f32.mrf.mxu3  ;;  %v1270_v23 = vpop.f32.mrf.mxu1 }
  0xe1   : > { %v1367_v24 = vadd.f32 %v1366_v22, %v1318_v21  ;;  %v1271_v25 = vadd.f32 %v1270_v23, %v1222_v17  ;;  %v1894_v17 = vor.u32 %v2371_v3, %v1893_v2  ;;  %v1898_v22 = vor.u32 %v2367_v4, %v1895_v5  ;;  %v2384_v5 = vld [vmem:[%s2625_s5 + $0x17c] sm:$0xf] }
  0xe2   : > { %v1417_v26 = vpop.f32.mrf.mxu0  ;;  %v1902_v23 = vor.u32 %v2372_v8, %v1901_v7  ;;  %v1959_v7 = vld [vmem:[%s2625_s5 + $0x19c] sm:$0xf0] }
  0xe3   : > { %v2965_v29 = vadd.f32 %v1415_v13, %v1367_v24 }
  0xe6   : > { %v1319_v38 = vpop.f32.mrf.mxu2 }
  0xe7   : > { %v1320_v39 = vadd.f32 %v1319_v38, %v1271_v25  ;;  %v2375_v38 = vld [vmem:[%s2625_s5 + $0x134] sm:$0xf] }
  0xe8   : > { %v1368_v40 = vpop.f32.mrf.mxu3  ;;  %v1273_v43 = vpop.f32.mrf.mxu1 }
  0xe9   : > { %v1369_v46 = vadd.f32 %v1368_v40, %v1320_v39  ;;  %v1274_v47 = vadd.f32 %v1273_v43, %v1225_v20  ;;  %v1923_v20 = vld [vmem:[%s2625_s5 + $0x154] sm:$0xf0]  ;;  %v1931_v43 = vld [vmem:[%s2625_s5 + $0x15c] sm:$0xf0] }
  0xea   : > { %v1420_v48 = vpop.f32.mrf.mxu0  ;;  %v1929_v40 = vld [vmem:[%s2625_s5 + $0x138] sm:$0xf]  ;;  %v1926_v54 = vor.u32 %v2375_v38, %v1923_v20 }
  0xeb   : > { %1468 = vmatmul.bf16.gmra.mxu1 %v1854_v41  ;;  %1517 = vmatmul.bf16.gmra.mxu2 %v1858_v42  ;;  %v2975_v49 = vadd.f32 %v1417_v26, %v1369_v46  ;;  %v2380_v41 = vld [vmem:[%s2625_s5 + $0x158] sm:$0xf0] }
  0xec   : > { %v2376_v42 = vld [vmem:[%s2625_s5 + $0x13c] sm:$0xf]  ;;  %v1930_v19 = vor.u32 %v2380_v41, %v1929_v40  ;;  %v2393_v41 = vld [vmem:[%s2625_s5 + $0x1c4] sm:$0xf] }
  0xed   : > { %1566 = vmatmul.bf16.gmra.mxu3 %v1862_v44  ;;  %1615 = vmatmul.bf16.gmra.mxu0 %v1866_v45  ;;  %v1937_v44 = vld [vmem:[%s2625_s5 + $0x140] sm:$0xf]  ;;  %v2381_v45 = vld [vmem:[%s2625_s5 + $0x160] sm:$0xf0] }
  0xee   : > { %v1322_v50 = vpop.f32.mrf.mxu2 }
  0xef   : > { %v1323_v53 = vadd.f32 %v1322_v50, %v1274_v47 }
  0xf0   : > { %v1371_v55 = vpop.f32.mrf.mxu3  ;;  %v1275_v57 = vpop.f32.mrf.mxu1 }
  0xf1   : > { %v1372_v61 = vadd.f32 %v1371_v55, %v1323_v53  ;;  %v1276_v62 = vadd.f32 %v1275_v57, %v1227_v51  ;;  %v1934_v51 = vor.u32 %v2376_v42, %v1931_v43  ;;  %v1938_v53 = vor.u32 %v2381_v45, %v1937_v44  ;;  %v1995_v42 = vld [vmem:[%s2625_s5 + $0x1e4] sm:$0xf0]  ;;  %v2398_v45 = vld [vmem:[%s2625_s5 + $0x1e8] sm:$0xf0] }
  0xf2   : > { %v1422_v63 = vpop.f32.mrf.mxu0  ;;  %v2001_v44 = vld [vmem:[%s2625_s5 + $0x1c8] sm:$0xf] }
  0xf3   : > { %v2981_v60 = vadd.f32 %v1420_v48, %v1372_v61 }
  0xf6   : > { %v1324_v9 = vpop.f32.mrf.mxu2 }
  0xf7   : > { %v1325_v12 = vadd.f32 %v1324_v9, %v1276_v62  ;;  %v1965_v9 = vld [vmem:[%s2625_s5 + $0x180] sm:$0xf] }
  0xf8   : > { %v1373_v13 = vpop.f32.mrf.mxu3  ;;  %v1278_v21 = vpop.f32.mrf.mxu1 }
  0xf9   : > { %v1374_v24 = vadd.f32 %v1373_v13, %v1325_v12  ;;  %v1279_v25 = vadd.f32 %v1278_v21, %v1230_v59  ;;  %v2389_v59 = vld [vmem:[%s2625_s5 + $0x1a0] sm:$0xf0]  ;;  %v1967_v13 = vld [vmem:[%s2625_s5 + $0x1a4] sm:$0xf0] }
  0xfa   : > { %v1425_v26 = vpop.f32.mrf.mxu0  ;;  %v2385_v12 = vld [vmem:[%s2625_s5 + $0x184] sm:$0xf] }
  0xfb   : > { %1473 = vmatmul.bf16.gmra.mxu1 %v1890_v14  ;;  %1522 = vmatmul.bf16.gmra.mxu2 %v1894_v17  ;;  %v2991_v27 = vadd.f32 %v1422_v63, %v1374_v24  ;;  %v1973_v14 = vld [vmem:[%s2625_s5 + $0x188] sm:$0xf]  ;;  %v2390_v17 = vld [vmem:[%s2625_s5 + $0x1a8] sm:$0xf0]  ;;  %v1962_v24 = vor.u32 %v2384_v5, %v1959_v7 }
  0xfd   : > { %1571 = vmatmul.bf16.gmra.mxu3 %v1898_v22  ;;  %1620 = vmatmul.bf16.gmra.mxu0 %v1902_v23 }
  0xfe   : > { %v1327_v11 = vpop.f32.mrf.mxu2 }
  0xff   : > { %v1328_v30 = vadd.f32 %v1327_v11, %v1279_v25  ;;  %v1966_v25 = vor.u32 %v2389_v59, %v1965_v9  ;;  %v1970_v11 = vor.u32 %v2385_v12, %v1967_v13  ;;  %v2402_v59 = vld [vmem:[%s2625_s5 + $0x20c] sm:$0xf]  ;;  %v2031_v12 = vld [vmem:[%s2625_s5 + $0x22c] sm:$0xf0] }
 0x100   : > { %v1376_v32 = vpop.f32.mrf.mxu3  ;;  %v1280_v33 = vpop.f32.mrf.mxu1 }
 0x101   : > { %v1377_v34 = vadd.f32 %v1376_v32, %v1328_v30  ;;  %v1281_v36 = vadd.f32 %v1280_v33, %v1232_v28  ;;  %v1974_v28 = vor.u32 %v2390_v17, %v1973_v14  ;;  %v2037_v14 = vld [vmem:[%s2625_s5 + $0x210] sm:$0xf]  ;;  %v2407_v17 = vld [vmem:[%s2625_s5 + $0x230] sm:$0xf0] }
 0x102   : > { %v1427_v37 = vpop.f32.mrf.mxu0 }
 0x103   : > { %v2997_v39 = vadd.f32 %v1425_v26, %v1377_v34 }
 0x106   : > { %v1329_v46 = vpop.f32.mrf.mxu2 }
 0x107   : > { %v1330_v47 = vadd.f32 %v1329_v46, %v1281_v36  ;;  %v2394_v46 = vld [vmem:[%s2625_s5 + $0x1cc] sm:$0xf] }
 0x108   : > { %v1378_v48 = vpop.f32.mrf.mxu3  ;;  %v1283_v50 = vpop.f32.mrf.mxu1 }
 0x109   : > { %v1379_v55 = vadd.f32 %v1378_v48, %v1330_v47  ;;  %v1284_v57 = vadd.f32 %v1283_v50, %v2902_v56  ;;  %v2003_v47 = vld [vmem:[%s2625_s5 + $0x1ec] sm:$0xf0] }
 0x10a   : > { %v1430_v61 = vpop.f32.mrf.mxu0  ;;  %v2009_v48 = vld [vmem:[%s2625_s5 + $0x1d0] sm:$0xf] }
 0x10b   : > { %1478 = vmatmul.bf16.gmra.mxu1 %v1926_v54  ;;  %1527 = vmatmul.bf16.gmra.mxu2 %v1930_v19  ;;  %v3006_v62 = vadd.f32 %v1427_v37, %v1379_v55  ;;  %v2399_v54 = vld [vmem:[%s2625_s5 + $0x1f0] sm:$0xf0]  ;;  %v2002_v55 = vor.u32 %v2398_v45, %v2001_v44 }
 0x10d   : > { %1576 = vmatmul.bf16.gmra.mxu3 %v1934_v51  ;;  %1625 = vmatmul.bf16.gmra.mxu0 %v1938_v53  ;;  %v1998_v53 = vor.u32 %v2393_v41, %v1995_v42 }
 0x10e   : > { %v1332_v63 = vpop.f32.mrf.mxu2 }
 0x10f   : > { %v1333_v0 = vadd.f32 %v1332_v63, %v1284_v57  ;;  %v2010_v63 = vor.u32 %v2399_v54, %v2009_v48 }
 0x110   : > { %v1381_v1 = vpop.f32.mrf.mxu3  ;;  %v1285_v2 = vpop.f32.mrf.mxu1 }
 0x111   : > { %v1382_v3 = vadd.f32 %v1381_v1, %v1333_v0  ;;  %v1286_v56 = vadd.f32 %v1285_v2, %v2918_v6 }
 0x112   : > { %v1432_v4 = vpop.f32.mrf.mxu0 }
 0x113   : > { %v3011_v8 = vadd.f32 %v1430_v61, %v1382_v3  ;;  %v2006_v61 = vor.u32 %v2394_v46, %v2003_v47 }
 0x116   : > { %v1334_v21 = vpop.f32.mrf.mxu2 }
 0x117   : > { %v1335_v22 = vadd.f32 %v1334_v21, %v1286_v56  ;;  %v2403_v21 = vld [vmem:[%s2625_s5 + $0x214] sm:$0xf] }
 0x118   : > { %v1383_v23 = vpop.f32.mrf.mxu3  ;;  %v1288_v26 = vpop.f32.mrf.mxu1 }
 0x119   : > { %v1384_v6 = vadd.f32 %v1383_v23, %v1335_v22  ;;  %v1289_v30 = vadd.f32 %v1288_v26, %v2926_v16  ;;  %v2039_v22 = vld [vmem:[%s2625_s5 + $0x234] sm:$0xf0] }
 0x11a   : > { %v1435_v32 = vpop.f32.mrf.mxu0  ;;  %v2045_v23 = vld [vmem:[%s2625_s5 + $0x218] sm:$0xf] }
 0x11b   : > { %1483 = vmatmul.bf16.gmra.mxu1 %v1962_v24  ;;  %1532 = vmatmul.bf16.gmra.mxu2 %v1966_v25  ;;  %v3020_v33 = vadd.f32 %v1432_v4, %v1384_v6  ;;  %v2408_v24 = vld [vmem:[%s2625_s5 + $0x238] sm:$0xf0]  ;;  %v2038_v6 = vor.u32 %v2407_v17, %v2037_v14  ;;  %s1758_s5 = sshll.u32 %s3093_s20, 2 }
 0x11c   : > { %s3061_s22 = scalar_lea.vmem %s3091_s3, %s1758_s5 }
 0x11d   : > { %1581 = vmatmul.bf16.gmra.mxu3 %v1970_v11  ;;  %1630 = vmatmul.bf16.gmra.mxu0 %v1974_v28  ;;  %v2034_v28 = vor.u32 %v2402_v59, %v2031_v12 }
 0x11e   : > { %v1337_v34 = vpop.f32.mrf.mxu2 }
 0x11f   : > { %v1338_v36 = vadd.f32 %v1337_v34, %v1289_v30  ;;  %v2046_v34 = vor.u32 %v2408_v24, %v2045_v23 }
 0x120   : > { %v1386_v37 = vpop.f32.mrf.mxu3  ;;  %v1290_v38 = vpop.f32.mrf.mxu1 }
 0x121   : > { %v1387_v20 = vadd.f32 %v1386_v37, %v1338_v36  ;;  %v1291_v16 = vadd.f32 %v1290_v38, %v2943_v31 }
 0x122   : > { %v1437_v40 = vpop.f32.mrf.mxu0 }
 0x123   : > { %v3025_v43 = vadd.f32 %v1435_v32, %v1387_v20  ;;  %v2042_v32 = vor.u32 %v2403_v21, %v2039_v22 }
 0x126   : > { %v1339_v19 = vpop.f32.mrf.mxu2 }
 0x127   : > { %v1340_v50 = vadd.f32 %v1339_v19, %v1291_v16 }
 0x128   : > { %v1388_v51 = vpop.f32.mrf.mxu3  ;;  %v1293_v57 = vpop.f32.mrf.mxu1 }
 0x129   : > { %v1389_v31 = vadd.f32 %v1388_v51, %v1340_v50  ;;  %v1294_v0 = vadd.f32 %v1293_v57, %v2905_v58 }
 0x12a   : > { %v1440_v1 = vpop.f32.mrf.mxu0 }
 0x12b   : > { %1488 = vmatmul.bf16.gmra.mxu1 %v1998_v53  ;;  %1537 = vmatmul.bf16.gmra.mxu2 %v2002_v55  ;;  %v3034_v2 = vadd.f32 %v1437_v40, %v1389_v31 }
 0x12d   : > { %1586 = vmatmul.bf16.gmra.mxu3 %v2006_v61  ;;  %1635 = vmatmul.bf16.gmra.mxu0 %v2010_v63 }
 0x12e   : > { %v1342_v3 = vpop.f32.mrf.mxu2 }
 0x12f   : > { %v1343_v56 = vadd.f32 %v1342_v3, %v1294_v0 }
 0x130   : > { %v1391_v4 = vpop.f32.mrf.mxu3  ;;  %v1295_v5 = vpop.f32.mrf.mxu1 }
 0x131   : > { %v1392_v7 = vadd.f32 %v1391_v4, %v1343_v56  ;;  %v1296_v58 = vadd.f32 %v1295_v5, %v2921_v10 }
 0x132   : > { %v1442_v9 = vpop.f32.mrf.mxu0 }
 0x133   : > { %v3039_v13 = vadd.f32 %v1440_v1, %v1392_v7 }
 0x136   : > { %v1344_v25 = vpop.f32.mrf.mxu2 }
 0x137   : > { %v1345_v26 = vadd.f32 %v1344_v25, %v1296_v58 }
 0x138   : > { %v1393_v11 = vpop.f32.mrf.mxu3  ;;  %v1298_v30 = vpop.f32.mrf.mxu1 }
 0x139   : > { %v1394_v10 = vadd.f32 %v1393_v11, %v1345_v26  ;;  %v1299_v36 = vadd.f32 %v1298_v30, %v2929_v18 }
 0x13a   : > { %v1445_v37 = vpop.f32.mrf.mxu0 }
 0x13b   : > { %1493 = vmatmul.bf16.gmra.mxu1 %v2034_v28  ;;  %1542 = vmatmul.bf16.gmra.mxu2 %v2038_v6  ;;  %v3048_v38 = vadd.f32 %v1442_v9, %v1394_v10 }
 0x13d   : > { %1591 = vmatmul.bf16.gmra.mxu3 %v2042_v32  ;;  %1640 = vmatmul.bf16.gmra.mxu0 %v2046_v34 }
 0x13e   : > { %v1347_v20 = vpop.f32.mrf.mxu2 }
 0x13f   : > { %v1348_v16 = vadd.f32 %v1347_v20, %v1299_v36 }
 0x140   : > { %v1396_v40 = vpop.f32.mrf.mxu3  ;;  %v1300_v41 = vpop.f32.mrf.mxu1 }
 0x141   : > { %v1397_v42 = vadd.f32 %v1396_v40, %v1348_v16  ;;  %v1301_v44 = vadd.f32 %v1300_v41, %v2946_v35 }
 0x142   : > { %v1447_v45 = vpop.f32.mrf.mxu0 }
 0x143   : > { %v3051_v46 = vadd.f32 %v1445_v37, %v1397_v42 }
 0x146   : > { %v1349_v47 = vpop.f32.mrf.mxu2 }
 0x147   : > { %v1350_v48 = vadd.f32 %v1349_v47, %v1301_v44 }
 0x148   : > { %v1398_v18 = vpop.f32.mrf.mxu3  ;;  %v1459_v54 = vpop.f32.mrf.mxu1 }
 0x149   : > { %v1399_v19 = vadd.f32 %v1398_v18, %v1350_v48  ;;  %v1460_v55 = vadd.f32 %v1459_v54, %v2951_v52 }
 0x14a   : > { %v1606_v50 = vpop.f32.mrf.mxu0 }
 0x14b   : > { %v3053_v51 = vadd.f32 %v1447_v45, %v1399_v19 }
 0x14e   : > { %v1508_v53 = vpop.f32.mrf.mxu2 }
 0x14f   : > { %v1509_v63 = vadd.f32 %v1508_v53, %v1460_v55 }
 0x150   : > { %v1557_v57 = vpop.f32.mrf.mxu3  ;;  %v1461_v61 = vpop.f32.mrf.mxu1 }
 0x151   : > { %v1558_v35 = vadd.f32 %v1557_v57, %v1509_v63  ;;  %v1462_v0 = vadd.f32 %v1461_v61, %v2960_v15 }
 0x152   : > { %v1608_v31 = vpop.f32.mrf.mxu0 }
 0x153   : > { %v1607_v5 = vadd.f32 %v1606_v50, %v1558_v35 }
 0x155   : > { %v1646_v59 = vmax.f32 %v1607_v5, 0.0 }
 0x156   : > { %v1510_v1 = vpop.f32.mrf.mxu2 }
 0x157   : > { %v1511_v3 = vadd.f32 %v1510_v1, %v1462_v0 }
 0x158   : > { %v1559_v56 = vpop.f32.mrf.mxu3  ;;  %v1464_v4 = vpop.f32.mrf.mxu1 }
 0x159   : > { %v1560_v7 = vadd.f32 %v1559_v56, %v1511_v3  ;;  %v1465_v15 = vadd.f32 %v1464_v4, %v2965_v29 }
 0x15a   : > { %v1611_v58 = vpop.f32.mrf.mxu0 }
 0x15b   : > { %v1609_v9 = vadd.f32 %v1608_v31, %v1560_v7 }
 0x15d   : > { %v1647_v12 = vmax.f32 %v1609_v9, 0.0 }
 0x15e   : > { %v1513_v52 = vpop.f32.mrf.mxu2 }
 0x15f   : > { %v2484_v14 = vpack.c.bf16 %v1647_v12, %v1646_v59  ;;  %v1514_v22 = vadd.f32 %v1513_v52, %v1465_v15 }
 0x160   : > { %v1562_v17 = vpop.f32.mrf.mxu3  ;;  %v1466_v21 = vpop.f32.mrf.mxu1 }
 0x161   : > { %2485 = vst [vmem:[%s3061_s22] sm:$0xff] %v2484_v14   ;;  %v1563_v24 = vadd.f32 %v1562_v17, %v1514_v22  ;;  %v1467_v25 = vadd.f32 %v1466_v21, %v2975_v49 }
 0x162   : > { %v1613_v23 = vpop.f32.mrf.mxu0 }
 0x163   : > { %v1612_v30 = vadd.f32 %v1611_v58, %v1563_v24 }
 0x165   : > { %v1648_v36 = vmax.f32 %v1612_v30, 0.0 }
 0x166   : > { %v1515_v26 = vpop.f32.mrf.mxu2 }
 0x167   : > { %v1516_v11 = vadd.f32 %v1515_v26, %v1467_v25 }
 0x168   : > { %v1564_v28 = vpop.f32.mrf.mxu3  ;;  %v1469_v6 = vpop.f32.mrf.mxu1 }
 0x169   : > { %v1565_v32 = vadd.f32 %v1564_v28, %v1516_v11  ;;  %v1470_v16 = vadd.f32 %v1469_v6, %v2981_v60 }
 0x16a   : > { %v1616_v34 = vpop.f32.mrf.mxu0 }
 0x16b   : > { %v1614_v10 = vadd.f32 %v1613_v23, %v1565_v32 }
 0x16d   : > { %v1649_v37 = vmax.f32 %v1614_v10, 0.0 }
 0x16e   : > { %v1518_v29 = vpop.f32.mrf.mxu2 }
 0x16f   : > { %v2489_v20 = vpack.c.bf16 %v1649_v37, %v1648_v36  ;;  %v1519_v42 = vadd.f32 %v1518_v29, %v1470_v16 }
 0x170   : > { %v1567_v40 = vpop.f32.mrf.mxu3  ;;  %v1471_v41 = vpop.f32.mrf.mxu1 }
 0x171   : > { %2521 = vst [vmem:[%s3061_s22 + $0x8] sm:$0xff] %v2489_v20   ;;  %v1568_v44 = vadd.f32 %v1567_v40, %v1519_v42  ;;  %v1472_v45 = vadd.f32 %v1471_v41, %v2991_v27 }
 0x172   : > { %v1618_v49 = vpop.f32.mrf.mxu0 }
 0x173   : > { %v1617_v19 = vadd.f32 %v1616_v34, %v1568_v44 }
 0x175   : > { %v1650_v57 = vmax.f32 %v1617_v19, 0.0 }
 0x176   : > { %v1520_v47 = vpop.f32.mrf.mxu2 }
 0x177   : > { %v1521_v48 = vadd.f32 %v1520_v47, %v1472_v45 }
 0x178   : > { %v1569_v18 = vpop.f32.mrf.mxu3  ;;  %v1474_v54 = vpop.f32.mrf.mxu1 }
 0x179   : > { %v1570_v50 = vadd.f32 %v1569_v18, %v1521_v48  ;;  %v1475_v31 = vadd.f32 %v1474_v54, %v2997_v39 }
 0x17a   : > { %v1621_v53 = vpop.f32.mrf.mxu0 }
 0x17b   : > { %v1619_v55 = vadd.f32 %v1618_v49, %v1570_v50 }
 0x17d   : > { %v1651_v61 = vmax.f32 %v1619_v55, 0.0 }
 0x17e   : > { %v1523_v60 = vpop.f32.mrf.mxu2 }
 0x17f   : > { %v2494_v63 = vpack.c.bf16 %v1651_v61, %v1650_v57  ;;  %v1524_v1 = vadd.f32 %v1523_v60, %v1475_v31 }
 0x180   : > { %v1572_v35 = vpop.f32.mrf.mxu3  ;;  %v1476_v0 = vpop.f32.mrf.mxu1 }
 0x181   : > { %2522 = vst [vmem:[%s3061_s22 + $0x10] sm:$0xff] %v2494_v63   ;;  %v1573_v3 = vadd.f32 %v1572_v35, %v1524_v1  ;;  %v1477_v56 = vadd.f32 %v1476_v0, %v3006_v62 }
 0x182   : > { %v1623_v27 = vpop.f32.mrf.mxu0 }
 0x183   : > { %v1622_v9 = vadd.f32 %v1621_v53, %v1573_v3 }
 0x185   : > { %v1652_v14 = vmax.f32 %v1622_v9, 0.0 }
 0x186   : > { %v1525_v4 = vpop.f32.mrf.mxu2 }
 0x187   : > { %v1526_v5 = vadd.f32 %v1525_v4, %v1477_v56 }
 0x188   : > { %v1574_v7 = vpop.f32.mrf.mxu3  ;;  %v1479_v58 = vpop.f32.mrf.mxu1 }
 0x189   : > { %v1575_v59 = vadd.f32 %v1574_v7, %v1526_v5  ;;  %v1480_v21 = vadd.f32 %v1479_v58, %v3011_v8 }
 0x18a   : > { %v1626_v12 = vpop.f32.mrf.mxu0 }
 0x18b   : > { %v1624_v52 = vadd.f32 %v1623_v27, %v1575_v59 }
 0x18d   : > { %v1653_v15 = vmax.f32 %v1624_v52, 0.0 }
 0x18e   : > { %v1528_v39 = vpop.f32.mrf.mxu2 }
 0x18f   : > { %v2499_v17 = vpack.c.bf16 %v1653_v15, %v1652_v14  ;;  %v1529_v24 = vadd.f32 %v1528_v39, %v1480_v21 }
 0x190   : > { %v1577_v22 = vpop.f32.mrf.mxu3  ;;  %v1481_v23 = vpop.f32.mrf.mxu1 }
 0x191   : > { %2523 = vst [vmem:[%s3061_s22 + $0x18] sm:$0xff] %v2499_v17   ;;  %v1578_v25 = vadd.f32 %v1577_v22, %v1529_v24  ;;  %v1482_v26 = vadd.f32 %v1481_v23, %v3020_v33 }
 0x192   : > { %v1628_v62 = vpop.f32.mrf.mxu0 }
 0x193   : > { %v1627_v32 = vadd.f32 %v1626_v12, %v1578_v25 }
 0x195   : > { %v1654_v37 = vmax.f32 %v1627_v32, 0.0 }
 0x196   : > { %v1530_v11 = vpop.f32.mrf.mxu2 }
 0x197   : > { %v1531_v28 = vadd.f32 %v1530_v11, %v1482_v26 }
 0x198   : > { %v1579_v6 = vpop.f32.mrf.mxu3  ;;  %v1484_v30 = vpop.f32.mrf.mxu1 }
 0x199   : > { %v1580_v34 = vadd.f32 %v1579_v6, %v1531_v28  ;;  %v1485_v16 = vadd.f32 %v1484_v30, %v3025_v43 }
 0x19a   : > { %v1631_v10 = vpop.f32.mrf.mxu0 }
 0x19b   : > { %v1629_v36 = vadd.f32 %v1628_v62, %v1580_v34 }
 0x19d   : > { %v1655_v29 = vmax.f32 %v1629_v36, 0.0 }
 0x19e   : > { %v1533_v8 = vpop.f32.mrf.mxu2 }
 0x19f   : > { %v2504_v20 = vpack.c.bf16 %v1655_v29, %v1654_v37  ;;  %v1534_v42 = vadd.f32 %v1533_v8, %v1485_v16 }
 0x1a0   : > { %v1582_v40 = vpop.f32.mrf.mxu3  ;;  %v1486_v41 = vpop.f32.mrf.mxu1 }
 0x1a1   : > { %2524 = vst [vmem:[%s3061_s22 + $0x20] sm:$0xff] %v2504_v20   ;;  %v1583_v49 = vadd.f32 %v1582_v40, %v1534_v42  ;;  %v1487_v44 = vadd.f32 %v1486_v41, %v3034_v2 }
 0x1a2   : > { %v1633_v33 = vpop.f32.mrf.mxu0 }
 0x1a3   : > { %v1632_v54 = vadd.f32 %v1631_v10, %v1583_v49 }
 0x1a5   : > { %v1656_v55 = vmax.f32 %v1632_v54, 0.0 }
 0x1a6   : > { %v1535_v45 = vpop.f32.mrf.mxu2 }
 0x1a7   : > { %v1536_v47 = vadd.f32 %v1535_v45, %v1487_v44 }
 0x1a8   : > { %v1584_v48 = vpop.f32.mrf.mxu3  ;;  %v1489_v18 = vpop.f32.mrf.mxu1 }
 0x1a9   : > { %v1585_v19 = vadd.f32 %v1584_v48, %v1536_v47  ;;  %v1490_v60 = vadd.f32 %v1489_v18, %v3039_v13 }
 0x1aa   : > { %v1636_v53 = vpop.f32.mrf.mxu0 }
 0x1ab   : > { %v1634_v50 = vadd.f32 %v1633_v33, %v1585_v19 }
 0x1ad   : > { %v1657_v57 = vmax.f32 %v1634_v50, 0.0 }
 0x1ae   : > { %v1538_v43 = vpop.f32.mrf.mxu2 }
 0x1af   : > { %v2509_v61 = vpack.c.bf16 %v1657_v57, %v1656_v55  ;;  %v1539_v35 = vadd.f32 %v1538_v43, %v1490_v60 }
 0x1b0   : > { %v1587_v63 = vpop.f32.mrf.mxu3  ;;  %v1491_v31 = vpop.f32.mrf.mxu1 }
 0x1b1   : > { %2525 = vst [vmem:[%s3061_s22 + $0x28] sm:$0xff] %v2509_v61   ;;  %v1588_v2 = vadd.f32 %v1587_v63, %v1539_v35  ;;  %v1492_v0 = vadd.f32 %v1491_v31, %v3048_v38 }
 0x1b2   : > { %v1638_v1 = vpop.f32.mrf.mxu0 }
 0x1b3   : > { %v1637_v5 = vadd.f32 %v1636_v53, %v1588_v2 }
 0x1b5   : > { %v1658_v9 = vmax.f32 %v1637_v5, 0.0 }
 0x1b6   : > { %v1540_v27 = vpop.f32.mrf.mxu2 }
 0x1b7   : > { %v1541_v3 = vadd.f32 %v1540_v27, %v1492_v0 }
 0x1b8   : > { %v1589_v56 = vpop.f32.mrf.mxu3  ;;  %v1494_v4 = vpop.f32.mrf.mxu1 }
 0x1b9   : > { %v1590_v7 = vadd.f32 %v1589_v56, %v1541_v3  ;;  %v1495_v52 = vadd.f32 %v1494_v4, %v3051_v46 }
 0x1ba   : > { %v1641_v15 = vpop.f32.mrf.mxu0 }
 0x1bb   : > { %v1639_v58 = vadd.f32 %v1638_v1, %v1590_v7 }
 0x1bd   : > { %v1659_v59 = vmax.f32 %v1639_v58, 0.0 }
 0x1be   : > { %v1543_v12 = vpop.f32.mrf.mxu2 }
 0x1bf   : > { %v2514_v13 = vpack.c.bf16 %v1659_v59, %v1658_v9  ;;  %v1544_v38 = vadd.f32 %v1543_v12, %v1495_v52 }
 0x1c0   : > { %v1592_v14 = vpop.f32.mrf.mxu3  ;;  %v1496_v39 = vpop.f32.mrf.mxu1 }
 0x1c1   : > { %2526 = vst [vmem:[%s3061_s22 + $0x30] sm:$0xff] %v2514_v13   ;;  %v1593_v17 = vadd.f32 %v1592_v14, %v1544_v38  ;;  %v1497_v21 = vadd.f32 %v1496_v39, %v3053_v51 }
 0x1c2   : > { %v1643_v26 = vpop.f32.mrf.mxu0 }
 0x1c3   : > { %v1642_v62 = vadd.f32 %v1641_v15, %v1593_v17 }
 0x1c5   : > { %v1660_v28 = vmax.f32 %v1642_v62, 0.0 }
 0x1c6   : > { %v1545_v22 = vpop.f32.mrf.mxu2 }
 0x1c7   : > { %v1546_v23 = vadd.f32 %v1545_v22, %v1497_v21 }
 0x1c8   : > { %v1594_v24 = vpop.f32.mrf.mxu3 }
 0x1c9   : > { %v1595_v25 = vadd.f32 %v1594_v24, %v1546_v23 }
 0x1cb   : > { %v1644_v11 = vadd.f32 %v1643_v26, %v1595_v25 }
 0x1cd   : > { %v1661_v6 = vmax.f32 %v1644_v11, 0.0 }
 0x1cf   : > { %v2519_v30 = vpack.c.bf16 %v1661_v6, %v1660_v28 }
 0x1d1   : > { %2527 = vst [vmem:[%s3061_s22 + $0x38] sm:$0xff] %v2519_v30  }
 0x1d2 PF: > { %s13_s12 = sadd.s32 1, %s2568_s12  }
 0x1d3   : > { %p10_p4 = scmp.ge.s32.totalorder %s13_s12, 4  }
 0x1d5   :  { %12 = sbr.rel (!%p10_p4) target bundleno = 1 (0x1), region = 62 }

// kernel: resnet_cifar_forward.10
= control target key start
LH: loop header
LB: loop body
LE: loop exit
PB: predicated region body
PF: predicated region fallthrough
CT: control target
= control target key end

     0   :  { %s2745_s15 = smov 0   ;;  %s3256_s0 = inlined_call_operand.vmem [shape: bf16[256,1152], index: 0, kind: input, shape index: {}]   ;;  %s3257_s1 = inlined_call_operand.vmem [shape: bf16[1152,128], index: 1, kind: input, shape index: {}]   ;;  %s3258_s2 = inlined_call_operand.vmem [shape: f32[1,128], index: 2, kind: input, shape index: {}]   ;;  %s3259_s3 = inlined_call_operand.vmem [shape: bf16[256,128], index: 3, kind: input, shape index: {}]   ;;  %s3260_s4 = inlined_call_operand.vmem [shape: bf16[256,128], index: 4, kind: output, shape index: {}]  }
   0x1 LB: > { %s1859_s16 = sadd.s32 4294967295, %s2718_s15   ;;  %p1863_p0 = scmp.ge.s32.totalorder %s2718_s15, 1  ;;  %s2718_s15 = sphi %s2745_s15, %s14_s15  }
   0x2   : > { %p175_p1 = scmp.lt.s32.totalorder %s2718_s15, 3 }
   0x4   : > { %p176_p2 = pnand %p1863_p0, %p175_p1 }
   0x5   : > { %s1864_s23 = sshll.u32 (!%p176_p2), %s1859_s16, 4 }
   0x6   : > { %179 = sbr.rel (%p176_p2) target bundleno = 468 (0x1d4), region = 36  ;;  %p208_p3 = scmp.lt.s32.totalorder (!%p176_p2), %s1864_s23, 31 }
   0xb   : > { %v2527_v0 = vld [vmem:[%s3257_s1 + $0x38] sm:$0xff]  ;;  %v2526_v1 = vld [vmem:[%s3257_s1 + $0x30] sm:$0xff]  ;;  %v2525_v2 = vld [vmem:[%s3257_s1 + $0x28] sm:$0xff]  ;;  %s3262_s23 = smov (!%p208_p3, %s1864_s23), 31 }
   0xc   : > { %2678 = vmatpush.bf16.msra.mxu1 %v2527_v0  ;;  %2679 = vmatpush.bf16.msra.mxu2 %v2527_v0  ;;  %v2524_v3 = vld [vmem:[%s3257_s1 + $0x20] sm:$0xff]  ;;  %v2523_v4 = vld [vmem:[%s3257_s1 + $0x18] sm:$0xff]  ;;  %v2522_v5 = vld [vmem:[%s3257_s1 + $0x10] sm:$0xff]  ;;  %s2702_s30 = smul.u32 36, %s3262_s23 }
   0xd   : > { %2680 = vmatpush.bf16.msra.mxu3 %v2527_v0  ;;  %1254 = vmatpush.bf16.msra.mxu0 %v2527_v0  ;;  %v2521_v6 = vld [vmem:[%s3257_s1 + $0x8] sm:$0xff]  ;;  %v2520_v7 = vld [vmem:[%s3257_s1] sm:$0xff]  ;;  %v2543_v16 = vld [vmem:[%s3257_s1 + $0xb8] sm:$0xff] }
   0xe   : > { %s2780_s9 = scalar_lea.vmem %s3256_s0, %s2702_s30  ;;  %v2535_v17 = vld [vmem:[%s3257_s1 + $0x78] sm:$0xff]  ;;  %v2542_v24 = vld [vmem:[%s3257_s1 + $0xb0] sm:$0xff]  ;;  %v2541_v28 = vld [vmem:[%s3257_s1 + $0xa8] sm:$0xff] }
   0xf   : > { %v1944_v8 = vld [vmem:[%s2780_s9 + $0x90] sm:$0xf]  ;;  %v2470_v9 = vld [vmem:[%s2780_s9 + $0xb0] sm:$0xf0]  ;;  %v2016_v10 = vld [vmem:[%s2780_s9 + $0x120] sm:$0xf] }
  0x10   : > { %2681 = vmatpush.bf16.msra.mxu1 %v2526_v1  ;;  %2682 = vmatpush.bf16.msra.mxu2 %v2526_v1  ;;  %v2488_v11 = vld [vmem:[%s2780_s9 + $0x140] sm:$0xf0]  ;;  %v2088_v12 = vld [vmem:[%s2780_s9 + $0x1b0] sm:$0xf]  ;;  %v2506_v13 = vld [vmem:[%s2780_s9 + $0x1d0] sm:$0xf0]  ;;  %v1945_v18 = vor.u32 %v2470_v9, %v1944_v8 }
  0x11   : > { %2683 = vmatpush.bf16.msra.mxu3 %v2526_v1  ;;  %1255 = vmatpush.bf16.msra.mxu0 %v2526_v1  ;;  %v1872_v14 = vld [vmem:[%s2780_s9] sm:$0xf]  ;;  %v2452_v15 = vld [vmem:[%s2780_s9 + $0x20] sm:$0xf0]  ;;  %v2017_v19 = vor.u32 %v2488_v11, %v2016_v10  ;;  %v2089_v20 = vor.u32 %v2506_v13, %v2088_v12  ;;  %v2551_v22 = vld [vmem:[%s3257_s1 + $0xf8] sm:$0xff] }
  0x12   : > { %v1873_v21 = vor.u32 %v2452_v15, %v1872_v14  ;;  %v2559_v23 = vld [vmem:[%s3257_s1 + $0x138] sm:$0xff]  ;;  %v2534_v25 = vld [vmem:[%s3257_s1 + $0x70] sm:$0xff]  ;;  %v2533_v29 = vld [vmem:[%s3257_s1 + $0x68] sm:$0xff] }
  0x13   : > { %v2550_v26 = vld [vmem:[%s3257_s1 + $0xf0] sm:$0xff]  ;;  %v2549_v30 = vld [vmem:[%s3257_s1 + $0xe8] sm:$0xff]  ;;  %v2540_v32 = vld [vmem:[%s3257_s1 + $0xa0] sm:$0xff] }
  0x14   : > { %2684 = vmatpush.bf16.msra.mxu1 %v2525_v2  ;;  %2685 = vmatpush.bf16.msra.mxu2 %v2525_v2  ;;  %v2558_v27 = vld [vmem:[%s3257_s1 + $0x130] sm:$0xff]  ;;  %v2557_v31 = vld [vmem:[%s3257_s1 + $0x128] sm:$0xff]  ;;  %v2532_v33 = vld [vmem:[%s3257_s1 + $0x60] sm:$0xff] }
  0x15   : > { %2686 = vmatpush.bf16.msra.mxu3 %v2525_v2  ;;  %1256 = vmatpush.bf16.msra.mxu0 %v2525_v2  ;;  %v2548_v34 = vld [vmem:[%s3257_s1 + $0xe0] sm:$0xff]  ;;  %v1980_v36 = vld [vmem:[%s2780_s9 + $0xd8] sm:$0xf]  ;;  %v2479_v37 = vld [vmem:[%s2780_s9 + $0xf8] sm:$0xf0] }
  0x16   : > { %v2556_v35 = vld [vmem:[%s3257_s1 + $0x120] sm:$0xff]  ;;  %v2052_v38 = vld [vmem:[%s2780_s9 + $0x168] sm:$0xf]  ;;  %v2497_v39 = vld [vmem:[%s2780_s9 + $0x188] sm:$0xf0]  ;;  %v1981_v46 = vor.u32 %v2479_v37, %v1980_v36 }
  0x17   : > { %v2124_v40 = vld [vmem:[%s2780_s9 + $0x1f8] sm:$0xf]  ;;  %v2515_v41 = vld [vmem:[%s2780_s9 + $0x218] sm:$0xf0]  ;;  %v1908_v42 = vld [vmem:[%s2780_s9 + $0x48] sm:$0xf]  ;;  %v2053_v47 = vor.u32 %v2497_v39, %v2052_v38 }
  0x18   : > { %2687 = vmatpush.bf16.msra.mxu1 %v2524_v3  ;;  %2688 = vmatpush.bf16.msra.mxu2 %v2524_v3  ;;  %v2461_v43 = vld [vmem:[%s2780_s9 + $0x68] sm:$0xf0]  ;;  %v2539_v44 = vld [vmem:[%s3257_s1 + $0x98] sm:$0xff]  ;;  %v2125_v48 = vor.u32 %v2515_v41, %v2124_v40  ;;  %v2538_v52 = vld [vmem:[%s3257_s1 + $0x90] sm:$0xff] }
  0x19   : > { %2689 = vmatpush.bf16.msra.mxu3 %v2524_v3  ;;  %1257 = vmatpush.bf16.msra.mxu0 %v2524_v3  ;;  %v2531_v45 = vld [vmem:[%s3257_s1 + $0x58] sm:$0xff]  ;;  %v1909_v49 = vor.u32 %v2461_v43, %v1908_v42  ;;  %v2530_v53 = vld [vmem:[%s3257_s1 + $0x50] sm:$0xff]  ;;  %v2537_v56 = vld [vmem:[%s3257_s1 + $0x88] sm:$0xff] }
  0x1a   : > { %v2547_v50 = vld [vmem:[%s3257_s1 + $0xd8] sm:$0xff]  ;;  %v2546_v54 = vld [vmem:[%s3257_s1 + $0xd0] sm:$0xff]  ;;  %v2529_v57 = vld [vmem:[%s3257_s1 + $0x48] sm:$0xff] }
  0x1b   : > { %v2555_v51 = vld [vmem:[%s3257_s1 + $0x118] sm:$0xff]  ;;  %v2554_v55 = vld [vmem:[%s3257_s1 + $0x110] sm:$0xff]  ;;  %v2545_v58 = vld [vmem:[%s3257_s1 + $0xc8] sm:$0xff] }
  0x1c   : > { %2690 = vmatpush.bf16.msra.mxu1 %v2523_v4  ;;  %2691 = vmatpush.bf16.msra.mxu2 %v2523_v4  ;;  %v2553_v59 = vld [vmem:[%s3257_s1 + $0x108] sm:$0xff]  ;;  %v2536_v60 = vld [vmem:[%s3257_s1 + $0x80] sm:$0xff]  ;;  %v2575_v2 = vld [vmem:[%s3257_s1 + $0x1b8] sm:$0xff] }
  0x1d   : > { %2692 = vmatpush.bf16.msra.mxu3 %v2523_v4  ;;  %1258 = vmatpush.bf16.msra.mxu0 %v2523_v4  ;;  %v2528_v61 = vld [vmem:[%s3257_s1 + $0x40] sm:$0xff]  ;;  %v1874_v1 = vld [vmem:[%s2780_s9 + $0x24] sm:$0xf0]  ;;  %v2567_v3 = vld [vmem:[%s3257_s1 + $0x178] sm:$0xff] }
  0x1e   : > { %v2448_v62 = vld [vmem:[%s2780_s9 + $0x4] sm:$0xf]  ;;  %v1880_v4 = vld [vmem:[%s2780_s9 + $0x8] sm:$0xf]  ;;  %v1888_v8 = vld [vmem:[%s2780_s9 + $0x10] sm:$0xf] }
  0x1f   : > { %v2544_v63 = vld [vmem:[%s3257_s1 + $0xc0] sm:$0xff]  ;;  %v2454_v9 = vld [vmem:[%s2780_s9 + $0x30] sm:$0xf0]  ;;  %v2583_v10 = vld [vmem:[%s3257_s1 + $0x1f8] sm:$0xff]  ;;  %v1877_v12 = vor.u32 %v2448_v62, %v1874_v1 }
  0x20   : > { %2693 = vmatpush.bf16.msra.mxu1 %v2522_v5  ;;  %2694 = vmatpush.bf16.msra.mxu2 %v2522_v5  ;;  %v2552_v0 = vld [vmem:[%s3257_s1 + $0x100] sm:$0xff]  ;;  %v2591_v11 = vld [vmem:[%s3257_s1 + $0x238] sm:$0xff]  ;;  %v1889_v15 = vor.u32 %v2454_v9, %v1888_v8  ;;  %v2466_v40 = vld [vmem:[%s2780_s9 + $0x94] sm:$0xf] }
  0x21   : > { %2695 = vmatpush.bf16.msra.mxu3 %v2522_v5  ;;  %1259 = vmatpush.bf16.msra.mxu0 %v2522_v5  ;;  %v2453_v5 = vld [vmem:[%s2780_s9 + $0x28] sm:$0xf0]  ;;  %v2572_v36 = vld [vmem:[%s3257_s1 + $0x1a0] sm:$0xff]  ;;  %v1946_v41 = vld [vmem:[%s2780_s9 + $0xb4] sm:$0xf0] }
  0x22   : > { %v1881_v13 = vor.u32 %v2453_v5, %v1880_v4  ;;  %v2580_v37 = vld [vmem:[%s3257_s1 + $0x1e0] sm:$0xff]  ;;  %v1952_v42 = vld [vmem:[%s2780_s9 + $0x98] sm:$0xf]  ;;  %v2471_v43 = vld [vmem:[%s2780_s9 + $0xb8] sm:$0xf0] }
  0x23   : > { %v2564_v38 = vld [vmem:[%s3257_s1 + $0x160] sm:$0xff]  ;;  %v1996_v62 = vld [vmem:[%s2780_s9 + $0xe8] sm:$0xf]  ;;  %v2570_v4 = vld [vmem:[%s3257_s1 + $0x190] sm:$0xff] }
  0x24   : > { %2696 = vmatpush.bf16.msra.mxu1 %v2521_v6  ;;  %2697 = vmatpush.bf16.msra.mxu2 %v2521_v6  ;;  %v2588_v39 = vld [vmem:[%s3257_s1 + $0x220] sm:$0xff]  ;;  %v2578_v5 = vld [vmem:[%s3257_s1 + $0x1d0] sm:$0xff]  ;;  %v2018_v9 = vld [vmem:[%s2780_s9 + $0x144] sm:$0xf0] }
  0x25   : > { %2698 = vmatpush.bf16.msra.mxu3 %v2521_v6  ;;  %1260 = vmatpush.bf16.msra.mxu0 %v2521_v6  ;;  %v2449_v6 = vld [vmem:[%s2780_s9 + $0xc] sm:$0xf]  ;;  %v2484_v8 = vld [vmem:[%s2780_s9 + $0x124] sm:$0xf] }
  0x28   : > { %2699 = vmatpush.bf16.msra.mxu1 %v2520_v7  ;;  %2700 = vmatpush.bf16.msra.mxu2 %v2520_v7 }
  0x29   : > { %2701 = vmatpush.bf16.msra.mxu3 %v2520_v7  ;;  %1261 = vmatpush.bf16.msra.mxu0 %v2520_v7  ;;  %v1882_v7 = vld [vmem:[%s2780_s9 + $0x2c] sm:$0xf0] }
  0x2a   : > { %v1885_v14 = vor.u32 %v2449_v6, %v1882_v7  ;;  %v2562_v6 = vld [vmem:[%s3257_s1 + $0x150] sm:$0xff] }
  0x2b   : > { %1272 = vmatmul.bf16.vlgmr.msra.gmra.mxu1 %v1945_v18  ;;  %1282 = vmatmul.bf16.vlgmr.msra.gmra.mxu2 %v2017_v19  ;;  %v2582_v18 = vld [vmem:[%s3257_s1 + $0x1f0] sm:$0xff] }
  0x2c   : > { %1352 = vmatpush.bf16.msrb.mxu2 %v2543_v16  ;;  %1303 = vmatpush.bf16.msrb.mxu1 %v2535_v17  ;;  %v2574_v16 = vld [vmem:[%s3257_s1 + $0x1b0] sm:$0xff] }
  0x2d   : > { %1292 = vmatmul.bf16.vlgmr.msra.gmra.mxu3 %v2089_v20  ;;  %1262 = vmatmul.bf16.vlgmr.msra.gmra.mxu0 %v1873_v21  ;;  %v2566_v17 = vld [vmem:[%s3257_s1 + $0x170] sm:$0xff]  ;;  %v2573_v20 = vld [vmem:[%s3257_s1 + $0x1a8] sm:$0xff] }
  0x2e   : > { %1401 = vmatpush.bf16.msrb.mxu3 %v2551_v22  ;;  %1450 = vmatpush.bf16.msrb.mxu0 %v2559_v23  ;;  %v2590_v19 = vld [vmem:[%s3257_s1 + $0x230] sm:$0xff]  ;;  %v2565_v21 = vld [vmem:[%s3257_s1 + $0x168] sm:$0xff] }
  0x2f   : > { %v2581_v22 = vld [vmem:[%s3257_s1 + $0x1e8] sm:$0xff]  ;;  %v2586_v7 = vld [vmem:[%s3257_s1 + $0x210] sm:$0xff] }
  0x30   : > { %1353 = vmatpush.bf16.msrb.mxu2 %v2542_v24  ;;  %1304 = vmatpush.bf16.msrb.mxu1 %v2534_v25  ;;  %v2589_v23 = vld [vmem:[%s3257_s1 + $0x228] sm:$0xff]  ;;  %v1910_v25 = vld [vmem:[%s2780_s9 + $0x6c] sm:$0xf0] }
  0x31   : > { %v2457_v24 = vld [vmem:[%s2780_s9 + $0x4c] sm:$0xf] }
  0x32   : > { %1402 = vmatpush.bf16.msrb.mxu3 %v2550_v26  ;;  %1451 = vmatpush.bf16.msrb.mxu0 %v2558_v27  ;;  %v1916_v26 = vld [vmem:[%s2780_s9 + $0x50] sm:$0xf]  ;;  %v2462_v27 = vld [vmem:[%s2780_s9 + $0x70] sm:$0xf0] }
  0x34   : > { %1354 = vmatpush.bf16.msrb.mxu2 %v2541_v28  ;;  %1305 = vmatpush.bf16.msrb.mxu1 %v2533_v29  ;;  %v2458_v28 = vld [vmem:[%s2780_s9 + $0x54] sm:$0xf]  ;;  %v1918_v29 = vld [vmem:[%s2780_s9 + $0x74] sm:$0xf0] }
  0x36   : > { %1403 = vmatpush.bf16.msrb.mxu3 %v2549_v30  ;;  %1452 = vmatpush.bf16.msrb.mxu0 %v2557_v31  ;;  %v1924_v30 = vld [vmem:[%s2780_s9 + $0x58] sm:$0xf]  ;;  %v2463_v31 = vld [vmem:[%s2780_s9 + $0x78] sm:$0xf0] }
  0x38   : > { %1355 = vmatpush.bf16.msrb.mxu2 %v2540_v32  ;;  %1306 = vmatpush.bf16.msrb.mxu1 %v2532_v33  ;;  %v1913_v32 = vor.u32 %v2457_v24, %v1910_v25  ;;  %v1917_v33 = vor.u32 %v2462_v27, %v1916_v26  ;;  %v2493_v24 = vld [vmem:[%s2780_s9 + $0x16c] sm:$0xf]  ;;  %v2054_v25 = vld [vmem:[%s2780_s9 + $0x18c] sm:$0xf0]  ;;  %v2498_v27 = vld [vmem:[%s2780_s9 + $0x190] sm:$0xf0] }
  0x39   : > { %v2060_v26 = vld [vmem:[%s2780_s9 + $0x170] sm:$0xf] }
  0x3a   : > { %1404 = vmatpush.bf16.msrb.mxu3 %v2548_v34  ;;  %1453 = vmatpush.bf16.msrb.mxu0 %v2556_v35  ;;  %v1921_v34 = vor.u32 %v2458_v28, %v1918_v29  ;;  %v1925_v35 = vor.u32 %v2463_v31, %v1924_v30  ;;  %v2494_v28 = vld [vmem:[%s2780_s9 + $0x174] sm:$0xf]  ;;  %v2062_v29 = vld [vmem:[%s2780_s9 + $0x194] sm:$0xf0]  ;;  %v2499_v31 = vld [vmem:[%s2780_s9 + $0x198] sm:$0xf0] }
  0x3b   : > { %1277 = vmatmul.bf16.gmra.mxu1 %v1981_v46  ;;  %1287 = vmatmul.bf16.gmra.mxu2 %v2053_v47  ;;  %v1960_v46 = vld [vmem:[%s2780_s9 + $0xa0] sm:$0xf]  ;;  %v2472_v47 = vld [vmem:[%s2780_s9 + $0xc0] sm:$0xf0]  ;;  %v2068_v30 = vld [vmem:[%s2780_s9 + $0x178] sm:$0xf] }
  0x3c   : > { %1356 = vmatpush.bf16.msrb.mxu2 %v2539_v44  ;;  %1307 = vmatpush.bf16.msrb.mxu1 %v2531_v45  ;;  %v2467_v44 = vld [vmem:[%s2780_s9 + $0x9c] sm:$0xf]  ;;  %v1954_v45 = vld [vmem:[%s2780_s9 + $0xbc] sm:$0xf0] }
  0x3d   : > { %1297 = vmatmul.bf16.gmra.mxu3 %v2125_v48  ;;  %1267 = vmatmul.bf16.gmra.mxu0 %v1909_v49  ;;  %v1949_v48 = vor.u32 %v2466_v40, %v1946_v41  ;;  %v1953_v49 = vor.u32 %v2471_v43, %v1952_v42  ;;  %v2502_v40 = vld [vmem:[%s2780_s9 + $0x1b4] sm:$0xf]  ;;  %v2090_v41 = vld [vmem:[%s2780_s9 + $0x1d4] sm:$0xf0]  ;;  %v2507_v43 = vld [vmem:[%s2780_s9 + $0x1d8] sm:$0xf0] }
  0x3e   : > { %1405 = vmatpush.bf16.msrb.mxu3 %v2547_v50  ;;  %1454 = vmatpush.bf16.msrb.mxu0 %v2555_v51  ;;  %v1957_v50 = vor.u32 %v2467_v44, %v1954_v45  ;;  %v1961_v51 = vor.u32 %v2472_v47, %v1960_v46  ;;  %v2096_v42 = vld [vmem:[%s2780_s9 + $0x1b8] sm:$0xf]  ;;  %v2503_v44 = vld [vmem:[%s2780_s9 + $0x1bc] sm:$0xf]  ;;  %v2098_v45 = vld [vmem:[%s2780_s9 + $0x1dc] sm:$0xf0] }
  0x3f   : > { %v2104_v46 = vld [vmem:[%s2780_s9 + $0x1c0] sm:$0xf]  ;;  %v2508_v47 = vld [vmem:[%s2780_s9 + $0x1e0] sm:$0xf0] }
  0x40   : > { %1357 = vmatpush.bf16.msrb.mxu2 %v2538_v52  ;;  %1308 = vmatpush.bf16.msrb.mxu1 %v2530_v53  ;;  %v2571_v52 = vld [vmem:[%s3257_s1 + $0x198] sm:$0xff] }
  0x41   : > { %v2579_v53 = vld [vmem:[%s3257_s1 + $0x1d8] sm:$0xff] }
  0x42   : > { %1406 = vmatpush.bf16.msrb.mxu3 %v2546_v54  ;;  %1455 = vmatpush.bf16.msrb.mxu0 %v2554_v55  ;;  %v2563_v54 = vld [vmem:[%s3257_s1 + $0x158] sm:$0xff] }
  0x43   : > { %v2587_v55 = vld [vmem:[%s3257_s1 + $0x218] sm:$0xff] }
  0x44   : > { %1358 = vmatpush.bf16.msrb.mxu2 %v2537_v56  ;;  %1309 = vmatpush.bf16.msrb.mxu1 %v2529_v57  ;;  %v2475_v56 = vld [vmem:[%s2780_s9 + $0xdc] sm:$0xf]  ;;  %v1982_v57 = vld [vmem:[%s2780_s9 + $0xfc] sm:$0xf0] }
  0x46   : > { %1407 = vmatpush.bf16.msrb.mxu3 %v2545_v58  ;;  %1456 = vmatpush.bf16.msrb.mxu0 %v2553_v59  ;;  %v1988_v58 = vld [vmem:[%s2780_s9 + $0xe0] sm:$0xf]  ;;  %v2480_v59 = vld [vmem:[%s2780_s9 + $0x100] sm:$0xf0] }
  0x47   : > { %v1989_v1 = vor.u32 %v2480_v59, %v1988_v58 }
  0x48   : > { %1359 = vmatpush.bf16.msrb.mxu2 %v2536_v60  ;;  %1310 = vmatpush.bf16.msrb.mxu1 %v2528_v61  ;;  %v2476_v60 = vld [vmem:[%s2780_s9 + $0xe4] sm:$0xf]  ;;  %v1990_v61 = vld [vmem:[%s2780_s9 + $0x104] sm:$0xf0] }
  0x4a   : > { %1408 = vmatpush.bf16.msrb.mxu3 %v2544_v63  ;;  %1457 = vmatpush.bf16.msrb.mxu0 %v2552_v0  ;;  %v2481_v63 = vld [vmem:[%s2780_s9 + $0x108] sm:$0xf0]  ;;  %v1985_v0 = vor.u32 %v2475_v56, %v1982_v57 }
  0x4b   : > { %1311 = vmatmul.bf16.vlgmr.msrb.gmra.mxu1 %v1877_v12  ;;  %1360 = vmatmul.bf16.vlgmr.msrb.gmra.mxu2 %v1881_v13  ;;  %v2485_v12 = vld [vmem:[%s2780_s9 + $0x12c] sm:$0xf]  ;;  %v2026_v13 = vld [vmem:[%s2780_s9 + $0x14c] sm:$0xf0] }
  0x4c   : > { %1548 = vmatpush.bf16.msra.mxu2 %v2575_v2  ;;  %1499 = vmatpush.bf16.msra.mxu1 %v2567_v3  ;;  %v1993_v2 = vor.u32 %v2476_v60, %v1990_v61  ;;  %v1997_v3 = vor.u32 %v2481_v63, %v1996_v62  ;;  %v2511_v61 = vld [vmem:[%s2780_s9 + $0x1fc] sm:$0xf]  ;;  %v2126_v62 = vld [vmem:[%s2780_s9 + $0x21c] sm:$0xf0] }
  0x4d   : > { %1409 = vmatmul.bf16.vlgmr.msrb.gmra.mxu3 %v1885_v14  ;;  %1458 = vmatmul.bf16.vlgmr.msrb.gmra.mxu0 %v1889_v15  ;;  %v2032_v14 = vld [vmem:[%s2780_s9 + $0x130] sm:$0xf]  ;;  %v2490_v15 = vld [vmem:[%s2780_s9 + $0x150] sm:$0xf0]  ;;  %v2132_v63 = vld [vmem:[%s2780_s9 + $0x200] sm:$0xf] }
  0x4e   : > { %1597 = vmatpush.bf16.msra.mxu3 %v2583_v10  ;;  %1646 = vmatpush.bf16.msra.mxu0 %v2591_v11  ;;  %v2024_v10 = vld [vmem:[%s2780_s9 + $0x128] sm:$0xf]  ;;  %v2489_v11 = vld [vmem:[%s2780_s9 + $0x148] sm:$0xf0] }
  0x50   : > { %1549 = vmatpush.bf16.msra.mxu2 %v2574_v16  ;;  %1500 = vmatpush.bf16.msra.mxu1 %v2566_v17  ;;  %v2021_v16 = vor.u32 %v2484_v8, %v2018_v9  ;;  %v2025_v17 = vor.u32 %v2489_v11, %v2024_v10  ;;  %v2129_v8 = vor.u32 %v2511_v61, %v2126_v62  ;;  %v1934_v61 = vld [vmem:[%s2780_s9 + $0x84] sm:$0xf0] }
  0x51   : > { %v1940_v62 = vld [vmem:[%s2780_s9 + $0x68] sm:$0xf] }
  0x52   : > { %1598 = vmatpush.bf16.msra.mxu3 %v2582_v18  ;;  %1647 = vmatpush.bf16.msra.mxu0 %v2590_v19  ;;  %v2029_v18 = vor.u32 %v2485_v12, %v2026_v13  ;;  %v2033_v19 = vor.u32 %v2490_v15, %v2032_v14 }
  0x54   : > { %1550 = vmatpush.bf16.msra.mxu2 %v2573_v20  ;;  %1501 = vmatpush.bf16.msra.mxu1 %v2565_v21  ;;  %v2569_v20 = vld [vmem:[%s3257_s1 + $0x188] sm:$0xff] }
  0x55   : > { %v2577_v21 = vld [vmem:[%s3257_s1 + $0x1c8] sm:$0xff] }
  0x56   : > { %1599 = vmatpush.bf16.msra.mxu3 %v2581_v22  ;;  %1648 = vmatpush.bf16.msra.mxu0 %v2589_v23  ;;  %v2561_v22 = vld [vmem:[%s3257_s1 + $0x148] sm:$0xff] }
  0x57   : > { %v2585_v23 = vld [vmem:[%s3257_s1 + $0x208] sm:$0xff] }
  0x58   : > { %1551 = vmatpush.bf16.msra.mxu2 %v2572_v36  ;;  %1502 = vmatpush.bf16.msra.mxu1 %v2564_v38  ;;  %v2568_v36 = vld [vmem:[%s3257_s1 + $0x180] sm:$0xff] }
  0x59   : > { %v2560_v38 = vld [vmem:[%s3257_s1 + $0x140] sm:$0xff] }
  0x5a   : > { %1600 = vmatpush.bf16.msra.mxu3 %v2580_v37  ;;  %1649 = vmatpush.bf16.msra.mxu0 %v2588_v39  ;;  %v2576_v37 = vld [vmem:[%s3257_s1 + $0x1c0] sm:$0xff] }
  0x5b   : > { %1316 = vmatmul.bf16.gmra.mxu1 %v1913_v32  ;;  %1365 = vmatmul.bf16.gmra.mxu2 %v1917_v33  ;;  %v2057_v32 = vor.u32 %v2493_v24, %v2054_v25  ;;  %v2061_v33 = vor.u32 %v2498_v27, %v2060_v26  ;;  %v2584_v39 = vld [vmem:[%s3257_s1 + $0x200] sm:$0xff]  ;;  %v2455_v24 = vld [vmem:[%s2780_s9 + $0x38] sm:$0xf0] }
  0x5c   : > { %1552 = vmatpush.bf16.msra.mxu2 %v2571_v52  ;;  %1503 = vmatpush.bf16.msra.mxu1 %v2563_v54  ;;  %v2105_v52 = vor.u32 %v2508_v47, %v2104_v46  ;;  %v3054_v54 = vld [vmem:[%s3258_s2] ss:$0 sm:$0xff]  ;;  %v2451_v25 = vld [vmem:[%s2780_s9 + $0x1c] sm:$0xf] }
  0x5d   : > { %1414 = vmatmul.bf16.gmra.mxu3 %v1921_v34  ;;  %1463 = vmatmul.bf16.gmra.mxu0 %v1925_v35  ;;  %v2065_v34 = vor.u32 %v2494_v28, %v2062_v29  ;;  %v2069_v35 = vor.u32 %v2499_v31, %v2068_v30  ;;  %v1898_v26 = vld [vmem:[%s2780_s9 + $0x3c] sm:$0xf0]  ;;  %v2456_v28 = vld [vmem:[%s2780_s9 + $0x40] sm:$0xf0] }
  0x5e   : > { %1601 = vmatpush.bf16.msra.mxu3 %v2579_v53  ;;  %1650 = vmatpush.bf16.msra.mxu0 %v2587_v55  ;;  %v1904_v27 = vld [vmem:[%s2780_s9 + $0x20] sm:$0xf] }
  0x60   : > { %1553 = vmatpush.bf16.msra.mxu2 %v2570_v4  ;;  %1504 = vmatpush.bf16.msra.mxu1 %v2562_v6  ;;  %v2517_v4 = vld [vmem:[%s2780_s9 + $0x228] sm:$0xf0] }
  0x62   : > { %1602 = vmatpush.bf16.msra.mxu3 %v2578_v5  ;;  %1651 = vmatpush.bf16.msra.mxu0 %v2586_v7 }
  0x64   : > { %1554 = vmatpush.bf16.msra.mxu2 %v2569_v20  ;;  %1505 = vmatpush.bf16.msra.mxu1 %v2561_v22  ;;  %v1890_v22 = vld [vmem:[%s2780_s9 + $0x34] sm:$0xf0] }
  0x66   : > { %1603 = vmatpush.bf16.msra.mxu3 %v2577_v21  ;;  %1652 = vmatpush.bf16.msra.mxu0 %v2585_v23  ;;  %v2450_v21 = vld [vmem:[%s2780_s9 + $0x14] sm:$0xf]  ;;  %v1896_v23 = vld [vmem:[%s2780_s9 + $0x18] sm:$0xf] }
  0x68   : > { %1555 = vmatpush.bf16.msra.mxu2 %v2568_v36  ;;  %1506 = vmatpush.bf16.msra.mxu1 %v2560_v38  ;;  %v1905_v38 = vor.u32 %v2456_v28, %v1904_v27  ;;  %v2468_v27 = vld [vmem:[%s2780_s9 + $0xa4] sm:$0xf]  ;;  %v1962_v28 = vld [vmem:[%s2780_s9 + $0xc4] sm:$0xf0] }
  0x6a   : > { %1604 = vmatpush.bf16.msra.mxu3 %v2576_v37  ;;  %1653 = vmatpush.bf16.msra.mxu0 %v2584_v39  ;;  %v1901_v37 = vor.u32 %v2451_v25, %v1898_v26 }
  0x6b   : > { %1321 = vmatmul.bf16.gmra.mxu1 %v1949_v48  ;;  %1370 = vmatmul.bf16.gmra.mxu2 %v1953_v49  ;;  %v2093_v48 = vor.u32 %v2502_v40, %v2090_v41  ;;  %v2097_v49 = vor.u32 %v2507_v43, %v2096_v42 }
  0x6d   : > { %1419 = vmatmul.bf16.gmra.mxu3 %v1957_v50  ;;  %1468 = vmatmul.bf16.gmra.mxu0 %v1961_v51  ;;  %v2101_v51 = vor.u32 %v2503_v44, %v2098_v45 }
  0x7b   : > { %1326 = vmatmul.bf16.gmra.mxu1 %v1985_v0  ;;  %1375 = vmatmul.bf16.gmra.mxu2 %v1989_v1  ;;  %v2516_v0 = vld [vmem:[%s2780_s9 + $0x220] sm:$0xf0] }
  0x7c   : > { %v2512_v1 = vld [vmem:[%s2780_s9 + $0x204] sm:$0xf]  ;;  %v2133_v9 = vor.u32 %v2516_v0, %v2132_v63  ;;  %v2465_v63 = vld [vmem:[%s2780_s9 + $0x88] sm:$0xf0] }
  0x7d   : > { %1424 = vmatmul.bf16.gmra.mxu3 %v1993_v2  ;;  %1473 = vmatmul.bf16.gmra.mxu0 %v1997_v3  ;;  %v2134_v2 = vld [vmem:[%s2780_s9 + $0x224] sm:$0xf0] }
  0x7e   : > { %v2140_v3 = vld [vmem:[%s2780_s9 + $0x208] sm:$0xf]  ;;  %v2137_v12 = vor.u32 %v2512_v1, %v2134_v2 }
  0x7f   : > { %v2141_v13 = vor.u32 %v2517_v4, %v2140_v3 }
  0x8b   : > { %1331 = vmatmul.bf16.gmra.mxu1 %v2021_v16  ;;  %1380 = vmatmul.bf16.gmra.mxu2 %v2025_v17 }
  0x8d   : > { %1429 = vmatmul.bf16.gmra.mxu3 %v2029_v18  ;;  %1478 = vmatmul.bf16.gmra.mxu0 %v2033_v19 }
  0x9b   : > { %1336 = vmatmul.bf16.gmra.mxu1 %v2057_v32  ;;  %1385 = vmatmul.bf16.gmra.mxu2 %v2061_v33  ;;  %v1893_v33 = vor.u32 %v2450_v21, %v1890_v22 }
  0x9d   : > { %1434 = vmatmul.bf16.gmra.mxu3 %v2065_v34  ;;  %1483 = vmatmul.bf16.gmra.mxu0 %v2069_v35  ;;  %v1897_v34 = vor.u32 %v2455_v24, %v1896_v23 }
  0xa8   : > { %v3049_v50 = vpop.f32.mrf.mxu1 }
  0xaa   : > { %v1263_v53 = vpop.f32.mrf.mxu0 }
  0xab   : > { %1341 = vmatmul.bf16.gmra.mxu1 %v2093_v48  ;;  %1390 = vmatmul.bf16.gmra.mxu2 %v2097_v49  ;;  %v1264_v30 = vadd.f32 %v3054_v54, %v1263_v53  ;;  %v2459_v49 = vld [vmem:[%s2780_s9 + $0x5c] sm:$0xf]  ;;  %v1932_v53 = vld [vmem:[%s2780_s9 + $0x60] sm:$0xf] }
  0xad   : > { %1439 = vmatmul.bf16.gmra.mxu3 %v2101_v51  ;;  %1488 = vmatmul.bf16.gmra.mxu0 %v2105_v52  ;;  %v1926_v51 = vld [vmem:[%s2780_s9 + $0x7c] sm:$0xf0] }
  0xae   : > { %v1283_v55 = vpop.f32.mrf.mxu2  ;;  %v1929_v3 = vor.u32 %v2459_v49, %v1926_v51 }
  0xaf   : > { %v3057_v56 = vadd.f32 %v3054_v54, %v1283_v55  ;;  %v2464_v55 = vld [vmem:[%s2780_s9 + $0x80] sm:$0xf0] }
  0xb0   : > { %v1293_v57 = vpop.f32.mrf.mxu3  ;;  %v3062_v59 = vpop.f32.mrf.mxu1  ;;  %v1933_v4 = vor.u32 %v2464_v55, %v1932_v53 }
  0xb1   : > { %v3060_v58 = vadd.f32 %v3054_v54, %v1293_v57  ;;  %v2460_v57 = vld [vmem:[%s2780_s9 + $0x64] sm:$0xf]  ;;  %v1276_v51 = vadd.f32 %v3054_v54, %v3062_v59 }
  0xb2   : > { %v1265_v60 = vpop.f32.mrf.mxu0 }
  0xb3   : > { %v1266_v42 = vadd.f32 %v3054_v54, %v1265_v60 }
  0xb6   : > { %v1285_v5 = vpop.f32.mrf.mxu2 }
  0xb7   : > { %v3073_v6 = vadd.f32 %v3054_v54, %v1285_v5 }
  0xb8   : > { %v1295_v7 = vpop.f32.mrf.mxu3  ;;  %v3078_v11 = vpop.f32.mrf.mxu1 }
  0xb9   : > { %v3076_v10 = vadd.f32 %v3054_v54, %v1295_v7  ;;  %v1937_v7 = vor.u32 %v2460_v57, %v1934_v61  ;;  %v1279_v59 = vadd.f32 %v3054_v54, %v3078_v11 }
  0xba   : > { %v1268_v14 = vpop.f32.mrf.mxu0 }
  0xbb   : > { %1346 = vmatmul.bf16.gmra.mxu1 %v2129_v8  ;;  %1395 = vmatmul.bf16.gmra.mxu2 %v2133_v9  ;;  %v1269_v1 = vadd.f32 %v3054_v54, %v1268_v14  ;;  %v1941_v8 = vor.u32 %v2465_v63, %v1940_v62 }
  0xbd   : > { %1444 = vmatmul.bf16.gmra.mxu3 %v2137_v12  ;;  %1493 = vmatmul.bf16.gmra.mxu0 %v2141_v13 }
  0xbe   : > { %v1288_v15 = vpop.f32.mrf.mxu2 }
  0xbf   : > { %v3081_v16 = vadd.f32 %v3054_v54, %v1288_v15 }
  0xc0   : > { %v1298_v17 = vpop.f32.mrf.mxu3  ;;  %v3086_v19 = vpop.f32.mrf.mxu1 }
  0xc1   : > { %v3084_v18 = vadd.f32 %v3054_v54, %v1298_v17 }
  0xc2   : > { %v1270_v20 = vpop.f32.mrf.mxu0 }
  0xc3   : > { %v1271_v17 = vadd.f32 %v3054_v54, %v1270_v20  ;;  %v1274_v20 = vadd.f32 %v3054_v54, %v3049_v50 }
  0xc6   : > { %v1290_v29 = vpop.f32.mrf.mxu2 }
  0xc7   : > { %v3098_v31 = vadd.f32 %v3054_v54, %v1290_v29 }
  0xc8   : > { %v1300_v32 = vpop.f32.mrf.mxu3  ;;  %v1312_v36 = vpop.f32.mrf.mxu1 }
  0xc9   : > { %v3101_v35 = vadd.f32 %v3054_v54, %v1300_v32  ;;  %v1313_v39 = vadd.f32 %v1312_v36, %v1264_v30  ;;  %v1968_v30 = vld [vmem:[%s2780_s9 + $0xa8] sm:$0xf]  ;;  %v2473_v32 = vld [vmem:[%s2780_s9 + $0xc8] sm:$0xf0]  ;;  %v1976_v36 = vld [vmem:[%s2780_s9 + $0xb0] sm:$0xf] }
  0xca   : > { %v1459_v40 = vpop.f32.mrf.mxu0 }
  0xcb   : > { %1507 = vmatmul.bf16.vlgmr.msra.gmra.mxu1 %v1893_v33  ;;  %1556 = vmatmul.bf16.vlgmr.msra.gmra.mxu2 %v1897_v34  ;;  %v2469_v33 = vld [vmem:[%s2780_s9 + $0xac] sm:$0xf]  ;;  %v1970_v34 = vld [vmem:[%s2780_s9 + $0xcc] sm:$0xf0] }
  0xcd   : > { %1605 = vmatmul.bf16.vlgmr.msra.gmra.mxu3 %v1901_v37  ;;  %1654 = vmatmul.bf16.vlgmr.msra.gmra.mxu0 %v1905_v38  ;;  %v2474_v37 = vld [vmem:[%s2780_s9 + $0xd0] sm:$0xf0] }
  0xce   : > { %v1361_v41 = vpop.f32.mrf.mxu2 }
  0xcf   : > { %v1362_v43 = vadd.f32 %v1361_v41, %v1313_v39  ;;  %v1965_v41 = vor.u32 %v2468_v27, %v1962_v28  ;;  %v1281_v28 = vadd.f32 %v3054_v54, %v3086_v19 }
  0xd0   : > { %v1410_v44 = vpop.f32.mrf.mxu3  ;;  %v1314_v45 = vpop.f32.mrf.mxu1 }
  0xd1   : > { %v1411_v46 = vadd.f32 %v1410_v44, %v1362_v43  ;;  %v1315_v47 = vadd.f32 %v1314_v45, %v1266_v42  ;;  %v1969_v42 = vor.u32 %v2473_v32, %v1968_v30  ;;  %v1973_v44 = vor.u32 %v2469_v33, %v1970_v34 }
  0xd2   : > { %v1461_v48 = vpop.f32.mrf.mxu0  ;;  %v1977_v45 = vor.u32 %v2474_v37, %v1976_v36 }
  0xd3   : > { %v3106_v52 = vadd.f32 %v1459_v40, %v1411_v46 }
  0xd6   : > { %v1363_v0 = vpop.f32.mrf.mxu2 }
  0xd7   : > { %v1364_v60 = vadd.f32 %v1363_v0, %v1315_v47  ;;  %v2477_v0 = vld [vmem:[%s2780_s9 + $0xec] sm:$0xf] }
  0xd8   : > { %v1412_v2 = vpop.f32.mrf.mxu3  ;;  %v1317_v5 = vpop.f32.mrf.mxu1 }
  0xd9   : > { %v1413_v9 = vadd.f32 %v1412_v2, %v1364_v60  ;;  %v1318_v12 = vadd.f32 %v1317_v5, %v1269_v1  ;;  %v1998_v1 = vld [vmem:[%s2780_s9 + $0x10c] sm:$0xf0]  ;;  %v2006_v5 = vld [vmem:[%s2780_s9 + $0x114] sm:$0xf0] }
  0xda   : > { %v1464_v13 = vpop.f32.mrf.mxu0  ;;  %v2004_v2 = vld [vmem:[%s2780_s9 + $0xf0] sm:$0xf] }
  0xdb   : > { %1512 = vmatmul.bf16.gmra.mxu1 %v1929_v3  ;;  %1561 = vmatmul.bf16.gmra.mxu2 %v1933_v4  ;;  %v3115_v15 = vadd.f32 %v1461_v48, %v1413_v9  ;;  %v2482_v3 = vld [vmem:[%s2780_s9 + $0x110] sm:$0xf0] }
  0xdc   : > { %v2478_v4 = vld [vmem:[%s2780_s9 + $0xf4] sm:$0xf] }
  0xdd   : > { %1610 = vmatmul.bf16.gmra.mxu3 %v1937_v7  ;;  %1659 = vmatmul.bf16.gmra.mxu0 %v1941_v8  ;;  %v2012_v7 = vld [vmem:[%s2780_s9 + $0xf8] sm:$0xf]  ;;  %v2483_v8 = vld [vmem:[%s2780_s9 + $0x118] sm:$0xf0] }
  0xde   : > { %v1366_v14 = vpop.f32.mrf.mxu2 }
  0xdf   : > { %v1367_v21 = vadd.f32 %v1366_v14, %v1318_v12  ;;  %v2001_v14 = vor.u32 %v2477_v0, %v1998_v1 }
  0xe0   : > { %v1415_v22 = vpop.f32.mrf.mxu3  ;;  %v1319_v23 = vpop.f32.mrf.mxu1 }
  0xe1   : > { %v1416_v24 = vadd.f32 %v1415_v22, %v1367_v21  ;;  %v1320_v25 = vadd.f32 %v1319_v23, %v1271_v17  ;;  %v2005_v17 = vor.u32 %v2482_v3, %v2004_v2  ;;  %v2009_v22 = vor.u32 %v2478_v4, %v2006_v5  ;;  %v2495_v5 = vld [vmem:[%s2780_s9 + $0x17c] sm:$0xf] }
  0xe2   : > { %v1466_v26 = vpop.f32.mrf.mxu0  ;;  %v2013_v23 = vor.u32 %v2483_v8, %v2012_v7  ;;  %v2070_v7 = vld [vmem:[%s2780_s9 + $0x19c] sm:$0xf0] }
  0xe3   : > { %v3120_v29 = vadd.f32 %v1464_v13, %v1416_v24 }
  0xe6   : > { %v1368_v38 = vpop.f32.mrf.mxu2 }
  0xe7   : > { %v1369_v39 = vadd.f32 %v1368_v38, %v1320_v25  ;;  %v2486_v38 = vld [vmem:[%s2780_s9 + $0x134] sm:$0xf] }
  0xe8   : > { %v1417_v40 = vpop.f32.mrf.mxu3  ;;  %v1322_v43 = vpop.f32.mrf.mxu1 }
  0xe9   : > { %v1418_v46 = vadd.f32 %v1417_v40, %v1369_v39  ;;  %v1323_v47 = vadd.f32 %v1322_v43, %v1274_v20  ;;  %v2034_v20 = vld [vmem:[%s2780_s9 + $0x154] sm:$0xf0]  ;;  %v2042_v43 = vld [vmem:[%s2780_s9 + $0x15c] sm:$0xf0] }
  0xea   : > { %v1469_v48 = vpop.f32.mrf.mxu0  ;;  %v2040_v40 = vld [vmem:[%s2780_s9 + $0x138] sm:$0xf]  ;;  %v2037_v54 = vor.u32 %v2486_v38, %v2034_v20 }
  0xeb   : > { %1517 = vmatmul.bf16.gmra.mxu1 %v1965_v41  ;;  %1566 = vmatmul.bf16.gmra.mxu2 %v1969_v42  ;;  %v3130_v49 = vadd.f32 %v1466_v26, %v1418_v46  ;;  %v2491_v41 = vld [vmem:[%s2780_s9 + $0x158] sm:$0xf0] }
  0xec   : > { %v2487_v42 = vld [vmem:[%s2780_s9 + $0x13c] sm:$0xf]  ;;  %v2041_v19 = vor.u32 %v2491_v41, %v2040_v40  ;;  %v2504_v41 = vld [vmem:[%s2780_s9 + $0x1c4] sm:$0xf] }
  0xed   : > { %1615 = vmatmul.bf16.gmra.mxu3 %v1973_v44  ;;  %1664 = vmatmul.bf16.gmra.mxu0 %v1977_v45  ;;  %v2048_v44 = vld [vmem:[%s2780_s9 + $0x140] sm:$0xf]  ;;  %v2492_v45 = vld [vmem:[%s2780_s9 + $0x160] sm:$0xf0] }
  0xee   : > { %v1371_v50 = vpop.f32.mrf.mxu2 }
  0xef   : > { %v1372_v53 = vadd.f32 %v1371_v50, %v1323_v47 }
  0xf0   : > { %v1420_v55 = vpop.f32.mrf.mxu3  ;;  %v1324_v57 = vpop.f32.mrf.mxu1 }
  0xf1   : > { %v1421_v61 = vadd.f32 %v1420_v55, %v1372_v53  ;;  %v1325_v62 = vadd.f32 %v1324_v57, %v1276_v51  ;;  %v2045_v51 = vor.u32 %v2487_v42, %v2042_v43  ;;  %v2049_v53 = vor.u32 %v2492_v45, %v2048_v44  ;;  %v2106_v42 = vld [vmem:[%s2780_s9 + $0x1e4] sm:$0xf0]  ;;  %v2509_v45 = vld [vmem:[%s2780_s9 + $0x1e8] sm:$0xf0] }
  0xf2   : > { %v1471_v63 = vpop.f32.mrf.mxu0  ;;  %v2112_v44 = vld [vmem:[%s2780_s9 + $0x1c8] sm:$0xf] }
  0xf3   : > { %v3136_v60 = vadd.f32 %v1469_v48, %v1421_v61 }
  0xf6   : > { %v1373_v9 = vpop.f32.mrf.mxu2 }
  0xf7   : > { %v1374_v12 = vadd.f32 %v1373_v9, %v1325_v62  ;;  %v2076_v9 = vld [vmem:[%s2780_s9 + $0x180] sm:$0xf] }
  0xf8   : > { %v1422_v13 = vpop.f32.mrf.mxu3  ;;  %v1327_v21 = vpop.f32.mrf.mxu1 }
  0xf9   : > { %v1423_v24 = vadd.f32 %v1422_v13, %v1374_v12  ;;  %v1328_v25 = vadd.f32 %v1327_v21, %v1279_v59  ;;  %v2500_v59 = vld [vmem:[%s2780_s9 + $0x1a0] sm:$0xf0]  ;;  %v2078_v13 = vld [vmem:[%s2780_s9 + $0x1a4] sm:$0xf0] }
  0xfa   : > { %v1474_v26 = vpop.f32.mrf.mxu0  ;;  %v2496_v12 = vld [vmem:[%s2780_s9 + $0x184] sm:$0xf] }
  0xfb   : > { %1522 = vmatmul.bf16.gmra.mxu1 %v2001_v14  ;;  %1571 = vmatmul.bf16.gmra.mxu2 %v2005_v17  ;;  %v3146_v27 = vadd.f32 %v1471_v63, %v1423_v24  ;;  %v2084_v14 = vld [vmem:[%s2780_s9 + $0x188] sm:$0xf]  ;;  %v2501_v17 = vld [vmem:[%s2780_s9 + $0x1a8] sm:$0xf0]  ;;  %v2073_v24 = vor.u32 %v2495_v5, %v2070_v7 }
  0xfd   : > { %1620 = vmatmul.bf16.gmra.mxu3 %v2009_v22  ;;  %1669 = vmatmul.bf16.gmra.mxu0 %v2013_v23 }
  0xfe   : > { %v1376_v11 = vpop.f32.mrf.mxu2 }
  0xff   : > { %v1377_v30 = vadd.f32 %v1376_v11, %v1328_v25  ;;  %v2077_v25 = vor.u32 %v2500_v59, %v2076_v9  ;;  %v2081_v11 = vor.u32 %v2496_v12, %v2078_v13  ;;  %v2513_v59 = vld [vmem:[%s2780_s9 + $0x20c] sm:$0xf]  ;;  %v2142_v12 = vld [vmem:[%s2780_s9 + $0x22c] sm:$0xf0] }
 0x100   : > { %v1425_v32 = vpop.f32.mrf.mxu3  ;;  %v1329_v33 = vpop.f32.mrf.mxu1 }
 0x101   : > { %v1426_v34 = vadd.f32 %v1425_v32, %v1377_v30  ;;  %v1330_v36 = vadd.f32 %v1329_v33, %v1281_v28  ;;  %v2085_v28 = vor.u32 %v2501_v17, %v2084_v14  ;;  %v2148_v14 = vld [vmem:[%s2780_s9 + $0x210] sm:$0xf]  ;;  %v2518_v17 = vld [vmem:[%s2780_s9 + $0x230] sm:$0xf0] }
 0x102   : > { %v1476_v37 = vpop.f32.mrf.mxu0 }
 0x103   : > { %v3152_v39 = vadd.f32 %v1474_v26, %v1426_v34 }
 0x106   : > { %v1378_v46 = vpop.f32.mrf.mxu2 }
 0x107   : > { %v1379_v47 = vadd.f32 %v1378_v46, %v1330_v36  ;;  %v2505_v46 = vld [vmem:[%s2780_s9 + $0x1cc] sm:$0xf] }
 0x108   : > { %v1427_v48 = vpop.f32.mrf.mxu3  ;;  %v1332_v50 = vpop.f32.mrf.mxu1 }
 0x109   : > { %v1428_v55 = vadd.f32 %v1427_v48, %v1379_v47  ;;  %v1333_v57 = vadd.f32 %v1332_v50, %v3057_v56  ;;  %v2114_v47 = vld [vmem:[%s2780_s9 + $0x1ec] sm:$0xf0] }
 0x10a   : > { %v1479_v61 = vpop.f32.mrf.mxu0  ;;  %v2120_v48 = vld [vmem:[%s2780_s9 + $0x1d0] sm:$0xf] }
 0x10b   : > { %1527 = vmatmul.bf16.gmra.mxu1 %v2037_v54  ;;  %1576 = vmatmul.bf16.gmra.mxu2 %v2041_v19  ;;  %v3161_v62 = vadd.f32 %v1476_v37, %v1428_v55  ;;  %v2510_v54 = vld [vmem:[%s2780_s9 + $0x1f0] sm:$0xf0]  ;;  %v2113_v55 = vor.u32 %v2509_v45, %v2112_v44 }
 0x10d   : > { %1625 = vmatmul.bf16.gmra.mxu3 %v2045_v51  ;;  %1674 = vmatmul.bf16.gmra.mxu0 %v2049_v53  ;;  %v2109_v53 = vor.u32 %v2504_v41, %v2106_v42 }
 0x10e   : > { %v1381_v63 = vpop.f32.mrf.mxu2 }
 0x10f   : > { %v1382_v0 = vadd.f32 %v1381_v63, %v1333_v57  ;;  %v2121_v63 = vor.u32 %v2510_v54, %v2120_v48 }
 0x110   : > { %v1430_v1 = vpop.f32.mrf.mxu3  ;;  %v1334_v2 = vpop.f32.mrf.mxu1 }
 0x111   : > { %v1431_v3 = vadd.f32 %v1430_v1, %v1382_v0  ;;  %v1335_v56 = vadd.f32 %v1334_v2, %v3073_v6 }
 0x112   : > { %v1481_v4 = vpop.f32.mrf.mxu0 }
 0x113   : > { %v3166_v8 = vadd.f32 %v1479_v61, %v1431_v3  ;;  %v2117_v61 = vor.u32 %v2505_v46, %v2114_v47 }
 0x116   : > { %v1383_v21 = vpop.f32.mrf.mxu2 }
 0x117   : > { %v1384_v22 = vadd.f32 %v1383_v21, %v1335_v56  ;;  %v2514_v21 = vld [vmem:[%s2780_s9 + $0x214] sm:$0xf] }
 0x118   : > { %v1432_v23 = vpop.f32.mrf.mxu3  ;;  %v1337_v26 = vpop.f32.mrf.mxu1 }
 0x119   : > { %v1433_v6 = vadd.f32 %v1432_v23, %v1384_v22  ;;  %v1338_v30 = vadd.f32 %v1337_v26, %v3081_v16  ;;  %v2150_v22 = vld [vmem:[%s2780_s9 + $0x234] sm:$0xf0] }
 0x11a   : > { %v1484_v32 = vpop.f32.mrf.mxu0  ;;  %v2156_v23 = vld [vmem:[%s2780_s9 + $0x218] sm:$0xf] }
 0x11b   : > { %1532 = vmatmul.bf16.gmra.mxu1 %v2073_v24  ;;  %1581 = vmatmul.bf16.gmra.mxu2 %v2077_v25  ;;  %v3175_v33 = vadd.f32 %v1481_v4, %v1433_v6  ;;  %v2519_v24 = vld [vmem:[%s2780_s9 + $0x238] sm:$0xf0]  ;;  %v2149_v6 = vor.u32 %v2518_v17, %v2148_v14  ;;  %s1867_s9 = sshll.u32 %s3262_s23, 2 }
 0x11c   : > { %s3215_s5 = scalar_lea.vmem %s3259_s3, %s1867_s9  ;;  %s3223_s7 = scalar_lea.vmem %s3260_s4, %s1867_s9 }
 0x11d   : > { %1630 = vmatmul.bf16.gmra.mxu3 %v2081_v11  ;;  %1679 = vmatmul.bf16.gmra.mxu0 %v2085_v28  ;;  %v2145_v28 = vor.u32 %v2513_v59, %v2142_v12 }
 0x11e   : > { %v1386_v34 = vpop.f32.mrf.mxu2 }
 0x11f   : > { %v1387_v36 = vadd.f32 %v1386_v34, %v1338_v30  ;;  %v2157_v34 = vor.u32 %v2519_v24, %v2156_v23 }
 0x120   : > { %v1435_v37 = vpop.f32.mrf.mxu3  ;;  %v1339_v38 = vpop.f32.mrf.mxu1 }
 0x121   : > { %v1436_v20 = vadd.f32 %v1435_v37, %v1387_v36  ;;  %v1340_v16 = vadd.f32 %v1339_v38, %v3098_v31 }
 0x122   : > { %v1486_v40 = vpop.f32.mrf.mxu0 }
 0x123   : > { %v3180_v43 = vadd.f32 %v1484_v32, %v1436_v20  ;;  %v2153_v32 = vor.u32 %v2514_v21, %v2150_v22 }
 0x126   : > { %v1388_v19 = vpop.f32.mrf.mxu2 }
 0x127   : > { %v1389_v50 = vadd.f32 %v1388_v19, %v1340_v16 }
 0x128   : > { %v1437_v51 = vpop.f32.mrf.mxu3  ;;  %v1342_v57 = vpop.f32.mrf.mxu1 }
 0x129   : > { %v1438_v31 = vadd.f32 %v1437_v51, %v1389_v50  ;;  %v1343_v0 = vadd.f32 %v1342_v57, %v3060_v58 }
 0x12a   : > { %v1489_v1 = vpop.f32.mrf.mxu0 }
 0x12b   : > { %1537 = vmatmul.bf16.gmra.mxu1 %v2109_v53  ;;  %1586 = vmatmul.bf16.gmra.mxu2 %v2113_v55  ;;  %v3189_v2 = vadd.f32 %v1486_v40, %v1438_v31 }
 0x12d   : > { %1635 = vmatmul.bf16.gmra.mxu3 %v2117_v61  ;;  %1684 = vmatmul.bf16.gmra.mxu0 %v2121_v63 }
 0x12e   : > { %v1391_v3 = vpop.f32.mrf.mxu2 }
 0x12f   : > { %v1392_v56 = vadd.f32 %v1391_v3, %v1343_v0  ;;  %v2593_v0 = vld [vmem:[%s3215_s5] sm:$0xff]  }
 0x130   : > { %v1440_v4 = vpop.f32.mrf.mxu3  ;;  %v1344_v5 = vpop.f32.mrf.mxu1 }
 0x131   : > { %v1441_v7 = vadd.f32 %v1440_v4, %v1392_v56  ;;  %v1345_v58 = vadd.f32 %v1344_v5, %v3076_v10  ;;  %v2594_v4 = vunpack.c.l.bf16 %v2593_v0 }
 0x132   : > { %v1491_v9 = vpop.f32.mrf.mxu0 }
 0x133   : > { %v3194_v13 = vadd.f32 %v1489_v1, %v1441_v7 }
 0x136   : > { %v1393_v25 = vpop.f32.mrf.mxu2 }
 0x137   : > { %v1394_v26 = vadd.f32 %v1393_v25, %v1345_v58 }
 0x138   : > { %v1442_v11 = vpop.f32.mrf.mxu3  ;;  %v1347_v30 = vpop.f32.mrf.mxu1 }
 0x139   : > { %v1443_v10 = vadd.f32 %v1442_v11, %v1394_v26  ;;  %v1348_v36 = vadd.f32 %v1347_v30, %v3084_v18  ;;  %v2664_v30 = vld [vmem:[%s3215_s5 + $0x8] sm:$0xff]  }
 0x13a   : > { %v1494_v37 = vpop.f32.mrf.mxu0 }
 0x13b   : > { %1542 = vmatmul.bf16.gmra.mxu1 %v2145_v28  ;;  %1591 = vmatmul.bf16.gmra.mxu2 %v2149_v6  ;;  %v3203_v38 = vadd.f32 %v1491_v9, %v1443_v10  ;;  %v2595_v9 = vunpack.c.h.bf16 %v2593_v0  ;;  %v2598_v10 = vunpack.c.l.bf16 %v2664_v30 }
 0x13d   : > { %1640 = vmatmul.bf16.gmra.mxu3 %v2153_v32  ;;  %1689 = vmatmul.bf16.gmra.mxu0 %v2157_v34 }
 0x13e   : > { %v1396_v20 = vpop.f32.mrf.mxu2 }
 0x13f   : > { %v1397_v16 = vadd.f32 %v1396_v20, %v1348_v36 }
 0x140   : > { %v1445_v40 = vpop.f32.mrf.mxu3  ;;  %v1349_v41 = vpop.f32.mrf.mxu1 }
 0x141   : > { %v1446_v42 = vadd.f32 %v1445_v40, %v1397_v16  ;;  %v1350_v44 = vadd.f32 %v1349_v41, %v3101_v35  ;;  %v2599_v40 = vunpack.c.h.bf16 %v2664_v30 }
 0x142   : > { %v1496_v45 = vpop.f32.mrf.mxu0 }
 0x143   : > { %v3206_v46 = vadd.f32 %v1494_v37, %v1446_v42 }
 0x146   : > { %v1398_v47 = vpop.f32.mrf.mxu2 }
 0x147   : > { %v1399_v18 = vadd.f32 %v1398_v47, %v1350_v44 }
 0x148   : > { %v1447_v48 = vpop.f32.mrf.mxu3  ;;  %v1508_v54 = vpop.f32.mrf.mxu1 }
 0x149   : > { %v1448_v19 = vadd.f32 %v1447_v48, %v1399_v18  ;;  %v1509_v53 = vadd.f32 %v1508_v54, %v3106_v52 }
 0x14a   : > { %v1655_v50 = vpop.f32.mrf.mxu0 }
 0x14b   : > { %v3208_v51 = vadd.f32 %v1496_v45, %v1448_v19 }
 0x14e   : > { %v1557_v55 = vpop.f32.mrf.mxu2 }
 0x14f   : > { %v1558_v57 = vadd.f32 %v1557_v55, %v1509_v53 }
 0x150   : > { %v1606_v61 = vpop.f32.mrf.mxu3  ;;  %v1510_v63 = vpop.f32.mrf.mxu1 }
 0x151   : > { %v1607_v31 = vadd.f32 %v1606_v61, %v1558_v57  ;;  %v1511_v1 = vadd.f32 %v1510_v63, %v3115_v15  ;;  %v2665_v61 = vld [vmem:[%s3215_s5 + $0x10] sm:$0xff]  }
 0x152   : > { %v1657_v35 = vpop.f32.mrf.mxu0  ;;  %v2602_v0 = vunpack.c.l.bf16 %v2665_v61 }
 0x153   : > { %v1656_v56 = vadd.f32 %v1655_v50, %v1607_v31 }
 0x155   : > { %v1727_v12 = vadd.f32 %v2594_v4, %v1656_v56  ;;  %v2603_v4 = vunpack.c.h.bf16 %v2665_v61 }
 0x156   : > { %v1559_v3 = vpop.f32.mrf.mxu2 }
 0x157   : > { %v1560_v52 = vadd.f32 %v1559_v3, %v1511_v1  ;;  %v1743_v23 = vmax.f32 %v1727_v12, 0.0 }
 0x158   : > { %v1608_v5 = vpop.f32.mrf.mxu3  ;;  %v1513_v7 = vpop.f32.mrf.mxu1 }
 0x159   : > { %v1609_v58 = vadd.f32 %v1608_v5, %v1560_v52  ;;  %v1514_v21 = vadd.f32 %v1513_v7, %v3120_v29 }
 0x15a   : > { %v1660_v59 = vpop.f32.mrf.mxu0 }
 0x15b   : > { %v1658_v14 = vadd.f32 %v1657_v35, %v1609_v58 }
 0x15d   : > { %v1728_v17 = vadd.f32 %v2595_v9, %v1658_v14 }
 0x15e   : > { %v1562_v22 = vpop.f32.mrf.mxu2 }
 0x15f   : > { %v1744_v24 = vmax.f32 %v1728_v17, 0.0  ;;  %v1563_v25 = vadd.f32 %v1562_v22, %v1514_v21 }
 0x160   : > { %v1611_v15 = vpop.f32.mrf.mxu3  ;;  %v1515_v26 = vpop.f32.mrf.mxu1 }
 0x161   : > { %v2627_v11 = vpack.c.bf16 %v1744_v24, %v1743_v23  ;;  %v1612_v6 = vadd.f32 %v1611_v15, %v1563_v25  ;;  %v1516_v32 = vadd.f32 %v1515_v26, %v3130_v49  ;;  %v2666_v25 = vld [vmem:[%s3215_s5 + $0x18] sm:$0xff]  }
 0x162   : > { %v1662_v28 = vpop.f32.mrf.mxu0 }
 0x163   : > { %2628 = vst [vmem:[%s3223_s7] sm:$0xff] %v2627_v11   ;;  %v1661_v34 = vadd.f32 %v1660_v59, %v1612_v6 }
 0x165   : > { %v1729_v42 = vadd.f32 %v2598_v10, %v1661_v34 }
 0x166   : > { %v1564_v29 = vpop.f32.mrf.mxu2 }
 0x167   : > { %v1565_v36 = vadd.f32 %v1564_v29, %v1516_v32  ;;  %v1745_v48 = vmax.f32 %v1729_v42, 0.0  ;;  %v2607_v29 = vunpack.c.h.bf16 %v2666_v25 }
 0x168   : > { %v1613_v37 = vpop.f32.mrf.mxu3  ;;  %v1518_v20 = vpop.f32.mrf.mxu1 }
 0x169   : > { %v1614_v16 = vadd.f32 %v1613_v37, %v1565_v36  ;;  %v1519_v47 = vadd.f32 %v1518_v20, %v3136_v60 }
 0x16a   : > { %v1665_v41 = vpop.f32.mrf.mxu0 }
 0x16b   : > { %v1663_v44 = vadd.f32 %v1662_v28, %v1614_v16  ;;  %v2606_v28 = vunpack.c.l.bf16 %v2666_v25 }
 0x16d   : > { %v1730_v45 = vadd.f32 %v2599_v40, %v1663_v44 }
 0x16e   : > { %v1567_v18 = vpop.f32.mrf.mxu2 }
 0x16f   : > { %v1746_v54 = vmax.f32 %v1730_v45, 0.0  ;;  %v1568_v49 = vadd.f32 %v1567_v18, %v1519_v47 }
 0x170   : > { %v1616_v19 = vpop.f32.mrf.mxu3  ;;  %v1520_v50 = vpop.f32.mrf.mxu1 }
 0x171   : > { %v2632_v53 = vpack.c.bf16 %v1746_v54, %v1745_v48  ;;  %v1617_v57 = vadd.f32 %v1616_v19, %v1568_v49  ;;  %v1521_v63 = vadd.f32 %v1520_v50, %v3146_v27  ;;  %v2667_v48 = vld [vmem:[%s3215_s5 + $0x20] sm:$0xff]  }
 0x172   : > { %v1667_v55 = vpop.f32.mrf.mxu0  ;;  %v2610_v50 = vunpack.c.l.bf16 %v2667_v48  ;;  %v2611_v61 = vunpack.c.h.bf16 %v2667_v48 }
 0x173   : > { %2671 = vst [vmem:[%s3223_s7 + $0x8] sm:$0xff] %v2632_v53   ;;  %v1666_v31 = vadd.f32 %v1665_v41, %v1617_v57 }
 0x175   : > { %v1731_v5 = vadd.f32 %v2602_v0, %v1666_v31 }
 0x176   : > { %v1569_v35 = vpop.f32.mrf.mxu2 }
 0x177   : > { %v1570_v1 = vadd.f32 %v1569_v35, %v1521_v63  ;;  %v1747_v12 = vmax.f32 %v1731_v5, 0.0 }
 0x178   : > { %v1618_v3 = vpop.f32.mrf.mxu3  ;;  %v1523_v56 = vpop.f32.mrf.mxu1 }
 0x179   : > { %v1619_v60 = vadd.f32 %v1618_v3, %v1570_v1  ;;  %v1524_v9 = vadd.f32 %v1523_v56, %v3152_v39 }
 0x17a   : > { %v1670_v52 = vpop.f32.mrf.mxu0 }
 0x17b   : > { %v1668_v7 = vadd.f32 %v1667_v55, %v1619_v60 }
 0x17d   : > { %v1732_v58 = vadd.f32 %v2603_v4, %v1668_v7 }
 0x17e   : > { %v1572_v59 = vpop.f32.mrf.mxu2 }
 0x17f   : > { %v1748_v14 = vmax.f32 %v1732_v58, 0.0  ;;  %v1573_v27 = vadd.f32 %v1572_v59, %v1524_v9  ;;  %v2668_v9 = vld [vmem:[%s3215_s5 + $0x28] sm:$0xff]  }
 0x180   : > { %v1621_v17 = vpop.f32.mrf.mxu3  ;;  %v1525_v21 = vpop.f32.mrf.mxu1 }
 0x181   : > { %v2637_v22 = vpack.c.bf16 %v1748_v14, %v1747_v12  ;;  %v1622_v24 = vadd.f32 %v1621_v17, %v1573_v27  ;;  %v1526_v15 = vadd.f32 %v1525_v21, %v3161_v62  ;;  %v2614_v27 = vunpack.c.l.bf16 %v2668_v9 }
 0x182   : > { %v1672_v23 = vpop.f32.mrf.mxu0 }
 0x183   : > { %2672 = vst [vmem:[%s3223_s7 + $0x10] sm:$0xff] %v2637_v22   ;;  %v1671_v11 = vadd.f32 %v1670_v52, %v1622_v24 }
 0x185   : > { %v1733_v10 = vadd.f32 %v2606_v28, %v1671_v11 }
 0x186   : > { %v1574_v26 = vpop.f32.mrf.mxu2 }
 0x187   : > { %v1575_v6 = vadd.f32 %v1574_v26, %v1526_v15  ;;  %v1749_v40 = vmax.f32 %v1733_v10, 0.0  ;;  %v2669_v10 = vld [vmem:[%s3215_s5 + $0x30] sm:$0xff]  }
 0x188   : > { %v1623_v30 = vpop.f32.mrf.mxu3  ;;  %v1528_v32 = vpop.f32.mrf.mxu1 }
 0x189   : > { %v1624_v39 = vadd.f32 %v1623_v30, %v1575_v6  ;;  %v1529_v20 = vadd.f32 %v1528_v32, %v3166_v8 }
 0x18a   : > { %v1675_v34 = vpop.f32.mrf.mxu0 }
 0x18b   : > { %v1673_v36 = vadd.f32 %v1672_v23, %v1624_v39  ;;  %v2615_v23 = vunpack.c.h.bf16 %v2668_v9 }
 0x18d   : > { %v1734_v37 = vadd.f32 %v2607_v29, %v1673_v36 }
 0x18e   : > { %v1577_v16 = vpop.f32.mrf.mxu2 }
 0x18f   : > { %v1750_v41 = vmax.f32 %v1734_v37, 0.0  ;;  %v1578_v62 = vadd.f32 %v1577_v16, %v1529_v20 }
 0x190   : > { %v1626_v42 = vpop.f32.mrf.mxu3  ;;  %v1530_v44 = vpop.f32.mrf.mxu1 }
 0x191   : > { %v2642_v45 = vpack.c.bf16 %v1750_v41, %v1749_v40  ;;  %v1627_v18 = vadd.f32 %v1626_v42, %v1578_v62  ;;  %v1531_v54 = vadd.f32 %v1530_v44, %v3175_v33  ;;  %v2618_v40 = vunpack.c.l.bf16 %v2669_v10 }
 0x192   : > { %v1677_v47 = vpop.f32.mrf.mxu0  ;;  %v2619_v44 = vunpack.c.h.bf16 %v2669_v10 }
 0x193   : > { %2673 = vst [vmem:[%s3223_s7 + $0x18] sm:$0xff] %v2642_v45   ;;  %v1676_v19 = vadd.f32 %v1675_v34, %v1627_v18 }
 0x195   : > { %v1735_v35 = vadd.f32 %v2610_v50, %v1676_v19 }
 0x196   : > { %v1579_v49 = vpop.f32.mrf.mxu2 }
 0x197   : > { %v1580_v53 = vadd.f32 %v1579_v49, %v1531_v54  ;;  %v1751_v56 = vmax.f32 %v1735_v35, 0.0 }
 0x198   : > { %v1628_v55 = vpop.f32.mrf.mxu3  ;;  %v1533_v57 = vpop.f32.mrf.mxu1 }
 0x199   : > { %v1629_v8 = vadd.f32 %v1628_v55, %v1580_v53  ;;  %v1534_v1 = vadd.f32 %v1533_v57, %v3180_v43 }
 0x19a   : > { %v1680_v63 = vpop.f32.mrf.mxu0 }
 0x19b   : > { %v1678_v31 = vadd.f32 %v1677_v47, %v1629_v8 }
 0x19d   : > { %v1736_v0 = vadd.f32 %v2611_v61, %v1678_v31  ;;  %v2670_v61 = vld [vmem:[%s3215_s5 + $0x38] sm:$0xff]  }
 0x19e   : > { %v1582_v3 = vpop.f32.mrf.mxu2 }
 0x19f   : > { %v1752_v60 = vmax.f32 %v1736_v0, 0.0  ;;  %v1583_v33 = vadd.f32 %v1582_v3, %v1534_v1  ;;  %v2622_v0 = vunpack.c.l.bf16 %v2670_v61 }
 0x1a0   : > { %v1631_v4 = vpop.f32.mrf.mxu3  ;;  %v1535_v52 = vpop.f32.mrf.mxu1 }
 0x1a1   : > { %v2647_v5 = vpack.c.bf16 %v1752_v60, %v1751_v56  ;;  %v1632_v58 = vadd.f32 %v1631_v4, %v1583_v33  ;;  %v1536_v59 = vadd.f32 %v1535_v52, %v3189_v2  ;;  %v2623_v56 = vunpack.c.h.bf16 %v2670_v61 }
 0x1a2   : > { %v1682_v7 = vpop.f32.mrf.mxu0 }
 0x1a3   : > { %2674 = vst [vmem:[%s3223_s7 + $0x20] sm:$0xff] %v2647_v5   ;;  %v1681_v14 = vadd.f32 %v1680_v63, %v1632_v58 }
 0x1a5   : > { %v1737_v24 = vadd.f32 %v2614_v27, %v1681_v14 }
 0x1a6   : > { %v1584_v12 = vpop.f32.mrf.mxu2 }
 0x1a7   : > { %v1585_v17 = vadd.f32 %v1584_v12, %v1536_v59  ;;  %v1753_v6 = vmax.f32 %v1737_v24, 0.0 }
 0x1a8   : > { %v1633_v21 = vpop.f32.mrf.mxu3  ;;  %v1538_v43 = vpop.f32.mrf.mxu1 }
 0x1a9   : > { %v1634_v22 = vadd.f32 %v1633_v21, %v1585_v17  ;;  %v1539_v11 = vadd.f32 %v1538_v43, %v3194_v13 }
 0x1aa   : > { %v1685_v15 = vpop.f32.mrf.mxu0 }
 0x1ab   : > { %v1683_v25 = vadd.f32 %v1682_v7, %v1634_v22 }
 0x1ad   : > { %v1738_v26 = vadd.f32 %v2615_v23, %v1683_v25 }
 0x1ae   : > { %v1587_v28 = vpop.f32.mrf.mxu2 }
 0x1af   : > { %v1754_v30 = vmax.f32 %v1738_v26, 0.0  ;;  %v1588_v2 = vadd.f32 %v1587_v28, %v1539_v11 }
 0x1b0   : > { %v1636_v32 = vpop.f32.mrf.mxu3  ;;  %v1540_v39 = vpop.f32.mrf.mxu1 }
 0x1b1   : > { %v2652_v29 = vpack.c.bf16 %v1754_v30, %v1753_v6  ;;  %v1637_v34 = vadd.f32 %v1636_v32, %v1588_v2  ;;  %v1541_v36 = vadd.f32 %v1540_v39, %v3203_v38 }
 0x1b2   : > { %v1687_v37 = vpop.f32.mrf.mxu0 }
 0x1b3   : > { %2675 = vst [vmem:[%s3223_s7 + $0x28] sm:$0xff] %v2652_v29   ;;  %v1686_v16 = vadd.f32 %v1685_v15, %v1637_v34 }
 0x1b5   : > { %v1739_v45 = vadd.f32 %v2618_v40, %v1686_v16 }
 0x1b6   : > { %v1589_v20 = vpop.f32.mrf.mxu2 }
 0x1b7   : > { %v1590_v41 = vadd.f32 %v1589_v20, %v1541_v36  ;;  %v1755_v49 = vmax.f32 %v1739_v45, 0.0 }
 0x1b8   : > { %v1638_v62 = vpop.f32.mrf.mxu3  ;;  %v1543_v13 = vpop.f32.mrf.mxu1 }
 0x1b9   : > { %v1639_v42 = vadd.f32 %v1638_v62, %v1590_v41  ;;  %v1544_v48 = vadd.f32 %v1543_v13, %v3206_v46 }
 0x1ba   : > { %v1690_v53 = vpop.f32.mrf.mxu0 }
 0x1bb   : > { %v1688_v47 = vadd.f32 %v1687_v37, %v1639_v42 }
 0x1bd   : > { %v1740_v18 = vadd.f32 %v2619_v44, %v1688_v47 }
 0x1be   : > { %v1592_v54 = vpop.f32.mrf.mxu2 }
 0x1bf   : > { %v1756_v19 = vmax.f32 %v1740_v18, 0.0  ;;  %v1593_v38 = vadd.f32 %v1592_v54, %v1544_v48 }
 0x1c0   : > { %v1641_v50 = vpop.f32.mrf.mxu3  ;;  %v1545_v57 = vpop.f32.mrf.mxu1 }
 0x1c1   : > { %v2657_v55 = vpack.c.bf16 %v1756_v19, %v1755_v49  ;;  %v1642_v8 = vadd.f32 %v1641_v50, %v1593_v38  ;;  %v1546_v63 = vadd.f32 %v1545_v57, %v3208_v51 }
 0x1c2   : > { %v1692_v60 = vpop.f32.mrf.mxu0 }
 0x1c3   : > { %2676 = vst [vmem:[%s3223_s7 + $0x30] sm:$0xff] %v2657_v55   ;;  %v1691_v31 = vadd.f32 %v1690_v53, %v1642_v8 }
 0x1c5   : > { %v1741_v33 = vadd.f32 %v2622_v0, %v1691_v31 }
 0x1c6   : > { %v1594_v35 = vpop.f32.mrf.mxu2 }
 0x1c7   : > { %v1595_v1 = vadd.f32 %v1594_v35, %v1546_v63  ;;  %v1757_v5 = vmax.f32 %v1741_v33, 0.0 }
 0x1c8   : > { %v1643_v3 = vpop.f32.mrf.mxu3 }
 0x1c9   : > { %v1644_v46 = vadd.f32 %v1643_v3, %v1595_v1 }
 0x1cb   : > { %v1693_v4 = vadd.f32 %v1692_v60, %v1644_v46 }
 0x1cd   : > { %v1742_v52 = vadd.f32 %v2623_v56, %v1693_v4 }
 0x1cf   : > { %v1758_v7 = vmax.f32 %v1742_v52, 0.0 }
 0x1d1   : > { %v2662_v58 = vpack.c.bf16 %v1758_v7, %v1757_v5 }
 0x1d3   : > { %2677 = vst [vmem:[%s3223_s7 + $0x38] sm:$0xff] %v2662_v58  }
 0x1d4 PF: > { %s14_s15 = sadd.s32 1, %s2718_s15  }
 0x1d5   : > { %p11_p4 = scmp.ge.s32.totalorder %s14_s15, 4  }
 0x1d7   :  { %13 = sbr.rel (!%p11_p4) target bundleno = 1 (0x1), region = 69 }

// kernel: resnet_cifar_forward.11
= control target key start
LH: loop header
LB: loop body
LE: loop exit
PB: predicated region body
PF: predicated region fallthrough
CT: control target
= control target key end

     0   :  { %s1137_s15 = smov 0   ;;  %s1329_s0 = inlined_call_operand.vmem [shape: bf16[256,288], index: 0, kind: input, shape index: {}]   ;;  %s1330_s1 = inlined_call_operand.vmem [shape: bf16[288,128], index: 1, kind: input, shape index: {}]   ;;  %s1331_s2 = inlined_call_operand.vmem [shape: f32[1,128], index: 2, kind: input, shape index: {}]   ;;  %s1332_s3 = inlined_call_operand.vmem [shape: f32[1,128], index: 3, kind: input, shape index: {}]   ;;  %s1333_s4 = inlined_call_operand.vmem [shape: bf16[256,128], index: 4, kind: output, shape index: {}]  }
   0x1 LB: > { %s801_s16 = sadd.s32 4294967295, %s1110_s15   ;;  %p805_p0 = scmp.ge.s32.totalorder %s1110_s15, 1  ;;  %s1110_s15 = sphi %s1137_s15, %s14_s15  }
   0x2   : > { %p164_p1 = scmp.lt.s32.totalorder %s1110_s15, 3 }
   0x4   : > { %p165_p2 = pnand %p805_p0, %p164_p1 }
   0x5   : > { %s806_s23 = sshll.u32 (!%p165_p2), %s801_s16, 4 }
   0x6   : > { %168 = sbr.rel (%p165_p2) target bundleno = 282 (0x11a), region = 36  ;;  %p192_p3 = scmp.lt.s32.totalorder (!%p165_p2), %s806_s23, 31 }
   0xb   : > { %v1019_v0 = vld [vmem:[%s1330_s1 + $0x38] sm:$0xff]  ;;  %v1029_v1 = vld [vmem:[%s1330_s1 + $0x88] sm:$0xff]  ;;  %v1018_v3 = vld [vmem:[%s1330_s1 + $0x30] sm:$0xff]  ;;  %s1335_s23 = smov (!%p192_p3, %s806_s23), 31  ;;  %vm505_vm0 = vcmask 261120  }
   0xc   : > { %v1154_v2 = vld [vmem:[%s1330_s1 + $0x78] sm:$0xff]  ;;  %530 = vmatpush.bf16.msra.mxu0 %v1019_v0  ;;  %1077 = vmatpush.bf16.msra.mxu3 %v1019_v0  ;;  %v1028_v4 = vld [vmem:[%s1330_s1 + $0x80] sm:$0xff]  ;;  %v1026_v5 = vld [vmem:[%s1330_s1 + $0x70] sm:$0xff]  ;;  %s1093_s30 = smul.u32 12, %s1335_s23  ;;  %s809_s12 = sshll.u32 %s1335_s23, 2 }
   0xd   : > { %634 = vmatpush.bf16.msra.mxu2 %v1029_v1  ;;  %579 = vmatpush.bf16.msra.mxu1 %v1154_v2  ;;  %v1017_v6 = vld [vmem:[%s1330_s1 + $0x28] sm:$0xff]  ;;  %v1016_v11 = vld [vmem:[%s1330_s1 + $0x20] sm:$0xff]  ;;  %v1015_v13 = vld [vmem:[%s1330_s1 + $0x18] sm:$0xff]  ;;  %s1286_s16 = scalar_lea.vmem %s1333_s4, %s809_s12 }
   0xe   : > { %s1175_s9 = scalar_lea.vmem %s1329_s0, %s1093_s30  ;;  %v1025_v7 = vld [vmem:[%s1330_s1 + $0x68] sm:$0xff]  ;;  %v1024_v12 = vld [vmem:[%s1330_s1 + $0x60] sm:$0xff]  ;;  %v1023_v14 = vld [vmem:[%s1330_s1 + $0x58] sm:$0xff] }
   0xf   : > { %v820_v8 = vld [vmem:[%s1175_s9 + $0x8] sm:$0xf]  ;;  %v990_v9 = vld [vmem:[%s1175_s9 + $0x10] sm:$0xf0]  ;;  %v832_v17 = vld [vmem:[%s1175_s9 + $0x20] sm:$0xf] }
  0x10   : > { %531 = vmatpush.bf16.msra.mxu0 %v1018_v3  ;;  %1078 = vmatpush.bf16.msra.mxu3 %v1018_v3  ;;  %v821_v10 = vor.u32 %v990_v9, %v820_v8  ;;  %v1014_v15 = vld [vmem:[%s1330_s1 + $0x10] sm:$0xff]  ;;  %v993_v18 = vld [vmem:[%s1175_s9 + $0x28] sm:$0xf0]  ;;  %v1012_v22 = vld [vmem:[%s1330_s1] sm:$0xff] }
  0x11   : > { %635 = vmatpush.bf16.msra.mxu2 %v1028_v4  ;;  %580 = vmatpush.bf16.msra.mxu1 %v1026_v5  ;;  %v1022_v16 = vld [vmem:[%s1330_s1 + $0x50] sm:$0xff]  ;;  %v1013_v19 = vld [vmem:[%s1330_s1 + $0x8] sm:$0xff]  ;;  %v833_v20 = vor.u32 %v993_v18, %v832_v17  ;;  %v812_v23 = vld [vmem:[%s1175_s9] sm:$0xf] }
  0x12   : > { %v1021_v21 = vld [vmem:[%s1330_s1 + $0x48] sm:$0xff]  ;;  %v884_v25 = vld [vmem:[%s1175_s9 + $0x90] sm:$0xf]  ;;  %v1007_v26 = vld [vmem:[%s1175_s9 + $0x98] sm:$0xf0] }
  0x13   : > { %v989_v24 = vld [vmem:[%s1175_s9 + $0x8] sm:$0xf0]  ;;  %v1020_v27 = vld [vmem:[%s1330_s1 + $0x40] sm:$0xff]  ;;  %v814_v29 = vld [vmem:[%s1175_s9 + $0xc] sm:$0xf0]  ;;  %v885_v31 = vor.u32 %v1007_v26, %v884_v25 }
  0x14   : > { %532 = vmatpush.bf16.msra.mxu0 %v1017_v6  ;;  %1079 = vmatpush.bf16.msra.mxu3 %v1017_v6  ;;  %v988_v28 = vld [vmem:[%s1175_s9 + $0x4] sm:$0xf]  ;;  %v813_v30 = vor.u32 %v989_v24, %v812_v23  ;;  %v844_v33 = vld [vmem:[%s1175_s9 + $0x38] sm:$0xf]  ;;  %v896_v38 = vld [vmem:[%s1175_s9 + $0xa8] sm:$0xf] }
  0x15   : > { %978 = vmatmul.msk.bf16.vlgmr.msra.gmra.mxu2 %vm505_vm0, %v821_v10  ;;  %581 = vmatpush.bf16.msra.mxu1 %v1025_v7  ;;  %v817_v32 = vor.u32 %v988_v28, %v814_v29  ;;  %v996_v34 = vld [vmem:[%s1175_s9 + $0x40] sm:$0xf0]  ;;  %v824_v36 = vld [vmem:[%s1175_s9 + $0x18] sm:$0xf]  ;;  %v1010_v39 = vld [vmem:[%s1175_s9 + $0xb0] sm:$0xf0] }
  0x16   : > { %v845_v35 = vor.u32 %v996_v34, %v844_v33  ;;  %v992_v37 = vld [vmem:[%s1175_s9 + $0x20] sm:$0xf0]  ;;  %v991_v40 = vld [vmem:[%s1175_s9 + $0x1c] sm:$0xf]  ;;  %v826_v41 = vld [vmem:[%s1175_s9 + $0x24] sm:$0xf0]  ;;  %v897_v43 = vor.u32 %v1010_v39, %v896_v38 }
  0x17   : > { %v825_v42 = vor.u32 %v992_v37, %v824_v36  ;;  %v829_v44 = vor.u32 %v991_v40, %v826_v41  ;;  %v856_v45 = vld [vmem:[%s1175_s9 + $0x50] sm:$0xf]  ;;  %v999_v46 = vld [vmem:[%s1175_s9 + $0x58] sm:$0xf0]  ;;  %v1006_v50 = vld [vmem:[%s1175_s9 + $0x94] sm:$0xf] }
  0x18   : > { %533 = vmatpush.bf16.msra.mxu0 %v1016_v11  ;;  %1080 = vmatpush.bf16.msra.mxu3 %v1016_v11  ;;  %v857_v47 = vor.u32 %v999_v46, %v856_v45  ;;  %v836_v48 = vld [vmem:[%s1175_s9 + $0x30] sm:$0xf]  ;;  %v995_v49 = vld [vmem:[%s1175_s9 + $0x38] sm:$0xf0]  ;;  %v886_v51 = vld [vmem:[%s1175_s9 + $0x9c] sm:$0xf0] }
  0x19   : > { %582 = vmatpush.bf16.msra.mxu1 %v1024_v12  ;;  %v994_v52 = vld [vmem:[%s1175_s9 + $0x34] sm:$0xf]  ;;  %v838_v53 = vld [vmem:[%s1175_s9 + $0x3c] sm:$0xf0]  ;;  %v837_v54 = vor.u32 %v995_v49, %v836_v48  ;;  %v889_v55 = vor.u32 %v1006_v50, %v886_v51  ;;  %v868_v57 = vld [vmem:[%s1175_s9 + $0x68] sm:$0xf] }
  0x1a   : > { %v841_v56 = vor.u32 %v994_v52, %v838_v53  ;;  %v1002_v58 = vld [vmem:[%s1175_s9 + $0x70] sm:$0xf0]  ;;  %v848_v60 = vld [vmem:[%s1175_s9 + $0x48] sm:$0xf]  ;;  %v1009_v62 = vld [vmem:[%s1175_s9 + $0xac] sm:$0xf] }
  0x1b   : > { %v869_v59 = vor.u32 %v1002_v58, %v868_v57  ;;  %v998_v61 = vld [vmem:[%s1175_s9 + $0x50] sm:$0xf0]  ;;  %v898_v63 = vld [vmem:[%s1175_s9 + $0xb4] sm:$0xf0]  ;;  %v997_v0 = vld [vmem:[%s1175_s9 + $0x4c] sm:$0xf] }
  0x1c   : > { %534 = vmatpush.bf16.msra.mxu0 %v1015_v13  ;;  %1081 = vmatpush.bf16.msra.mxu3 %v1015_v13  ;;  %v850_v1 = vld [vmem:[%s1175_s9 + $0x54] sm:$0xf0]  ;;  %v901_v3 = vor.u32 %v1009_v62, %v898_v63  ;;  %v1005_v6 = vld [vmem:[%s1175_s9 + $0x88] sm:$0xf0]  ;;  %v860_v8 = vld [vmem:[%s1175_s9 + $0x60] sm:$0xf] }
  0x1d   : > { %583 = vmatpush.bf16.msra.mxu1 %v1023_v14  ;;  %v853_v4 = vor.u32 %v997_v0, %v850_v1  ;;  %v1001_v9 = vld [vmem:[%s1175_s9 + $0x68] sm:$0xf0]  ;;  %v1000_v10 = vld [vmem:[%s1175_s9 + $0x64] sm:$0xf]  ;;  %v862_v11 = vld [vmem:[%s1175_s9 + $0x6c] sm:$0xf0] }
  0x1e   : > { %v865_v13 = vor.u32 %v1000_v10, %v862_v11  ;;  %v872_v17 = vld [vmem:[%s1175_s9 + $0x78] sm:$0xf]  ;;  %v1004_v18 = vld [vmem:[%s1175_s9 + $0x80] sm:$0xf0]  ;;  %v904_v23 = vld [vmem:[%s1175_s9 + $0xb0] sm:$0xf] }
  0x1f   : > { %v1011_v24 = vld [vmem:[%s1175_s9 + $0xb8] sm:$0xf0]  ;;  %v1270_v28 = vld [vmem:[%s1331_s2] ss:$0 sm:$0xff] }
  0x20   : > { %535 = vmatpush.bf16.msra.mxu0 %v1014_v15  ;;  %1082 = vmatpush.bf16.msra.mxu3 %v1014_v15  ;;  %v1008_v15 = vld [vmem:[%s1175_s9 + $0xa0] sm:$0xf0]  ;;  %v905_v25 = vor.u32 %v1011_v24, %v904_v23  ;;  %v1276_v37 = vld [vmem:[%s1332_s3] ss:$0 sm:$0xff] }
  0x21   : > { %584 = vmatpush.bf16.msra.mxu1 %v1022_v16 }
  0x24   : > { %536 = vmatpush.bf16.msra.mxu0 %v1013_v19  ;;  %1083 = vmatpush.bf16.msra.mxu3 %v1013_v19  ;;  %v1003_v19 = vld [vmem:[%s1175_s9 + $0x7c] sm:$0xf] }
  0x25   : > { %979 = vmatmul.msk.bf16.gmra.mxu2 %vm505_vm0, %v833_v20  ;;  %585 = vmatpush.bf16.msra.mxu1 %v1021_v21  ;;  %v874_v20 = vld [vmem:[%s1175_s9 + $0x84] sm:$0xf0] }
  0x28   : > { %537 = vmatpush.bf16.msra.mxu0 %v1012_v22  ;;  %1084 = vmatpush.bf16.msra.mxu3 %v1012_v22  ;;  %v877_v22 = vor.u32 %v1003_v19, %v874_v20 }
  0x29   : > { %586 = vmatpush.bf16.msra.mxu1 %v1020_v27 }
  0x2b   : > { %538 = vmatmul.bf16.vlgmr.msra.gmra.mxu0 %v813_v30  ;;  %568 = vmatmul.bf16.vlgmr.msra.gmra.mxu3 %v885_v31 }
  0x2c   : > { %1085 = vmatpush.bf16.msrb.mxu3 %v1154_v2  ;;  %587 = vmatmul.bf16.vlgmr.msra.gmra.mxu1 %v817_v32  ;;  %v849_v2 = vor.u32 %v998_v61, %v848_v60 }
  0x30   : > { %1086 = vmatpush.bf16.msrb.mxu3 %v1026_v5  ;;  %v880_v5 = vld [vmem:[%s1175_s9 + $0x80] sm:$0xf] }
  0x34   : > { %1087 = vmatpush.bf16.msrb.mxu3 %v1025_v7  ;;  %v881_v7 = vor.u32 %v1005_v6, %v880_v5 }
  0x35   : > { %980 = vmatmul.msk.bf16.gmra.mxu2 %vm505_vm0, %v845_v35 }
  0x38   : > { %1088 = vmatpush.bf16.msrb.mxu3 %v1024_v12  ;;  %v861_v12 = vor.u32 %v1001_v9, %v860_v8 }
  0x3b   : > { %543 = vmatmul.bf16.gmra.mxu0 %v825_v42  ;;  %573 = vmatmul.bf16.gmra.mxu3 %v897_v43 }
  0x3c   : > { %1089 = vmatpush.bf16.msrb.mxu3 %v1023_v14  ;;  %592 = vmatmul.bf16.gmra.mxu1 %v829_v44  ;;  %v892_v14 = vld [vmem:[%s1175_s9 + $0x98] sm:$0xf] }
  0x40   : > { %1090 = vmatpush.bf16.msrb.mxu3 %v1022_v16  ;;  %v893_v16 = vor.u32 %v1008_v15, %v892_v14 }
  0x44   : > { %1091 = vmatpush.bf16.msrb.mxu3 %v1021_v21  ;;  %v873_v21 = vor.u32 %v1004_v18, %v872_v17 }
  0x45   : > { %981 = vmatmul.msk.bf16.gmra.mxu2 %vm505_vm0, %v857_v47 }
  0x48   : > { %1092 = vmatpush.bf16.msrb.mxu3 %v1020_v27 }
  0x4b   : > { %548 = vmatmul.bf16.gmra.mxu0 %v837_v54  ;;  %617 = vmatmul.bf16.vlgmr.msrb.gmra.mxu3 %v889_v55 }
  0x4c   : > { %597 = vmatmul.bf16.gmra.mxu1 %v841_v56 }
  0x55   : > { %982 = vmatmul.msk.bf16.gmra.mxu2 %vm505_vm0, %v869_v59 }
  0x5b   : > { %553 = vmatmul.bf16.gmra.mxu0 %v849_v2  ;;  %622 = vmatmul.bf16.gmra.mxu3 %v901_v3 }
  0x5c   : > { %602 = vmatmul.bf16.gmra.mxu1 %v853_v4 }
  0x65   : > { %983 = vmatmul.msk.bf16.gmra.mxu2 %vm505_vm0, %v881_v7 }
  0x6b   : > { %558 = vmatmul.bf16.gmra.mxu0 %v861_v12 }
  0x6c   : > { %607 = vmatmul.bf16.gmra.mxu1 %v865_v13 }
  0x75   : > { %984 = vmatmul.msk.bf16.gmra.mxu2 %vm505_vm0, %v893_v16 }
  0x7b   : > { %563 = vmatmul.bf16.gmra.mxu0 %v873_v21 }
  0x7c   : > { %612 = vmatmul.bf16.gmra.mxu1 %v877_v22 }
  0x85   : > { %985 = vmatmul.msk.bf16.gmra.mxu2 %vm505_vm0, %v905_v25 }
  0x98   : > { %v637_v26 = vpop.f32.mrf.mxu2 }
  0xa0   : > { %v639_v27 = vpop.f32.mrf.mxu2 }
  0xa8   : > { %v642_v29 = vpop.f32.mrf.mxu2  ;;  %v539_v30 = vpop.f32.mrf.mxu0 }
  0xa9   : > { %v540_v31 = vadd.f32 %v1270_v28, %v539_v30  ;;  %v588_v32 = vpop.f32.mrf.mxu1 }
  0xab   : > { %v589_v33 = vadd.f32 %v588_v32, %v540_v31 }
  0xad   : > { %v638_v36 = vadd.f32 %v637_v26, %v589_v33 }
  0xae   : > { %v569_v58 = vpop.f32.mrf.mxu3 }
  0xaf   : > { %v681_v41 = vmul.f32 %v1276_v37, %v638_v36 }
  0xb0   : > { %v644_v34 = vpop.f32.mrf.mxu2  ;;  %v541_v35 = vpop.f32.mrf.mxu0 }
  0xb1   : > { %v542_v38 = vadd.f32 %v1270_v28, %v541_v35  ;;  %v590_v39 = vpop.f32.mrf.mxu1  ;;  %v697_v46 = vmax.f32 %v638_v36, %v681_v41 }
  0xb3   : > { %v591_v40 = vadd.f32 %v590_v39, %v542_v38 }
  0xb5   : > { %v640_v42 = vadd.f32 %v639_v27, %v591_v40 }
  0xb6   : > { %v571_v6 = vpop.f32.mrf.mxu3 }
  0xb7   : > { %v682_v43 = vmul.f32 %v1276_v37, %v640_v42 }
  0xb8   : > { %v647_v44 = vpop.f32.mrf.mxu2  ;;  %v544_v45 = vpop.f32.mrf.mxu0 }
  0xb9   : > { %v698_v47 = vmax.f32 %v640_v42, %v682_v43  ;;  %v545_v48 = vadd.f32 %v1270_v28, %v544_v45  ;;  %v593_v49 = vpop.f32.mrf.mxu1 }
  0xbb   : > { %v1033_v50 = vpack.c.bf16 %v698_v47, %v697_v46  ;;  %v594_v51 = vadd.f32 %v593_v49, %v545_v48 }
  0xbd   : > { %1034 = vst [vmem:[%s1286_s16] sm:$0xff] %v1033_v50   ;;  %v643_v54 = vadd.f32 %v642_v29, %v594_v51 }
  0xbe   : > { %v1297_v18 = vpop.f32.mrf.mxu3 }
  0xbf   : > { %v683_v59 = vmul.f32 %v1276_v37, %v643_v54 }
  0xc0   : > { %v649_v52 = vpop.f32.mrf.mxu2  ;;  %v546_v53 = vpop.f32.mrf.mxu0 }
  0xc1   : > { %v547_v55 = vadd.f32 %v1270_v28, %v546_v53  ;;  %v595_v56 = vpop.f32.mrf.mxu1  ;;  %v699_v0 = vmax.f32 %v643_v54, %v683_v59  ;;  %v570_v54 = vadd.f32 %v1270_v28, %v569_v58 }
  0xc3   : > { %v596_v57 = vadd.f32 %v595_v56, %v547_v55 }
  0xc5   : > { %v645_v60 = vadd.f32 %v644_v34, %v596_v57 }
  0xc6   : > { %v576_v31 = vpop.f32.mrf.mxu3 }
  0xc7   : > { %v684_v61 = vmul.f32 %v1276_v37, %v645_v60 }
  0xc8   : > { %v652_v62 = vpop.f32.mrf.mxu2  ;;  %v549_v63 = vpop.f32.mrf.mxu0 }
  0xc9   : > { %v700_v1 = vmax.f32 %v645_v60, %v684_v61  ;;  %v550_v2 = vadd.f32 %v1270_v28, %v549_v63  ;;  %v598_v3 = vpop.f32.mrf.mxu1 }
  0xcb   : > { %v1038_v4 = vpack.c.bf16 %v700_v1, %v699_v0  ;;  %v599_v5 = vadd.f32 %v598_v3, %v550_v2  ;;  %v572_v0 = vadd.f32 %v1270_v28, %v571_v6 }
  0xcd   : > { %1070 = vst [vmem:[%s1286_s16 + $0x8] sm:$0xff] %v1038_v4   ;;  %v648_v9 = vadd.f32 %v647_v44, %v599_v5 }
  0xce   : > { %v618_v44 = vpop.f32.mrf.mxu3 }
  0xcf   : > { %v685_v13 = vmul.f32 %v1276_v37, %v648_v9  ;;  %v619_v1 = vadd.f32 %v618_v44, %v570_v54 }
  0xd0   : > { %v654_v7 = vpop.f32.mrf.mxu2  ;;  %v551_v8 = vpop.f32.mrf.mxu0 }
  0xd1   : > { %v552_v10 = vadd.f32 %v1270_v28, %v551_v8  ;;  %v600_v11 = vpop.f32.mrf.mxu1  ;;  %v701_v19 = vmax.f32 %v648_v9, %v685_v13 }
  0xd3   : > { %v601_v12 = vadd.f32 %v600_v11, %v552_v10 }
  0xd5   : > { %v650_v14 = vadd.f32 %v649_v52, %v601_v12 }
  0xd6   : > { %v620_v55 = vpop.f32.mrf.mxu3 }
  0xd7   : > { %v686_v15 = vmul.f32 %v1276_v37, %v650_v14  ;;  %v621_v5 = vadd.f32 %v620_v55, %v572_v0 }
  0xd8   : > { %v657_v16 = vpop.f32.mrf.mxu2  ;;  %v554_v17 = vpop.f32.mrf.mxu0 }
  0xd9   : > { %v702_v20 = vmax.f32 %v650_v14, %v686_v15  ;;  %v555_v21 = vadd.f32 %v1270_v28, %v554_v17  ;;  %v603_v22 = vpop.f32.mrf.mxu1 }
  0xdb   : > { %v1043_v23 = vpack.c.bf16 %v702_v20, %v701_v19  ;;  %v604_v24 = vadd.f32 %v603_v22, %v555_v21  ;;  %v575_v20 = vadd.f32 %v1270_v28, %v1297_v18 }
  0xdd   : > { %1071 = vst [vmem:[%s1286_s16 + $0x10] sm:$0xff] %v1043_v23   ;;  %v653_v27 = vadd.f32 %v652_v62, %v604_v24 }
  0xde   : > { %v623_v13 = vpop.f32.mrf.mxu3 }
  0xdf   : > { %v687_v33 = vmul.f32 %v1276_v37, %v653_v27 }
  0xe0   : > { %v659_v25 = vpop.f32.mrf.mxu2  ;;  %v556_v26 = vpop.f32.mrf.mxu0 }
  0xe1   : > { %v557_v29 = vadd.f32 %v1270_v28, %v556_v26  ;;  %v605_v30 = vpop.f32.mrf.mxu1  ;;  %v703_v39 = vmax.f32 %v653_v27, %v687_v33  ;;  %v577_v26 = vadd.f32 %v1270_v28, %v576_v31  ;;  %v624_v27 = vadd.f32 %v623_v13, %v575_v20 }
  0xe3   : > { %v606_v32 = vadd.f32 %v605_v30, %v557_v29 }
  0xe5   : > { %v655_v34 = vadd.f32 %v654_v7, %v606_v32 }
  0xe6   : > { %v625_v30 = vpop.f32.mrf.mxu3 }
  0xe7   : > { %v688_v35 = vmul.f32 %v1276_v37, %v655_v34  ;;  %v626_v33 = vadd.f32 %v625_v30, %v577_v26 }
  0xe8   : > { %v662_v36 = vpop.f32.mrf.mxu2  ;;  %v559_v38 = vpop.f32.mrf.mxu0 }
  0xe9   : > { %v704_v40 = vmax.f32 %v655_v34, %v688_v35  ;;  %v560_v41 = vadd.f32 %v1270_v28, %v559_v38  ;;  %v608_v42 = vpop.f32.mrf.mxu1 }
  0xeb   : > { %v1048_v43 = vpack.c.bf16 %v704_v40, %v703_v39  ;;  %v609_v45 = vadd.f32 %v608_v42, %v560_v41 }
  0xed   : > { %1072 = vst [vmem:[%s1286_s16 + $0x18] sm:$0xff] %v1048_v43   ;;  %v658_v48 = vadd.f32 %v657_v16, %v609_v45 }
  0xef   : > { %v689_v52 = vmul.f32 %v1276_v37, %v658_v48 }
  0xf0   : > { %v664_v46 = vpop.f32.mrf.mxu2  ;;  %v561_v47 = vpop.f32.mrf.mxu0 }
  0xf1   : > { %v562_v49 = vadd.f32 %v1270_v28, %v561_v47  ;;  %v610_v50 = vpop.f32.mrf.mxu1  ;;  %v705_v60 = vmax.f32 %v658_v48, %v689_v52 }
  0xf3   : > { %v611_v51 = vadd.f32 %v610_v50, %v562_v49 }
  0xf5   : > { %v660_v53 = vadd.f32 %v659_v25, %v611_v51 }
  0xf7   : > { %v690_v56 = vmul.f32 %v1276_v37, %v660_v53 }
  0xf8   : > { %v667_v57 = vpop.f32.mrf.mxu2  ;;  %v564_v59 = vpop.f32.mrf.mxu0 }
  0xf9   : > { %v706_v61 = vmax.f32 %v660_v53, %v690_v56  ;;  %v565_v62 = vadd.f32 %v1270_v28, %v564_v59  ;;  %v613_v63 = vpop.f32.mrf.mxu1  ;;  %v668_v3 = vadd.f32 %v667_v57, %v619_v1 }
  0xfb   : > { %v1053_v2 = vpack.c.bf16 %v706_v61, %v705_v60  ;;  %v614_v4 = vadd.f32 %v613_v63, %v565_v62  ;;  %v693_v8 = vmul.f32 %v1276_v37, %v668_v3 }
  0xfd   : > { %1073 = vst [vmem:[%s1286_s16 + $0x20] sm:$0xff] %v1053_v2   ;;  %v663_v9 = vadd.f32 %v662_v36, %v614_v4  ;;  %v709_v15 = vmax.f32 %v668_v3, %v693_v8 }
  0xff   : > { %v691_v16 = vmul.f32 %v1276_v37, %v663_v9 }
 0x100   : > { %v669_v7 = vpop.f32.mrf.mxu2  ;;  %v566_v58 = vpop.f32.mrf.mxu0 }
 0x101   : > { %v670_v10 = vadd.f32 %v669_v7, %v621_v5  ;;  %v567_v11 = vadd.f32 %v1270_v28, %v566_v58  ;;  %v615_v12 = vpop.f32.mrf.mxu1  ;;  %v707_v24 = vmax.f32 %v663_v9, %v691_v16 }
 0x103   : > { %v694_v14 = vmul.f32 %v1276_v37, %v670_v10  ;;  %v616_v6 = vadd.f32 %v615_v12, %v567_v11 }
 0x105   : > { %v710_v17 = vmax.f32 %v670_v10, %v694_v14  ;;  %v665_v19 = vadd.f32 %v664_v46, %v616_v6 }
 0x107   : > { %v1063_v21 = vpack.c.bf16 %v710_v17, %v709_v15  ;;  %v692_v22 = vmul.f32 %v1276_v37, %v665_v19 }
 0x108   : > { %v672_v23 = vpop.f32.mrf.mxu2 }
 0x109   : > { %1075 = vst [vmem:[%s1286_s16 + $0x30] sm:$0xff] %v1063_v21   ;;  %v708_v25 = vmax.f32 %v665_v19, %v692_v22  ;;  %v673_v32 = vadd.f32 %v672_v23, %v624_v27 }
 0x10b   : > { %v1058_v29 = vpack.c.bf16 %v708_v25, %v707_v24  ;;  %v695_v35 = vmul.f32 %v1276_v37, %v673_v32 }
 0x10d   : > { %1074 = vst [vmem:[%s1286_s16 + $0x28] sm:$0xff] %v1058_v29   ;;  %v711_v38 = vmax.f32 %v673_v32, %v695_v35 }
 0x110   : > { %v674_v34 = vpop.f32.mrf.mxu2 }
 0x111   : > { %v675_v18 = vadd.f32 %v674_v34, %v626_v33 }
 0x113   : > { %v696_v36 = vmul.f32 %v1276_v37, %v675_v18 }
 0x115   : > { %v712_v39 = vmax.f32 %v675_v18, %v696_v36 }
 0x117   : > { %v1068_v40 = vpack.c.bf16 %v712_v39, %v711_v38 }
 0x119   : > { %1076 = vst [vmem:[%s1286_s16 + $0x38] sm:$0xff] %v1068_v40  }
 0x11a PF: > { %s14_s15 = sadd.s32 1, %s1110_s15  }
 0x11b   : > { %p11_p4 = scmp.ge.s32.totalorder %s14_s15, 4  }
 0x11d   :  { %13 = sbr.rel (!%p11_p4) target bundleno = 1 (0x1), region = 66 }

// kernel: resnet_cifar_forward.12
= control target key start
LH: loop header
LB: loop body
LE: loop exit
PB: predicated region body
PF: predicated region fallthrough
CT: control target
= control target key end

     0   :  { %s2061_s15 = smov 0   ;;  %s2426_s0 = inlined_call_operand.vmem [shape: bf16[128,1152], index: 0, kind: input, shape index: {}]   ;;  %s2427_s1 = inlined_call_operand.vmem [shape: bf16[1152,128], index: 1, kind: input, shape index: {}]   ;;  %s2428_s2 = inlined_call_operand.vmem [shape: f32[1,128], index: 2, kind: input, shape index: {}]   ;;  %s2429_s3 = inlined_call_operand.vmem [shape: bf16[128,128], index: 3, kind: input, shape index: {}]   ;;  %s2430_s4 = inlined_call_operand.vmem [shape: bf16[128,128], index: 4, kind: output, shape index: {}]  }
   0x1 LB: > { %s1407_s16 = sadd.s32 4294967295, %s2034_s15   ;;  %p1411_p0 = scmp.ge.s32.totalorder %s2034_s15, 1  ;;  %s2034_s15 = sphi %s2061_s15, %s14_s15  }
   0x2   : > { %p175_p1 = scmp.lt.s32.totalorder %s2034_s15, 3 }
   0x4   : > { %p176_p2 = pnand %p1411_p0, %p175_p1 }
   0x5   : > { %s1412_s7 = sshll.u32 (!%p176_p2), %s1407_s16, 3 }
   0x6   : > { %179 = sbr.rel (%p176_p2) target bundleno = 336 (0x150), region = 36  ;;  %p208_p3 = scmp.lt.s32.totalorder (!%p176_p2), %s1412_s7, 15 }
   0xb   : > { %v1895_v0 = vld [vmem:[%s2427_s1 + $0x38] sm:$0xff]  ;;  %v1894_v2 = vld [vmem:[%s2427_s1 + $0x30] sm:$0xff]  ;;  %v1893_v6 = vld [vmem:[%s2427_s1 + $0x28] sm:$0xff]  ;;  %s2432_s7 = smov (!%p208_p3, %s1412_s7), 15 }
   0xc   : > { %v1911_v1 = vld [vmem:[%s2427_s1 + $0xb8] sm:$0xff]  ;;  %2002 = vmatpush.bf16.msra.mxu1 %v1895_v0  ;;  %1030 = vmatpush.bf16.msra.mxu0 %v1895_v0  ;;  %v1910_v3 = vld [vmem:[%s2427_s1 + $0xb0] sm:$0xff]  ;;  %v1909_v7 = vld [vmem:[%s2427_s1 + $0xa8] sm:$0xff]  ;;  %s2018_s25 = smul.u32 36, %s2432_s7 }
   0xd   : > { %1088 = vmatpush.bf16.msra.mxu2 %v1911_v1  ;;  %v1919_v4 = vld [vmem:[%s2427_s1 + $0xf8] sm:$0xff]  ;;  %v1918_v5 = vld [vmem:[%s2427_s1 + $0xf0] sm:$0xff]  ;;  %v1917_v8 = vld [vmem:[%s2427_s1 + $0xe8] sm:$0xff] }
   0xe   : > { %1117 = vmatpush.bf16.msra.mxu3 %v1919_v4  ;;  %v1892_v9 = vld [vmem:[%s2427_s1 + $0x20] sm:$0xff]  ;;  %v1891_v12 = vld [vmem:[%s2427_s1 + $0x18] sm:$0xff]  ;;  %v1890_v15 = vld [vmem:[%s2427_s1 + $0x10] sm:$0xff]  ;;  %s2132_s9 = scalar_lea.vmem %s2426_s0, %s2018_s25 }
   0xf   : > { %v1908_v10 = vld [vmem:[%s2427_s1 + $0xa0] sm:$0xff]  ;;  %v1907_v13 = vld [vmem:[%s2427_s1 + $0x98] sm:$0xff]  ;;  %v1906_v16 = vld [vmem:[%s2427_s1 + $0x90] sm:$0xff] }
  0x10   : > { %2003 = vmatpush.bf16.msra.mxu1 %v1894_v2  ;;  %1031 = vmatpush.bf16.msra.mxu0 %v1894_v2  ;;  %v1916_v11 = vld [vmem:[%s2427_s1 + $0xe0] sm:$0xff]  ;;  %v1915_v14 = vld [vmem:[%s2427_s1 + $0xd8] sm:$0xff]  ;;  %v1914_v17 = vld [vmem:[%s2427_s1 + $0xd0] sm:$0xff] }
  0x11   : > { %1089 = vmatpush.bf16.msra.mxu2 %v1910_v3  ;;  %v1889_v18 = vld [vmem:[%s2427_s1 + $0x8] sm:$0xff]  ;;  %v1888_v20 = vld [vmem:[%s2427_s1] sm:$0xff]  ;;  %v1492_v21 = vld [vmem:[%s2132_s9 + $0x90] sm:$0xf] }
  0x12   : > { %1118 = vmatpush.bf16.msra.mxu3 %v1918_v5  ;;  %v1905_v19 = vld [vmem:[%s2427_s1 + $0x88] sm:$0xff]  ;;  %v1903_v22 = vld [vmem:[%s2427_s1 + $0x78] sm:$0xff]  ;;  %v1874_v24 = vld [vmem:[%s2132_s9 + $0xb0] sm:$0xf0] }
  0x13   : > { %v1913_v23 = vld [vmem:[%s2427_s1 + $0xc8] sm:$0xff]  ;;  %v1420_v25 = vld [vmem:[%s2132_s9] sm:$0xf]  ;;  %v1856_v26 = vld [vmem:[%s2132_s9 + $0x20] sm:$0xf0]  ;;  %v1493_v32 = vor.u32 %v1874_v24, %v1492_v21 }
  0x14   : > { %2004 = vmatpush.bf16.msra.mxu1 %v1893_v6  ;;  %1032 = vmatpush.bf16.msra.mxu0 %v1893_v6  ;;  %v1904_v27 = vld [vmem:[%s2427_s1 + $0x80] sm:$0xff]  ;;  %v1428_v28 = vld [vmem:[%s2132_s9 + $0x8] sm:$0xf]  ;;  %v1857_v29 = vld [vmem:[%s2132_s9 + $0x28] sm:$0xf0]  ;;  %v1421_v33 = vor.u32 %v1856_v26, %v1420_v25 }
  0x15   : > { %1090 = vmatpush.bf16.msra.mxu2 %v1909_v7  ;;  %v1927_v30 = vld [vmem:[%s2427_s1 + $0x138] sm:$0xff]  ;;  %v1429_v34 = vor.u32 %v1857_v29, %v1428_v28  ;;  %v1912_v35 = vld [vmem:[%s2427_s1 + $0xc0] sm:$0xff]  ;;  %v1853_v36 = vld [vmem:[%s2132_s9 + $0xc] sm:$0xf] }
  0x16   : > { %1119 = vmatpush.bf16.msra.mxu3 %v1917_v8  ;;  %v1943_v31 = vld [vmem:[%s2427_s1 + $0x1b8] sm:$0xff]  ;;  %v1430_v37 = vld [vmem:[%s2132_s9 + $0x2c] sm:$0xf0]  ;;  %v1901_v43 = vld [vmem:[%s2427_s1 + $0x68] sm:$0xff] }
  0x17   : > { %v1902_v38 = vld [vmem:[%s2427_s1 + $0x70] sm:$0xff]  ;;  %v1951_v39 = vld [vmem:[%s2427_s1 + $0x1f8] sm:$0xff]  ;;  %v1433_v42 = vor.u32 %v1853_v36, %v1430_v37  ;;  %v1925_v45 = vld [vmem:[%s2427_s1 + $0x128] sm:$0xff] }
  0x18   : > { %2005 = vmatpush.bf16.msra.mxu1 %v1892_v9  ;;  %1033 = vmatpush.bf16.msra.mxu0 %v1892_v9  ;;  %v1926_v40 = vld [vmem:[%s2427_s1 + $0x130] sm:$0xff]  ;;  %v1941_v46 = vld [vmem:[%s2427_s1 + $0x1a8] sm:$0xff]  ;;  %v1900_v47 = vld [vmem:[%s2427_s1 + $0x60] sm:$0xff] }
  0x19   : > { %1091 = vmatpush.bf16.msra.mxu2 %v1908_v10  ;;  %v1942_v41 = vld [vmem:[%s2427_s1 + $0x1b0] sm:$0xff]  ;;  %v1949_v48 = vld [vmem:[%s2427_s1 + $0x1e8] sm:$0xff]  ;;  %v1924_v49 = vld [vmem:[%s2427_s1 + $0x120] sm:$0xff] }
  0x1a   : > { %1120 = vmatpush.bf16.msra.mxu3 %v1916_v11  ;;  %v1950_v44 = vld [vmem:[%s2427_s1 + $0x1f0] sm:$0xff]  ;;  %v1940_v50 = vld [vmem:[%s2427_s1 + $0x1a0] sm:$0xff]  ;;  %v1528_v51 = vld [vmem:[%s2132_s9 + $0xd8] sm:$0xf] }
  0x1b   : > { %v1883_v52 = vld [vmem:[%s2132_s9 + $0xf8] sm:$0xf0]  ;;  %v1456_v53 = vld [vmem:[%s2132_s9 + $0x48] sm:$0xf]  ;;  %v1865_v54 = vld [vmem:[%s2132_s9 + $0x68] sm:$0xf0] }
  0x1c   : > { %2006 = vmatpush.bf16.msra.mxu1 %v1891_v12  ;;  %1034 = vmatpush.bf16.msra.mxu0 %v1891_v12  ;;  %v1899_v55 = vld [vmem:[%s2427_s1 + $0x58] sm:$0xff]  ;;  %v1464_v56 = vld [vmem:[%s2132_s9 + $0x50] sm:$0xf]  ;;  %v1866_v57 = vld [vmem:[%s2132_s9 + $0x70] sm:$0xf0]  ;;  %v1529_v59 = vor.u32 %v1883_v52, %v1528_v51  ;;  %v1457_v60 = vor.u32 %v1865_v54, %v1456_v53 }
  0x1d   : > { %1092 = vmatpush.bf16.msra.mxu2 %v1907_v13  ;;  %v1923_v58 = vld [vmem:[%s2427_s1 + $0x118] sm:$0xff]  ;;  %v1465_v61 = vor.u32 %v1866_v57, %v1464_v56  ;;  %v1862_v62 = vld [vmem:[%s2132_s9 + $0x54] sm:$0xf]  ;;  %v1897_v4 = vld [vmem:[%s2427_s1 + $0x48] sm:$0xff] }
  0x1e   : > { %1121 = vmatpush.bf16.msra.mxu3 %v1915_v14  ;;  %v1466_v63 = vld [vmem:[%s2132_s9 + $0x74] sm:$0xf0]  ;;  %v1898_v0 = vld [vmem:[%s2427_s1 + $0x50] sm:$0xff]  ;;  %v1948_v5 = vld [vmem:[%s2427_s1 + $0x1e0] sm:$0xff] }
  0x1f   : > { %v1922_v1 = vld [vmem:[%s2427_s1 + $0x110] sm:$0xff]  ;;  %v1469_v2 = vor.u32 %v1862_v62, %v1466_v63  ;;  %v1939_v3 = vld [vmem:[%s2427_s1 + $0x198] sm:$0xff]  ;;  %v1921_v6 = vld [vmem:[%s2427_s1 + $0x108] sm:$0xff] }
  0x20   : > { %2007 = vmatpush.bf16.msra.mxu1 %v1890_v15  ;;  %1035 = vmatpush.bf16.msra.mxu0 %v1890_v15  ;;  %v1938_v7 = vld [vmem:[%s2427_s1 + $0x190] sm:$0xff]  ;;  %v1947_v8 = vld [vmem:[%s2427_s1 + $0x1d8] sm:$0xff]  ;;  %v1896_v9 = vld [vmem:[%s2427_s1 + $0x40] sm:$0xff] }
  0x21   : > { %1093 = vmatpush.bf16.msra.mxu2 %v1906_v16  ;;  %v1935_v10 = vld [vmem:[%s2427_s1 + $0x178] sm:$0xff]  ;;  %v1920_v11 = vld [vmem:[%s2427_s1 + $0x100] sm:$0xff]  ;;  %v1422_v14 = vld [vmem:[%s2132_s9 + $0x24] sm:$0xf0] }
  0x22   : > { %1122 = vmatpush.bf16.msra.mxu3 %v1914_v17  ;;  %v1852_v12 = vld [vmem:[%s2132_s9 + $0x4] sm:$0xf]  ;;  %v1959_v13 = vld [vmem:[%s2427_s1 + $0x238] sm:$0xff]  ;;  %v1436_v15 = vld [vmem:[%s2132_s9 + $0x10] sm:$0xf] }
  0x23   : > { %v1858_v16 = vld [vmem:[%s2132_s9 + $0x30] sm:$0xf0]  ;;  %v1500_v17 = vld [vmem:[%s2132_s9 + $0x98] sm:$0xf]  ;;  %v1502_v24 = vld [vmem:[%s2132_s9 + $0xbc] sm:$0xf0] }
  0x24   : > { %2008 = vmatpush.bf16.msra.mxu1 %v1889_v18  ;;  %1036 = vmatpush.bf16.msra.mxu0 %v1889_v18  ;;  %v1875_v18 = vld [vmem:[%s2132_s9 + $0xb8] sm:$0xf0]  ;;  %v1437_v21 = vor.u32 %v1858_v16, %v1436_v15  ;;  %v1958_v25 = vld [vmem:[%s2427_s1 + $0x230] sm:$0xff]  ;;  %v1933_v26 = vld [vmem:[%s2427_s1 + $0x168] sm:$0xff] }
  0x25   : > { %1094 = vmatpush.bf16.msra.mxu2 %v1905_v19  ;;  %v1934_v19 = vld [vmem:[%s2427_s1 + $0x170] sm:$0xff]  ;;  %v1936_v29 = vld [vmem:[%s2427_s1 + $0x180] sm:$0xff]  ;;  %v1861_v36 = vld [vmem:[%s2132_s9 + $0x4c] sm:$0xf] }
  0x26   : > { %1123 = vmatpush.bf16.msra.mxu3 %v1913_v23  ;;  %v1871_v23 = vld [vmem:[%s2132_s9 + $0x9c] sm:$0xf]  ;;  %v1458_v37 = vld [vmem:[%s2132_s9 + $0x6c] sm:$0xf0]  ;;  %v1928_v52 = vld [vmem:[%s2427_s1 + $0x140] sm:$0xff] }
  0x27   : > { %v1505_v28 = vor.u32 %v1871_v23, %v1502_v24  ;;  %v1955_v51 = vld [vmem:[%s2427_s1 + $0x218] sm:$0xff]  ;;  %v1954_v53 = vld [vmem:[%s2427_s1 + $0x210] sm:$0xff]  ;;  %v1508_v57 = vld [vmem:[%s2132_s9 + $0xa0] sm:$0xf] }
  0x28   : > { %2009 = vmatpush.bf16.msra.mxu1 %v1888_v20  ;;  %1037 = vmatpush.bf16.msra.mxu0 %v1888_v20  ;;  %v1425_v20 = vor.u32 %v1852_v12, %v1422_v14  ;;  %v1870_v54 = vld [vmem:[%s2132_s9 + $0x94] sm:$0xf]  ;;  %v1494_v56 = vld [vmem:[%s2132_s9 + $0xb4] sm:$0xf0]  ;;  %v1482_v14 = vld [vmem:[%s2132_s9 + $0x84] sm:$0xf0] }
  0x29   : > { %1095 = vmatpush.bf16.msra.mxu2 %v1904_v27  ;;  %v1937_v27 = vld [vmem:[%s2427_s1 + $0x188] sm:$0xff]  ;;  %v1854_v16 = vld [vmem:[%s2132_s9 + $0x14] sm:$0xf] }
  0x2a   : > { %1124 = vmatpush.bf16.msra.mxu3 %v1912_v35  ;;  %v1931_v35 = vld [vmem:[%s2427_s1 + $0x158] sm:$0xff] }
  0x2b   : > { %1048 = vmatmul.bf16.vlgmr.msra.gmra.mxu1 %v1493_v32  ;;  %1038 = vmatmul.bf16.vlgmr.msra.gmra.mxu0 %v1421_v33  ;;  %v1932_v32 = vld [vmem:[%s2427_s1 + $0x160] sm:$0xff]  ;;  %v1945_v33 = vld [vmem:[%s2427_s1 + $0x1c8] sm:$0xff] }
  0x2c   : > { %1059 = vmatpush.bf16.msrb.mxu1 %v1903_v22  ;;  %1146 = vmatpush.bf16.msrb.mxu0 %v1927_v30  ;;  %v1501_v22 = vor.u32 %v1875_v18, %v1500_v17  ;;  %v1946_v30 = vld [vmem:[%s2427_s1 + $0x1d0] sm:$0xff]  ;;  %v1438_v17 = vld [vmem:[%s2132_s9 + $0x34] sm:$0xf0]  ;;  %v1452_v18 = vld [vmem:[%s2132_s9 + $0x20] sm:$0xf] }
  0x2d   : > { %1204 = vmatpush.bf16.msrb.mxu2 %v1943_v31  ;;  %1125 = vmatmul.bf16.vlgmr.msra.gmra.mxu3 %v1433_v42  ;;  %v1957_v31 = vld [vmem:[%s2427_s1 + $0x228] sm:$0xff]  ;;  %v1930_v42 = vld [vmem:[%s2427_s1 + $0x150] sm:$0xff] }
  0x2e   : > { %1096 = vmatmul.bf16.vlgmr.msra.gmra.mxu2 %v1429_v34  ;;  %1233 = vmatpush.bf16.msrb.mxu3 %v1951_v39  ;;  %v1956_v34 = vld [vmem:[%s2427_s1 + $0x220] sm:$0xff]  ;;  %v1867_v39 = vld [vmem:[%s2132_s9 + $0x78] sm:$0xf0] }
  0x30   : > { %1060 = vmatpush.bf16.msrb.mxu1 %v1902_v38  ;;  %1147 = vmatpush.bf16.msrb.mxu0 %v1926_v40  ;;  %v1472_v38 = vld [vmem:[%s2132_s9 + $0x58] sm:$0xf]  ;;  %v1536_v40 = vld [vmem:[%s2132_s9 + $0xe0] sm:$0xf] }
  0x31   : > { %1205 = vmatpush.bf16.msrb.mxu2 %v1942_v41  ;;  %v1884_v41 = vld [vmem:[%s2132_s9 + $0x100] sm:$0xf0] }
  0x32   : > { %1234 = vmatpush.bf16.msrb.mxu3 %v1950_v44  ;;  %v1473_v44 = vor.u32 %v1867_v39, %v1472_v38  ;;  %v1554_v38 = vld [vmem:[%s2132_s9 + $0x114] sm:$0xf0] }
  0x34   : > { %1061 = vmatpush.bf16.msrb.mxu1 %v1901_v43  ;;  %1148 = vmatpush.bf16.msrb.mxu0 %v1925_v45  ;;  %v1461_v43 = vor.u32 %v1861_v36, %v1458_v37  ;;  %v1537_v45 = vor.u32 %v1884_v41, %v1536_v40  ;;  %v1882_v37 = vld [vmem:[%s2132_s9 + $0xf4] sm:$0xf]  ;;  %v1872_v40 = vld [vmem:[%s2132_s9 + $0xa4] sm:$0xf]  ;;  %v1510_v41 = vld [vmem:[%s2132_s9 + $0xc4] sm:$0xf0] }
  0x35   : > { %1206 = vmatpush.bf16.msrb.mxu2 %v1941_v46  ;;  %v1880_v46 = vld [vmem:[%s2132_s9 + $0xe4] sm:$0xf]  ;;  %v1557_v39 = vor.u32 %v1882_v37, %v1554_v38 }
  0x36   : > { %1235 = vmatpush.bf16.msrb.mxu3 %v1949_v48 }
  0x38   : > { %1062 = vmatpush.bf16.msrb.mxu1 %v1900_v47  ;;  %1149 = vmatpush.bf16.msrb.mxu0 %v1924_v49  ;;  %v1538_v47 = vld [vmem:[%s2132_s9 + $0x104] sm:$0xf0] }
  0x39   : > { %1207 = vmatpush.bf16.msrb.mxu2 %v1940_v50  ;;  %v1541_v48 = vor.u32 %v1880_v46, %v1538_v47  ;;  %v1929_v49 = vld [vmem:[%s2427_s1 + $0x148] sm:$0xff]  ;;  %v1944_v50 = vld [vmem:[%s2427_s1 + $0x1c0] sm:$0xff]  ;;  %v1513_v46 = vor.u32 %v1872_v40, %v1510_v41 }
  0x3a   : > { %1236 = vmatpush.bf16.msrb.mxu3 %v1948_v5  ;;  %v1530_v5 = vld [vmem:[%s2132_s9 + $0xfc] sm:$0xf0] }
  0x3b   : > { %1053 = vmatmul.bf16.gmra.mxu1 %v1529_v59  ;;  %1043 = vmatmul.bf16.gmra.mxu0 %v1457_v60  ;;  %v1444_v59 = vld [vmem:[%s2132_s9 + $0x18] sm:$0xf]  ;;  %v1859_v60 = vld [vmem:[%s2132_s9 + $0x38] sm:$0xf0] }
  0x3c   : > { %1063 = vmatpush.bf16.msrb.mxu1 %v1899_v55  ;;  %1150 = vmatpush.bf16.msrb.mxu0 %v1923_v58  ;;  %v1953_v55 = vld [vmem:[%s2427_s1 + $0x208] sm:$0xff]  ;;  %v1876_v58 = vld [vmem:[%s2132_s9 + $0xc0] sm:$0xf0]  ;;  %v1445_v63 = vor.u32 %v1859_v60, %v1444_v59 }
  0x3d   : > { %1208 = vmatpush.bf16.msrb.mxu2 %v1939_v3  ;;  %1130 = vmatmul.bf16.gmra.mxu3 %v1469_v2  ;;  %v1509_v62 = vor.u32 %v1876_v58, %v1508_v57  ;;  %v1952_v3 = vld [vmem:[%s2427_s1 + $0x200] sm:$0xff] }
  0x3e   : > { %1101 = vmatmul.bf16.gmra.mxu2 %v1465_v61  ;;  %1237 = vmatpush.bf16.msrb.mxu3 %v1947_v8  ;;  %v1497_v61 = vor.u32 %v1870_v54, %v1494_v56  ;;  %v1480_v8 = vld [vmem:[%s2132_s9 + $0x60] sm:$0xf]  ;;  %v1546_v56 = vld [vmem:[%s2132_s9 + $0x10c] sm:$0xf0] }
  0x40   : > { %1064 = vmatpush.bf16.msrb.mxu1 %v1898_v0  ;;  %1151 = vmatpush.bf16.msrb.mxu0 %v1922_v1  ;;  %v1855_v0 = vld [vmem:[%s2132_s9 + $0x1c] sm:$0xf]  ;;  %v1446_v1 = vld [vmem:[%s2132_s9 + $0x3c] sm:$0xf0] }
  0x41   : > { %1209 = vmatpush.bf16.msrb.mxu2 %v1938_v7  ;;  %v1449_v2 = vor.u32 %v1855_v0, %v1446_v1  ;;  %v1885_v7 = vld [vmem:[%s2132_s9 + $0x108] sm:$0xf0] }
  0x42   : > { %1238 = vmatpush.bf16.msrb.mxu3 %v1946_v30  ;;  %v1488_v30 = vld [vmem:[%s2132_s9 + $0x68] sm:$0xf] }
  0x44   : > { %1065 = vmatpush.bf16.msrb.mxu1 %v1897_v4  ;;  %1152 = vmatpush.bf16.msrb.mxu0 %v1921_v6  ;;  %v1879_v4 = vld [vmem:[%s2132_s9 + $0xdc] sm:$0xf]  ;;  %v1544_v6 = vld [vmem:[%s2132_s9 + $0xe8] sm:$0xf] }
  0x45   : > { %1210 = vmatpush.bf16.msrb.mxu2 %v1937_v27 }
  0x46   : > { %1239 = vmatpush.bf16.msrb.mxu3 %v1945_v33  ;;  %v1886_v33 = vld [vmem:[%s2132_s9 + $0x110] sm:$0xf0] }
  0x48   : > { %1066 = vmatpush.bf16.msrb.mxu1 %v1896_v9  ;;  %1153 = vmatpush.bf16.msrb.mxu0 %v1920_v11  ;;  %v1868_v9 = vld [vmem:[%s2132_s9 + $0x80] sm:$0xf0]  ;;  %v1545_v11 = vor.u32 %v1885_v7, %v1544_v6 }
  0x49   : > { %1211 = vmatpush.bf16.msrb.mxu2 %v1936_v29  ;;  %v1481_v12 = vor.u32 %v1868_v9, %v1480_v8  ;;  %v1474_v29 = vld [vmem:[%s2132_s9 + $0x7c] sm:$0xf0] }
  0x4a   : > { %1240 = vmatpush.bf16.msrb.mxu3 %v1944_v50 }
  0x4b   : > { %1067 = vmatmul.bf16.vlgmr.msrb.gmra.mxu1 %v1425_v20  ;;  %1154 = vmatmul.bf16.vlgmr.msrb.gmra.mxu0 %v1437_v21  ;;  %v1516_v20 = vld [vmem:[%s2132_s9 + $0xa8] sm:$0xf]  ;;  %v1877_v21 = vld [vmem:[%s2132_s9 + $0xc8] sm:$0xf0] }
  0x4c   : > { %1175 = vmatpush.bf16.msra.mxu1 %v1935_v10  ;;  %1262 = vmatpush.bf16.msra.mxu0 %v1959_v13  ;;  %v1533_v10 = vor.u32 %v1879_v4, %v1530_v5  ;;  %v1517_v24 = vor.u32 %v1877_v21, %v1516_v20 }
  0x4d   : > { %1135 = vmatmul.bf16.gmra.mxu3 %v1505_v28  ;;  %2010 = vmatpush.bf16.msra.mxu2 %v1959_v13  ;;  %v1864_v13 = vld [vmem:[%s2132_s9 + $0x64] sm:$0xf]  ;;  %v1863_v28 = vld [vmem:[%s2132_s9 + $0x5c] sm:$0xf] }
  0x4e   : > { %1106 = vmatmul.bf16.gmra.mxu2 %v1501_v22  ;;  %v1485_v15 = vor.u32 %v1864_v13, %v1482_v14  ;;  %v1441_v22 = vor.u32 %v1854_v16, %v1438_v17 }
  0x50   : > { %1176 = vmatpush.bf16.msra.mxu1 %v1934_v19  ;;  %1263 = vmatpush.bf16.msra.mxu0 %v1958_v25  ;;  %v1860_v19 = vld [vmem:[%s2132_s9 + $0x40] sm:$0xf0] }
  0x51   : > { %2011 = vmatpush.bf16.msra.mxu2 %v1958_v25  ;;  %v1453_v23 = vor.u32 %v1860_v19, %v1452_v18  ;;  %v1873_v25 = vld [vmem:[%s2132_s9 + $0xac] sm:$0xf] }
  0x54   : > { %1177 = vmatpush.bf16.msra.mxu1 %v1933_v26  ;;  %1264 = vmatpush.bf16.msra.mxu0 %v1957_v31  ;;  %v1518_v26 = vld [vmem:[%s2132_s9 + $0xcc] sm:$0xf0] }
  0x55   : > { %2012 = vmatpush.bf16.msra.mxu2 %v1957_v31  ;;  %v1521_v27 = vor.u32 %v1873_v25, %v1518_v26  ;;  %v1869_v31 = vld [vmem:[%s2132_s9 + $0x88] sm:$0xf0] }
  0x58   : > { %1178 = vmatpush.bf16.msra.mxu1 %v1932_v32  ;;  %1265 = vmatpush.bf16.msra.mxu0 %v1956_v34  ;;  %v1552_v32 = vld [vmem:[%s2132_s9 + $0xf0] sm:$0xf] }
  0x59   : > { %2013 = vmatpush.bf16.msra.mxu2 %v1956_v34  ;;  %v1477_v34 = vor.u32 %v1863_v28, %v1474_v29  ;;  %v1553_v36 = vor.u32 %v1886_v33, %v1552_v32 }
  0x5b   : > { %1072 = vmatmul.bf16.gmra.mxu1 %v1461_v43  ;;  %1159 = vmatmul.bf16.gmra.mxu0 %v1473_v44  ;;  %v1878_v43 = vld [vmem:[%s2132_s9 + $0xd0] sm:$0xf0]  ;;  %v1560_v44 = vld [vmem:[%s2132_s9 + $0xf8] sm:$0xf] }
  0x5c   : > { %1179 = vmatpush.bf16.msra.mxu1 %v1931_v35  ;;  %1266 = vmatpush.bf16.msra.mxu0 %v1955_v51  ;;  %v1489_v35 = vor.u32 %v1869_v31, %v1488_v30 }
  0x5d   : > { %1140 = vmatmul.bf16.gmra.mxu3 %v1541_v48  ;;  %2014 = vmatpush.bf16.msra.mxu2 %v1955_v51 }
  0x5e   : > { %1111 = vmatmul.bf16.gmra.mxu2 %v1537_v45  ;;  %v1887_v45 = vld [vmem:[%s2132_s9 + $0x118] sm:$0xf0] }
  0x5f   : > { %v1561_v50 = vor.u32 %v1887_v45, %v1560_v44 }
  0x60   : > { %1180 = vmatpush.bf16.msra.mxu1 %v1930_v42  ;;  %1267 = vmatpush.bf16.msra.mxu0 %v1954_v53  ;;  %v1524_v42 = vld [vmem:[%s2132_s9 + $0xb0] sm:$0xf] }
  0x61   : > { %2015 = vmatpush.bf16.msra.mxu2 %v1954_v53  ;;  %v1525_v47 = vor.u32 %v1878_v43, %v1524_v42 }
  0x64   : > { %1181 = vmatpush.bf16.msra.mxu1 %v1929_v49  ;;  %1268 = vmatpush.bf16.msra.mxu0 %v1953_v55 }
  0x65   : > { %2016 = vmatpush.bf16.msra.mxu2 %v1953_v55  ;;  %v1881_v55 = vld [vmem:[%s2132_s9 + $0xec] sm:$0xf]  ;;  %s1415_s9 = sshll.u32 %s2432_s7, 2 }
  0x66   : > { %v1549_v57 = vor.u32 %v1881_v55, %v1546_v56  ;;  %s2397_s29 = scalar_lea.vmem %s2429_s3, %s1415_s9  ;;  %s2405_s5 = scalar_lea.vmem %s2430_s4, %s1415_s9 }
  0x68   : > { %1182 = vmatpush.bf16.msra.mxu1 %v1928_v52  ;;  %1269 = vmatpush.bf16.msra.mxu0 %v1952_v3 }
  0x69   : > { %2017 = vmatpush.bf16.msra.mxu2 %v1952_v3 }
  0x6b   : > { %1077 = vmatmul.bf16.gmra.mxu1 %v1497_v61  ;;  %1164 = vmatmul.bf16.gmra.mxu0 %v1509_v62 }
  0x6d   : > { %1241 = vmatmul.bf16.vlgmr.msrb.gmra.mxu3 %v1449_v2  ;;  %v2027_v2 = vld [vmem:[%s2428_s2] ss:$0 sm:$0xff] }
  0x6e   : > { %1212 = vmatmul.bf16.vlgmr.msrb.gmra.mxu2 %v1445_v63 }
  0x7b   : > { %1082 = vmatmul.bf16.gmra.mxu1 %v1533_v10  ;;  %1169 = vmatmul.bf16.gmra.mxu0 %v1545_v11 }
  0x7d   : > { %1246 = vmatmul.bf16.gmra.mxu3 %v1485_v15 }
  0x7e   : > { %1217 = vmatmul.bf16.gmra.mxu2 %v1481_v12 }
  0x8b   : > { %1183 = vmatmul.bf16.vlgmr.msra.gmra.mxu1 %v1441_v22  ;;  %1270 = vmatmul.bf16.vlgmr.msra.gmra.mxu0 %v1453_v23 }
  0x8d   : > { %1251 = vmatmul.bf16.gmra.mxu3 %v1521_v27 }
  0x8e   : > { %1222 = vmatmul.bf16.gmra.mxu2 %v1517_v24 }
  0x9b   : > { %1188 = vmatmul.bf16.gmra.mxu1 %v1477_v34  ;;  %1275 = vmatmul.bf16.gmra.mxu0 %v1489_v35 }
  0x9d   : > { %1256 = vmatmul.bf16.gmra.mxu3 %v1557_v39 }
  0x9e   : > { %1227 = vmatmul.bf16.gmra.mxu2 %v1553_v36 }
  0xa8   : > { %v1049_v48 = vpop.f32.mrf.mxu1  ;;  %v1039_v49 = vpop.f32.mrf.mxu0 }
  0xa9   : > { %v1040_v3 = vadd.f32 %v2027_v2, %v1039_v49  ;;  %v1050_v34 = vadd.f32 %v2027_v2, %v1049_v48 }
  0xab   : > { %1193 = vmatmul.bf16.gmra.mxu1 %v1513_v46  ;;  %1280 = vmatmul.bf16.gmra.mxu0 %v1525_v47 }
  0xae   : > { %1285 = vmatmul.bf16.vlgmr.msra.gmra.mxu2 %v1561_v50 }
  0xb0   : > { %v1051_v52 = vpop.f32.mrf.mxu1  ;;  %v1041_v53 = vpop.f32.mrf.mxu0 }
  0xb1   : > { %v1097_v51 = vpop.f32.mrf.mxu2  ;;  %v1126_v54 = vpop.f32.mrf.mxu3  ;;  %v1042_v11 = vadd.f32 %v2027_v2, %v1041_v53  ;;  %v1052_v42 = vadd.f32 %v2027_v2, %v1051_v52 }
  0xb8   : > { %v1054_v59 = vpop.f32.mrf.mxu1  ;;  %v1044_v60 = vpop.f32.mrf.mxu0 }
  0xb9   : > { %v1099_v58 = vpop.f32.mrf.mxu2  ;;  %v2365_v61 = vpop.f32.mrf.mxu3  ;;  %v1045_v19 = vadd.f32 %v2027_v2, %v1044_v60  ;;  %v1055_v48 = vadd.f32 %v2027_v2, %v1054_v59 }
  0xbb   : > { %1198 = vmatmul.bf16.gmra.mxu1 %v1549_v57 }
  0xc0   : > { %v1056_v63 = vpop.f32.mrf.mxu1  ;;  %v1046_v0 = vpop.f32.mrf.mxu0 }
  0xc1   : > { %v1102_v62 = vpop.f32.mrf.mxu2  ;;  %v1131_v1 = vpop.f32.mrf.mxu3  ;;  %v1047_v26 = vadd.f32 %v2027_v2, %v1046_v0 }
  0xc8   : > { %v1068_v5 = vpop.f32.mrf.mxu1  ;;  %v1155_v6 = vpop.f32.mrf.mxu0 }
  0xc9   : > { %v1104_v4 = vpop.f32.mrf.mxu2  ;;  %v1069_v7 = vadd.f32 %v1068_v5, %v1040_v3  ;;  %v2370_v9 = vpop.f32.mrf.mxu3 }
  0xcb   : > { %v1098_v8 = vadd.f32 %v1097_v51, %v1069_v7 }
  0xcd   : > { %v1127_v10 = vadd.f32 %v1126_v54, %v1098_v8 }
  0xcf   : > { %v1156_v12 = vadd.f32 %v1155_v6, %v1127_v10 }
  0xd0   : > { %v1070_v14 = vpop.f32.mrf.mxu1  ;;  %v1157_v15 = vpop.f32.mrf.mxu0 }
  0xd1   : > { %v1107_v13 = vpop.f32.mrf.mxu2  ;;  %v1071_v16 = vadd.f32 %v1070_v14, %v1042_v11  ;;  %v1136_v18 = vpop.f32.mrf.mxu3 }
  0xd3   : > { %v1100_v17 = vadd.f32 %v1099_v58, %v1071_v16  ;;  %v1057_v58 = vadd.f32 %v2027_v2, %v1056_v63 }
  0xd5   : > { %v1129_v10 = vadd.f32 %v2365_v61, %v1100_v17 }
  0xd7   : > { %v1158_v63 = vadd.f32 %v1157_v15, %v1129_v10 }
  0xd8   : > { %v1073_v21 = vpop.f32.mrf.mxu1  ;;  %v1160_v22 = vpop.f32.mrf.mxu0 }
  0xd9   : > { %v1109_v20 = vpop.f32.mrf.mxu2  ;;  %v1074_v23 = vadd.f32 %v1073_v21, %v1045_v19  ;;  %v2374_v29 = vpop.f32.mrf.mxu3 }
  0xdb   : > { %v1103_v24 = vadd.f32 %v1102_v62, %v1074_v23 }
  0xdd   : > { %v1132_v25 = vadd.f32 %v1131_v1, %v1103_v24 }
  0xdf   : > { %v2372_v27 = vadd.f32 %v1160_v22, %v1132_v25 }
  0xe0   : > { %v1075_v30 = vpop.f32.mrf.mxu1  ;;  %v2376_v31 = vpop.f32.mrf.mxu0 }
  0xe1   : > { %v1112_v28 = vpop.f32.mrf.mxu2  ;;  %v1076_v32 = vadd.f32 %v1075_v30, %v1047_v26  ;;  %v1141_v39 = vpop.f32.mrf.mxu3 }
  0xe3   : > { %v1105_v33 = vadd.f32 %v1104_v4, %v1076_v32 }
  0xe5   : > { %v1134_v30 = vadd.f32 %v2370_v9, %v1105_v33 }
  0xe8   : > { %v1078_v36 = vpop.f32.mrf.mxu1  ;;  %v1165_v37 = vpop.f32.mrf.mxu0 }
  0xe9   : > { %v1114_v35 = vpop.f32.mrf.mxu2  ;;  %v1079_v38 = vadd.f32 %v1078_v36, %v1050_v34  ;;  %v2384_v50 = vpop.f32.mrf.mxu3 }
  0xeb   : > { %v1108_v40 = vadd.f32 %v1107_v13, %v1079_v38  ;;  %v1961_v13 = vld [vmem:[%s2397_s29] sm:$0xff]  }
  0xec   : > { %v1963_v61 = vunpack.c.h.bf16 %v1961_v13 }
  0xed   : > { %v1137_v41 = vadd.f32 %v1136_v18, %v1108_v40 }
  0xef   : > { %v2378_v43 = vadd.f32 %v1165_v37, %v1137_v41  ;;  %v1996_v41 = vld [vmem:[%s2397_s29 + $0x8] sm:$0xff]  }
  0xf0   : > { %v1080_v45 = vpop.f32.mrf.mxu1  ;;  %v2380_v46 = vpop.f32.mrf.mxu0 }
  0xf1   : > { %v1213_v44 = vpop.f32.mrf.mxu2  ;;  %v1081_v47 = vadd.f32 %v1080_v45, %v1052_v42  ;;  %v1242_v52 = vpop.f32.mrf.mxu3 }
  0xf3   : > { %v2382_v49 = vadd.f32 %v1109_v20, %v1081_v47 }
  0xf8   : > { %v1083_v53 = vpop.f32.mrf.mxu1  ;;  %v1170_v54 = vpop.f32.mrf.mxu0 }
  0xf9   : > { %v1215_v51 = vpop.f32.mrf.mxu2  ;;  %v1084_v55 = vadd.f32 %v1083_v53, %v1055_v48  ;;  %v1244_v5 = vpop.f32.mrf.mxu3  ;;  %v1967_v48 = vunpack.c.h.bf16 %v1996_v41 }
  0xfb   : > { %v1113_v56 = vadd.f32 %v1112_v28, %v1084_v55 }
  0xfd   : > { %v1142_v57 = vadd.f32 %v1141_v39, %v1113_v56  ;;  %v1163_v39 = vadd.f32 %v2376_v31, %v1134_v30 }
  0xff   : > { %v2386_v60 = vadd.f32 %v1170_v54, %v1142_v57 }
 0x100   : > { %v1085_v0 = vpop.f32.mrf.mxu1  ;;  %v2388_v1 = vpop.f32.mrf.mxu0 }
 0x101   : > { %v1218_v62 = vpop.f32.mrf.mxu2  ;;  %v1086_v3 = vadd.f32 %v1085_v0, %v1057_v58  ;;  %v1247_v19 = vpop.f32.mrf.mxu3  ;;  %v1139_v58 = vadd.f32 %v2374_v29, %v2382_v49 }
 0x103   : > { %v2390_v4 = vadd.f32 %v1114_v35, %v1086_v3 }
 0x108   : > { %v1184_v59 = vpop.f32.mrf.mxu1  ;;  %v1271_v6 = vpop.f32.mrf.mxu0 }
 0x109   : > { %v1185_v7 = vadd.f32 %v1184_v59, %v1156_v12  ;;  %v1220_v8 = vpop.f32.mrf.mxu2  ;;  %v1962_v12 = vunpack.c.l.bf16 %v1961_v13  ;;  %v1249_v36 = vpop.f32.mrf.mxu3  ;;  %v1168_v59 = vadd.f32 %v2380_v46, %v1139_v58 }
 0x10b   : > { %v1214_v11 = vadd.f32 %v1213_v44, %v1185_v7  ;;  %v1966_v44 = vunpack.c.l.bf16 %v1996_v41 }
 0x10d   : > { %v1243_v2 = vadd.f32 %v1242_v52, %v1214_v11 }
 0x10f   : > { %v1272_v20 = vadd.f32 %v1271_v6, %v1243_v2 }
 0x110   : > { %v1186_v14 = vpop.f32.mrf.mxu1  ;;  %v1273_v16 = vpop.f32.mrf.mxu0 }
 0x111   : > { %v1187_v18 = vadd.f32 %v1186_v14, %v1158_v63  ;;  %v1223_v22 = vpop.f32.mrf.mxu2  ;;  %v1307_v17 = vadd.f32 %v1962_v12, %v1272_v20 }
 0x113   : > { %v1216_v21 = vadd.f32 %v1215_v51, %v1187_v18  ;;  %v1315_v32 = vmax.f32 %v1307_v17, 0.0  ;;  %v1252_v51 = vpop.f32.mrf.mxu3 }
 0x115   : > { %v1245_v23 = vadd.f32 %v1244_v5, %v1216_v21  ;;  %v1144_v21 = vadd.f32 %v2384_v50, %v2390_v4 }
 0x117   : > { %v1274_v24 = vadd.f32 %v1273_v16, %v1245_v23 }
 0x118   : > { %v1189_v25 = vpop.f32.mrf.mxu1  ;;  %v1276_v26 = vpop.f32.mrf.mxu0 }
 0x119   : > { %v1308_v28 = vadd.f32 %v1963_v61, %v1274_v24  ;;  %v1190_v15 = vadd.f32 %v1189_v25, %v2372_v27  ;;  %v1225_v38 = vpop.f32.mrf.mxu2  ;;  %v1173_v25 = vadd.f32 %v2388_v1, %v1144_v21 }
 0x11b   : > { %v1316_v34 = vmax.f32 %v1308_v28, 0.0  ;;  %v1219_v35 = vadd.f32 %v1218_v62, %v1190_v15  ;;  %v1254_v7 = vpop.f32.mrf.mxu3  ;;  %v1998_v28 = vld [vmem:[%s2397_s29 + $0x18] sm:$0xff]  }
 0x11d   : > { %v1979_v37 = vpack.c.bf16 %v1316_v34, %v1315_v32  ;;  %v1248_v40 = vadd.f32 %v1247_v19, %v1219_v35  ;;  %v1974_v34 = vunpack.c.l.bf16 %v1998_v28 }
 0x11f   : > { %1980 = vst [vmem:[%s2405_s5] sm:$0xff] %v1979_v37   ;;  %v1277_v33 = vadd.f32 %v1276_v26, %v1248_v40  ;;  %v1975_v37 = vunpack.c.h.bf16 %v1998_v28 }
 0x120   : > { %v1191_v27 = vpop.f32.mrf.mxu1  ;;  %v1278_v42 = vpop.f32.mrf.mxu0 }
 0x121   : > { %v1192_v9 = vadd.f32 %v1191_v27, %v1163_v39  ;;  %v1309_v53 = vadd.f32 %v1966_v44, %v1277_v33  ;;  %v1228_v55 = vpop.f32.mrf.mxu2 }
 0x123   : > { %v1221_v45 = vadd.f32 %v1220_v8, %v1192_v9  ;;  %v1317_v62 = vmax.f32 %v1309_v53, 0.0  ;;  %v1997_v8 = vld [vmem:[%s2397_s29 + $0x10] sm:$0xff]   ;;  %v1257_v12 = vpop.f32.mrf.mxu3 }
 0x124   : > { %v1970_v13 = vunpack.c.l.bf16 %v1997_v8  ;;  %v1971_v29 = vunpack.c.h.bf16 %v1997_v8 }
 0x125   : > { %v1250_v47 = vadd.f32 %v1249_v36, %v1221_v45 }
 0x127   : > { %v1279_v54 = vadd.f32 %v1278_v42, %v1250_v47 }
 0x128   : > { %v1194_v56 = vpop.f32.mrf.mxu1  ;;  %v1281_v52 = vpop.f32.mrf.mxu0 }
 0x129   : > { %v1310_v57 = vadd.f32 %v1967_v48, %v1279_v54  ;;  %v1195_v31 = vadd.f32 %v1194_v56, %v2378_v43  ;;  %v1230_v63 = vpop.f32.mrf.mxu2 }
 0x12b   : > { %v1318_v0 = vmax.f32 %v1310_v57, 0.0  ;;  %v1224_v3 = vadd.f32 %v1223_v22, %v1195_v31  ;;  %v1259_v35 = vpop.f32.mrf.mxu3 }
 0x12d   : > { %v1984_v5 = vpack.c.bf16 %v1318_v0, %v1317_v62  ;;  %v1253_v6 = vadd.f32 %v1252_v51, %v1224_v3 }
 0x12f   : > { %1999 = vst [vmem:[%s2405_s5 + $0x8] sm:$0xff] %v1984_v5   ;;  %v1282_v2 = vadd.f32 %v1281_v52, %v1253_v6 }
 0x130   : > { %v1196_v10 = vpop.f32.mrf.mxu1  ;;  %v1283_v14 = vpop.f32.mrf.mxu0 }
 0x131   : > { %v1197_v11 = vadd.f32 %v1196_v10, %v1168_v59  ;;  %v1311_v49 = vadd.f32 %v1970_v13, %v1282_v2  ;;  %v1286_v17 = vpop.f32.mrf.mxu2 }
 0x133   : > { %v1226_v43 = vadd.f32 %v1225_v38, %v1197_v11  ;;  %v1319_v22 = vmax.f32 %v1311_v49, 0.0 }
 0x135   : > { %v1255_v16 = vadd.f32 %v1254_v7, %v1226_v43 }
 0x137   : > { %v1284_v18 = vadd.f32 %v1283_v14, %v1255_v16 }
 0x138   : > { %v1199_v19 = vpop.f32.mrf.mxu1 }
 0x139   : > { %v1312_v20 = vadd.f32 %v1971_v29, %v1284_v18  ;;  %v1200_v46 = vadd.f32 %v1199_v19, %v2386_v60  ;;  %v1288_v50 = vpop.f32.mrf.mxu2 }
 0x13b   : > { %v1320_v23 = vmax.f32 %v1312_v20, 0.0  ;;  %v1229_v61 = vadd.f32 %v1228_v55, %v1200_v46 }
 0x13d   : > { %v1989_v24 = vpack.c.bf16 %v1320_v23, %v1319_v22  ;;  %v1258_v26 = vadd.f32 %v1257_v12, %v1229_v61 }
 0x13f   : > { %2000 = vst [vmem:[%s2405_s5 + $0x10] sm:$0xff] %v1989_v24   ;;  %v1287_v32 = vadd.f32 %v1286_v17, %v1258_v26 }
 0x140   : > { %v1201_v15 = vpop.f32.mrf.mxu1 }
 0x141   : > { %v1202_v30 = vadd.f32 %v1201_v15, %v1173_v25  ;;  %v1313_v4 = vadd.f32 %v1974_v34, %v1287_v32 }
 0x143   : > { %v1231_v60 = vadd.f32 %v1230_v63, %v1202_v30  ;;  %v1321_v40 = vmax.f32 %v1313_v4, 0.0 }
 0x145   : > { %v1260_v36 = vadd.f32 %v1259_v35, %v1231_v60 }
 0x147   : > { %v1289_v38 = vadd.f32 %v1288_v50, %v1260_v36 }
 0x149   : > { %v1314_v39 = vadd.f32 %v1975_v37, %v1289_v38 }
 0x14b   : > { %v1322_v41 = vmax.f32 %v1314_v39, 0.0 }
 0x14d   : > { %v1994_v27 = vpack.c.bf16 %v1322_v41, %v1321_v40 }
 0x14f   : > { %2001 = vst [vmem:[%s2405_s5 + $0x18] sm:$0xff] %v1994_v27  }
 0x150 PF: > { %s14_s15 = sadd.s32 1, %s2034_s15  }
 0x151   : > { %p11_p4 = scmp.ge.s32.totalorder %s14_s15, 4  }
 0x153   :  { %13 = sbr.rel (!%p11_p4) target bundleno = 1 (0x1), region = 69 }

// kernel: resnet_cifar_forward.13
= control target key start
LH: loop header
LB: loop body
LE: loop exit
PB: predicated region body
PF: predicated region fallthrough
CT: control target
= control target key end

     0   :  { %s869_s15 = smov 0   ;;  %s990_s0 = inlined_call_operand.vmem [shape: bf16[128,288], index: 0, kind: input, shape index: {}]   ;;  %s991_s1 = inlined_call_operand.vmem [shape: bf16[288,128], index: 1, kind: input, shape index: {}]   ;;  %s992_s2 = inlined_call_operand.vmem [shape: f32[1,128], index: 2, kind: input, shape index: {}]   ;;  %s993_s3 = inlined_call_operand.vmem [shape: f32[1,128], index: 3, kind: input, shape index: {}]   ;;  %s994_s4 = inlined_call_operand.vmem [shape: bf16[128,128], index: 4, kind: output, shape index: {}]  }
   0x1 LB: > { %s621_s16 = sadd.s32 4294967295, %s842_s15   ;;  %p625_p0 = scmp.ge.s32.totalorder %s842_s15, 1  ;;  %s842_s15 = sphi %s869_s15, %s14_s15  }
   0x2   : > { %p164_p1 = scmp.lt.s32.totalorder %s842_s15, 3 }
   0x4   : > { %p165_p2 = pnand %p625_p0, %p164_p1 }
   0x5   : > { %s626_s21 = sshll.u32 (!%p165_p2), %s621_s16, 3 }
   0x6   : > { %168 = sbr.rel (%p165_p2) target bundleno = 228 (0xe4), region = 36  ;;  %p192_p3 = scmp.lt.s32.totalorder (!%p165_p2), %s626_s21, 15 }
   0xb   : > { %v775_v0 = vld [vmem:[%s991_s1 + $0x38] sm:$0xff]  ;;  %v785_v2 = vld [vmem:[%s991_s1 + $0x88] sm:$0xff]  ;;  %v774_v3 = vld [vmem:[%s991_s1 + $0x30] sm:$0xff]  ;;  %s996_s21 = smov (!%p192_p3, %s626_s21), 15  ;;  %vm429_vm0 = vcmask 261120  }
   0xc   : > { %v883_v1 = vld [vmem:[%s991_s1 + $0x78] sm:$0xff]  ;;  %442 = vmatpush.bf16.msra.mxu0 %v775_v0  ;;  %809 = vmatpush.bf16.msra.mxu3 %v775_v0  ;;  %v782_v4 = vld [vmem:[%s991_s1 + $0x70] sm:$0xff]  ;;  %v784_v5 = vld [vmem:[%s991_s1 + $0x80] sm:$0xff]  ;;  %s825_s30 = smul.u32 12, %s996_s21  ;;  %s629_s12 = sshll.u32 %s996_s21, 2 }
   0xd   : > { %817 = vmatpush.bf16.msra.mxu1 %v883_v1  ;;  %506 = vmatpush.bf16.msra.mxu2 %v785_v2  ;;  %v773_v6 = vld [vmem:[%s991_s1 + $0x28] sm:$0xff]  ;;  %v772_v11 = vld [vmem:[%s991_s1 + $0x20] sm:$0xff]  ;;  %v771_v13 = vld [vmem:[%s991_s1 + $0x18] sm:$0xff]  ;;  %s981_s16 = scalar_lea.vmem %s994_s4, %s629_s12 }
   0xe   : > { %v781_v7 = vld [vmem:[%s991_s1 + $0x68] sm:$0xff]  ;;  %s910_s11 = scalar_lea.vmem %s990_s0, %s825_s30  ;;  %v780_v12 = vld [vmem:[%s991_s1 + $0x60] sm:$0xff]  ;;  %v779_v14 = vld [vmem:[%s991_s1 + $0x58] sm:$0xff] }
   0xf   : > { %v640_v8 = vld [vmem:[%s910_s11 + $0x8] sm:$0xf]  ;;  %v758_v9 = vld [vmem:[%s910_s11 + $0x10] sm:$0xf0]  ;;  %v652_v17 = vld [vmem:[%s910_s11 + $0x20] sm:$0xf] }
  0x10   : > { %443 = vmatpush.bf16.msra.mxu0 %v774_v3  ;;  %810 = vmatpush.bf16.msra.mxu3 %v774_v3  ;;  %v641_v10 = vor.u32 %v758_v9, %v640_v8  ;;  %v770_v15 = vld [vmem:[%s991_s1 + $0x10] sm:$0xff]  ;;  %v761_v18 = vld [vmem:[%s910_s11 + $0x28] sm:$0xf0]  ;;  %v768_v22 = vld [vmem:[%s991_s1] sm:$0xff] }
  0x11   : > { %818 = vmatpush.bf16.msra.mxu1 %v782_v4  ;;  %507 = vmatpush.bf16.msra.mxu2 %v784_v5  ;;  %v778_v16 = vld [vmem:[%s991_s1 + $0x50] sm:$0xff]  ;;  %v769_v19 = vld [vmem:[%s991_s1 + $0x8] sm:$0xff]  ;;  %v653_v21 = vor.u32 %v761_v18, %v652_v17  ;;  %v644_v23 = vld [vmem:[%s910_s11 + $0x18] sm:$0xf] }
  0x12   : > { %v777_v20 = vld [vmem:[%s991_s1 + $0x48] sm:$0xff]  ;;  %v760_v24 = vld [vmem:[%s910_s11 + $0x20] sm:$0xf0]  ;;  %v632_v25 = vld [vmem:[%s910_s11] sm:$0xf] }
  0x13   : > { %v757_v26 = vld [vmem:[%s910_s11 + $0x8] sm:$0xf0]  ;;  %v776_v27 = vld [vmem:[%s991_s1 + $0x40] sm:$0xff]  ;;  %v759_v28 = vld [vmem:[%s910_s11 + $0x1c] sm:$0xf]  ;;  %v645_v30 = vor.u32 %v760_v24, %v644_v23 }
  0x14   : > { %444 = vmatpush.bf16.msra.mxu0 %v773_v6  ;;  %811 = vmatpush.bf16.msra.mxu3 %v773_v6  ;;  %v646_v29 = vld [vmem:[%s910_s11 + $0x24] sm:$0xf0]  ;;  %v633_v31 = vor.u32 %v757_v26, %v632_v25  ;;  %v664_v33 = vld [vmem:[%s910_s11 + $0x38] sm:$0xf]  ;;  %v764_v34 = vld [vmem:[%s910_s11 + $0x40] sm:$0xf0] }
  0x15   : > { %819 = vmatpush.bf16.msra.mxu1 %v781_v7  ;;  %750 = vmatmul.msk.bf16.vlgmr.msra.gmra.mxu2 %vm429_vm0, %v641_v10  ;;  %v649_v32 = vor.u32 %v759_v28, %v646_v29  ;;  %v665_v35 = vor.u32 %v764_v34, %v664_v33  ;;  %v656_v36 = vld [vmem:[%s910_s11 + $0x30] sm:$0xf]  ;;  %v763_v37 = vld [vmem:[%s910_s11 + $0x38] sm:$0xf0]  ;;  %v762_v38 = vld [vmem:[%s910_s11 + $0x34] sm:$0xf] }
  0x16   : > { %v658_v39 = vld [vmem:[%s910_s11 + $0x3c] sm:$0xf0]  ;;  %v657_v40 = vor.u32 %v763_v37, %v656_v36  ;;  %v676_v42 = vld [vmem:[%s910_s11 + $0x50] sm:$0xf]  ;;  %v767_v43 = vld [vmem:[%s910_s11 + $0x58] sm:$0xf0] }
  0x17   : > { %v661_v41 = vor.u32 %v762_v38, %v658_v39  ;;  %v677_v44 = vor.u32 %v767_v43, %v676_v42  ;;  %v756_v45 = vld [vmem:[%s910_s11 + $0x4] sm:$0xf]  ;;  %v634_v46 = vld [vmem:[%s910_s11 + $0xc] sm:$0xf0]  ;;  %v668_v48 = vld [vmem:[%s910_s11 + $0x48] sm:$0xf] }
  0x18   : > { %445 = vmatpush.bf16.msra.mxu0 %v772_v11  ;;  %812 = vmatpush.bf16.msra.mxu3 %v772_v11  ;;  %v637_v47 = vor.u32 %v756_v45, %v634_v46  ;;  %v766_v49 = vld [vmem:[%s910_s11 + $0x50] sm:$0xf0]  ;;  %v765_v50 = vld [vmem:[%s910_s11 + $0x4c] sm:$0xf]  ;;  %v670_v51 = vld [vmem:[%s910_s11 + $0x54] sm:$0xf0] }
  0x19   : > { %820 = vmatpush.bf16.msra.mxu1 %v780_v12  ;;  %v669_v52 = vor.u32 %v766_v49, %v668_v48  ;;  %v673_v53 = vor.u32 %v765_v50, %v670_v51  ;;  %v834_v58 = vld [vmem:[%s992_s2] ss:$0 sm:$0xff] }
  0x1a   : > { %v835_v3 = vld [vmem:[%s993_s3] ss:$0 sm:$0xff] }
  0x1c   : > { %446 = vmatpush.bf16.msra.mxu0 %v771_v13  ;;  %813 = vmatpush.bf16.msra.mxu3 %v771_v13 }
  0x1d   : > { %821 = vmatpush.bf16.msra.mxu1 %v779_v14 }
  0x20   : > { %447 = vmatpush.bf16.msra.mxu0 %v770_v15  ;;  %814 = vmatpush.bf16.msra.mxu3 %v770_v15 }
  0x21   : > { %822 = vmatpush.bf16.msra.mxu1 %v778_v16 }
  0x24   : > { %448 = vmatpush.bf16.msra.mxu0 %v769_v19  ;;  %815 = vmatpush.bf16.msra.mxu3 %v769_v19 }
  0x25   : > { %823 = vmatpush.bf16.msra.mxu1 %v777_v20  ;;  %751 = vmatmul.msk.bf16.gmra.mxu2 %vm429_vm0, %v653_v21 }
  0x28   : > { %449 = vmatpush.bf16.msra.mxu0 %v768_v22  ;;  %816 = vmatpush.bf16.msra.mxu3 %v768_v22 }
  0x29   : > { %824 = vmatpush.bf16.msra.mxu1 %v776_v27 }
  0x2b   : > { %455 = vmatmul.bf16.vlgmr.msra.gmra.mxu3 %v645_v30  ;;  %450 = vmatmul.bf16.vlgmr.msra.gmra.mxu0 %v633_v31 }
  0x2c   : > { %471 = vmatpush.bf16.msrb.mxu0 %v883_v1  ;;  %484 = vmatmul.bf16.vlgmr.msra.gmra.mxu1 %v649_v32 }
  0x30   : > { %472 = vmatpush.bf16.msrb.mxu0 %v782_v4 }
  0x34   : > { %473 = vmatpush.bf16.msrb.mxu0 %v781_v7 }
  0x35   : > { %752 = vmatmul.msk.bf16.gmra.mxu2 %vm429_vm0, %v665_v35 }
  0x38   : > { %474 = vmatpush.bf16.msrb.mxu0 %v780_v12 }
  0x3b   : > { %460 = vmatmul.bf16.gmra.mxu3 %v657_v40 }
  0x3c   : > { %475 = vmatpush.bf16.msrb.mxu0 %v779_v14  ;;  %489 = vmatmul.bf16.gmra.mxu1 %v661_v41 }
  0x40   : > { %476 = vmatpush.bf16.msrb.mxu0 %v778_v16 }
  0x44   : > { %477 = vmatpush.bf16.msrb.mxu0 %v777_v20 }
  0x45   : > { %753 = vmatmul.msk.bf16.gmra.mxu2 %vm429_vm0, %v677_v44 }
  0x48   : > { %478 = vmatpush.bf16.msrb.mxu0 %v776_v27 }
  0x4b   : > { %479 = vmatmul.bf16.vlgmr.msrb.gmra.mxu0 %v637_v47  ;;  %465 = vmatmul.bf16.gmra.mxu3 %v669_v52 }
  0x4c   : > { %494 = vmatmul.bf16.gmra.mxu1 %v673_v53 }
  0x98   : > { %v509_v54 = vpop.f32.mrf.mxu2 }
  0xa0   : > { %v511_v55 = vpop.f32.mrf.mxu2 }
  0xa8   : > { %v514_v56 = vpop.f32.mrf.mxu2  ;;  %v451_v62 = vpop.f32.mrf.mxu0 }
  0xa9   : > { %v485_v57 = vpop.f32.mrf.mxu1  ;;  %v452_v20 = vadd.f32 %v834_v58, %v451_v62 }
  0xae   : > { %v456_v59 = vpop.f32.mrf.mxu3 }
  0xaf   : > { %v457_v60 = vadd.f32 %v834_v58, %v456_v59 }
  0xb0   : > { %v516_v63 = vpop.f32.mrf.mxu2  ;;  %v453_v9 = vpop.f32.mrf.mxu0 }
  0xb1   : > { %v487_v61 = vpop.f32.mrf.mxu1  ;;  %v486_v0 = vadd.f32 %v485_v57, %v457_v60  ;;  %v454_v29 = vadd.f32 %v834_v58, %v453_v9 }
  0xb3   : > { %v515_v2 = vadd.f32 %v514_v56, %v486_v0 }
  0xb5   : > { %v535_v7 = vmul.f32 %v835_v3, %v515_v2 }
  0xb6   : > { %v458_v1 = vpop.f32.mrf.mxu3 }
  0xb7   : > { %v459_v4 = vadd.f32 %v834_v58, %v458_v1  ;;  %v543_v13 = vmax.f32 %v515_v2, %v535_v7 }
  0xb8   : > { %v519_v10 = vpop.f32.mrf.mxu2 }
  0xb9   : > { %v488_v5 = vadd.f32 %v487_v61, %v459_v4  ;;  %v490_v6 = vpop.f32.mrf.mxu1 }
  0xbb   : > { %v517_v8 = vadd.f32 %v516_v63, %v488_v5 }
  0xbd   : > { %v536_v11 = vmul.f32 %v835_v3, %v517_v8 }
  0xbe   : > { %v461_v12 = vpop.f32.mrf.mxu3 }
  0xbf   : > { %v544_v14 = vmax.f32 %v517_v8, %v536_v11  ;;  %v462_v15 = vadd.f32 %v834_v58, %v461_v12 }
  0xc0   : > { %v521_v21 = vpop.f32.mrf.mxu2 }
  0xc1   : > { %v794_v16 = vpack.c.bf16 %v544_v14, %v543_v13  ;;  %v491_v17 = vadd.f32 %v490_v6, %v462_v15  ;;  %v492_v18 = vpop.f32.mrf.mxu1 }
  0xc3   : > { %806 = vst [vmem:[%s981_s16 + $0x8] sm:$0xff] %v794_v16   ;;  %v520_v23 = vadd.f32 %v519_v10, %v491_v17 }
  0xc5   : > { %v537_v27 = vmul.f32 %v835_v3, %v520_v23 }
  0xc6   : > { %v463_v22 = vpop.f32.mrf.mxu3 }
  0xc7   : > { %v464_v24 = vadd.f32 %v834_v58, %v463_v22  ;;  %v545_v36 = vmax.f32 %v520_v23, %v537_v27 }
  0xc8   : > { %v480_v19 = vpop.f32.mrf.mxu0  ;;  %v524_v40 = vpop.f32.mrf.mxu2 }
  0xc9   : > { %v481_v25 = vadd.f32 %v480_v19, %v452_v20  ;;  %v493_v26 = vadd.f32 %v492_v18, %v464_v24  ;;  %v495_v33 = vpop.f32.mrf.mxu1 }
  0xcb   : > { %v522_v28 = vadd.f32 %v521_v21, %v493_v26  ;;  %v510_v30 = vadd.f32 %v509_v54, %v481_v25 }
  0xcd   : > { %v538_v31 = vmul.f32 %v835_v3, %v522_v28  ;;  %v533_v39 = vmul.f32 %v835_v3, %v510_v30 }
  0xce   : > { %v466_v35 = vpop.f32.mrf.mxu3 }
  0xcf   : > { %v546_v37 = vmax.f32 %v522_v28, %v538_v31  ;;  %v467_v38 = vadd.f32 %v834_v58, %v466_v35  ;;  %v541_v45 = vmax.f32 %v510_v30, %v533_v39 }
  0xd0   : > { %v482_v32 = vpop.f32.mrf.mxu0  ;;  %v526_v53 = vpop.f32.mrf.mxu2 }
  0xd1   : > { %v483_v34 = vadd.f32 %v482_v32, %v454_v29  ;;  %v799_v42 = vpack.c.bf16 %v546_v37, %v545_v36  ;;  %v496_v44 = vadd.f32 %v495_v33, %v467_v38  ;;  %v497_v51 = vpop.f32.mrf.mxu1 }
  0xd3   : > { %v512_v41 = vadd.f32 %v511_v55, %v483_v34  ;;  %807 = vst [vmem:[%s981_s16 + $0x10] sm:$0xff] %v799_v42   ;;  %v525_v49 = vadd.f32 %v524_v40, %v496_v44 }
  0xd5   : > { %v534_v43 = vmul.f32 %v835_v3, %v512_v41  ;;  %v539_v54 = vmul.f32 %v835_v3, %v525_v49 }
  0xd6   : > { %v468_v48 = vpop.f32.mrf.mxu3 }
  0xd7   : > { %v542_v46 = vmax.f32 %v512_v41, %v534_v43  ;;  %v469_v50 = vadd.f32 %v834_v58, %v468_v48  ;;  %v547_v59 = vmax.f32 %v525_v49, %v539_v54 }
  0xd9   : > { %v789_v47 = vpack.c.bf16 %v542_v46, %v541_v45  ;;  %v498_v52 = vadd.f32 %v497_v51, %v469_v50 }
  0xdb   : > { %790 = vst [vmem:[%s981_s16] sm:$0xff] %v789_v47   ;;  %v527_v56 = vadd.f32 %v526_v53, %v498_v52 }
  0xdd   : > { %v540_v57 = vmul.f32 %v835_v3, %v527_v56 }
  0xdf   : > { %v548_v55 = vmax.f32 %v527_v56, %v540_v57 }
  0xe1   : > { %v804_v60 = vpack.c.bf16 %v548_v55, %v547_v59 }
  0xe3   : > { %808 = vst [vmem:[%s981_s16 + $0x18] sm:$0xff] %v804_v60  }
  0xe4 PF: > { %s14_s15 = sadd.s32 1, %s842_s15  }
  0xe5   : > { %p11_p4 = scmp.ge.s32.totalorder %s14_s15, 4  }
  0xe7   :  { %13 = sbr.rel (!%p11_p4) target bundleno = 1 (0x1), region = 66 }

// kernel: resnet_cifar_forward.15
= control target key start
LH: loop header
LB: loop body
LE: loop exit
PB: predicated region body
PF: predicated region fallthrough
CT: control target
= control target key end

     0   :  { %vm142_vm0 = vcmask 523264   ;;  %vm331_vm1 = vcmask 1041409   ;;  %vm333_vm2 = vcmask 1042434   ;;  %vm335_vm3 = vcmask 1043459   ;;  %s976_s1 = inlined_call_operand.vmem [shape: f32[64,128], index: 1, kind: input, shape index: {}]   ;;  %s977_s0 = inlined_call_operand.vmem [shape: bf16[8,64,64], index: 0, kind: input, shape index: {}]   ;;  %s978_s2 = inlined_call_operand.vmem [shape: f32[1,128], index: 2, kind: input, shape index: {}]   ;;  %s979_s3 = inlined_call_operand.vmem [shape: f32[8,128], index: 3, kind: output, shape index: {}]  }
   0x1   :  { %v318_v0 = vld [vmem:[%s976_s1 + $0x38] sm:$0xff]  ;;  %v317_v1 = vld [vmem:[%s976_s1 + $0x30] sm:$0xff]  ;;  %v316_v2 = vld [vmem:[%s976_s1 + $0x28] sm:$0xff]  ;;  %vm337_vm4 = vcmask 1044484   ;;  %vm339_vm5 = vcmask 1045509   ;;  %vm341_vm6 = vcmask 1046534  }
   0x2   :  { %355 = vmatpush.msra.mxu0 %v318_v0  ;;  %v565_v3 = vld [vmem:[%s977_s0] sm:$0xff]   ;;  %v573_v5 = vld [vmem:[%s977_s0 + $0x8] sm:$0xff]   ;;  %v578_v6 = vld [vmem:[%s977_s0 + $0x10] sm:$0xff]   ;;  %vm343_vm7 = vcmask 1047559  }
   0x3   :  { %v315_v4 = vld [vmem:[%s976_s1 + $0x20] sm:$0xff]  ;;  %v583_v7 = vld [vmem:[%s977_s0 + $0x18] sm:$0xff]   ;;  %v375_v10 = vunpack.c.l.bf16 %v565_v3  ;;  %v376_v11 = vunpack.c.h.bf16 %v565_v3  ;;  %v598_v12 = vld [vmem:[%s977_s0 + $0x28] sm:$0xff]   ;;  %v379_v14 = vunpack.c.l.bf16 %v573_v5  ;;  %v380_v15 = vunpack.c.h.bf16 %v573_v5 }
   0x4   :  { %356 = vmatpush.msra.mxu0 %v317_v1  ;;  %v588_v8 = vld [vmem:[%s977_s0 + $0x20] sm:$0xff]   ;;  %v314_v9 = vld [vmem:[%s976_s1 + $0x18] sm:$0xff]  ;;  %v603_v13 = vld [vmem:[%s977_s0 + $0x30] sm:$0xff]   ;;  %v383_v16 = vunpack.c.l.bf16 %v578_v6  ;;  %v384_v17 = vunpack.c.h.bf16 %v578_v6  ;;  %v387_v21 = vunpack.c.l.bf16 %v583_v7  ;;  %v388_v22 = vunpack.c.h.bf16 %v583_v7 }
   0x5   :  { %v612_v18 = vld [vmem:[%s977_s0 + $0x38] sm:$0xff]   ;;  %v617_v19 = vld [vmem:[%s977_s0 + $0x40] sm:$0xff]   ;;  %v313_v20 = vld [vmem:[%s976_s1 + $0x10] sm:$0xff]  ;;  %v391_v23 = vunpack.c.l.bf16 %v588_v8  ;;  %v392_v24 = vunpack.c.h.bf16 %v588_v8  ;;  %v395_v27 = vunpack.c.l.bf16 %v598_v12  ;;  %v396_v28 = vunpack.c.h.bf16 %v598_v12 }
   0x6   :  { %357 = vmatpush.msra.mxu0 %v316_v2  ;;  %v629_v25 = vld [vmem:[%s977_s0 + $0x48] sm:$0xff]   ;;  %v634_v26 = vld [vmem:[%s977_s0 + $0x50] sm:$0xff]   ;;  %v399_v29 = vunpack.c.l.bf16 %v603_v13  ;;  %v400_v30 = vunpack.c.h.bf16 %v603_v13  ;;  %v643_v31 = vld [vmem:[%s977_s0 + $0x58] sm:$0xff]   ;;  %v403_v34 = vunpack.c.l.bf16 %v612_v18  ;;  %v404_v35 = vunpack.c.h.bf16 %v612_v18 }
   0x7   :  { %v648_v32 = vld [vmem:[%s977_s0 + $0x60] sm:$0xff]   ;;  %v312_v33 = vld [vmem:[%s976_s1 + $0x8] sm:$0xff]  ;;  %v407_v36 = vunpack.c.l.bf16 %v617_v19  ;;  %v408_v37 = vunpack.c.h.bf16 %v617_v19  ;;  %v665_v39 = vld [vmem:[%s977_s0 + $0x70] sm:$0xff]   ;;  %v411_v40 = vunpack.c.l.bf16 %v629_v25  ;;  %v412_v41 = vunpack.c.h.bf16 %v629_v25 }
   0x8   :  { %358 = vmatpush.msra.mxu0 %v315_v4  ;;  %v660_v38 = vld [vmem:[%s977_s0 + $0x68] sm:$0xff]   ;;  %v415_v42 = vunpack.c.l.bf16 %v634_v26  ;;  %v416_v43 = vunpack.c.h.bf16 %v634_v26  ;;  %v674_v44 = vld [vmem:[%s977_s0 + $0x78] sm:$0xff]   ;;  %v679_v45 = vld [vmem:[%s977_s0 + $0x80] sm:$0xff]   ;;  %v419_v47 = vunpack.c.l.bf16 %v643_v31  ;;  %v420_v48 = vunpack.c.h.bf16 %v643_v31 }
   0x9   :  { %v311_v46 = vld [vmem:[%s976_s1] sm:$0xff]  ;;  %v423_v49 = vunpack.c.l.bf16 %v648_v32  ;;  %v424_v50 = vunpack.c.h.bf16 %v648_v32  ;;  %v691_v51 = vld [vmem:[%s977_s0 + $0x88] sm:$0xff]   ;;  %v696_v52 = vld [vmem:[%s977_s0 + $0x90] sm:$0xff]   ;;  %v427_v53 = vunpack.c.l.bf16 %v660_v38  ;;  %v428_v54 = vunpack.c.h.bf16 %v660_v38 }
   0xa   :  { %359 = vmatpush.msra.mxu0 %v314_v9  ;;  %v705_v57 = vld [vmem:[%s977_s0 + $0x98] sm:$0xff]   ;;  %v710_v58 = vld [vmem:[%s977_s0 + $0xa0] sm:$0xff]   ;;  %v719_v63 = vld [vmem:[%s977_s0 + $0xa8] sm:$0xff]   ;;  %v143_v59 = vsel %vm142_vm0, %v375_v10, 0.0  ;;  %v144_v4 = vsel %vm142_vm0, %v376_v11, 0.0  ;;  %v146_v61 = vsel %vm142_vm0, %v379_v14, 0.0  ;;  %v980_v26 = vunpack.c.l.bf16 %v679_v45 }
   0xb   :  { %v724_v0 = vld [vmem:[%s977_s0 + $0xb0] sm:$0xff]   ;;  %v747_v9 = vld [vmem:[%s977_s0 + $0xc8] sm:$0xff]   ;;  %v765_v56 = vld [vmem:[%s977_s0 + $0xd8] sm:$0xff]   ;;  %v145_v2 = vadd.f32 %v144_v4, %v143_v59  ;;  %v148_v10 = vsel %vm142_vm0, %v380_v15, 0.0  ;;  %v164_v3 = vsel %vm142_vm0, %v391_v23, 0.0  ;;  %v150_v59 = vsel %vm142_vm0, %v383_v16, 0.0 }
   0xc   :  { %360 = vmatpush.msra.mxu0 %v313_v20  ;;  %v733_v20 = vld [vmem:[%s977_s0 + $0xb8] sm:$0xff]   ;;  %v756_v60 = vld [vmem:[%s977_s0 + $0xd0] sm:$0xff]   ;;  %v483_v62 = vunpack.c.l.bf16 %v765_v56  ;;  %v484_v1 = vunpack.c.h.bf16 %v765_v56  ;;  %v165_v14 = vsel %vm142_vm0, %v392_v24, 0.0  ;;  %v167_v4 = vsel %vm142_vm0, %v395_v27, 0.0 }
   0xd   :  { %v480_v55 = vunpack.c.h.bf16 %v756_v60  ;;  %v147_v11 = vadd.f32 %v146_v61, %v145_v2  ;;  %v152_v5 = vsel %vm142_vm0, %v384_v17, 0.0  ;;  %v154_v15 = vsel %vm142_vm0, %v387_v21, 0.0 }
   0xe   :  { %361 = vmatpush.msra.mxu0 %v312_v33  ;;  %v738_v33 = vld [vmem:[%s977_s0 + $0xc0] sm:$0xff]   ;;  %v156_v16 = vsel %vm142_vm0, %v388_v22, 0.0  ;;  %v166_v23 = vadd.f32 %v165_v14, %v164_v3  ;;  %v169_v24 = vsel %vm142_vm0, %v396_v28, 0.0  ;;  %v185_v6 = vsel %vm142_vm0, %v407_v36, 0.0 }
   0xf   :  { %v149_v8 = vadd.f32 %v148_v10, %v147_v11  ;;  %v186_v17 = vsel %vm142_vm0, %v408_v37, 0.0  ;;  %v171_v7 = vsel %vm142_vm0, %v399_v29, 0.0  ;;  %v188_v12 = vsel %vm142_vm0, %v411_v40, 0.0 }
  0x10   :  { %362 = vmatpush.msra.mxu0 %v311_v46  ;;  %v479_v46 = vunpack.c.l.bf16 %v756_v60  ;;  %v168_v27 = vadd.f32 %v167_v4, %v166_v23  ;;  %v187_v21 = vadd.f32 %v186_v17, %v185_v6  ;;  %v173_v28 = vsel %vm142_vm0, %v400_v30, 0.0 }
  0x11   :  { %v151_v22 = vadd.f32 %v150_v59, %v149_v8  ;;  %v175_v19 = vsel %vm142_vm0, %v403_v34, 0.0  ;;  %v190_v36 = vsel %vm142_vm0, %v412_v41, 0.0  ;;  %v177_v29 = vsel %vm142_vm0, %v404_v35, 0.0 }
  0x12   :  { %v170_v37 = vadd.f32 %v169_v24, %v168_v27  ;;  %v189_v61 = vadd.f32 %v188_v12, %v187_v21  ;;  %v206_v13 = vsel %vm142_vm0, %v423_v49, 0.0  ;;  %v192_v30 = vsel %vm142_vm0, %v415_v42, 0.0 }
  0x13   :  { %v153_v40 = vadd.f32 %v152_v5, %v151_v22  ;;  %v207_v25 = vsel %vm142_vm0, %v424_v50, 0.0  ;;  %v209_v18 = vsel %vm142_vm0, %v427_v53, 0.0  ;;  %v194_v41 = vsel %vm142_vm0, %v416_v43, 0.0 }
  0x14   :  { %v172_v34 = vadd.f32 %v171_v7, %v170_v37  ;;  %v191_v35 = vadd.f32 %v190_v36, %v189_v61  ;;  %v208_v49 = vadd.f32 %v207_v25, %v206_v13  ;;  %v196_v42 = vsel %vm142_vm0, %v419_v47, 0.0 }
  0x15   :  { %v155_v2 = vadd.f32 %v154_v15, %v153_v40  ;;  %v198_v32 = vsel %vm142_vm0, %v420_v48, 0.0  ;;  %v211_v50 = vsel %vm142_vm0, %v428_v54, 0.0  ;;  %v227_v43 = vsel %vm142_vm0, %v980_v26, 0.0 }
  0x16   :  { %v174_v53 = vadd.f32 %v173_v28, %v172_v34  ;;  %v193_v10 = vadd.f32 %v192_v30, %v191_v35  ;;  %v210_v3 = vadd.f32 %v209_v18, %v208_v49  ;;  %v981_v59 = vunpack.c.l.bf16 %v665_v39 }
  0x17   :  { %v157_v11 = vadd.f32 %v156_v16, %v155_v2  ;;  %v982_v31 = vunpack.c.h.bf16 %v679_v45  ;;  %v983_v38 = vunpack.c.l.bf16 %v691_v51  ;;  %v984_v8 = vunpack.c.h.bf16 %v665_v39  ;;  %v904_v2 = vld [vmem:[%s977_s0 + $0xe8] sm:$0xff]  }
  0x18   :  { %v213_v47 = vsel %vm142_vm0, %v981_v59, 0.0  ;;  %v176_v14 = vadd.f32 %v175_v19, %v174_v53  ;;  %v195_v4 = vadd.f32 %v194_v41, %v193_v10  ;;  %v212_v5 = vadd.f32 %v211_v50, %v210_v3 }
  0x19   :  { %v228_v48 = vsel %vm142_vm0, %v982_v31, 0.0  ;;  %v230_v54 = vsel %vm142_vm0, %v983_v38, 0.0  ;;  %v158_v23 = vrot.slane %v157_v11, 4  ;;  %v215_v16 = vsel %vm142_vm0, %v984_v8, 0.0 }
  0x1a   :  { %v229_v15 = vadd.f32 %v228_v48, %v227_v43  ;;  %v985_v24 = vunpack.c.l.bf16 %v674_v44  ;;  %v986_v45 = vunpack.c.h.bf16 %v691_v51  ;;  %v178_v27 = vadd.f32 %v177_v29, %v176_v14  ;;  %v890_v51 = vld [vmem:[%s977_s0 + $0xe0] sm:$0xff]  }
  0x1b   :  { %v197_v7 = vadd.f32 %v196_v42, %v195_v4  ;;  %v214_v21 = vadd.f32 %v213_v47, %v212_v5  ;;  %v159_v22 = vadd.f32 %v158_v23, %v157_v11  ;;  %v987_v28 = vunpack.c.l.bf16 %v696_v52 }
  0x1c   :  { %v217_v6 = vsel %vm142_vm0, %v985_v24, 0.0  ;;  %v232_v17 = vsel %vm142_vm0, %v986_v45, 0.0  ;;  %v231_v12 = vadd.f32 %v230_v54, %v229_v15  ;;  %v988_v39 = vunpack.c.l.bf16 %v710_v58 }
  0x1d   :  { %v234_v19 = vsel %vm142_vm0, %v987_v28, 0.0  ;;  %v989_v37 = vunpack.c.h.bf16 %v710_v58  ;;  %v179_v29 = vrot.slane %v178_v27, 4  ;;  %v199_v13 = vadd.f32 %v198_v32, %v197_v7 }
  0x1e   :  { %v248_v36 = vsel %vm142_vm0, %v988_v39, 0.0  ;;  %v216_v40 = vadd.f32 %v215_v16, %v214_v21  ;;  %v233_v30 = vadd.f32 %v232_v17, %v231_v12  ;;  %v990_v25 = vunpack.c.h.bf16 %v674_v44  ;;  %v530_v21 = vld [vmem:[%s977_s0 + $0xf0] sm:$0xff]  }
  0x1f   :  { %v249_v61 = vsel %vm142_vm0, %v989_v37, 0.0  ;;  %v991_v34 = vunpack.c.h.bf16 %v696_v52  ;;  %v992_v41 = vunpack.c.l.bf16 %v719_v63  ;;  %v200_v42 = vrot.slane %v199_v13, 4 }
  0x20   :  { %v219_v18 = vsel %vm142_vm0, %v990_v25, 0.0  ;;  %v250_v58 = vadd.f32 %v249_v61, %v248_v36  ;;  %v218_v32 = vadd.f32 %v217_v6, %v216_v40  ;;  %v235_v50 = vadd.f32 %v234_v19, %v233_v30 }
  0x21   :  { %v236_v35 = vsel %vm142_vm0, %v991_v34, 0.0  ;;  %v251_v49 = vsel %vm142_vm0, %v992_v41, 0.0  ;;  %v993_v44 = vunpack.c.h.bf16 %v719_v63  ;;  %v487_v52 = vunpack.c.l.bf16 %v890_v51 }
  0x22   :  { %v180_v10 = vadd.f32 %v179_v29, %v178_v27  ;;  %v994_v3 = vunpack.c.l.bf16 %v705_v57  ;;  %v252_v43 = vadd.f32 %v251_v49, %v250_v58  ;;  %v160_v11 = vrot.slane %v159_v22, 2 }
  0x23   :  { %v253_v53 = vsel %vm142_vm0, %v993_v44, 0.0  ;;  %v220_v59 = vadd.f32 %v219_v18, %v218_v32  ;;  %v237_v47 = vadd.f32 %v236_v35, %v235_v50  ;;  %v995_v31 = vunpack.c.l.bf16 %v724_v0 }
  0x24   :  { %v238_v26 = vsel %vm142_vm0, %v994_v3, 0.0  ;;  %v488_v38 = vunpack.c.h.bf16 %v890_v51  ;;  %v491_v63 = vunpack.c.l.bf16 %v904_v2  ;;  %v996_v54 = vunpack.c.h.bf16 %v705_v57 }
  0x25   :  { %v255_v48 = vsel %vm142_vm0, %v995_v31, 0.0  ;;  %v254_v4 = vadd.f32 %v253_v53, %v252_v43  ;;  %v201_v5 = vadd.f32 %v200_v42, %v199_v13  ;;  %v221_v15 = vrot.slane %v220_v59, 4 }
  0x26   :  { %v240_v14 = vsel %vm142_vm0, %v996_v54, 0.0  ;;  %v239_v23 = vadd.f32 %v238_v26, %v237_v47  ;;  %v997_v8 = vunpack.c.h.bf16 %v724_v0  ;;  %v181_v24 = vrot.slane %v180_v10, 2 }
  0x27   :  { %v256_v6 = vadd.f32 %v255_v48, %v254_v4  ;;  %v998_v45 = vunpack.c.l.bf16 %v738_v33  ;;  %v999_v27 = vunpack.c.h.bf16 %v738_v33  ;;  %v492_v7 = vunpack.c.h.bf16 %v904_v2 }
  0x28   :  { %v257_v16 = vsel %vm142_vm0, %v997_v8, 0.0  ;;  %v161_v12 = vadd.f32 %v160_v11, %v159_v22  ;;  %v241_v0 = vadd.f32 %v240_v14, %v239_v23  ;;  %v1000_v28 = vunpack.c.l.bf16 %v733_v20 }
  0x29   :  { %v269_v17 = vsel %vm142_vm0, %v998_v45, 0.0  ;;  %v270_v57 = vsel %vm142_vm0, %v999_v27, 0.0  ;;  %v222_v39 = vadd.f32 %v221_v15, %v220_v59  ;;  %v258_v36 = vadd.f32 %v257_v16, %v256_v6 }
  0x2a   :  { %v259_v19 = vsel %vm142_vm0, %v1000_v28, 0.0  ;;  %v271_v37 = vadd.f32 %v270_v57, %v269_v17  ;;  %v1001_v61 = vunpack.c.l.bf16 %v747_v9  ;;  %v202_v51 = vrot.slane %v201_v5, 2 }
  0x2b   :  { %v242_v29 = vrot.slane %v241_v0, 4  ;;  %v1002_v13 = vunpack.c.h.bf16 %v733_v20  ;;  %v1003_v22 = vunpack.c.h.bf16 %v747_v9  ;;  %v495_v25 = vunpack.c.l.bf16 %v530_v21  ;;  %v531_v20 = vld [vmem:[%s977_s0 + $0xf8] sm:$0xff]  }
  0x2c   :  { %v272_v33 = vsel %vm142_vm0, %v1001_v61, 0.0  ;;  %v182_v18 = vadd.f32 %v181_v24, %v180_v10  ;;  %v260_v34 = vadd.f32 %v259_v19, %v258_v36  ;;  %v496_v58 = vunpack.c.h.bf16 %v530_v21 }
  0x2d   :  { %v261_v40 = vsel %vm142_vm0, %v1002_v13, 0.0  ;;  %v274_v30 = vsel %vm142_vm0, %v1003_v22, 0.0  ;;  %v273_v35 = vadd.f32 %v272_v33, %v271_v37  ;;  %v162_v41 = vrot.slane %v161_v12, 1 }
  0x2e   :  { %v243_v49 = vadd.f32 %v242_v29, %v241_v0  ;;  %v276_v2 = vsel %vm142_vm0, %v479_v46, 0.0  ;;  %v223_v42 = vrot.slane %v222_v39, 2  ;;  %v262_v32 = vadd.f32 %v261_v40, %v260_v34 }
  0x2f   :  { %v275_v9 = vadd.f32 %v274_v30, %v273_v35  ;;  %v290_v50 = vsel %vm142_vm0, %v487_v52, 0.0  ;;  %v203_v44 = vadd.f32 %v202_v51, %v201_v5  ;;  %v278_v53 = vsel %vm142_vm0, %v480_v55, 0.0 }
  0x30   :  { %v291_v10 = vsel %vm142_vm0, %v488_v38, 0.0  ;;  %v293_v3 = vsel %vm142_vm0, %v491_v63, 0.0  ;;  %v183_v26 = vrot.slane %v182_v18, 1  ;;  %v263_v46 = vrot.slane %v262_v32, 4 }
  0x31   :  { %v277_v43 = vadd.f32 %v276_v2, %v275_v9  ;;  %v292_v11 = vadd.f32 %v291_v10, %v290_v50  ;;  %v499_v59 = vunpack.c.l.bf16 %v531_v20  ;;  %v244_v47 = vrot.slane %v243_v49, 2 }
  0x32   :  { %v280_v31 = vsel %vm142_vm0, %v483_v62, 0.0  ;;  %v295_v52 = vsel %vm142_vm0, %v492_v7, 0.0  ;;  %v224_v48 = vadd.f32 %v223_v42, %v222_v39  ;;  %v264_v60 = vadd.f32 %v263_v46, %v262_v32  ;;  %v532_v32 = vld [vmem:[%s978_s2] ss:$0 sm:$0xff] }
  0x33   :  { %v279_v54 = vadd.f32 %v278_v53, %v277_v43  ;;  %v294_v55 = vadd.f32 %v293_v3, %v292_v11  ;;  %v163_v14 = vadd.f32 %v162_v41, %v161_v12  ;;  %v204_v38 = vrot.slane %v203_v44, 1 }
  0x34   :  { %v282_v63 = vsel %vm142_vm0, %v484_v1, 0.0  ;;  %v297_v4 = vsel %vm142_vm0, %v495_v25, 0.0  ;;  %v184_v5 = vadd.f32 %v183_v26, %v182_v18  ;;  %v265_v15 = vrot.slane %v264_v60, 2 }
  0x35   :  { %v281_v23 = vadd.f32 %v280_v31, %v279_v54  ;;  %v296_v8 = vadd.f32 %v295_v52, %v294_v55  ;;  %v500_v16 = vunpack.c.h.bf16 %v531_v20  ;;  %v245_v62 = vadd.f32 %v244_v47, %v243_v49 }
  0x36   :  { %v299_v24 = vsel %vm142_vm0, %v496_v58, 0.0  ;;  %v225_v6 = vrot.slane %v224_v48, 1  ;;  %v205_v27 = vadd.f32 %v204_v38, %v203_v44  ;;  %v301_v57 = vsel %vm142_vm0, %v499_v59, 0.0 }
  0x37   :  { %v283_v45 = vadd.f32 %v282_v63, %v281_v23  ;;  %v298_v17 = vadd.f32 %v297_v4, %v296_v8  ;;  %v266_v56 = vadd.f32 %v265_v15, %v264_v60  ;;  %v332_v21 = vsel %vm331_vm1, %v184_v5, %v163_v14 }
  0x38   :  { %v246_v12 = vrot.slane %v245_v62, 1  ;;  %v303_v0 = vsel %vm142_vm0, %v500_v16, 0.0  ;;  %v226_v28 = vadd.f32 %v225_v6, %v224_v48  ;;  %v334_v36 = vsel %vm333_vm2, %v205_v27, %v332_v21 }
  0x39   :  { %v284_v1 = vrot.slane %v283_v45, 4  ;;  %v300_v7 = vadd.f32 %v299_v24, %v298_v17  ;;  %v267_v37 = vrot.slane %v266_v56, 1 }
  0x3a   :  { %v247_v51 = vadd.f32 %v246_v12, %v245_v62  ;;  %v336_v40 = vsel %vm335_vm3, %v226_v28, %v334_v36 }
  0x3b   :  { %v285_v19 = vadd.f32 %v284_v1, %v283_v45  ;;  %v302_v39 = vadd.f32 %v301_v57, %v300_v7  ;;  %v268_v22 = vadd.f32 %v267_v37, %v266_v56 }
  0x3c   :  { %v338_v18 = vsel %vm337_vm4, %v247_v51, %v336_v40 }
  0x3d   :  { %v286_v61 = vrot.slane %v285_v19, 2  ;;  %v304_v33 = vadd.f32 %v303_v0, %v302_v39  ;;  %v340_v41 = vsel %vm339_vm5, %v268_v22, %v338_v18 }
  0x3f   :  { %v287_v29 = vadd.f32 %v286_v61, %v285_v19  ;;  %v305_v13 = vrot.slane %v304_v33, 4 }
  0x41   :  { %v288_v30 = vrot.slane %v287_v29, 1  ;;  %v306_v25 = vadd.f32 %v305_v13, %v304_v33 }
  0x43   :  { %v307_v34 = vrot.slane %v306_v25, 2  ;;  %v289_v35 = vadd.f32 %v288_v30, %v287_v29 }
  0x45   :  { %v308_v58 = vadd.f32 %v307_v34, %v306_v25  ;;  %v342_v2 = vsel %vm341_vm6, %v289_v35, %v340_v41 }
  0x47   :  { %v309_v49 = vrot.slane %v308_v58, 1 }
  0x49   :  { %v310_v20 = vadd.f32 %v309_v49, %v308_v58 }
  0x4b   :  { %v344_v42 = vsel %vm343_vm7, %v310_v20, %v342_v2 }
  0x4c   :  { %372 = vmatmul.msk.f32.vlgmr.msra.gmra.mxu0 %vm142_vm0, %v344_v42 }
  0xc9   :  { %v364_v9 = vpop.f32.mrf.mxu0 }
  0xca   :  { %v365_v50 = vadd.f32 %v532_v32, %v364_v9 }
  0xcc   :  { %367 = vst [vmem:[%s979_s3] sm:$0xff] %v365_v50 }

// kernel: resnet_cifar_forward.14
= control target key start
LH: loop header
LB: loop body
LE: loop exit
PB: predicated region body
PF: predicated region fallthrough
CT: control target
= control target key end

     0   :  { %s1715_s15 = smov 0   ;;  %s2000_s0 = inlined_call_operand.vmem [shape: bf16[64,1152], index: 0, kind: input, shape index: {}]   ;;  %s2001_s1 = inlined_call_operand.vmem [shape: bf16[1152,128], index: 1, kind: input, shape index: {}]   ;;  %s2002_s2 = inlined_call_operand.vmem [shape: f32[1,128], index: 2, kind: input, shape index: {}]   ;;  %s2003_s3 = inlined_call_operand.vmem [shape: bf16[64,128], index: 3, kind: input, shape index: {}]   ;;  %s2004_s4 = inlined_call_operand.vmem [shape: bf16[64,128], index: 4, kind: output, shape index: {}]  }
   0x1 LB: > { %s1181_s16 = sadd.s32 4294967295, %s1688_s15   ;;  %p1185_p0 = scmp.ge.s32.totalorder %s1688_s15, 1  ;;  %s1688_s15 = sphi %s1715_s15, %s14_s15  }
   0x2   : > { %p175_p1 = scmp.lt.s32.totalorder %s1688_s15, 3 }
   0x4   : > { %p176_p2 = pnand %p1185_p0, %p175_p1 }
   0x5   : > { %s1186_s17 = sshll.u32 (!%p176_p2), %s1181_s16, 2 }
   0x6   : > { %179 = sbr.rel (%p176_p2) target bundleno = 251 (0xfb), region = 36  ;;  %p208_p3 = scmp.lt.s32.totalorder (!%p176_p2), %s1186_s17, 7 }
   0xb   : > { %v1579_v0 = vld [vmem:[%s2001_s1 + $0x38] sm:$0xff]  ;;  %v1578_v4 = vld [vmem:[%s2001_s1 + $0x30] sm:$0xff]  ;;  %v1577_v8 = vld [vmem:[%s2001_s1 + $0x28] sm:$0xff]  ;;  %s2006_s17 = smov (!%p208_p3, %s1186_s17), 7 }
   0xc   : > { %v1587_v1 = vld [vmem:[%s2001_s1 + $0x78] sm:$0xff]  ;;  %918 = vmatpush.bf16.msra.mxu0 %v1579_v0  ;;  %v1586_v5 = vld [vmem:[%s2001_s1 + $0x70] sm:$0xff]  ;;  %v1585_v9 = vld [vmem:[%s2001_s1 + $0x68] sm:$0xff]  ;;  %s1672_s11 = smul.u32 36, %s2006_s17  ;;  %s1189_s26 = sshll.u32 %s2006_s17, 2 }
   0xd   : > { %v1595_v2 = vld [vmem:[%s2001_s1 + $0xb8] sm:$0xff]  ;;  %937 = vmatpush.bf16.msra.mxu1 %v1587_v1  ;;  %v1594_v6 = vld [vmem:[%s2001_s1 + $0xb0] sm:$0xff]  ;;  %v1593_v10 = vld [vmem:[%s2001_s1 + $0xa8] sm:$0xff]  ;;  %s218_s29 = scalar_lea.vmem %s2003_s3, %s1189_s26  ;;  %s224_s6 = scalar_lea.vmem %s2004_s4, %s1189_s26 }
   0xe   : > { %v1603_v3 = vld [vmem:[%s2001_s1 + $0xf8] sm:$0xff]  ;;  %956 = vmatpush.bf16.msra.mxu2 %v1595_v2  ;;  %v1602_v7 = vld [vmem:[%s2001_s1 + $0xf0] sm:$0xff]  ;;  %v1601_v11 = vld [vmem:[%s2001_s1 + $0xe8] sm:$0xff]  ;;  %s1807_s25 = scalar_lea.vmem %s2000_s0, %s1672_s11 }
   0xf   : > { %975 = vmatpush.bf16.msra.mxu3 %v1603_v3  ;;  %v1576_v12 = vld [vmem:[%s2001_s1 + $0x20] sm:$0xff]  ;;  %v1575_v16 = vld [vmem:[%s2001_s1 + $0x18] sm:$0xff]  ;;  %v1574_v20 = vld [vmem:[%s2001_s1 + $0x10] sm:$0xff] }
  0x10   : > { %919 = vmatpush.bf16.msra.mxu0 %v1578_v4  ;;  %v1584_v13 = vld [vmem:[%s2001_s1 + $0x60] sm:$0xff]  ;;  %v1583_v17 = vld [vmem:[%s2001_s1 + $0x58] sm:$0xff]  ;;  %v1582_v21 = vld [vmem:[%s2001_s1 + $0x50] sm:$0xff] }
  0x11   : > { %938 = vmatpush.bf16.msra.mxu1 %v1586_v5  ;;  %v1592_v14 = vld [vmem:[%s2001_s1 + $0xa0] sm:$0xff]  ;;  %v1591_v18 = vld [vmem:[%s2001_s1 + $0x98] sm:$0xff]  ;;  %v1590_v22 = vld [vmem:[%s2001_s1 + $0x90] sm:$0xff] }
  0x12   : > { %957 = vmatpush.bf16.msra.mxu2 %v1594_v6  ;;  %v1600_v15 = vld [vmem:[%s2001_s1 + $0xe0] sm:$0xff]  ;;  %v1599_v19 = vld [vmem:[%s2001_s1 + $0xd8] sm:$0xff]  ;;  %v1598_v23 = vld [vmem:[%s2001_s1 + $0xd0] sm:$0xff] }
  0x13   : > { %976 = vmatpush.bf16.msra.mxu3 %v1602_v7  ;;  %v1573_v24 = vld [vmem:[%s2001_s1 + $0x8] sm:$0xff]  ;;  %v1572_v28 = vld [vmem:[%s2001_s1] sm:$0xff]  ;;  %v1204_v39 = vld [vmem:[%s1807_s25 + $0x2c] sm:$0xf0] }
  0x14   : > { %920 = vmatpush.bf16.msra.mxu0 %v1577_v8  ;;  %v1581_v25 = vld [vmem:[%s2001_s1 + $0x48] sm:$0xff]  ;;  %v1580_v29 = vld [vmem:[%s2001_s1 + $0x40] sm:$0xff]  ;;  %v1611_v40 = vld [vmem:[%s2001_s1 + $0x138] sm:$0xff] }
  0x15   : > { %939 = vmatpush.bf16.msra.mxu1 %v1585_v9  ;;  %v1589_v26 = vld [vmem:[%s2001_s1 + $0x88] sm:$0xff]  ;;  %v1588_v30 = vld [vmem:[%s2001_s1 + $0x80] sm:$0xff]  ;;  %v1619_v41 = vld [vmem:[%s2001_s1 + $0x178] sm:$0xff] }
  0x16   : > { %958 = vmatpush.bf16.msra.mxu2 %v1593_v10  ;;  %v1597_v27 = vld [vmem:[%s2001_s1 + $0xc8] sm:$0xff]  ;;  %v1596_v31 = vld [vmem:[%s2001_s1 + $0xc0] sm:$0xff]  ;;  %v1627_v46 = vld [vmem:[%s2001_s1 + $0x1b8] sm:$0xff] }
  0x17   : > { %977 = vmatpush.bf16.msra.mxu3 %v1601_v11  ;;  %v1194_v32 = vld [vmem:[%s1807_s25] sm:$0xf]  ;;  %v1558_v33 = vld [vmem:[%s1807_s25 + $0x20] sm:$0xf0]  ;;  %v1196_v35 = vld [vmem:[%s1807_s25 + $0x24] sm:$0xf0] }
  0x18   : > { %921 = vmatpush.bf16.msra.mxu0 %v1576_v12  ;;  %v1554_v34 = vld [vmem:[%s1807_s25 + $0x4] sm:$0xf]  ;;  %v1202_v36 = vld [vmem:[%s1807_s25 + $0x8] sm:$0xf]  ;;  %v1559_v37 = vld [vmem:[%s1807_s25 + $0x28] sm:$0xf0]  ;;  %v1195_v42 = vor.u32 %v1558_v33, %v1194_v32 }
  0x19   : > { %940 = vmatpush.bf16.msra.mxu1 %v1584_v13  ;;  %v1555_v38 = vld [vmem:[%s1807_s25 + $0xc] sm:$0xf]  ;;  %v1199_v43 = vor.u32 %v1554_v34, %v1196_v35  ;;  %v1203_v44 = vor.u32 %v1559_v37, %v1202_v36  ;;  %v1635_v47 = vld [vmem:[%s2001_s1 + $0x1f8] sm:$0xff]  ;;  %v1610_v48 = vld [vmem:[%s2001_s1 + $0x130] sm:$0xff] }
  0x1a   : > { %959 = vmatpush.bf16.msra.mxu2 %v1592_v14  ;;  %v1207_v45 = vor.u32 %v1555_v38, %v1204_v39  ;;  %v1618_v49 = vld [vmem:[%s2001_s1 + $0x170] sm:$0xff]  ;;  %v1609_v52 = vld [vmem:[%s2001_s1 + $0x128] sm:$0xff]  ;;  %v1608_v56 = vld [vmem:[%s2001_s1 + $0x120] sm:$0xff] }
  0x1b   : > { %978 = vmatpush.bf16.msra.mxu3 %v1600_v15  ;;  %v1626_v50 = vld [vmem:[%s2001_s1 + $0x1b0] sm:$0xff]  ;;  %v1617_v53 = vld [vmem:[%s2001_s1 + $0x168] sm:$0xff]  ;;  %v1616_v57 = vld [vmem:[%s2001_s1 + $0x160] sm:$0xff] }
  0x1c   : > { %922 = vmatpush.bf16.msra.mxu0 %v1575_v16  ;;  %v1634_v51 = vld [vmem:[%s2001_s1 + $0x1f0] sm:$0xff]  ;;  %v1625_v54 = vld [vmem:[%s2001_s1 + $0x1a8] sm:$0xff]  ;;  %v1624_v58 = vld [vmem:[%s2001_s1 + $0x1a0] sm:$0xff] }
  0x1d   : > { %941 = vmatpush.bf16.msra.mxu1 %v1583_v17  ;;  %v1633_v55 = vld [vmem:[%s2001_s1 + $0x1e8] sm:$0xff]  ;;  %v1632_v59 = vld [vmem:[%s2001_s1 + $0x1e0] sm:$0xff]  ;;  %v1232_v63 = vld [vmem:[%s1807_s25 + $0x6c] sm:$0xf0] }
  0x1e   : > { %960 = vmatpush.bf16.msra.mxu2 %v1591_v18  ;;  %v1230_v60 = vld [vmem:[%s1807_s25 + $0x48] sm:$0xf]  ;;  %v1567_v61 = vld [vmem:[%s1807_s25 + $0x68] sm:$0xf0]  ;;  %v1238_v0 = vld [vmem:[%s1807_s25 + $0x50] sm:$0xf] }
  0x1f   : > { %979 = vmatpush.bf16.msra.mxu3 %v1599_v19  ;;  %v1563_v62 = vld [vmem:[%s1807_s25 + $0x4c] sm:$0xf]  ;;  %v1568_v1 = vld [vmem:[%s1807_s25 + $0x70] sm:$0xf0]  ;;  %v1240_v3 = vld [vmem:[%s1807_s25 + $0x74] sm:$0xf0]  ;;  %v1231_v6 = vor.u32 %v1567_v61, %v1230_v60 }
  0x20   : > { %923 = vmatpush.bf16.msra.mxu0 %v1574_v20  ;;  %v1564_v2 = vld [vmem:[%s1807_s25 + $0x54] sm:$0xf]  ;;  %v1607_v4 = vld [vmem:[%s2001_s1 + $0x118] sm:$0xff]  ;;  %v1235_v7 = vor.u32 %v1563_v62, %v1232_v63  ;;  %v1239_v8 = vor.u32 %v1568_v1, %v1238_v0  ;;  %v1605_v16 = vld [vmem:[%s2001_s1 + $0x108] sm:$0xff] }
  0x21   : > { %942 = vmatpush.bf16.msra.mxu1 %v1582_v21  ;;  %v1615_v5 = vld [vmem:[%s2001_s1 + $0x158] sm:$0xff]  ;;  %v1243_v9 = vor.u32 %v1564_v2, %v1240_v3  ;;  %v1606_v12 = vld [vmem:[%s2001_s1 + $0x110] sm:$0xff]  ;;  %v1613_v17 = vld [vmem:[%s2001_s1 + $0x148] sm:$0xff] }
  0x22   : > { %961 = vmatpush.bf16.msra.mxu2 %v1590_v22  ;;  %v1623_v10 = vld [vmem:[%s2001_s1 + $0x198] sm:$0xff]  ;;  %v1614_v13 = vld [vmem:[%s2001_s1 + $0x150] sm:$0xff]  ;;  %v1621_v18 = vld [vmem:[%s2001_s1 + $0x188] sm:$0xff] }
  0x23   : > { %980 = vmatpush.bf16.msra.mxu3 %v1598_v23  ;;  %v1631_v11 = vld [vmem:[%s2001_s1 + $0x1d8] sm:$0xff]  ;;  %v1622_v14 = vld [vmem:[%s2001_s1 + $0x190] sm:$0xff]  ;;  %v1629_v19 = vld [vmem:[%s2001_s1 + $0x1c8] sm:$0xff] }
  0x24   : > { %924 = vmatpush.bf16.msra.mxu0 %v1573_v24  ;;  %v1630_v15 = vld [vmem:[%s2001_s1 + $0x1d0] sm:$0xff]  ;;  %v1604_v20 = vld [vmem:[%s2001_s1 + $0x100] sm:$0xff]  ;;  %v1641_v38 = vld [vmem:[%s2001_s1 + $0x228] sm:$0xff] }
  0x25   : > { %943 = vmatpush.bf16.msra.mxu1 %v1581_v25  ;;  %v1612_v21 = vld [vmem:[%s2001_s1 + $0x140] sm:$0xff]  ;;  %v1210_v24 = vld [vmem:[%s1807_s25 + $0x10] sm:$0xf]  ;;  %v1560_v25 = vld [vmem:[%s1807_s25 + $0x30] sm:$0xf0] }
  0x26   : > { %962 = vmatpush.bf16.msra.mxu2 %v1589_v26  ;;  %v1620_v22 = vld [vmem:[%s2001_s1 + $0x180] sm:$0xff]  ;;  %v1643_v26 = vld [vmem:[%s2001_s1 + $0x238] sm:$0xff]  ;;  %v1211_v33 = vor.u32 %v1560_v25, %v1210_v24  ;;  %v1642_v37 = vld [vmem:[%s2001_s1 + $0x230] sm:$0xff] }
  0x27   : > { %981 = vmatpush.bf16.msra.mxu3 %v1597_v27  ;;  %v1628_v23 = vld [vmem:[%s2001_s1 + $0x1c0] sm:$0xff]  ;;  %v1556_v27 = vld [vmem:[%s1807_s25 + $0x14] sm:$0xf] }
  0x28   : > { %925 = vmatpush.bf16.msra.mxu0 %v1572_v28  ;;  %v1212_v28 = vld [vmem:[%s1807_s25 + $0x34] sm:$0xf0]  ;;  %v1220_v32 = vld [vmem:[%s1807_s25 + $0x3c] sm:$0xf0] }
  0x29   : > { %944 = vmatpush.bf16.msra.mxu1 %v1580_v29  ;;  %v1218_v29 = vld [vmem:[%s1807_s25 + $0x18] sm:$0xf]  ;;  %v1215_v34 = vor.u32 %v1556_v27, %v1212_v28  ;;  %v1640_v39 = vld [vmem:[%s2001_s1 + $0x220] sm:$0xff] }
  0x2a   : > { %963 = vmatpush.bf16.msra.mxu2 %v1588_v30  ;;  %v1561_v30 = vld [vmem:[%s1807_s25 + $0x38] sm:$0xf0] }
  0x2b   : > { %982 = vmatpush.bf16.msra.mxu3 %v1596_v31  ;;  %926 = vmatmul.bf16.vlgmr.msra.gmra.mxu0 %v1195_v42  ;;  %v1557_v31 = vld [vmem:[%s1807_s25 + $0x1c] sm:$0xf]  ;;  %v1219_v35 = vor.u32 %v1561_v30, %v1218_v29 }
  0x2c   : > { %994 = vmatpush.bf16.msrb.mxu0 %v1611_v40  ;;  %945 = vmatmul.bf16.vlgmr.msra.gmra.mxu1 %v1199_v43  ;;  %v1223_v36 = vor.u32 %v1557_v31, %v1220_v32  ;;  %v1246_v40 = vld [vmem:[%s1807_s25 + $0x58] sm:$0xf]  ;;  %v1565_v42 = vld [vmem:[%s1807_s25 + $0x5c] sm:$0xf]  ;;  %v1248_v43 = vld [vmem:[%s1807_s25 + $0x7c] sm:$0xf0] }
  0x2d   : > { %1013 = vmatpush.bf16.msrb.mxu1 %v1619_v41  ;;  %964 = vmatmul.bf16.vlgmr.msra.gmra.mxu2 %v1203_v44  ;;  %v1569_v41 = vld [vmem:[%s1807_s25 + $0x78] sm:$0xf0]  ;;  %v1254_v44 = vld [vmem:[%s1807_s25 + $0x60] sm:$0xf] }
  0x2e   : > { %983 = vmatmul.bf16.vlgmr.msra.gmra.mxu3 %v1207_v45  ;;  %1032 = vmatpush.bf16.msrb.mxu2 %v1627_v46  ;;  %v1570_v45 = vld [vmem:[%s1807_s25 + $0x80] sm:$0xf0]  ;;  %v1639_v46 = vld [vmem:[%s2001_s1 + $0x218] sm:$0xff] }
  0x2f   : > { %1051 = vmatpush.bf16.msrb.mxu3 %v1635_v47  ;;  %v1566_v47 = vld [vmem:[%s1807_s25 + $0x64] sm:$0xf] }
  0x30   : > { %995 = vmatpush.bf16.msrb.mxu0 %v1610_v48  ;;  %v1256_v48 = vld [vmem:[%s1807_s25 + $0x84] sm:$0xf0] }
  0x31   : > { %1014 = vmatpush.bf16.msrb.mxu1 %v1618_v49  ;;  %v1247_v49 = vor.u32 %v1569_v41, %v1246_v40 }
  0x32   : > { %1033 = vmatpush.bf16.msrb.mxu2 %v1626_v50  ;;  %v1251_v50 = vor.u32 %v1565_v42, %v1248_v43 }
  0x33   : > { %1052 = vmatpush.bf16.msrb.mxu3 %v1634_v51  ;;  %v1255_v51 = vor.u32 %v1570_v45, %v1254_v44 }
  0x34   : > { %996 = vmatpush.bf16.msrb.mxu0 %v1609_v52  ;;  %v1259_v52 = vor.u32 %v1566_v47, %v1256_v48 }
  0x35   : > { %1015 = vmatpush.bf16.msrb.mxu1 %v1617_v53  ;;  %v1638_v53 = vld [vmem:[%s2001_s1 + $0x210] sm:$0xff] }
  0x36   : > { %1034 = vmatpush.bf16.msrb.mxu2 %v1625_v54  ;;  %v1637_v54 = vld [vmem:[%s2001_s1 + $0x208] sm:$0xff] }
  0x37   : > { %1053 = vmatpush.bf16.msrb.mxu3 %v1633_v55  ;;  %v1636_v55 = vld [vmem:[%s2001_s1 + $0x200] sm:$0xff] }
  0x38   : > { %997 = vmatpush.bf16.msrb.mxu0 %v1608_v56  ;;  %v1226_v56 = vld [vmem:[%s1807_s25 + $0x20] sm:$0xf] }
  0x39   : > { %1016 = vmatpush.bf16.msrb.mxu1 %v1616_v57  ;;  %v1562_v57 = vld [vmem:[%s1807_s25 + $0x40] sm:$0xf0] }
  0x3a   : > { %1035 = vmatpush.bf16.msrb.mxu2 %v1624_v58  ;;  %v1262_v58 = vld [vmem:[%s1807_s25 + $0x68] sm:$0xf]  ;;  %v1227_v60 = vor.u32 %v1562_v57, %v1226_v56 }
  0x3b   : > { %1054 = vmatpush.bf16.msrb.mxu3 %v1632_v59  ;;  %931 = vmatmul.bf16.gmra.mxu0 %v1231_v6  ;;  %v1571_v59 = vld [vmem:[%s1807_s25 + $0x88] sm:$0xf0] }
  0x3c   : > { %998 = vmatpush.bf16.msrb.mxu0 %v1607_v4  ;;  %950 = vmatmul.bf16.gmra.mxu1 %v1235_v7  ;;  %v1263_v61 = vor.u32 %v1571_v59, %v1262_v58  ;;  %v1645_v58 = vld [vmem:[%s218_s29] sm:$0xff]   ;;  %v1662_v59 = vld [vmem:[%s218_s29 + $0x8] sm:$0xff]  }
  0x3d   : > { %1017 = vmatpush.bf16.msrb.mxu1 %v1615_v5  ;;  %969 = vmatmul.bf16.gmra.mxu2 %v1239_v8 }
  0x3e   : > { %988 = vmatmul.bf16.gmra.mxu3 %v1243_v9  ;;  %1036 = vmatpush.bf16.msrb.mxu2 %v1623_v10 }
  0x3f   : > { %1055 = vmatpush.bf16.msrb.mxu3 %v1631_v11 }
  0x40   : > { %999 = vmatpush.bf16.msrb.mxu0 %v1606_v12 }
  0x41   : > { %1018 = vmatpush.bf16.msrb.mxu1 %v1614_v13 }
  0x42   : > { %1037 = vmatpush.bf16.msrb.mxu2 %v1622_v14 }
  0x43   : > { %1056 = vmatpush.bf16.msrb.mxu3 %v1630_v15 }
  0x44   : > { %1000 = vmatpush.bf16.msrb.mxu0 %v1605_v16 }
  0x45   : > { %1019 = vmatpush.bf16.msrb.mxu1 %v1613_v17 }
  0x46   : > { %1038 = vmatpush.bf16.msrb.mxu2 %v1621_v18 }
  0x47   : > { %1057 = vmatpush.bf16.msrb.mxu3 %v1629_v19 }
  0x48   : > { %1001 = vmatpush.bf16.msrb.mxu0 %v1604_v20  ;;  %v1681_v20 = vld [vmem:[%s2002_s2] ss:$0 sm:$0xff] }
  0x49   : > { %1020 = vmatpush.bf16.msrb.mxu1 %v1612_v21 }
  0x4a   : > { %1039 = vmatpush.bf16.msrb.mxu2 %v1620_v22 }
  0x4b   : > { %1058 = vmatpush.bf16.msrb.mxu3 %v1628_v23  ;;  %1002 = vmatmul.bf16.vlgmr.msrb.gmra.mxu0 %v1211_v33 }
  0x4c   : > { %1070 = vmatpush.bf16.msra.mxu0 %v1643_v26  ;;  %1021 = vmatmul.bf16.vlgmr.msrb.gmra.mxu1 %v1215_v34 }
  0x4d   : > { %1664 = vmatpush.bf16.msra.mxu1 %v1643_v26  ;;  %1040 = vmatmul.bf16.vlgmr.msrb.gmra.mxu2 %v1219_v35 }
  0x4e   : > { %1059 = vmatmul.bf16.vlgmr.msrb.gmra.mxu3 %v1223_v36 }
  0x50   : > { %1071 = vmatpush.bf16.msra.mxu0 %v1642_v37 }
  0x51   : > { %1665 = vmatpush.bf16.msra.mxu1 %v1642_v37 }
  0x54   : > { %1072 = vmatpush.bf16.msra.mxu0 %v1641_v38 }
  0x55   : > { %1666 = vmatpush.bf16.msra.mxu1 %v1641_v38 }
  0x58   : > { %1073 = vmatpush.bf16.msra.mxu0 %v1640_v39 }
  0x59   : > { %1667 = vmatpush.bf16.msra.mxu1 %v1640_v39 }
  0x5b   : > { %1007 = vmatmul.bf16.gmra.mxu0 %v1247_v49 }
  0x5c   : > { %1074 = vmatpush.bf16.msra.mxu0 %v1639_v46  ;;  %1026 = vmatmul.bf16.gmra.mxu1 %v1251_v50 }
  0x5d   : > { %1668 = vmatpush.bf16.msra.mxu1 %v1639_v46  ;;  %1045 = vmatmul.bf16.gmra.mxu2 %v1255_v51 }
  0x5e   : > { %1064 = vmatmul.bf16.gmra.mxu3 %v1259_v52 }
  0x60   : > { %1075 = vmatpush.bf16.msra.mxu0 %v1638_v53 }
  0x61   : > { %1669 = vmatpush.bf16.msra.mxu1 %v1638_v53 }
  0x64   : > { %1076 = vmatpush.bf16.msra.mxu0 %v1637_v54 }
  0x65   : > { %1670 = vmatpush.bf16.msra.mxu1 %v1637_v54 }
  0x68   : > { %1077 = vmatpush.bf16.msra.mxu0 %v1636_v55 }
  0x69   : > { %1671 = vmatpush.bf16.msra.mxu1 %v1636_v55 }
  0x6b   : > { %1078 = vmatmul.bf16.vlgmr.msra.gmra.mxu0 %v1227_v60 }
  0x6c   : > { %1083 = vmatmul.bf16.vlgmr.msra.gmra.mxu1 %v1263_v61 }
  0xa8   : > { %v927_v62 = vpop.f32.mrf.mxu0 }
  0xa9   : > { %v946_v63 = vpop.f32.mrf.mxu1  ;;  %v928_v21 = vadd.f32 %v1681_v20, %v927_v62 }
  0xab   : > { %v947_v27 = vadd.f32 %v946_v63, %v928_v21 }
  0xb0   : > { %v965_v0 = vpop.f32.mrf.mxu2  ;;  %v929_v2 = vpop.f32.mrf.mxu0 }
  0xb1   : > { %v984_v1 = vpop.f32.mrf.mxu3  ;;  %v948_v3 = vpop.f32.mrf.mxu1  ;;  %v930_v28 = vadd.f32 %v1681_v20, %v929_v2  ;;  %v966_v31 = vadd.f32 %v965_v0, %v947_v27  ;;  %v1646_v2 = vunpack.c.l.bf16 %v1645_v58 }
  0xb3   : > { %v949_v33 = vadd.f32 %v948_v3, %v930_v28  ;;  %v985_v35 = vadd.f32 %v984_v1, %v966_v31 }
  0xb8   : > { %v967_v4 = vpop.f32.mrf.mxu2  ;;  %v932_v6 = vpop.f32.mrf.mxu0 }
  0xb9   : > { %v986_v5 = vpop.f32.mrf.mxu3  ;;  %v951_v7 = vpop.f32.mrf.mxu1  ;;  %v933_v22 = vadd.f32 %v1681_v20, %v932_v6  ;;  %v968_v36 = vadd.f32 %v967_v4, %v949_v33  ;;  %v1650_v4 = vunpack.c.l.bf16 %v1662_v59 }
  0xbb   : > { %v952_v29 = vadd.f32 %v951_v7, %v933_v22  ;;  %v987_v45 = vadd.f32 %v986_v5, %v968_v36  ;;  %v1647_v7 = vunpack.c.h.bf16 %v1645_v58 }
  0xc0   : > { %v970_v8 = vpop.f32.mrf.mxu2  ;;  %v934_v10 = vpop.f32.mrf.mxu0 }
  0xc1   : > { %v989_v9 = vpop.f32.mrf.mxu3  ;;  %v953_v11 = vpop.f32.mrf.mxu1  ;;  %v935_v30 = vadd.f32 %v1681_v20, %v934_v10  ;;  %v971_v32 = vadd.f32 %v970_v8, %v952_v29  ;;  %v1651_v8 = vunpack.c.h.bf16 %v1662_v59 }
  0xc3   : > { %v954_v34 = vadd.f32 %v953_v11, %v935_v30  ;;  %v990_v37 = vadd.f32 %v989_v9, %v971_v32 }
  0xc8   : > { %v972_v12 = vpop.f32.mrf.mxu2  ;;  %v1003_v14 = vpop.f32.mrf.mxu0 }
  0xc9   : > { %v991_v13 = vpop.f32.mrf.mxu3  ;;  %v1022_v15 = vpop.f32.mrf.mxu1  ;;  %v973_v38 = vadd.f32 %v972_v12, %v954_v34  ;;  %v1004_v42 = vadd.f32 %v1003_v14, %v985_v35 }
  0xcb   : > { %v992_v46 = vadd.f32 %v991_v13, %v973_v38  ;;  %v1023_v47 = vadd.f32 %v1022_v15, %v1004_v42 }
  0xd0   : > { %v1041_v16 = vpop.f32.mrf.mxu2  ;;  %v1005_v18 = vpop.f32.mrf.mxu0 }
  0xd1   : > { %v1060_v17 = vpop.f32.mrf.mxu3  ;;  %v1024_v19 = vpop.f32.mrf.mxu1  ;;  %v1006_v48 = vadd.f32 %v1005_v18, %v987_v45  ;;  %v1042_v51 = vadd.f32 %v1041_v16, %v1023_v47 }
  0xd3   : > { %v1025_v56 = vadd.f32 %v1024_v19, %v1006_v48  ;;  %v1061_v60 = vadd.f32 %v1060_v17, %v1042_v51 }
  0xd8   : > { %v1043_v23 = vpop.f32.mrf.mxu2  ;;  %v1008_v25 = vpop.f32.mrf.mxu0 }
  0xd9   : > { %v1062_v24 = vpop.f32.mrf.mxu3  ;;  %v1027_v26 = vpop.f32.mrf.mxu1  ;;  %v1009_v43 = vadd.f32 %v1008_v25, %v990_v37  ;;  %v1044_v61 = vadd.f32 %v1043_v23, %v1025_v56 }
  0xdb   : > { %v1028_v49 = vadd.f32 %v1027_v26, %v1009_v43  ;;  %v1063_v5 = vadd.f32 %v1062_v24, %v1044_v61 }
  0xe0   : > { %v1046_v39 = vpop.f32.mrf.mxu2  ;;  %v1010_v40 = vpop.f32.mrf.mxu0 }
  0xe1   : > { %v1029_v41 = vpop.f32.mrf.mxu1  ;;  %v1065_v44 = vpop.f32.mrf.mxu3  ;;  %v1011_v50 = vadd.f32 %v1010_v40, %v992_v46  ;;  %v1047_v52 = vadd.f32 %v1046_v39, %v1028_v49 }
  0xe3   : > { %v1030_v57 = vadd.f32 %v1029_v41, %v1011_v50  ;;  %v1066_v62 = vadd.f32 %v1065_v44, %v1047_v52 }
  0xe8   : > { %v1048_v53 = vpop.f32.mrf.mxu2  ;;  %v1079_v54 = vpop.f32.mrf.mxu0 }
  0xe9   : > { %v1084_v55 = vpop.f32.mrf.mxu1  ;;  %v1049_v63 = vadd.f32 %v1048_v53, %v1030_v57  ;;  %v1067_v0 = vpop.f32.mrf.mxu3  ;;  %v1080_v1 = vadd.f32 %v1079_v54, %v1061_v60 }
  0xea   : > { %v1085_v3 = vadd.f32 %v1084_v55, %v1066_v62 }
  0xeb   : > { %v1068_v6 = vadd.f32 %v1067_v0, %v1049_v63  ;;  %v1097_v11 = vadd.f32 %v1646_v2, %v1080_v1 }
  0xec   : > { %v1099_v12 = vadd.f32 %v1650_v4, %v1085_v3 }
  0xed   : > { %v1101_v17 = vmax.f32 %v1097_v11, 0.0 }
  0xee   : > { %v1103_v18 = vmax.f32 %v1099_v12, 0.0 }
  0xf0   : > { %v1081_v9 = vpop.f32.mrf.mxu0 }
  0xf1   : > { %v1086_v10 = vpop.f32.mrf.mxu1  ;;  %v1082_v13 = vadd.f32 %v1081_v9, %v1063_v5 }
  0xf2   : > { %v1087_v14 = vadd.f32 %v1086_v10, %v1068_v6 }
  0xf3   : > { %v1098_v15 = vadd.f32 %v1647_v7, %v1082_v13 }
  0xf4   : > { %v1100_v16 = vadd.f32 %v1651_v8, %v1087_v14 }
  0xf5   : > { %v1102_v19 = vmax.f32 %v1098_v15, 0.0 }
  0xf6   : > { %v1104_v20 = vmax.f32 %v1100_v16, 0.0 }
  0xf7   : > { %v1655_v21 = vpack.c.bf16 %v1102_v19, %v1101_v17 }
  0xf8   : > { %v1660_v22 = vpack.c.bf16 %v1104_v20, %v1103_v18 }
  0xf9   : > { %1656 = vst [vmem:[%s224_s6] sm:$0xff] %v1655_v21  }
  0xfa   : > { %1663 = vst [vmem:[%s224_s6 + $0x8] sm:$0xff] %v1660_v22  }
  0xfb PF: > { %s14_s15 = sadd.s32 1, %s1688_s15  }
  0xfc   : > { %p11_p4 = scmp.ge.s32.totalorder %s14_s15, 4  }
  0xfe   :  { %13 = sbr.rel (!%p11_p4) target bundleno = 1 (0x1), region = 69 }

</bundles_post_ra>
